<compile_context>
chip_gen: v6e
topology: v6e:2x2x1
jax: 0.10.0
libtpu: 0.0.40
codegen_flags: <defaults>
</compile_context>

<pallas_src>
import functools

import jax
import jax.numpy as jnp
from jax.experimental import pallas as pl
from jax.experimental.pallas import tpu as pltpu

C_PAD = 128                       # lane-dense channel padding
_EPS = 1e-5                       # PyTorch BatchNorm2d default eps
_VMEM_LIMIT = 32 * 1024 * 1024    # explicit scoped-VMEM limit (safe on v5e/v6e/v7x)


# ----------------------------- Pallas kernels ------------------------------

def _conv_stats_kernel(p0, p1, p2, p3, w_ref, bias_ref, gamma_ref, beta_ref,
                       a_out, b_out, s_acc, q_acc, *, m_total):
    """Pass 1: accumulate per-channel sum / sumsq of conv output (no bias) over all
    M rows; at the last grid step emit the fused BN affine:  y = u*a + b, u = P@W."""
    t = pl.program_id(0)

    @pl.when(t == 0)
    def _():
        s_acc[...] = jnp.zeros_like(s_acc)
        q_acc[...] = jnp.zeros_like(q_acc)

    w = w_ref[...]
    s = jnp.zeros((1, C_PAD), jnp.float32)
    q = jnp.zeros((1, C_PAD), jnp.float32)
    for p_ref in (p0, p1, p2, p3):                       # 4 pool positions of this tile
        u = jnp.dot(p_ref[...], w, preferred_element_type=jnp.float32)
        s = s + jnp.sum(u, axis=0, keepdims=True)
        q = q + jnp.sum(u * u, axis=0, keepdims=True)
    s_acc[...] += s
    q_acc[...] += q

    @pl.when(t == pl.num_programs(0) - 1)
    def _():
        inv_m = 1.0 / float(m_total)
        mean_u = s_acc[...] * inv_m                      # mean of P@W (bias excluded)
        var = q_acc[...] * inv_m - mean_u * mean_u       # biased variance (bias-invariant)
        a = gamma_ref[...] * jax.lax.rsqrt(var + _EPS)
        mean_conv = mean_u + bias_ref[...]               # mean of conv incl. bias
        a_out[...] = a
        # y = a*(u + bias) + beta - a*mean_conv  ==  a*u + b   (conv bias cancels)
        b_out[...] = beta_ref[...] + (bias_ref[...] - mean_conv) * a


def _conv_bn_relu_pool_kernel(p0, p1, p2, p3, w_ref, a_ref, b_ref, o_ref):
    """Pass 2: conv + BN affine + ReLU + fused 2x2 max-pool for one tile of pooled rows.
    relu(max_j(.)) == max_j(relu(.)), and the affine is applied before the max so a
    negative BN gamma is handled exactly like PyTorch's conv->BN->ReLU->pool order."""
    w = w_ref[...]
    a = a_ref[...]
    b = b_ref[...]
    z = None
    for p_ref in (p0, p1, p2, p3):
        u = jnp.dot(p_ref[...], w, preferred_element_type=jnp.float32)
        zj = u * a + b
        z = zj if z is None else jnp.maximum(z, zj)
    o_ref[...] = jnp.maximum(z, 0.0)


def _fc_softmax_kernel(x_ref, w_ref, b_ref, o_ref):
    """Linear (padded to 128 output lanes) + softmax.  Padded logits carry bias -1e30,
    so they contribute exp(.)=0 and the real classes form a proper distribution."""
    logits = jnp.dot(x_ref[...], w_ref[...],
                     preferred_element_type=jnp.float32) + b_ref[...]
    m = jnp.max(logits, axis=-1, keepdims=True)
    e = jnp.exp(logits - m)
    o_ref[...] = e / jnp.sum(e, axis=-1, keepdims=True)


# ----------------------------- pallas_call wrappers ------------------------

def _pick_tile(m, target=512):
    """Largest tile <= target that divides m and is a multiple of 8; else the full m."""
    if m <= target:
        return m
    for t in range(target, 7, -1):
        if m % t == 0 and t % 8 == 0:
            return t
    return m


def _conv_layer(groups, w_pad, bias_p, gamma_p, beta_p, m_total):
    """groups: 4 patch arrays (M4, K) bf16, one per 2x2 pool position.
    Returns pooled activation (M4, C_PAD) f32, rows ordered (b, h/2, w/2)."""
    m4, k = groups[0].shape
    tm = _pick_tile(m4)
    grid = (m4 // tm,)

    p_spec = pl.BlockSpec((tm, k), lambda i: (i, 0))
    w_spec = pl.BlockSpec((k, C_PAD), lambda i: (0, 0))
    v_spec = pl.BlockSpec((1, C_PAD), lambda i: (0, 0))

    # pass 1: global (whole-batch) BN statistics -> per-channel affine (a, b)
    a_vec, b_vec = pl.pallas_call(
        functools.partial(_conv_stats_kernel, m_total=m_total),
        out_shape=(jax.ShapeDtypeStruct((1, C_PAD), jnp.float32),
                   jax.ShapeDtypeStruct((1, C_PAD), jnp.float32)),
        grid=grid,
        in_specs=[p_spec] * 4 + [w_spec, v_spec, v_spec, v_spec],
        out_specs=(v_spec, v_spec),
        scratch_shapes=[pltpu.VMEM((1, C_PAD), jnp.float32),
                        pltpu.VMEM((1, C_PAD), jnp.float32)],
        compiler_params=pltpu.CompilerParams(
            dimension_semantics=("arbitrary",),
            vmem_limit_bytes=_VMEM_LIMIT),
    )(*groups, w_pad, bias_p, gamma_p, beta_p)

    # pass 2: conv + BN + ReLU + fused max-pool, lane-dense (tm, 128) stores
    pooled = pl.pallas_call(
        _conv_bn_relu_pool_kernel,
        out_shape=jax.ShapeDtypeStruct((m4, C_PAD), jnp.float32),
        grid=grid,
        in_specs=[p_spec] * 4 + [w_spec, v_spec, v_spec],
        out_specs=pl.BlockSpec((tm, C_PAD), lambda i: (i, 0)),
        compiler_params=pltpu.CompilerParams(
            dimension_semantics=("parallel",),
            vmem_limit_bytes=_VMEM_LIMIT),
    )(*groups, w_pad, a_vec, b_vec)
    return pooled


def _fc_softmax(x_fc, w_pad, b_pad):
    bsz, f = x_fc.shape
    tb = _pick_tile(bsz, target=256)
    return pl.pallas_call(
        _fc_softmax_kernel,
        out_shape=jax.ShapeDtypeStruct((bsz, C_PAD), jnp.float32),
        grid=(bsz // tb,),
        in_specs=[pl.BlockSpec((tb, f), lambda i: (i, 0)),
                  pl.BlockSpec((f, C_PAD), lambda i: (0, 0)),
                  pl.BlockSpec((1, C_PAD), lambda i: (0, 0))],
        out_specs=pl.BlockSpec((tb, C_PAD), lambda i: (i, 0)),
        compiler_params=pltpu.CompilerParams(
            dimension_semantics=("parallel",),
            vmem_limit_bytes=_VMEM_LIMIT),
    )(x_fc, w_pad, b_pad)


# ----------------------------- JAX glue (layout plumbing) ------------------

def _im2col_pool_groups(x_nhwc, kh=5, kw=5, pad=2):
    """NHWC input -> 4 patch arrays (B*(H//2)*(W//2), kh*kw*C), one per 2x2 pool
    position; K ordered (kh, kw, cin); rows ordered (b, h//2, w//2)."""
    B, H, W, C = x_nhwc.shape
    xp = jnp.pad(x_nhwc, ((0, 0), (pad, pad), (pad, pad), (0, 0)))
    cols = [xp[:, i:i + H, j:j + W, :] for i in range(kh) for j in range(kw)]
    p = jnp.concatenate(cols, axis=-1)                       # (B, H, W, kh*kw*C)
    k = kh * kw * C
    m4 = B * (H // 2) * (W // 2)
    return [p[:, ph::2, pw::2, :].reshape(m4, k)
            for ph in range(2) for pw in range(2)]


def _prep_conv_w(w):
    """PyTorch (Cout, Cin, KH, KW) -> (KH*KW*Cin, C_PAD) bf16, zero-padded columns."""
    cout = w.shape[0]
    wk = jnp.transpose(w, (2, 3, 1, 0)).reshape(-1, cout)
    return jnp.pad(wk, ((0, 0), (0, C_PAD - cout))).astype(jnp.bfloat16)


def _pad_row(v):
    """(C,) -> (1, C_PAD) f32, zero-padded lanes."""
    return jnp.pad(v, (0, C_PAD - v.shape[0])).reshape(1, C_PAD).astype(jnp.float32)


def _prep_fc_w(wfc, cout2=32, hw=7):
    """(NC, cout2*hw*hw) with PyTorch NCHW-flatten column order -> (hw*hw*C_PAD, C_PAD)
    bf16 whose rows match the (h, w, padded-c) order of the layer-2 kernel output."""
    nc = wfc.shape[0]
    w = wfc.reshape(nc, cout2, hw, hw).transpose(2, 3, 1, 0)        # (h, w, c, nc)
    w = jnp.pad(w, ((0, 0), (0, 0), (0, C_PAD - cout2), (0, C_PAD - nc)))
    return w.reshape(hw * hw * C_PAD, C_PAD).astype(jnp.bfloat16)


def _prep_fc_b(bfc):
    nc = bfc.shape[0]
    pad = jnp.full((C_PAD - nc,), -1e30, jnp.float32)               # mask padded logits
    return jnp.concatenate([bfc.astype(jnp.float32), pad]).reshape(1, C_PAD)


# ----------------------------- full forward --------------------------------

@jax.jit
def convnet_forward(x, params):
    (w1, b1, g1, be1, w2, b2, g2, be2, wfc, bfc) = params
    B = x.shape[0]

    # one-time NCHW -> NHWC (trivial for Cin=1); bf16 for the matmul inputs
    x_nhwc = jnp.transpose(x, (0, 2, 3, 1)).astype(jnp.bfloat16)

    # layer1: conv(1->16, k5, pad2) + BN + ReLU + maxpool2 (fused)
    pg1 = _im2col_pool_groups(x_nhwc)                               # 4 x (B*196, 25)
    pooled1 = _conv_layer(pg1, _prep_conv_w(w1), _pad_row(b1),
                          _pad_row(g1), _pad_row(be1),
                          m_total=B * 28 * 28)                      # (B*196, 128)
    act1 = pooled1.reshape(B, 14, 14, C_PAD)[..., :16].astype(jnp.bfloat16)

    # layer2: conv(16->32, k5, pad2) + BN + ReLU + maxpool2 (fused)
    pg2 = _im2col_pool_groups(act1)                                 # 4 x (B*49, 400)
    pooled2 = _conv_layer(pg2, _prep_conv_w(w2), _pad_row(b2),
                          _pad_row(g2), _pad_row(be2),
                          m_total=B * 14 * 14)                      # (B*49, 128)

    # fc1 + Softmax(dim=1); PyTorch NCHW flatten folded into the padded FC weight
    x_fc = pooled2.reshape(B, 7 * 7 * C_PAD).astype(jnp.bfloat16)   # pure reshape
    probs = _fc_softmax(x_fc, _prep_fc_w(wfc), _prep_fc_b(bfc))     # (B, 128)
    return probs[:, :wfc.shape[0]]                                  # (B, 10)


def init_params(key):
    ks = jax.random.split(key, 10)
    w1 = 0.1 * jax.random.normal(ks[0], (16, 1, 5, 5), jnp.float32)
    b1 = 0.1 * jax.random.normal(ks[1], (16,), jnp.float32)
    g1 = 1.0 + 0.1 * jax.random.normal(ks[2], (16,), jnp.float32)
    be1 = 0.1 * jax.random.normal(ks[3], (16,), jnp.float32)
    w2 = 0.05 * jax.random.normal(ks[4], (32, 16, 5, 5), jnp.float32)
    b2 = 0.1 * jax.random.normal(ks[5], (32,), jnp.float32)
    g2 = 1.0 + 0.1 * jax.random.normal(ks[6], (32,), jnp.float32)
    be2 = 0.1 * jax.random.normal(ks[7], (32,), jnp.float32)
    wfc = 0.05 * jax.random.normal(ks[8], (10, 7 * 7 * 32), jnp.float32)
    bfc = 0.1 * jax.random.normal(ks[9], (10,), jnp.float32)
    return (w1, b1, g1, be1, w2, b2, g2, be2, wfc, bfc)


if __name__ == "__main__":
    key = jax.random.PRNGKey(0)
    kx, kp = jax.random.split(key)
    # Spatial size must be 28x28 so 7*7*32 matches fc1 (as in the module).
    x = jax.random.normal(kx, (2, 1, 28, 28), jnp.float32)
    params = init_params(kp)

    out = jax.block_until_ready(convnet_forward(x, params))

    assert out.shape == (2, 10)
    assert bool(jnp.all(jnp.isfinite(out)))
    assert bool(jnp.allclose(jnp.sum(out, axis=1), 1.0, atol=1e-5))
    print("KERNEL_OK")
</pallas_src>

<mosaic_0001>
module attributes {stable_mosaic.version = 11 : i64} {
  func.func @_conv_stats_kernel(%arg0: i32, %arg1: memref<392x25xbf16, #tpu.memory_space<vmem>>, %arg2: memref<392x25xbf16, #tpu.memory_space<vmem>>, %arg3: memref<392x25xbf16, #tpu.memory_space<vmem>>, %arg4: memref<392x25xbf16, #tpu.memory_space<vmem>>, %arg5: memref<25x128xbf16, #tpu.memory_space<vmem>>, %arg6: memref<1x128xf32, #tpu.memory_space<vmem>>, %arg7: memref<1x128xf32, #tpu.memory_space<vmem>>, %arg8: memref<1x128xf32, #tpu.memory_space<vmem>>, %arg9: memref<1x128xf32, #tpu.memory_space<vmem>>, %arg10: memref<1x128xf32, #tpu.memory_space<vmem>>, %arg11: memref<1x128xf32, #tpu.memory_space<vmem>>, %arg12: memref<1x128xf32, #tpu.memory_space<vmem>>) attributes {dimension_semantics = [#tpu.dimension_semantics<arbitrary>], iteration_bounds = array<i64: 1>, scalar_prefetch = 0 : i64, scratch_operands = 2 : i64, tpu.core_type = #tpu.core_type<tc>, window_params = [{transform_indices = @transform_0, window_bounds = array<i64: 392, 25>}, {transform_indices = @transform_1, window_bounds = array<i64: 392, 25>}, {transform_indices = @transform_2, window_bounds = array<i64: 392, 25>}, {transform_indices = @transform_3, window_bounds = array<i64: 392, 25>}, {pipeline_mode = #tpu.pipeline_mode<synchronous>, transform_indices = @transform_4, window_bounds = array<i64: 25, 128>}, {pipeline_mode = #tpu.pipeline_mode<synchronous>, transform_indices = @transform_5, window_bounds = array<i64: 1, 128>}, {pipeline_mode = #tpu.pipeline_mode<synchronous>, transform_indices = @transform_6, window_bounds = array<i64: 1, 128>}, {pipeline_mode = #tpu.pipeline_mode<synchronous>, transform_indices = @transform_7, window_bounds = array<i64: 1, 128>}, {pipeline_mode = #tpu.pipeline_mode<synchronous>, transform_indices = @transform_8, window_bounds = array<i64: 1, 128>}, {pipeline_mode = #tpu.pipeline_mode<synchronous>, transform_indices = @transform_9, window_bounds = array<i64: 1, 128>}]} {
    %c0_i32 = arith.constant 0 : i32
    %0 = arith.cmpi eq, %arg0, %c0_i32 : i32
    %1 = arith.extui %0 : i1 to i32
    %c0_i32_0 = arith.constant 0 : i32
    %2 = arith.cmpi ne, %1, %c0_i32_0 : i32
    scf.if %2 {
      %cst_33 = arith.constant 0.000000e+00 : f32
      %51 = vector.broadcast %cst_33 : f32 to vector<1x128xf32>
      %c0_34 = arith.constant 0 : index
      %c0_35 = arith.constant 0 : index
      %52 = vector.load %arg11[%c0_34, %c0_35] : memref<1x128xf32, #tpu.memory_space<vmem>>, vector<1x128xf32>
      tpu.vector_store %arg11[%c0_34, %c0_35], %51 {strides = array<i32>} : memref<1x128xf32, #tpu.memory_space<vmem>>, vector<1x128xf32>,
      %cst_36 = arith.constant 0.000000e+00 : f32
      %53 = vector.broadcast %cst_36 : f32 to vector<1x128xf32>
      %c0_37 = arith.constant 0 : index
      %c0_38 = arith.constant 0 : index
      %54 = vector.load %arg12[%c0_37, %c0_38] : memref<1x128xf32, #tpu.memory_space<vmem>>, vector<1x128xf32>
      tpu.vector_store %arg12[%c0_37, %c0_38], %53 {strides = array<i32>} : memref<1x128xf32, #tpu.memory_space<vmem>>, vector<1x128xf32>,
    } else {
    }
    %c0 = arith.constant 0 : index
    %c0_1 = arith.constant 0 : index
    %3 = vector.load %arg5[%c0, %c0_1] : memref<25x128xbf16, #tpu.memory_space<vmem>>, vector<25x128xbf16>
    %cst = arith.constant 0.000000e+00 : f32
    %4 = vector.broadcast %cst : f32 to vector<1x128xf32>
    %cst_2 = arith.constant 0.000000e+00 : f32
    %5 = vector.broadcast %cst_2 : f32 to vector<1x128xf32>
    %c0_3 = arith.constant 0 : index
    %c0_4 = arith.constant 0 : index
    %6 = vector.load %arg1[%c0_3, %c0_4] : memref<392x25xbf16, #tpu.memory_space<vmem>>, vector<392x25xbf16>
    %cst_5 = arith.constant dense<0.000000e+00> : vector<392x128xf32>
    %7 = tpu.matmul %6, %3, %cst_5 {dimension_numbers = #tpu.dot_dimension_numbers<[1], [0], [0], [1], [0, 0, 1, 1], [], []>} : vector<392x25xbf16>, vector<25x128xbf16>, vector<392x128xf32> -> vector<392x128xf32>
    %cst_6 = arith.constant dense<0.000000e+00> : vector<128xf32>
    %8 = vector.multi_reduction <add>, %7, %cst_6 [0] : vector<392x128xf32> to vector<128xf32>
    %9 = vector.shape_cast %8 : vector<128xf32> to vector<1x128xf32>
    %10 = arith.addf %4, %9 : vector<1x128xf32>
    %11 = arith.mulf %7, %7 : vector<392x128xf32>
    %cst_7 = arith.constant dense<0.000000e+00> : vector<128xf32>
    %12 = vector.multi_reduction <add>, %11, %cst_7 [0] : vector<392x128xf32> to vector<128xf32>
    %13 = vector.shape_cast %12 : vector<128xf32> to vector<1x128xf32>
    %14 = arith.addf %5, %13 : vector<1x128xf32>
    %c0_8 = arith.constant 0 : index
    %c0_9 = arith.constant 0 : index
    %15 = vector.load %arg2[%c0_8, %c0_9] : memref<392x25xbf16, #tpu.memory_space<vmem>>, vector<392x25xbf16>
    %cst_10 = arith.constant dense<0.000000e+00> : vector<392x128xf32>
    %16 = tpu.matmul %15, %3, %cst_10 {dimension_numbers = #tpu.dot_dimension_numbers<[1], [0], [0], [1], [0, 0, 1, 1], [], []>} : vector<392x25xbf16>, vector<25x128xbf16>, vector<392x128xf32> -> vector<392x128xf32>
    %cst_11 = arith.constant dense<0.000000e+00> : vector<128xf32>
    %17 = vector.multi_reduction <add>, %16, %cst_11 [0] : vector<392x128xf32> to vector<128xf32>
    %18 = vector.shape_cast %17 : vector<128xf32> to vector<1x128xf32>
    %19 = arith.addf %10, %18 : vector<1x128xf32>
    %20 = arith.mulf %16, %16 : vector<392x128xf32>
    %cst_12 = arith.constant dense<0.000000e+00> : vector<128xf32>
    %21 = vector.multi_reduction <add>, %20, %cst_12 [0] : vector<392x128xf32> to vector<128xf32>
    %22 = vector.shape_cast %21 : vector<128xf32> to vector<1x128xf32>
    %23 = arith.addf %14, %22 : vector<1x128xf32>
    %c0_13 = arith.constant 0 : index
    %c0_14 = arith.constant 0 : index
    %24 = vector.load %arg3[%c0_13, %c0_14] : memref<392x25xbf16, #tpu.memory_space<vmem>>, vector<392x25xbf16>
    %cst_15 = arith.constant dense<0.000000e+00> : vector<392x128xf32>
    %25 = tpu.matmul %24, %3, %cst_15 {dimension_numbers = #tpu.dot_dimension_numbers<[1], [0], [0], [1], [0, 0, 1, 1], [], []>} : vector<392x25xbf16>, vector<25x128xbf16>, vector<392x128xf32> -> vector<392x128xf32>
    %cst_16 = arith.constant dense<0.000000e+00> : vector<128xf32>
    %26 = vector.multi_reduction <add>, %25, %cst_16 [0] : vector<392x128xf32> to vector<128xf32>
    %27 = vector.shape_cast %26 : vector<128xf32> to vector<1x128xf32>
    %28 = arith.addf %19, %27 : vector<1x128xf32>
    %29 = arith.mulf %25, %25 : vector<392x128xf32>
    %cst_17 = arith.constant dense<0.000000e+00> : vector<128xf32>
    %30 = vector.multi_reduction <add>, %29, %cst_17 [0] : vector<392x128xf32> to vector<128xf32>
    %31 = vector.shape_cast %30 : vector<128xf32> to vector<1x128xf32>
    %32 = arith.addf %23, %31 : vector<1x128xf32>
    %c0_18 = arith.constant 0 : index
    %c0_19 = arith.constant 0 : index
    %33 = vector.load %arg4[%c0_18, %c0_19] : memref<392x25xbf16, #tpu.memory_space<vmem>>, vector<392x25xbf16>
    %cst_20 = arith.constant dense<0.000000e+00> : vector<392x128xf32>
    %34 = tpu.matmul %33, %3, %cst_20 {dimension_numbers = #tpu.dot_dimension_numbers<[1], [0], [0], [1], [0, 0, 1, 1], [], []>} : vector<392x25xbf16>, vector<25x128xbf16>, vector<392x128xf32> -> vector<392x128xf32>
    %cst_21 = arith.constant dense<0.000000e+00> : vector<128xf32>
    %35 = vector.multi_reduction <add>, %34, %cst_21 [0] : vector<392x128xf32> to vector<128xf32>
    %36 = vector.shape_cast %35 : vector<128xf32> to vector<1x128xf32>
    %37 = arith.addf %28, %36 : vector<1x128xf32>
    %38 = arith.mulf %34, %34 : vector<392x128xf32>
    %cst_22 = arith.constant dense<0.000000e+00> : vector<128xf32>
    %39 = vector.multi_reduction <add>, %38, %cst_22 [0] : vector<392x128xf32> to vector<128xf32>
    %40 = vector.shape_cast %39 : vector<128xf32> to vector<1x128xf32>
    %41 = arith.addf %32, %40 : vector<1x128xf32>
    %c0_23 = arith.constant 0 : index
    %c0_24 = arith.constant 0 : index
    %42 = vector.load %arg11[%c0_23, %c0_24] : memref<1x128xf32, #tpu.memory_space<vmem>>, vector<1x128xf32>
    %43 = arith.addf %42, %37 : vector<1x128xf32>
    %c0_25 = arith.constant 0 : index
    %c0_26 = arith.constant 0 : index
    %44 = vector.load %arg11[%c0_25, %c0_26] : memref<1x128xf32, #tpu.memory_space<vmem>>, vector<1x128xf32>
    tpu.vector_store %arg11[%c0_25, %c0_26], %43 {strides = array<i32>} : memref<1x128xf32, #tpu.memory_space<vmem>>, vector<1x128xf32>,
    %c0_27 = arith.constant 0 : index
    %c0_28 = arith.constant 0 : index
    %45 = vector.load %arg12[%c0_27, %c0_28] : memref<1x128xf32, #tpu.memory_space<vmem>>, vector<1x128xf32>
    %46 = arith.addf %45, %41 : vector<1x128xf32>
    %c0_29 = arith.constant 0 : index
    %c0_30 = arith.constant 0 : index
    %47 = vector.load %arg12[%c0_29, %c0_30] : memref<1x128xf32, #tpu.memory_space<vmem>>, vector<1x128xf32>
    tpu.vector_store %arg12[%c0_29, %c0_30], %46 {strides = array<i32>} : memref<1x128xf32, #tpu.memory_space<vmem>>, vector<1x128xf32>,
    %c0_i32_31 = arith.constant 0 : i32
    %48 = arith.cmpi eq, %arg0, %c0_i32_31 : i32
    %49 = arith.extui %48 : i1 to i32
    %c0_i32_32 = arith.constant 0 : i32
    %50 = arith.cmpi ne, %49, %c0_i32_32 : i32
    scf.if %50 {
      %c0_33 = arith.constant 0 : index
      %c0_34 = arith.constant 0 : index
      %51 = vector.load %arg11[%c0_33, %c0_34] : memref<1x128xf32, #tpu.memory_space<vmem>>, vector<1x128xf32>
      %cst_35 = arith.constant 6.37755089E-4 : f32
      %52 = vector.broadcast %cst_35 : f32 to vector<1x128xf32>
      %53 = arith.mulf %51, %52 : vector<1x128xf32>
      %c0_36 = arith.constant 0 : index
      %c0_37 = arith.constant 0 : index
      %54 = vector.load %arg12[%c0_36, %c0_37] : memref<1x128xf32, #tpu.memory_space<vmem>>, vector<1x128xf32>
      %cst_38 = arith.constant 6.37755089E-4 : f32
      %55 = vector.broadcast %cst_38 : f32 to vector<1x128xf32>
      %56 = arith.mulf %54, %55 : vector<1x128xf32>
      %57 = arith.mulf %53, %53 : vector<1x128xf32>
      %58 = arith.subf %56, %57 : vector<1x128xf32>
      %c0_39 = arith.constant 0 : index
      %c0_40 = arith.constant 0 : index
      %59 = vector.load %arg7[%c0_39, %c0_40] : memref<1x128xf32, #tpu.memory_space<vmem>>, vector<1x128xf32>
      %cst_41 = arith.constant 9.99999974E-6 : f32
      %60 = vector.broadcast %cst_41 : f32 to vector<1x128xf32>
      %61 = arith.addf %58, %60 : vector<1x128xf32>
      %62 = math.rsqrt %61 : vector<1x128xf32>
      %63 = arith.mulf %59, %62 : vector<1x128xf32>
      %c0_42 = arith.constant 0 : index
      %c0_43 = arith.constant 0 : index
      %64 = vector.load %arg6[%c0_42, %c0_43] : memref<1x128xf32, #tpu.memory_space<vmem>>, vector<1x128xf32>
      %65 = arith.addf %53, %64 : vector<1x128xf32>
      %c0_44 = arith.constant 0 : index
      %c0_45 = arith.constant 0 : index
      %66 = vector.load %arg9[%c0_44, %c0_45] : memref<1x128xf32, #tpu.memory_space<vmem>>, vector<1x128xf32>
      tpu.vector_store %arg9[%c0_44, %c0_45], %63 {strides = array<i32>} : memref<1x128xf32, #tpu.memory_space<vmem>>, vector<1x128xf32>,
      %c0_46 = arith.constant 0 : index
      %c0_47 = arith.constant 0 : index
      %67 = vector.load %arg8[%c0_46, %c0_47] : memref<1x128xf32, #tpu.memory_space<vmem>>, vector<1x128xf32>
      %c0_48 = arith.constant 0 : index
      %c0_49 = arith.constant 0 : index
      %68 = vector.load %arg6[%c0_48, %c0_49] : memref<1x128xf32, #tpu.memory_space<vmem>>, vector<1x128xf32>
      %69 = arith.subf %68, %65 : vector<1x128xf32>
      %70 = arith.mulf %69, %63 : vector<1x128xf32>
      %71 = arith.addf %67, %70 : vector<1x128xf32>
      %c0_50 = arith.constant 0 : index
      %c0_51 = arith.constant 0 : index
      %72 = vector.load %arg10[%c0_50, %c0_51] : memref<1x128xf32, #tpu.memory_space<vmem>>, vector<1x128xf32>
      tpu.vector_store %arg10[%c0_50, %c0_51], %71 {strides = array<i32>} : memref<1x128xf32, #tpu.memory_space<vmem>>, vector<1x128xf32>,
    } else {
    }
    return
  }
  func.func @transform_0(%arg0: i32) -> (i32, i32) {
    %c0_i32 = arith.constant 0 : i32
    %c0_i32_0 = arith.constant 0 : i32
    return %arg0, %c0_i32 : i32, i32
  }
  func.func @transform_1(%arg0: i32) -> (i32, i32) {
    %c0_i32 = arith.constant 0 : i32
    %c0_i32_0 = arith.constant 0 : i32
    return %arg0, %c0_i32 : i32, i32
  }
  func.func @transform_2(%arg0: i32) -> (i32, i32) {
    %c0_i32 = arith.constant 0 : i32
    %c0_i32_0 = arith.constant 0 : i32
    return %arg0, %c0_i32 : i32, i32
  }
  func.func @transform_3(%arg0: i32) -> (i32, i32) {
    %c0_i32 = arith.constant 0 : i32
    %c0_i32_0 = arith.constant 0 : i32
    return %arg0, %c0_i32 : i32, i32
  }
  func.func @transform_4(%arg0: i32) -> (i32, i32) {
    %c0_i32 = arith.constant 0 : i32
    %c0_i32_0 = arith.constant 0 : i32
    %c0_i32_1 = arith.constant 0 : i32
    return %c0_i32, %c0_i32_0 : i32, i32
  }
  func.func @transform_5(%arg0: i32) -> (i32, i32) {
    %c0_i32 = arith.constant 0 : i32
    %c0_i32_0 = arith.constant 0 : i32
    %c0_i32_1 = arith.constant 0 : i32
    return %c0_i32, %c0_i32_0 : i32, i32
  }
  func.func @transform_6(%arg0: i32) -> (i32, i32) {
    %c0_i32 = arith.constant 0 : i32
    %c0_i32_0 = arith.constant 0 : i32
    %c0_i32_1 = arith.constant 0 : i32
    return %c0_i32, %c0_i32_0 : i32, i32
  }
  func.func @transform_7(%arg0: i32) -> (i32, i32) {
    %c0_i32 = arith.constant 0 : i32
    %c0_i32_0 = arith.constant 0 : i32
    %c0_i32_1 = arith.constant 0 : i32
    return %c0_i32, %c0_i32_0 : i32, i32
  }
  func.func @transform_8(%arg0: i32) -> (i32, i32) {
    %c0_i32 = arith.constant 0 : i32
    %c0_i32_0 = arith.constant 0 : i32
    %c0_i32_1 = arith.constant 0 : i32
    return %c0_i32, %c0_i32_0 : i32, i32
  }
  func.func @transform_9(%arg0: i32) -> (i32, i32) {
    %c0_i32 = arith.constant 0 : i32
    %c0_i32_0 = arith.constant 0 : i32
    %c0_i32_1 = arith.constant 0 : i32
    return %c0_i32, %c0_i32_0 : i32, i32
  }
}

module attributes {stable_mosaic.version = 11 : i64} {
  func.func @_conv_bn_relu_pool_kernel(%arg0: i32, %arg1: memref<392x25xbf16, #tpu.memory_space<vmem>>, %arg2: memref<392x25xbf16, #tpu.memory_space<vmem>>, %arg3: memref<392x25xbf16, #tpu.memory_space<vmem>>, %arg4: memref<392x25xbf16, #tpu.memory_space<vmem>>, %arg5: memref<25x128xbf16, #tpu.memory_space<vmem>>, %arg6: memref<1x128xf32, #tpu.memory_space<vmem>>, %arg7: memref<1x128xf32, #tpu.memory_space<vmem>>, %arg8: memref<392x128xf32, #tpu.memory_space<vmem>>) attributes {dimension_semantics = [#tpu.dimension_semantics<parallel>], iteration_bounds = array<i64: 1>, scalar_prefetch = 0 : i64, scratch_operands = 0 : i64, tpu.core_type = #tpu.core_type<tc>, window_params = [{transform_indices = @transform_0, window_bounds = array<i64: 392, 25>}, {transform_indices = @transform_1, window_bounds = array<i64: 392, 25>}, {transform_indices = @transform_2, window_bounds = array<i64: 392, 25>}, {transform_indices = @transform_3, window_bounds = array<i64: 392, 25>}, {pipeline_mode = #tpu.pipeline_mode<synchronous>, transform_indices = @transform_4, window_bounds = array<i64: 25, 128>}, {pipeline_mode = #tpu.pipeline_mode<synchronous>, transform_indices = @transform_5, window_bounds = array<i64: 1, 128>}, {pipeline_mode = #tpu.pipeline_mode<synchronous>, transform_indices = @transform_6, window_bounds = array<i64: 1, 128>}, {transform_indices = @transform_7, window_bounds = array<i64: 392, 128>}]} {
    %c0 = arith.constant 0 : index
    %c0_0 = arith.constant 0 : index
    %0 = vector.load %arg5[%c0, %c0_0] : memref<25x128xbf16, #tpu.memory_space<vmem>>, vector<25x128xbf16>
    %c0_1 = arith.constant 0 : index
    %c0_2 = arith.constant 0 : index
    %1 = vector.load %arg6[%c0_1, %c0_2] : memref<1x128xf32, #tpu.memory_space<vmem>>, vector<1x128xf32>
    %c0_3 = arith.constant 0 : index
    %c0_4 = arith.constant 0 : index
    %2 = vector.load %arg7[%c0_3, %c0_4] : memref<1x128xf32, #tpu.memory_space<vmem>>, vector<1x128xf32>
    %c0_5 = arith.constant 0 : index
    %c0_6 = arith.constant 0 : index
    %3 = vector.load %arg1[%c0_5, %c0_6] : memref<392x25xbf16, #tpu.memory_space<vmem>>, vector<392x25xbf16>
    %cst = arith.constant dense<0.000000e+00> : vector<392x128xf32>
    %4 = tpu.matmul %3, %0, %cst {dimension_numbers = #tpu.dot_dimension_numbers<[1], [0], [0], [1], [0, 0, 1, 1], [], []>} : vector<392x25xbf16>, vector<25x128xbf16>, vector<392x128xf32> -> vector<392x128xf32>
    %5 = vector.broadcast %1 : vector<1x128xf32> to vector<392x128xf32>
    %6 = arith.mulf %4, %5 : vector<392x128xf32>
    %7 = vector.broadcast %2 : vector<1x128xf32> to vector<392x128xf32>
    %8 = arith.addf %6, %7 : vector<392x128xf32>
    %c0_7 = arith.constant 0 : index
    %c0_8 = arith.constant 0 : index
    %9 = vector.load %arg2[%c0_7, %c0_8] : memref<392x25xbf16, #tpu.memory_space<vmem>>, vector<392x25xbf16>
    %cst_9 = arith.constant dense<0.000000e+00> : vector<392x128xf32>
    %10 = tpu.matmul %9, %0, %cst_9 {dimension_numbers = #tpu.dot_dimension_numbers<[1], [0], [0], [1], [0, 0, 1, 1], [], []>} : vector<392x25xbf16>, vector<25x128xbf16>, vector<392x128xf32> -> vector<392x128xf32>
    %11 = vector.broadcast %1 : vector<1x128xf32> to vector<392x128xf32>
    %12 = arith.mulf %10, %11 : vector<392x128xf32>
    %13 = vector.broadcast %2 : vector<1x128xf32> to vector<392x128xf32>
    %14 = arith.addf %12, %13 : vector<392x128xf32>
    %15 = arith.maximumf %8, %14 : vector<392x128xf32>
    %c0_10 = arith.constant 0 : index
    %c0_11 = arith.constant 0 : index
    %16 = vector.load %arg3[%c0_10, %c0_11] : memref<392x25xbf16, #tpu.memory_space<vmem>>, vector<392x25xbf16>
    %cst_12 = arith.constant dense<0.000000e+00> : vector<392x128xf32>
    %17 = tpu.matmul %16, %0, %cst_12 {dimension_numbers = #tpu.dot_dimension_numbers<[1], [0], [0], [1], [0, 0, 1, 1], [], []>} : vector<392x25xbf16>, vector<25x128xbf16>, vector<392x128xf32> -> vector<392x128xf32>
    %18 = vector.broadcast %1 : vector<1x128xf32> to vector<392x128xf32>
    %19 = arith.mulf %17, %18 : vector<392x128xf32>
    %20 = vector.broadcast %2 : vector<1x128xf32> to vector<392x128xf32>
    %21 = arith.addf %19, %20 : vector<392x128xf32>
    %22 = arith.maximumf %15, %21 : vector<392x128xf32>
    %c0_13 = arith.constant 0 : index
    %c0_14 = arith.constant 0 : index
    %23 = vector.load %arg4[%c0_13, %c0_14] : memref<392x25xbf16, #tpu.memory_space<vmem>>, vector<392x25xbf16>
    %cst_15 = arith.constant dense<0.000000e+00> : vector<392x128xf32>
    %24 = tpu.matmul %23, %0, %cst_15 {dimension_numbers = #tpu.dot_dimension_numbers<[1], [0], [0], [1], [0, 0, 1, 1], [], []>} : vector<392x25xbf16>, vector<25x128xbf16>, vector<392x128xf32> -> vector<392x128xf32>
    %25 = vector.broadcast %1 : vector<1x128xf32> to vector<392x128xf32>
    %26 = arith.mulf %24, %25 : vector<392x128xf32>
    %27 = vector.broadcast %2 : vector<1x128xf32> to vector<392x128xf32>
    %28 = arith.addf %26, %27 : vector<392x128xf32>
    %29 = arith.maximumf %22, %28 : vector<392x128xf32>
    %cst_16 = arith.constant 0.000000e+00 : f32
    %30 = vector.broadcast %cst_16 : f32 to vector<392x128xf32>
    %31 = arith.maximumf %29, %30 : vector<392x128xf32>
    %c0_17 = arith.constant 0 : index
    %c0_18 = arith.constant 0 : index
    %32 = vector.load %arg8[%c0_17, %c0_18] : memref<392x128xf32, #tpu.memory_space<vmem>>, vector<392x128xf32>
    tpu.vector_store %arg8[%c0_17, %c0_18], %31 {strides = array<i32>} : memref<392x128xf32, #tpu.memory_space<vmem>>, vector<392x128xf32>,
    return
  }
  func.func @transform_0(%arg0: i32) -> (i32, i32) {
    %c0_i32 = arith.constant 0 : i32
    %c0_i32_0 = arith.constant 0 : i32
    return %arg0, %c0_i32 : i32, i32
  }
  func.func @transform_1(%arg0: i32) -> (i32, i32) {
    %c0_i32 = arith.constant 0 : i32
    %c0_i32_0 = arith.constant 0 : i32
    return %arg0, %c0_i32 : i32, i32
  }
  func.func @transform_2(%arg0: i32) -> (i32, i32) {
    %c0_i32 = arith.constant 0 : i32
    %c0_i32_0 = arith.constant 0 : i32
    return %arg0, %c0_i32 : i32, i32
  }
  func.func @transform_3(%arg0: i32) -> (i32, i32) {
    %c0_i32 = arith.constant 0 : i32
    %c0_i32_0 = arith.constant 0 : i32
    return %arg0, %c0_i32 : i32, i32
  }
  func.func @transform_4(%arg0: i32) -> (i32, i32) {
    %c0_i32 = arith.constant 0 : i32
    %c0_i32_0 = arith.constant 0 : i32
    %c0_i32_1 = arith.constant 0 : i32
    return %c0_i32, %c0_i32_0 : i32, i32
  }
  func.func @transform_5(%arg0: i32) -> (i32, i32) {
    %c0_i32 = arith.constant 0 : i32
    %c0_i32_0 = arith.constant 0 : i32
    %c0_i32_1 = arith.constant 0 : i32
    return %c0_i32, %c0_i32_0 : i32, i32
  }
  func.func @transform_6(%arg0: i32) -> (i32, i32) {
    %c0_i32 = arith.constant 0 : i32
    %c0_i32_0 = arith.constant 0 : i32
    %c0_i32_1 = arith.constant 0 : i32
    return %c0_i32, %c0_i32_0 : i32, i32
  }
  func.func @transform_7(%arg0: i32) -> (i32, i32) {
    %c0_i32 = arith.constant 0 : i32
    %c0_i32_0 = arith.constant 0 : i32
    return %arg0, %c0_i32 : i32, i32
  }
}

module attributes {stable_mosaic.version = 11 : i64} {
  func.func @_conv_stats_kernel(%arg0: i32, %arg1: memref<98x400xbf16, #tpu.memory_space<vmem>>, %arg2: memref<98x400xbf16, #tpu.memory_space<vmem>>, %arg3: memref<98x400xbf16, #tpu.memory_space<vmem>>, %arg4: memref<98x400xbf16, #tpu.memory_space<vmem>>, %arg5: memref<400x128xbf16, #tpu.memory_space<vmem>>, %arg6: memref<1x128xf32, #tpu.memory_space<vmem>>, %arg7: memref<1x128xf32, #tpu.memory_space<vmem>>, %arg8: memref<1x128xf32, #tpu.memory_space<vmem>>, %arg9: memref<1x128xf32, #tpu.memory_space<vmem>>, %arg10: memref<1x128xf32, #tpu.memory_space<vmem>>, %arg11: memref<1x128xf32, #tpu.memory_space<vmem>>, %arg12: memref<1x128xf32, #tpu.memory_space<vmem>>) attributes {dimension_semantics = [#tpu.dimension_semantics<arbitrary>], iteration_bounds = array<i64: 1>, scalar_prefetch = 0 : i64, scratch_operands = 2 : i64, tpu.core_type = #tpu.core_type<tc>, window_params = [{transform_indices = @transform_0, window_bounds = array<i64: 98, 400>}, {transform_indices = @transform_1, window_bounds = array<i64: 98, 400>}, {transform_indices = @transform_2, window_bounds = array<i64: 98, 400>}, {transform_indices = @transform_3, window_bounds = array<i64: 98, 400>}, {pipeline_mode = #tpu.pipeline_mode<synchronous>, transform_indices = @transform_4, window_bounds = array<i64: 400, 128>}, {pipeline_mode = #tpu.pipeline_mode<synchronous>, transform_indices = @transform_5, window_bounds = array<i64: 1, 128>}, {pipeline_mode = #tpu.pipeline_mode<synchronous>, transform_indices = @transform_6, window_bounds = array<i64: 1, 128>}, {pipeline_mode = #tpu.pipeline_mode<synchronous>, transform_indices = @transform_7, window_bounds = array<i64: 1, 128>}, {pipeline_mode = #tpu.pipeline_mode<synchronous>, transform_indices = @transform_8, window_bounds = array<i64: 1, 128>}, {pipeline_mode = #tpu.pipeline_mode<synchronous>, transform_indices = @transform_9, window_bounds = array<i64: 1, 128>}]} {
    %c0_i32 = arith.constant 0 : i32
    %0 = arith.cmpi eq, %arg0, %c0_i32 : i32
    %1 = arith.extui %0 : i1 to i32
    %c0_i32_0 = arith.constant 0 : i32
    %2 = arith.cmpi ne, %1, %c0_i32_0 : i32
    scf.if %2 {
      %cst_33 = arith.constant 0.000000e+00 : f32
      %51 = vector.broadcast %cst_33 : f32 to vector<1x128xf32>
      %c0_34 = arith.constant 0 : index
      %c0_35 = arith.constant 0 : index
      %52 = vector.load %arg11[%c0_34, %c0_35] : memref<1x128xf32, #tpu.memory_space<vmem>>, vector<1x128xf32>
      tpu.vector_store %arg11[%c0_34, %c0_35], %51 {strides = array<i32>} : memref<1x128xf32, #tpu.memory_space<vmem>>, vector<1x128xf32>,
      %cst_36 = arith.constant 0.000000e+00 : f32
      %53 = vector.broadcast %cst_36 : f32 to vector<1x128xf32>
      %c0_37 = arith.constant 0 : index
      %c0_38 = arith.constant 0 : index
      %54 = vector.load %arg12[%c0_37, %c0_38] : memref<1x128xf32, #tpu.memory_space<vmem>>, vector<1x128xf32>
      tpu.vector_store %arg12[%c0_37, %c0_38], %53 {strides = array<i32>} : memref<1x128xf32, #tpu.memory_space<vmem>>, vector<1x128xf32>,
    } else {
    }
    %c0 = arith.constant 0 : index
    %c0_1 = arith.constant 0 : index
    %3 = vector.load %arg5[%c0, %c0_1] : memref<400x128xbf16, #tpu.memory_space<vmem>>, vector<400x128xbf16>
    %cst = arith.constant 0.000000e+00 : f32
    %4 = vector.broadcast %cst : f32 to vector<1x128xf32>
    %cst_2 = arith.constant 0.000000e+00 : f32
    %5 = vector.broadcast %cst_2 : f32 to vector<1x128xf32>
    %c0_3 = arith.constant 0 : index
    %c0_4 = arith.constant 0 : index
    %6 = vector.load %arg1[%c0_3, %c0_4] : memref<98x400xbf16, #tpu.memory_space<vmem>>, vector<98x400xbf16>
    %cst_5 = arith.constant dense<0.000000e+00> : vector<98x128xf32>
    %7 = tpu.matmul %6, %3, %cst_5 {dimension_numbers = #tpu.dot_dimension_numbers<[1], [0], [0], [1], [0, 0, 1, 1], [], []>} : vector<98x400xbf16>, vector<400x128xbf16>, vector<98x128xf32> -> vector<98x128xf32>
    %cst_6 = arith.constant dense<0.000000e+00> : vector<128xf32>
    %8 = vector.multi_reduction <add>, %7, %cst_6 [0] : vector<98x128xf32> to vector<128xf32>
    %9 = vector.shape_cast %8 : vector<128xf32> to vector<1x128xf32>
    %10 = arith.addf %4, %9 : vector<1x128xf32>
    %11 = arith.mulf %7, %7 : vector<98x128xf32>
    %cst_7 = arith.constant dense<0.000000e+00> : vector<128xf32>
    %12 = vector.multi_reduction <add>, %11, %cst_7 [0] : vector<98x128xf32> to vector<128xf32>
    %13 = vector.shape_cast %12 : vector<128xf32> to vector<1x128xf32>
    %14 = arith.addf %5, %13 : vector<1x128xf32>
    %c0_8 = arith.constant 0 : index
    %c0_9 = arith.constant 0 : index
    %15 = vector.load %arg2[%c0_8, %c0_9] : memref<98x400xbf16, #tpu.memory_space<vmem>>, vector<98x400xbf16>
    %cst_10 = arith.constant dense<0.000000e+00> : vector<98x128xf32>
    %16 = tpu.matmul %15, %3, %cst_10 {dimension_numbers = #tpu.dot_dimension_numbers<[1], [0], [0], [1], [0, 0, 1, 1], [], []>} : vector<98x400xbf16>, vector<400x128xbf16>, vector<98x128xf32> -> vector<98x128xf32>
    %cst_11 = arith.constant dense<0.000000e+00> : vector<128xf32>
    %17 = vector.multi_reduction <add>, %16, %cst_11 [0] : vector<98x128xf32> to vector<128xf32>
    %18 = vector.shape_cast %17 : vector<128xf32> to vector<1x128xf32>
    %19 = arith.addf %10, %18 : vector<1x128xf32>
    %20 = arith.mulf %16, %16 : vector<98x128xf32>
    %cst_12 = arith.constant dense<0.000000e+00> : vector<128xf32>
    %21 = vector.multi_reduction <add>, %20, %cst_12 [0] : vector<98x128xf32> to vector<128xf32>
    %22 = vector.shape_cast %21 : vector<128xf32> to vector<1x128xf32>
    %23 = arith.addf %14, %22 : vector<1x128xf32>
    %c0_13 = arith.constant 0 : index
    %c0_14 = arith.constant 0 : index
    %24 = vector.load %arg3[%c0_13, %c0_14] : memref<98x400xbf16, #tpu.memory_space<vmem>>, vector<98x400xbf16>
    %cst_15 = arith.constant dense<0.000000e+00> : vector<98x128xf32>
    %25 = tpu.matmul %24, %3, %cst_15 {dimension_numbers = #tpu.dot_dimension_numbers<[1], [0], [0], [1], [0, 0, 1, 1], [], []>} : vector<98x400xbf16>, vector<400x128xbf16>, vector<98x128xf32> -> vector<98x128xf32>
    %cst_16 = arith.constant dense<0.000000e+00> : vector<128xf32>
    %26 = vector.multi_reduction <add>, %25, %cst_16 [0] : vector<98x128xf32> to vector<128xf32>
    %27 = vector.shape_cast %26 : vector<128xf32> to vector<1x128xf32>
    %28 = arith.addf %19, %27 : vector<1x128xf32>
    %29 = arith.mulf %25, %25 : vector<98x128xf32>
    %cst_17 = arith.constant dense<0.000000e+00> : vector<128xf32>
    %30 = vector.multi_reduction <add>, %29, %cst_17 [0] : vector<98x128xf32> to vector<128xf32>
    %31 = vector.shape_cast %30 : vector<128xf32> to vector<1x128xf32>
    %32 = arith.addf %23, %31 : vector<1x128xf32>
    %c0_18 = arith.constant 0 : index
    %c0_19 = arith.constant 0 : index
    %33 = vector.load %arg4[%c0_18, %c0_19] : memref<98x400xbf16, #tpu.memory_space<vmem>>, vector<98x400xbf16>
    %cst_20 = arith.constant dense<0.000000e+00> : vector<98x128xf32>
    %34 = tpu.matmul %33, %3, %cst_20 {dimension_numbers = #tpu.dot_dimension_numbers<[1], [0], [0], [1], [0, 0, 1, 1], [], []>} : vector<98x400xbf16>, vector<400x128xbf16>, vector<98x128xf32> -> vector<98x128xf32>
    %cst_21 = arith.constant dense<0.000000e+00> : vector<128xf32>
    %35 = vector.multi_reduction <add>, %34, %cst_21 [0] : vector<98x128xf32> to vector<128xf32>
    %36 = vector.shape_cast %35 : vector<128xf32> to vector<1x128xf32>
    %37 = arith.addf %28, %36 : vector<1x128xf32>
    %38 = arith.mulf %34, %34 : vector<98x128xf32>
    %cst_22 = arith.constant dense<0.000000e+00> : vector<128xf32>
    %39 = vector.multi_reduction <add>, %38, %cst_22 [0] : vector<98x128xf32> to vector<128xf32>
    %40 = vector.shape_cast %39 : vector<128xf32> to vector<1x128xf32>
    %41 = arith.addf %32, %40 : vector<1x128xf32>
    %c0_23 = arith.constant 0 : index
    %c0_24 = arith.constant 0 : index
    %42 = vector.load %arg11[%c0_23, %c0_24] : memref<1x128xf32, #tpu.memory_space<vmem>>, vector<1x128xf32>
    %43 = arith.addf %42, %37 : vector<1x128xf32>
    %c0_25 = arith.constant 0 : index
    %c0_26 = arith.constant 0 : index
    %44 = vector.load %arg11[%c0_25, %c0_26] : memref<1x128xf32, #tpu.memory_space<vmem>>, vector<1x128xf32>
    tpu.vector_store %arg11[%c0_25, %c0_26], %43 {strides = array<i32>} : memref<1x128xf32, #tpu.memory_space<vmem>>, vector<1x128xf32>,
    %c0_27 = arith.constant 0 : index
    %c0_28 = arith.constant 0 : index
    %45 = vector.load %arg12[%c0_27, %c0_28] : memref<1x128xf32, #tpu.memory_space<vmem>>, vector<1x128xf32>
    %46 = arith.addf %45, %41 : vector<1x128xf32>
    %c0_29 = arith.constant 0 : index
    %c0_30 = arith.constant 0 : index
    %47 = vector.load %arg12[%c0_29, %c0_30] : memref<1x128xf32, #tpu.memory_space<vmem>>, vector<1x128xf32>
    tpu.vector_store %arg12[%c0_29, %c0_30], %46 {strides = array<i32>} : memref<1x128xf32, #tpu.memory_space<vmem>>, vector<1x128xf32>,
    %c0_i32_31 = arith.constant 0 : i32
    %48 = arith.cmpi eq, %arg0, %c0_i32_31 : i32
    %49 = arith.extui %48 : i1 to i32
    %c0_i32_32 = arith.constant 0 : i32
    %50 = arith.cmpi ne, %49, %c0_i32_32 : i32
    scf.if %50 {
      %c0_33 = arith.constant 0 : index
      %c0_34 = arith.constant 0 : index
      %51 = vector.load %arg11[%c0_33, %c0_34] : memref<1x128xf32, #tpu.memory_space<vmem>>, vector<1x128xf32>
      %cst_35 = arith.constant 0.00255102036 : f32
      %52 = vector.broadcast %cst_35 : f32 to vector<1x128xf32>
      %53 = arith.mulf %51, %52 : vector<1x128xf32>
      %c0_36 = arith.constant 0 : index
      %c0_37 = arith.constant 0 : index
      %54 = vector.load %arg12[%c0_36, %c0_37] : memref<1x128xf32, #tpu.memory_space<vmem>>, vector<1x128xf32>
      %cst_38 = arith.constant 0.00255102036 : f32
      %55 = vector.broadcast %cst_38 : f32 to vector<1x128xf32>
      %56 = arith.mulf %54, %55 : vector<1x128xf32>
      %57 = arith.mulf %53, %53 : vector<1x128xf32>
      %58 = arith.subf %56, %57 : vector<1x128xf32>
      %c0_39 = arith.constant 0 : index
      %c0_40 = arith.constant 0 : index
      %59 = vector.load %arg7[%c0_39, %c0_40] : memref<1x128xf32, #tpu.memory_space<vmem>>, vector<1x128xf32>
      %cst_41 = arith.constant 9.99999974E-6 : f32
      %60 = vector.broadcast %cst_41 : f32 to vector<1x128xf32>
      %61 = arith.addf %58, %60 : vector<1x128xf32>
      %62 = math.rsqrt %61 : vector<1x128xf32>
      %63 = arith.mulf %59, %62 : vector<1x128xf32>
      %c0_42 = arith.constant 0 : index
      %c0_43 = arith.constant 0 : index
      %64 = vector.load %arg6[%c0_42, %c0_43] : memref<1x128xf32, #tpu.memory_space<vmem>>, vector<1x128xf32>
      %65 = arith.addf %53, %64 : vector<1x128xf32>
      %c0_44 = arith.constant 0 : index
      %c0_45 = arith.constant 0 : index
      %66 = vector.load %arg9[%c0_44, %c0_45] : memref<1x128xf32, #tpu.memory_space<vmem>>, vector<1x128xf32>
      tpu.vector_store %arg9[%c0_44, %c0_45], %63 {strides = array<i32>} : memref<1x128xf32, #tpu.memory_space<vmem>>, vector<1x128xf32>,
      %c0_46 = arith.constant 0 : index
      %c0_47 = arith.constant 0 : index
      %67 = vector.load %arg8[%c0_46, %c0_47] : memref<1x128xf32, #tpu.memory_space<vmem>>, vector<1x128xf32>
      %c0_48 = arith.constant 0 : index
      %c0_49 = arith.constant 0 : index
      %68 = vector.load %arg6[%c0_48, %c0_49] : memref<1x128xf32, #tpu.memory_space<vmem>>, vector<1x128xf32>
      %69 = arith.subf %68, %65 : vector<1x128xf32>
      %70 = arith.mulf %69, %63 : vector<1x128xf32>
      %71 = arith.addf %67, %70 : vector<1x128xf32>
      %c0_50 = arith.constant 0 : index
      %c0_51 = arith.constant 0 : index
      %72 = vector.load %arg10[%c0_50, %c0_51] : memref<1x128xf32, #tpu.memory_space<vmem>>, vector<1x128xf32>
      tpu.vector_store %arg10[%c0_50, %c0_51], %71 {strides = array<i32>} : memref<1x128xf32, #tpu.memory_space<vmem>>, vector<1x128xf32>,
    } else {
    }
    return
  }
  func.func @transform_0(%arg0: i32) -> (i32, i32) {
    %c0_i32 = arith.constant 0 : i32
    %c0_i32_0 = arith.constant 0 : i32
    return %arg0, %c0_i32 : i32, i32
  }
  func.func @transform_1(%arg0: i32) -> (i32, i32) {
    %c0_i32 = arith.constant 0 : i32
    %c0_i32_0 = arith.constant 0 : i32
    return %arg0, %c0_i32 : i32, i32
  }
  func.func @transform_2(%arg0: i32) -> (i32, i32) {
    %c0_i32 = arith.constant 0 : i32
    %c0_i32_0 = arith.constant 0 : i32
    return %arg0, %c0_i32 : i32, i32
  }
  func.func @transform_3(%arg0: i32) -> (i32, i32) {
    %c0_i32 = arith.constant 0 : i32
    %c0_i32_0 = arith.constant 0 : i32
    return %arg0, %c0_i32 : i32, i32
  }
  func.func @transform_4(%arg0: i32) -> (i32, i32) {
    %c0_i32 = arith.constant 0 : i32
    %c0_i32_0 = arith.constant 0 : i32
    %c0_i32_1 = arith.constant 0 : i32
    return %c0_i32, %c0_i32_0 : i32, i32
  }
  func.func @transform_5(%arg0: i32) -> (i32, i32) {
    %c0_i32 = arith.constant 0 : i32
    %c0_i32_0 = arith.constant 0 : i32
    %c0_i32_1 = arith.constant 0 : i32
    return %c0_i32, %c0_i32_0 : i32, i32
  }
  func.func @transform_6(%arg0: i32) -> (i32, i32) {
    %c0_i32 = arith.constant 0 : i32
    %c0_i32_0 = arith.constant 0 : i32
    %c0_i32_1 = arith.constant 0 : i32
    return %c0_i32, %c0_i32_0 : i32, i32
  }
  func.func @transform_7(%arg0: i32) -> (i32, i32) {
    %c0_i32 = arith.constant 0 : i32
    %c0_i32_0 = arith.constant 0 : i32
    %c0_i32_1 = arith.constant 0 : i32
    return %c0_i32, %c0_i32_0 : i32, i32
  }
  func.func @transform_8(%arg0: i32) -> (i32, i32) {
    %c0_i32 = arith.constant 0 : i32
    %c0_i32_0 = arith.constant 0 : i32
    %c0_i32_1 = arith.constant 0 : i32
    return %c0_i32, %c0_i32_0 : i32, i32
  }
  func.func @transform_9(%arg0: i32) -> (i32, i32) {
    %c0_i32 = arith.constant 0 : i32
    %c0_i32_0 = arith.constant 0 : i32
    %c0_i32_1 = arith.constant 0 : i32
    return %c0_i32, %c0_i32_0 : i32, i32
  }
}

module attributes {stable_mosaic.version = 11 : i64} {
  func.func @_conv_bn_relu_pool_kernel(%arg0: i32, %arg1: memref<98x400xbf16, #tpu.memory_space<vmem>>, %arg2: memref<98x400xbf16, #tpu.memory_space<vmem>>, %arg3: memref<98x400xbf16, #tpu.memory_space<vmem>>, %arg4: memref<98x400xbf16, #tpu.memory_space<vmem>>, %arg5: memref<400x128xbf16, #tpu.memory_space<vmem>>, %arg6: memref<1x128xf32, #tpu.memory_space<vmem>>, %arg7: memref<1x128xf32, #tpu.memory_space<vmem>>, %arg8: memref<98x128xf32, #tpu.memory_space<vmem>>) attributes {dimension_semantics = [#tpu.dimension_semantics<parallel>], iteration_bounds = array<i64: 1>, scalar_prefetch = 0 : i64, scratch_operands = 0 : i64, tpu.core_type = #tpu.core_type<tc>, window_params = [{transform_indices = @transform_0, window_bounds = array<i64: 98, 400>}, {transform_indices = @transform_1, window_bounds = array<i64: 98, 400>}, {transform_indices = @transform_2, window_bounds = array<i64: 98, 400>}, {transform_indices = @transform_3, window_bounds = array<i64: 98, 400>}, {pipeline_mode = #tpu.pipeline_mode<synchronous>, transform_indices = @transform_4, window_bounds = array<i64: 400, 128>}, {pipeline_mode = #tpu.pipeline_mode<synchronous>, transform_indices = @transform_5, window_bounds = array<i64: 1, 128>}, {pipeline_mode = #tpu.pipeline_mode<synchronous>, transform_indices = @transform_6, window_bounds = array<i64: 1, 128>}, {transform_indices = @transform_7, window_bounds = array<i64: 98, 128>}]} {
    %c0 = arith.constant 0 : index
    %c0_0 = arith.constant 0 : index
    %0 = vector.load %arg5[%c0, %c0_0] : memref<400x128xbf16, #tpu.memory_space<vmem>>, vector<400x128xbf16>
    %c0_1 = arith.constant 0 : index
    %c0_2 = arith.constant 0 : index
    %1 = vector.load %arg6[%c0_1, %c0_2] : memref<1x128xf32, #tpu.memory_space<vmem>>, vector<1x128xf32>
    %c0_3 = arith.constant 0 : index
    %c0_4 = arith.constant 0 : index
    %2 = vector.load %arg7[%c0_3, %c0_4] : memref<1x128xf32, #tpu.memory_space<vmem>>, vector<1x128xf32>
    %c0_5 = arith.constant 0 : index
    %c0_6 = arith.constant 0 : index
    %3 = vector.load %arg1[%c0_5, %c0_6] : memref<98x400xbf16, #tpu.memory_space<vmem>>, vector<98x400xbf16>
    %cst = arith.constant dense<0.000000e+00> : vector<98x128xf32>
    %4 = tpu.matmul %3, %0, %cst {dimension_numbers = #tpu.dot_dimension_numbers<[1], [0], [0], [1], [0, 0, 1, 1], [], []>} : vector<98x400xbf16>, vector<400x128xbf16>, vector<98x128xf32> -> vector<98x128xf32>
    %5 = vector.broadcast %1 : vector<1x128xf32> to vector<98x128xf32>
    %6 = arith.mulf %4, %5 : vector<98x128xf32>
    %7 = vector.broadcast %2 : vector<1x128xf32> to vector<98x128xf32>
    %8 = arith.addf %6, %7 : vector<98x128xf32>
    %c0_7 = arith.constant 0 : index
    %c0_8 = arith.constant 0 : index
    %9 = vector.load %arg2[%c0_7, %c0_8] : memref<98x400xbf16, #tpu.memory_space<vmem>>, vector<98x400xbf16>
    %cst_9 = arith.constant dense<0.000000e+00> : vector<98x128xf32>
    %10 = tpu.matmul %9, %0, %cst_9 {dimension_numbers = #tpu.dot_dimension_numbers<[1], [0], [0], [1], [0, 0, 1, 1], [], []>} : vector<98x400xbf16>, vector<400x128xbf16>, vector<98x128xf32> -> vector<98x128xf32>
    %11 = vector.broadcast %1 : vector<1x128xf32> to vector<98x128xf32>
    %12 = arith.mulf %10, %11 : vector<98x128xf32>
    %13 = vector.broadcast %2 : vector<1x128xf32> to vector<98x128xf32>
    %14 = arith.addf %12, %13 : vector<98x128xf32>
    %15 = arith.maximumf %8, %14 : vector<98x128xf32>
    %c0_10 = arith.constant 0 : index
    %c0_11 = arith.constant 0 : index
    %16 = vector.load %arg3[%c0_10, %c0_11] : memref<98x400xbf16, #tpu.memory_space<vmem>>, vector<98x400xbf16>
    %cst_12 = arith.constant dense<0.000000e+00> : vector<98x128xf32>
    %17 = tpu.matmul %16, %0, %cst_12 {dimension_numbers = #tpu.dot_dimension_numbers<[1], [0], [0], [1], [0, 0, 1, 1], [], []>} : vector<98x400xbf16>, vector<400x128xbf16>, vector<98x128xf32> -> vector<98x128xf32>
    %18 = vector.broadcast %1 : vector<1x128xf32> to vector<98x128xf32>
    %19 = arith.mulf %17, %18 : vector<98x128xf32>
    %20 = vector.broadcast %2 : vector<1x128xf32> to vector<98x128xf32>
    %21 = arith.addf %19, %20 : vector<98x128xf32>
    %22 = arith.maximumf %15, %21 : vector<98x128xf32>
    %c0_13 = arith.constant 0 : index
    %c0_14 = arith.constant 0 : index
    %23 = vector.load %arg4[%c0_13, %c0_14] : memref<98x400xbf16, #tpu.memory_space<vmem>>, vector<98x400xbf16>
    %cst_15 = arith.constant dense<0.000000e+00> : vector<98x128xf32>
    %24 = tpu.matmul %23, %0, %cst_15 {dimension_numbers = #tpu.dot_dimension_numbers<[1], [0], [0], [1], [0, 0, 1, 1], [], []>} : vector<98x400xbf16>, vector<400x128xbf16>, vector<98x128xf32> -> vector<98x128xf32>
    %25 = vector.broadcast %1 : vector<1x128xf32> to vector<98x128xf32>
    %26 = arith.mulf %24, %25 : vector<98x128xf32>
    %27 = vector.broadcast %2 : vector<1x128xf32> to vector<98x128xf32>
    %28 = arith.addf %26, %27 : vector<98x128xf32>
    %29 = arith.maximumf %22, %28 : vector<98x128xf32>
    %cst_16 = arith.constant 0.000000e+00 : f32
    %30 = vector.broadcast %cst_16 : f32 to vector<98x128xf32>
    %31 = arith.maximumf %29, %30 : vector<98x128xf32>
    %c0_17 = arith.constant 0 : index
    %c0_18 = arith.constant 0 : index
    %32 = vector.load %arg8[%c0_17, %c0_18] : memref<98x128xf32, #tpu.memory_space<vmem>>, vector<98x128xf32>
    tpu.vector_store %arg8[%c0_17, %c0_18], %31 {strides = array<i32>} : memref<98x128xf32, #tpu.memory_space<vmem>>, vector<98x128xf32>,
    return
  }
  func.func @transform_0(%arg0: i32) -> (i32, i32) {
    %c0_i32 = arith.constant 0 : i32
    %c0_i32_0 = arith.constant 0 : i32
    return %arg0, %c0_i32 : i32, i32
  }
  func.func @transform_1(%arg0: i32) -> (i32, i32) {
    %c0_i32 = arith.constant 0 : i32
    %c0_i32_0 = arith.constant 0 : i32
    return %arg0, %c0_i32 : i32, i32
  }
  func.func @transform_2(%arg0: i32) -> (i32, i32) {
    %c0_i32 = arith.constant 0 : i32
    %c0_i32_0 = arith.constant 0 : i32
    return %arg0, %c0_i32 : i32, i32
  }
  func.func @transform_3(%arg0: i32) -> (i32, i32) {
    %c0_i32 = arith.constant 0 : i32
    %c0_i32_0 = arith.constant 0 : i32
    return %arg0, %c0_i32 : i32, i32
  }
  func.func @transform_4(%arg0: i32) -> (i32, i32) {
    %c0_i32 = arith.constant 0 : i32
    %c0_i32_0 = arith.constant 0 : i32
    %c0_i32_1 = arith.constant 0 : i32
    return %c0_i32, %c0_i32_0 : i32, i32
  }
  func.func @transform_5(%arg0: i32) -> (i32, i32) {
    %c0_i32 = arith.constant 0 : i32
    %c0_i32_0 = arith.constant 0 : i32
    %c0_i32_1 = arith.constant 0 : i32
    return %c0_i32, %c0_i32_0 : i32, i32
  }
  func.func @transform_6(%arg0: i32) -> (i32, i32) {
    %c0_i32 = arith.constant 0 : i32
    %c0_i32_0 = arith.constant 0 : i32
    %c0_i32_1 = arith.constant 0 : i32
    return %c0_i32, %c0_i32_0 : i32, i32
  }
  func.func @transform_7(%arg0: i32) -> (i32, i32) {
    %c0_i32 = arith.constant 0 : i32
    %c0_i32_0 = arith.constant 0 : i32
    return %arg0, %c0_i32 : i32, i32
  }
}

module attributes {stable_mosaic.version = 11 : i64} {
  func.func @_fc_softmax_kernel(%arg0: i32, %arg1: memref<2x6272xbf16, #tpu.memory_space<vmem>>, %arg2: memref<6272x128xbf16, #tpu.memory_space<vmem>>, %arg3: memref<1x128xf32, #tpu.memory_space<vmem>>, %arg4: memref<2x128xf32, #tpu.memory_space<vmem>>) attributes {dimension_semantics = [#tpu.dimension_semantics<parallel>], iteration_bounds = array<i64: 1>, scalar_prefetch = 0 : i64, scratch_operands = 0 : i64, tpu.core_type = #tpu.core_type<tc>, window_params = [{transform_indices = @transform_0, window_bounds = array<i64: 2, 6272>}, {pipeline_mode = #tpu.pipeline_mode<synchronous>, transform_indices = @transform_1, window_bounds = array<i64: 6272, 128>}, {pipeline_mode = #tpu.pipeline_mode<synchronous>, transform_indices = @transform_2, window_bounds = array<i64: 1, 128>}, {transform_indices = @transform_3, window_bounds = array<i64: 2, 128>}]} {
    %c0 = arith.constant 0 : index
    %c0_0 = arith.constant 0 : index
    %0 = vector.load %arg1[%c0, %c0_0] : memref<2x6272xbf16, #tpu.memory_space<vmem>>, vector<2x6272xbf16>
    %c0_1 = arith.constant 0 : index
    %c0_2 = arith.constant 0 : index
    %1 = vector.load %arg2[%c0_1, %c0_2] : memref<6272x128xbf16, #tpu.memory_space<vmem>>, vector<6272x128xbf16>
    %cst = arith.constant dense<0.000000e+00> : vector<2x128xf32>
    %2 = tpu.matmul %0, %1, %cst {dimension_numbers = #tpu.dot_dimension_numbers<[1], [0], [0], [1], [0, 0, 1, 1], [], []>} : vector<2x6272xbf16>, vector<6272x128xbf16>, vector<2x128xf32> -> vector<2x128xf32>
    %c0_3 = arith.constant 0 : index
    %c0_4 = arith.constant 0 : index
    %3 = vector.load %arg3[%c0_3, %c0_4] : memref<1x128xf32, #tpu.memory_space<vmem>>, vector<1x128xf32>
    %4 = vector.broadcast %3 : vector<1x128xf32> to vector<2x128xf32>
    %5 = arith.addf %2, %4 : vector<2x128xf32>
    %cst_5 = arith.constant dense<0xFF800000> : vector<2xf32>
    %6 = vector.multi_reduction <maximumf>, %5, %cst_5 [1] : vector<2x128xf32> to vector<2xf32>
    %7 = vector.shape_cast %6 : vector<2xf32> to vector<2x1xf32>
    %8 = vector.broadcast %7 : vector<2x1xf32> to vector<2x128xf32>
    %9 = arith.subf %5, %8 : vector<2x128xf32>
    %10 = math.exp %9 : vector<2x128xf32>
    %cst_6 = arith.constant dense<0.000000e+00> : vector<2xf32>
    %11 = vector.multi_reduction <add>, %10, %cst_6 [1] : vector<2x128xf32> to vector<2xf32>
    %12 = vector.shape_cast %11 : vector<2xf32> to vector<2x1xf32>
    %13 = vector.broadcast %12 : vector<2x1xf32> to vector<2x128xf32>
    %14 = arith.divf %10, %13 : vector<2x128xf32>
    %c0_7 = arith.constant 0 : index
    %c0_8 = arith.constant 0 : index
    %15 = vector.load %arg4[%c0_7, %c0_8] : memref<2x128xf32, #tpu.memory_space<vmem>>, vector<2x128xf32>
    tpu.vector_store %arg4[%c0_7, %c0_8], %14 {strides = array<i32>} : memref<2x128xf32, #tpu.memory_space<vmem>>, vector<2x128xf32>,
    return
  }
  func.func @transform_0(%arg0: i32) -> (i32, i32) {
    %c0_i32 = arith.constant 0 : i32
    %c0_i32_0 = arith.constant 0 : i32
    return %arg0, %c0_i32 : i32, i32
  }
  func.func @transform_1(%arg0: i32) -> (i32, i32) {
    %c0_i32 = arith.constant 0 : i32
    %c0_i32_0 = arith.constant 0 : i32
    %c0_i32_1 = arith.constant 0 : i32
    return %c0_i32, %c0_i32_0 : i32, i32
  }
  func.func @transform_2(%arg0: i32) -> (i32, i32) {
    %c0_i32 = arith.constant 0 : i32
    %c0_i32_0 = arith.constant 0 : i32
    %c0_i32_1 = arith.constant 0 : i32
    return %c0_i32, %c0_i32_0 : i32, i32
  }
  func.func @transform_3(%arg0: i32) -> (i32, i32) {
    %c0_i32 = arith.constant 0 : i32
    %c0_i32_0 = arith.constant 0 : i32
    return %arg0, %c0_i32 : i32, i32
  }
}

</mosaic_0001>

<bundles_post_ra>
// kernel: convnet_forward.5
= control target key start
LH: loop header
LB: loop body
LE: loop exit
PB: predicated region body
PF: predicated region fallthrough
CT: control target
= control target key end

     0   :  { %vm301_vm0 = vcmask 1043456   ;;  %vm302_vm1 = vcmask 1044480   ;;  %v3482_v0 = vmov 0.0   ;;  %v3483_v2 = vmov 65535   ;;  %s4422_s4 = inlined_call_operand.vmem [shape: bf16[25,128], index: 4, kind: input, shape index: {}]   ;;  %s4423_s0 = inlined_call_operand.vmem [shape: bf16[392,25], index: 0, kind: input, shape index: {}]   ;;  %s4424_s1 = inlined_call_operand.vmem [shape: bf16[392,25], index: 1, kind: input, shape index: {}]   ;;  %s4425_s2 = inlined_call_operand.vmem [shape: bf16[392,25], index: 2, kind: input, shape index: {}]   ;;  %s4426_s3 = inlined_call_operand.vmem [shape: bf16[392,25], index: 3, kind: input, shape index: {}]   ;;  %s4427_s5 = inlined_call_operand.vmem [shape: f32[1,128], index: 5, kind: input, shape index: {}]   ;;  %s4428_s6 = inlined_call_operand.vmem [shape: f32[1,128], index: 6, kind: input, shape index: {}]   ;;  %s4429_s7 = inlined_call_operand.vmem [shape: f32[1,128], index: 7, kind: input, shape index: {}]   ;;  %s4430_s8 = inlined_call_operand.vmem [shape: f32[1,128], index: 8, kind: output, shape index: {0}]   ;;  %s4431_s9 = inlined_call_operand.vmem [shape: f32[1,128], index: 9, kind: output, shape index: {1}]  }
   0x1   :  { %2959 = vmatprep.subr.bf16.mxu0 %v3482_v0  ;;  %36 = vst [vmem:[#allocation2] sm:$0x1] %v3482_v0  ;;  %37 = vst [vmem:[#allocation3] sm:$0x1] %v3482_v0  ;;  %3063 = vmatprep.subr.bf16.mxu1 %v3482_v0  ;;  %v3378_v1 = vld [vmem:[%s4422_s4 + $0x8] sm:$0x1f]  }
   0x2   :  { %v303_v3 = vsel %vm301_vm0, 4294967295, %v3483_v2  ;;  %vm3484_vm2 = vmmov 0   ;;  %v3379_v6 = vld [vmem:[%s4422_s4] sm:$0xff]   ;;  %vm225_vm3 = vcmask 203776   ;;  %v3382_v9 = vld [vmem:[%s4423_s0 + $0x8] sm:$0xff]   ;;  %v3384_v11 = vld [vmem:[%s4423_s0 + $0x10] sm:$0xff]  }
   0x3   :  { %v304_v4 = vsel %vm302_vm1, %v303_v3, 0  ;;  %2963 = vmatprep.mubr.msk.bf16.mxu0 %vm3484_vm2, %v3482_v0  ;;  %3067 = vmatprep.mubr.msk.bf16.mxu1 %vm3484_vm2, %v3482_v0  ;;  %v3380_v7 = vld [vmem:[%s4423_s0] sm:$0xff]   ;;  %v3383_v10 = vld [vmem:[%s4424_s1 + $0x8] sm:$0xff]   ;;  %v3385_v12 = vld [vmem:[%s4424_s1 + $0x10] sm:$0xff]  }
   0x4   :  { %v306_v5 = vand.u32 %v3378_v1, %v304_v4  ;;  %v3381_v8 = vld [vmem:[%s4424_s1] sm:$0xff]   ;;  %v3386_v13 = vld [vmem:[%s4423_s0 + $0x18] sm:$0xff]   ;;  %v3390_v17 = vld [vmem:[%s4423_s0 + $0x28] sm:$0xff]  }
   0x5   :  { %v3387_v14 = vld [vmem:[%s4424_s1 + $0x18] sm:$0xff]   ;;  %v3388_v15 = vld [vmem:[%s4423_s0 + $0x20] sm:$0xff]   ;;  %v3391_v18 = vld [vmem:[%s4424_s1 + $0x28] sm:$0xff]  }
   0x6   :  { %2960 = vmatpush3.bf16.msra.mxu0 %v306_v5  ;;  %3064 = vmatpush3.bf16.msra.mxu1 %v306_v5  ;;  %v3389_v16 = vld [vmem:[%s4424_s1 + $0x20] sm:$0xff]   ;;  %v3392_v19 = vld [vmem:[%s4423_s0 + $0x30] sm:$0xff]   ;;  %v3394_v21 = vld [vmem:[%s4423_s0 + $0x38] sm:$0xff]  }
   0x7   :  { %2961 = vmatprep.subr.bf16.mxu0 %v3482_v0  ;;  %3065 = vmatprep.subr.bf16.mxu1 %v3482_v0  ;;  %v3393_v20 = vld [vmem:[%s4424_s1 + $0x30] sm:$0xff]   ;;  %v3395_v22 = vld [vmem:[%s4424_s1 + $0x38] sm:$0xff]   ;;  %v3396_v23 = vld [vmem:[%s4423_s0 + $0x40] sm:$0xff]  }
   0x8   :  { %v3397_v24 = vld [vmem:[%s4424_s1 + $0x40] sm:$0xff]   ;;  %v3398_v25 = vld [vmem:[%s4423_s0 + $0x48] sm:$0xff]   ;;  %v3400_v27 = vld [vmem:[%s4423_s0 + $0x50] sm:$0xff]  }
   0x9   :  { %v3399_v26 = vld [vmem:[%s4424_s1 + $0x48] sm:$0xff]   ;;  %v3401_v28 = vld [vmem:[%s4424_s1 + $0x50] sm:$0xff]   ;;  %v3402_v29 = vld [vmem:[%s4423_s0 + $0x58] sm:$0xff]  }
   0xa   :  { %2962 = vmatpush3.bf16.msra.mxu0 %v3379_v6  ;;  %3066 = vmatpush3.bf16.msra.mxu1 %v3379_v6  ;;  %v3403_v30 = vld [vmem:[%s4424_s1 + $0x58] sm:$0xff]   ;;  %v3404_v31 = vld [vmem:[%s4423_s0 + $0x60] sm:$0xff]   ;;  %v3406_v33 = vld [vmem:[%s4423_s0 + $0x68] sm:$0xff]  }
   0xb   :  { %3167 = vmatprep.subr.bf16.mxu0 %v3482_v0  ;;  %3271 = vmatprep.subr.bf16.mxu1 %v3482_v0  ;;  %v3405_v32 = vld [vmem:[%s4424_s1 + $0x60] sm:$0xff]   ;;  %v3407_v34 = vld [vmem:[%s4424_s1 + $0x68] sm:$0xff]   ;;  %v3408_v35 = vld [vmem:[%s4423_s0 + $0x70] sm:$0xff]  }
   0xc   :  { %v3409_v36 = vld [vmem:[%s4424_s1 + $0x70] sm:$0xff]   ;;  %v3410_v37 = vld [vmem:[%s4423_s0 + $0x78] sm:$0xff]   ;;  %v3412_v39 = vld [vmem:[%s4423_s0 + $0x80] sm:$0xff]  }
   0xd   :  { %2964 = vmatmul.mubr.msk.bf16.vlgmr.msra.gmra.mxu0 %vm225_vm3, %v3380_v7  ;;  %3068 = vmatmul.mubr.msk.bf16.vlgmr.msra.gmra.mxu1 %vm225_vm3, %v3381_v8  ;;  %v3411_v38 = vld [vmem:[%s4424_s1 + $0x78] sm:$0xff]   ;;  %v3413_v40 = vld [vmem:[%s4424_s1 + $0x80] sm:$0xff]   ;;  %v3414_v41 = vld [vmem:[%s4423_s0 + $0x88] sm:$0xff]  }
   0xe   :  { %3168 = vmatpush3.bf16.msra.mxu0 %v306_v5  ;;  %3272 = vmatpush3.bf16.msra.mxu1 %v306_v5  ;;  %v3415_v42 = vld [vmem:[%s4424_s1 + $0x88] sm:$0xff]   ;;  %v3416_v43 = vld [vmem:[%s4423_s0 + $0x90] sm:$0xff]   ;;  %v3418_v45 = vld [vmem:[%s4423_s0 + $0x98] sm:$0xff]  }
   0xf   :  { %2967 = vmatprep.mubr.msk.bf16.mxu0 %vm3484_vm2, %v3482_v0  ;;  %3071 = vmatprep.mubr.msk.bf16.mxu1 %vm3484_vm2, %v3482_v0  ;;  %v3417_v44 = vld [vmem:[%s4424_s1 + $0x90] sm:$0xff]   ;;  %v3419_v46 = vld [vmem:[%s4424_s1 + $0x98] sm:$0xff]   ;;  %v3420_v47 = vld [vmem:[%s4423_s0 + $0xa0] sm:$0xff]  }
  0x10   :  { %3169 = vmatprep.subr.bf16.mxu0 %v3482_v0  ;;  %3273 = vmatprep.subr.bf16.mxu1 %v3482_v0  ;;  %v3421_v48 = vld [vmem:[%s4424_s1 + $0xa0] sm:$0xff]   ;;  %v3422_v49 = vld [vmem:[%s4423_s0 + $0xa8] sm:$0xff]   ;;  %v3424_v51 = vld [vmem:[%s4423_s0 + $0xb0] sm:$0xff]  }
  0x11   :  { %v3423_v50 = vld [vmem:[%s4424_s1 + $0xa8] sm:$0xff]   ;;  %v3425_v52 = vld [vmem:[%s4424_s1 + $0xb0] sm:$0xff]   ;;  %v3426_v53 = vld [vmem:[%s4423_s0 + $0xb8] sm:$0xff]  }
  0x12   :  { %3170 = vmatpush3.bf16.msra.mxu0 %v3379_v6  ;;  %3274 = vmatpush3.bf16.msra.mxu1 %v3379_v6  ;;  %v3427_v54 = vld [vmem:[%s4424_s1 + $0xb8] sm:$0xff]   ;;  %v3428_v55 = vld [vmem:[%s4423_s0 + $0xc0] ss:$0 sps:$4 sm:$0xff]  }
  0x13   :  { %v3429_v56 = vld [vmem:[%s4424_s1 + $0xc0] ss:$0 sps:$4 sm:$0xff]  }
  0x14   :  { %v3430_v2 = vld [vmem:[%s4425_s2] sm:$0xff]  }
  0x15   :  { %2968 = vmatmul.mubr.msk.bf16.gmra.mxu0 %vm225_vm3, %v3382_v9  ;;  %3072 = vmatmul.mubr.msk.bf16.gmra.mxu1 %vm225_vm3, %v3383_v10  ;;  %v3431_v3 = vld [vmem:[%s4426_s3] sm:$0xff]  }
  0x16   :  { %2971 = vmatprep.mubr.msk.bf16.mxu0 %vm3484_vm2, %v3482_v0  ;;  %3075 = vmatprep.mubr.msk.bf16.mxu1 %vm3484_vm2, %v3482_v0 }
  0x1d   :  { %2972 = vmatmul.mubr.msk.bf16.gmra.mxu0 %vm225_vm3, %v3384_v11  ;;  %3076 = vmatmul.mubr.msk.bf16.gmra.mxu1 %vm225_vm3, %v3385_v12 }
  0x1e   :  { %2975 = vmatprep.mubr.msk.bf16.mxu0 %vm3484_vm2, %v3482_v0  ;;  %3079 = vmatprep.mubr.msk.bf16.mxu1 %vm3484_vm2, %v3482_v0 }
  0x25   :  { %2976 = vmatmul.mubr.msk.bf16.gmra.mxu0 %vm225_vm3, %v3386_v13  ;;  %3080 = vmatmul.mubr.msk.bf16.gmra.mxu1 %vm225_vm3, %v3387_v14 }
  0x26   :  { %2979 = vmatprep.mubr.msk.bf16.mxu0 %vm3484_vm2, %v3482_v0  ;;  %3083 = vmatprep.mubr.msk.bf16.mxu1 %vm3484_vm2, %v3482_v0 }
  0x2d   :  { %2980 = vmatmul.mubr.msk.bf16.gmra.mxu0 %vm225_vm3, %v3388_v15  ;;  %3084 = vmatmul.mubr.msk.bf16.gmra.mxu1 %vm225_vm3, %v3389_v16 }
  0x2e   :  { %2983 = vmatprep.mubr.msk.bf16.mxu0 %vm3484_vm2, %v3482_v0  ;;  %3087 = vmatprep.mubr.msk.bf16.mxu1 %vm3484_vm2, %v3482_v0 }
  0x35   :  { %2984 = vmatmul.mubr.msk.bf16.gmra.mxu0 %vm225_vm3, %v3390_v17  ;;  %3088 = vmatmul.mubr.msk.bf16.gmra.mxu1 %vm225_vm3, %v3391_v18 }
  0x36   :  { %2987 = vmatprep.mubr.msk.bf16.mxu0 %vm3484_vm2, %v3482_v0  ;;  %3091 = vmatprep.mubr.msk.bf16.mxu1 %vm3484_vm2, %v3482_v0 }
  0x3d   :  { %2988 = vmatmul.mubr.msk.bf16.gmra.mxu0 %vm225_vm3, %v3392_v19  ;;  %3092 = vmatmul.mubr.msk.bf16.gmra.mxu1 %vm225_vm3, %v3393_v20 }
  0x3e   :  { %2991 = vmatprep.mubr.msk.bf16.mxu0 %vm3484_vm2, %v3482_v0  ;;  %3095 = vmatprep.mubr.msk.bf16.mxu1 %vm3484_vm2, %v3482_v0 }
  0x45   :  { %2992 = vmatmul.mubr.msk.bf16.gmra.mxu0 %vm225_vm3, %v3394_v21  ;;  %3096 = vmatmul.mubr.msk.bf16.gmra.mxu1 %vm225_vm3, %v3395_v22 }
  0x46   :  { %2995 = vmatprep.mubr.msk.bf16.mxu0 %vm3484_vm2, %v3482_v0  ;;  %3099 = vmatprep.mubr.msk.bf16.mxu1 %vm3484_vm2, %v3482_v0 }
  0x4d   :  { %2996 = vmatmul.mubr.msk.bf16.gmra.mxu0 %vm225_vm3, %v3396_v23  ;;  %3100 = vmatmul.mubr.msk.bf16.gmra.mxu1 %vm225_vm3, %v3397_v24  ;;  %v3432_v24 = vld [vmem:[%s4425_s2 + $0x8] sm:$0xff]  }
  0x4e   :  { %2999 = vmatprep.mubr.msk.bf16.mxu0 %vm3484_vm2, %v3482_v0  ;;  %3103 = vmatprep.mubr.msk.bf16.mxu1 %vm3484_vm2, %v3482_v0 }
  0x55   :  { %3000 = vmatmul.mubr.msk.bf16.gmra.mxu0 %vm225_vm3, %v3398_v25  ;;  %3104 = vmatmul.mubr.msk.bf16.gmra.mxu1 %vm225_vm3, %v3399_v26  ;;  %v3433_v25 = vld [vmem:[%s4426_s3 + $0x8] sm:$0xff]  }
  0x56   :  { %3003 = vmatprep.mubr.msk.bf16.mxu0 %vm3484_vm2, %v3482_v0  ;;  %3107 = vmatprep.mubr.msk.bf16.mxu1 %vm3484_vm2, %v3482_v0 }
  0x5d   :  { %3004 = vmatmul.mubr.msk.bf16.gmra.mxu0 %vm225_vm3, %v3400_v27  ;;  %3108 = vmatmul.mubr.msk.bf16.gmra.mxu1 %vm225_vm3, %v3401_v28 }
  0x5e   :  { %3007 = vmatprep.mubr.msk.bf16.mxu0 %vm3484_vm2, %v3482_v0  ;;  %3111 = vmatprep.mubr.msk.bf16.mxu1 %vm3484_vm2, %v3482_v0 }
  0x65   :  { %3008 = vmatmul.mubr.msk.bf16.gmra.mxu0 %vm225_vm3, %v3402_v29  ;;  %3112 = vmatmul.mubr.msk.bf16.gmra.mxu1 %vm225_vm3, %v3403_v30 }
  0x66   :  { %3011 = vmatprep.mubr.msk.bf16.mxu0 %vm3484_vm2, %v3482_v0  ;;  %3115 = vmatprep.mubr.msk.bf16.mxu1 %vm3484_vm2, %v3482_v0 }
  0x6d   :  { %3012 = vmatmul.mubr.msk.bf16.gmra.mxu0 %vm225_vm3, %v3404_v31  ;;  %3116 = vmatmul.mubr.msk.bf16.gmra.mxu1 %vm225_vm3, %v3405_v32 }
  0x6e   :  { %3015 = vmatprep.mubr.msk.bf16.mxu0 %vm3484_vm2, %v3482_v0  ;;  %3119 = vmatprep.mubr.msk.bf16.mxu1 %vm3484_vm2, %v3482_v0 }
  0x75   :  { %3016 = vmatmul.mubr.msk.bf16.gmra.mxu0 %vm225_vm3, %v3406_v33  ;;  %3120 = vmatmul.mubr.msk.bf16.gmra.mxu1 %vm225_vm3, %v3407_v34 }
  0x76   :  { %3019 = vmatprep.mubr.msk.bf16.mxu0 %vm3484_vm2, %v3482_v0  ;;  %3123 = vmatprep.mubr.msk.bf16.mxu1 %vm3484_vm2, %v3482_v0 }
  0x7d   :  { %3020 = vmatmul.mubr.msk.bf16.gmra.mxu0 %vm225_vm3, %v3408_v35  ;;  %3124 = vmatmul.mubr.msk.bf16.gmra.mxu1 %vm225_vm3, %v3409_v36 }
  0x7e   :  { %3023 = vmatprep.mubr.msk.bf16.mxu0 %vm3484_vm2, %v3482_v0  ;;  %3127 = vmatprep.mubr.msk.bf16.mxu1 %vm3484_vm2, %v3482_v0 }
  0x85   :  { %3024 = vmatmul.mubr.msk.bf16.gmra.mxu0 %vm225_vm3, %v3410_v37  ;;  %3128 = vmatmul.mubr.msk.bf16.gmra.mxu1 %vm225_vm3, %v3411_v38 }
  0x86   :  { %3027 = vmatprep.mubr.msk.bf16.mxu0 %vm3484_vm2, %v3482_v0  ;;  %3131 = vmatprep.mubr.msk.bf16.mxu1 %vm3484_vm2, %v3482_v0 }
  0x8d   :  { %3028 = vmatmul.mubr.msk.bf16.gmra.mxu0 %vm225_vm3, %v3412_v39  ;;  %3132 = vmatmul.mubr.msk.bf16.gmra.mxu1 %vm225_vm3, %v3413_v40 }
  0x8e   :  { %3031 = vmatprep.mubr.msk.bf16.mxu0 %vm3484_vm2, %v3482_v0  ;;  %3135 = vmatprep.mubr.msk.bf16.mxu1 %vm3484_vm2, %v3482_v0 }
  0x95   :  { %3032 = vmatmul.mubr.msk.bf16.gmra.mxu0 %vm225_vm3, %v3414_v41  ;;  %3136 = vmatmul.mubr.msk.bf16.gmra.mxu1 %vm225_vm3, %v3415_v42 }
  0x96   :  { %3035 = vmatprep.mubr.msk.bf16.mxu0 %vm3484_vm2, %v3482_v0  ;;  %3139 = vmatprep.mubr.msk.bf16.mxu1 %vm3484_vm2, %v3482_v0 }
  0x9d   :  { %3036 = vmatmul.mubr.msk.bf16.gmra.mxu0 %vm225_vm3, %v3416_v43  ;;  %3140 = vmatmul.mubr.msk.bf16.gmra.mxu1 %vm225_vm3, %v3417_v44 }
  0x9e   :  { %3039 = vmatprep.mubr.msk.bf16.mxu0 %vm3484_vm2, %v3482_v0  ;;  %3143 = vmatprep.mubr.msk.bf16.mxu1 %vm3484_vm2, %v3482_v0 }
  0xa5   :  { %3040 = vmatmul.mubr.msk.bf16.gmra.mxu0 %vm225_vm3, %v3418_v45  ;;  %3144 = vmatmul.mubr.msk.bf16.gmra.mxu1 %vm225_vm3, %v3419_v46  ;;  %v3434_v46 = vld [vmem:[%s4425_s2 + $0x10] sm:$0xff]  }
  0xa6   :  { %3043 = vmatprep.mubr.msk.bf16.mxu0 %vm3484_vm2, %v3482_v0  ;;  %3147 = vmatprep.mubr.msk.bf16.mxu1 %vm3484_vm2, %v3482_v0 }
  0xad   :  { %3044 = vmatmul.mubr.msk.bf16.gmra.mxu0 %vm225_vm3, %v3420_v47  ;;  %3148 = vmatmul.mubr.msk.bf16.gmra.mxu1 %vm225_vm3, %v3421_v48  ;;  %v3435_v47 = vld [vmem:[%s4426_s3 + $0x10] sm:$0xff]  }
  0xae   :  { %3047 = vmatprep.mubr.msk.bf16.mxu0 %vm3484_vm2, %v3482_v0  ;;  %3151 = vmatprep.mubr.msk.bf16.mxu1 %vm3484_vm2, %v3482_v0 }
  0xb5   :  { %3048 = vmatmul.mubr.msk.bf16.gmra.mxu0 %vm225_vm3, %v3422_v49  ;;  %3152 = vmatmul.mubr.msk.bf16.gmra.mxu1 %vm225_vm3, %v3423_v50 }
  0xb6   :  { %3051 = vmatprep.mubr.msk.bf16.mxu0 %vm3484_vm2, %v3482_v0  ;;  %3155 = vmatprep.mubr.msk.bf16.mxu1 %vm3484_vm2, %v3482_v0 }
  0xbd   :  { %3052 = vmatmul.mubr.msk.bf16.gmra.mxu0 %vm225_vm3, %v3424_v51  ;;  %3156 = vmatmul.mubr.msk.bf16.gmra.mxu1 %vm225_vm3, %v3425_v52 }
  0xbe   :  { %3055 = vmatprep.mubr.msk.bf16.mxu0 %vm3484_vm2, %v3482_v0  ;;  %3159 = vmatprep.mubr.msk.bf16.mxu1 %vm3484_vm2, %v3482_v0 }
  0xc5   :  { %3056 = vmatmul.mubr.msk.bf16.gmra.mxu0 %vm225_vm3, %v3426_v53  ;;  %3160 = vmatmul.mubr.msk.bf16.gmra.mxu1 %vm225_vm3, %v3427_v54 }
  0xc6   :  { %3059 = vmatprep.mubr.msk.bf16.mxu0 %vm3484_vm2, %v3482_v0  ;;  %3163 = vmatprep.mubr.msk.bf16.mxu1 %vm3484_vm2, %v3482_v0 }
  0xcd   :  { %v342_v57 = vpop.f32.mrf.mxu0  ;;  %3060 = vmatmul.mubr.msk.bf16.gmra.mxu0 %vm225_vm3, %v3428_v55  ;;  %v980_v58 = vpop.f32.mrf.mxu1  ;;  %3164 = vmatmul.mubr.msk.bf16.gmra.mxu1 %vm225_vm3, %v3429_v56 }
  0xce   :  { %3171 = vmatprep.mubr.msk.bf16.mxu0 %vm3484_vm2, %v3482_v0  ;;  %3275 = vmatprep.mubr.msk.bf16.mxu1 %vm3484_vm2, %v3482_v0  ;;  %v595_v61 = vmul.f32 %v342_v57, %v342_v57  ;;  %v1233_v62 = vmul.f32 %v980_v58, %v980_v58 }
  0xcf   :  { %v2965_v59 = vpop.f32.mrf.mxu0  ;;  %v3069_v60 = vpop.f32.mrf.mxu1 }
  0xd1   :  { %v345_v63 = vpop.f32.mrf.mxu0  ;;  %v983_v1 = vpop.f32.mrf.mxu1 }
  0xd2   :  { %v540_v4 = vadd.f32 %v345_v63, %v342_v57  ;;  %v596_v5 = vmul.f32 %v345_v63, %v345_v63  ;;  %v1178_v6 = vadd.f32 %v983_v1, %v980_v58  ;;  %v1234_v7 = vmul.f32 %v983_v1, %v983_v1 }
  0xd3   :  { %v2966_v8 = vpop.f32.mrf.mxu0  ;;  %v3070_v9 = vpop.f32.mrf.mxu1 }
  0xd4   :  { %v644_v10 = vadd.f32 %v596_v5, %v595_v61  ;;  %v1282_v11 = vadd.f32 %v1234_v7, %v1233_v62  ;;  %v3436_v5 = vld [vmem:[%s4425_s2 + $0x18] sm:$0xff]  }
  0xd5   :  { %v350_v12 = vpop.f32.mrf.mxu0  ;;  %v988_v13 = vpop.f32.mrf.mxu1  ;;  %3172 = vmatmul.mubr.msk.bf16.vlgmr.msra.gmra.mxu0 %vm225_vm3, %v3430_v2  ;;  %3276 = vmatmul.mubr.msk.bf16.vlgmr.msra.gmra.mxu1 %vm225_vm3, %v3431_v3 }
  0xd6   :  { %v541_v14 = vadd.f32 %v540_v4, %v350_v12  ;;  %v597_v15 = vmul.f32 %v350_v12, %v350_v12  ;;  %v1179_v16 = vadd.f32 %v1178_v6, %v988_v13  ;;  %v1235_v17 = vmul.f32 %v988_v13, %v988_v13  ;;  %3175 = vmatprep.mubr.msk.bf16.mxu0 %vm3484_vm2, %v3482_v0  ;;  %v3437_v6 = vld [vmem:[%s4426_s3 + $0x18] sm:$0xff]  }
  0xd7   :  { %v2969_v18 = vpop.f32.mrf.mxu0  ;;  %v3073_v19 = vpop.f32.mrf.mxu1  ;;  %3279 = vmatprep.mubr.msk.bf16.mxu1 %vm3484_vm2, %v3482_v0 }
  0xd8   :  { %v645_v20 = vadd.f32 %v644_v10, %v597_v15  ;;  %v1283_v21 = vadd.f32 %v1282_v11, %v1235_v17 }
  0xd9   :  { %v353_v22 = vpop.f32.mrf.mxu0  ;;  %v991_v23 = vpop.f32.mrf.mxu1 }
  0xda   :  { %v542_v26 = vadd.f32 %v541_v14, %v353_v22  ;;  %v598_v27 = vmul.f32 %v353_v22, %v353_v22  ;;  %v1180_v28 = vadd.f32 %v1179_v16, %v991_v23  ;;  %v1236_v29 = vmul.f32 %v991_v23, %v991_v23 }
  0xdb   :  { %v2970_v30 = vpop.f32.mrf.mxu0  ;;  %v3074_v31 = vpop.f32.mrf.mxu1 }
  0xdc   :  { %v646_v32 = vadd.f32 %v645_v20, %v598_v27  ;;  %v1284_v33 = vadd.f32 %v1283_v21, %v1236_v29  ;;  %v3438_v27 = vld [vmem:[%s4425_s2 + $0x20] sm:$0xff]  }
  0xdd   :  { %v358_v34 = vpop.f32.mrf.mxu0  ;;  %v996_v35 = vpop.f32.mrf.mxu1  ;;  %3176 = vmatmul.mubr.msk.bf16.gmra.mxu0 %vm225_vm3, %v3432_v24  ;;  %3280 = vmatmul.mubr.msk.bf16.gmra.mxu1 %vm225_vm3, %v3433_v25 }
  0xde   :  { %v543_v36 = vadd.f32 %v542_v26, %v358_v34  ;;  %v599_v37 = vmul.f32 %v358_v34, %v358_v34  ;;  %v1181_v38 = vadd.f32 %v1180_v28, %v996_v35  ;;  %v1237_v39 = vmul.f32 %v996_v35, %v996_v35  ;;  %3179 = vmatprep.mubr.msk.bf16.mxu0 %vm3484_vm2, %v3482_v0  ;;  %v3439_v28 = vld [vmem:[%s4426_s3 + $0x20] sm:$0xff]  }
  0xdf   :  { %v2973_v40 = vpop.f32.mrf.mxu0  ;;  %v3077_v41 = vpop.f32.mrf.mxu1  ;;  %3283 = vmatprep.mubr.msk.bf16.mxu1 %vm3484_vm2, %v3482_v0 }
  0xe0   :  { %v647_v42 = vadd.f32 %v646_v32, %v599_v37  ;;  %v1285_v43 = vadd.f32 %v1284_v33, %v1237_v39 }
  0xe1   :  { %v361_v44 = vpop.f32.mrf.mxu0  ;;  %v999_v45 = vpop.f32.mrf.mxu1 }
  0xe2   :  { %v544_v48 = vadd.f32 %v543_v36, %v361_v44  ;;  %v600_v49 = vmul.f32 %v361_v44, %v361_v44  ;;  %v1182_v50 = vadd.f32 %v1181_v38, %v999_v45  ;;  %v1238_v51 = vmul.f32 %v999_v45, %v999_v45 }
  0xe3   :  { %v2974_v52 = vpop.f32.mrf.mxu0  ;;  %v3078_v53 = vpop.f32.mrf.mxu1 }
  0xe4   :  { %v648_v54 = vadd.f32 %v647_v42, %v600_v49  ;;  %v1286_v55 = vadd.f32 %v1285_v43, %v1238_v51  ;;  %v3440_v49 = vld [vmem:[%s4425_s2 + $0x28] sm:$0xff]  }
  0xe5   :  { %v366_v56 = vpop.f32.mrf.mxu0  ;;  %v1004_v57 = vpop.f32.mrf.mxu1  ;;  %3180 = vmatmul.mubr.msk.bf16.gmra.mxu0 %vm225_vm3, %v3434_v46  ;;  %3284 = vmatmul.mubr.msk.bf16.gmra.mxu1 %vm225_vm3, %v3435_v47 }
  0xe6   :  { %v545_v58 = vadd.f32 %v544_v48, %v366_v56  ;;  %v601_v59 = vmul.f32 %v366_v56, %v366_v56  ;;  %v1183_v60 = vadd.f32 %v1182_v50, %v1004_v57  ;;  %v1239_v61 = vmul.f32 %v1004_v57, %v1004_v57  ;;  %3183 = vmatprep.mubr.msk.bf16.mxu0 %vm3484_vm2, %v3482_v0  ;;  %v3441_v50 = vld [vmem:[%s4426_s3 + $0x28] sm:$0xff]  }
  0xe7   :  { %v2977_v62 = vpop.f32.mrf.mxu0  ;;  %v3081_v63 = vpop.f32.mrf.mxu1  ;;  %3287 = vmatprep.mubr.msk.bf16.mxu1 %vm3484_vm2, %v3482_v0 }
  0xe8   :  { %v649_v1 = vadd.f32 %v648_v54, %v601_v59  ;;  %v1287_v2 = vadd.f32 %v1286_v55, %v1239_v61 }
  0xe9   :  { %v369_v3 = vpop.f32.mrf.mxu0  ;;  %v1007_v4 = vpop.f32.mrf.mxu1 }
  0xea   :  { %v546_v7 = vadd.f32 %v545_v58, %v369_v3  ;;  %v602_v8 = vmul.f32 %v369_v3, %v369_v3  ;;  %v1184_v9 = vadd.f32 %v1183_v60, %v1007_v4  ;;  %v1240_v10 = vmul.f32 %v1007_v4, %v1007_v4 }
  0xeb   :  { %v2978_v11 = vpop.f32.mrf.mxu0  ;;  %v3082_v12 = vpop.f32.mrf.mxu1 }
  0xec   :  { %v650_v13 = vadd.f32 %v649_v1, %v602_v8  ;;  %v1288_v14 = vadd.f32 %v1287_v2, %v1240_v10  ;;  %v3442_v8 = vld [vmem:[%s4425_s2 + $0x30] sm:$0xff]  }
  0xed   :  { %v374_v15 = vpop.f32.mrf.mxu0  ;;  %v1012_v16 = vpop.f32.mrf.mxu1  ;;  %3184 = vmatmul.mubr.msk.bf16.gmra.mxu0 %vm225_vm3, %v3436_v5  ;;  %3288 = vmatmul.mubr.msk.bf16.gmra.mxu1 %vm225_vm3, %v3437_v6 }
  0xee   :  { %v547_v17 = vadd.f32 %v546_v7, %v374_v15  ;;  %v603_v18 = vmul.f32 %v374_v15, %v374_v15  ;;  %v1185_v19 = vadd.f32 %v1184_v9, %v1012_v16  ;;  %v1241_v20 = vmul.f32 %v1012_v16, %v1012_v16  ;;  %3187 = vmatprep.mubr.msk.bf16.mxu0 %vm3484_vm2, %v3482_v0  ;;  %v3443_v9 = vld [vmem:[%s4426_s3 + $0x30] sm:$0xff]  }
  0xef   :  { %v2981_v21 = vpop.f32.mrf.mxu0  ;;  %v3085_v22 = vpop.f32.mrf.mxu1  ;;  %3291 = vmatprep.mubr.msk.bf16.mxu1 %vm3484_vm2, %v3482_v0 }
  0xf0   :  { %v651_v23 = vadd.f32 %v650_v13, %v603_v18  ;;  %v1289_v24 = vadd.f32 %v1288_v14, %v1241_v20 }
  0xf1   :  { %v377_v25 = vpop.f32.mrf.mxu0  ;;  %v1015_v26 = vpop.f32.mrf.mxu1 }
  0xf2   :  { %v548_v29 = vadd.f32 %v547_v17, %v377_v25  ;;  %v604_v30 = vmul.f32 %v377_v25, %v377_v25  ;;  %v1186_v31 = vadd.f32 %v1185_v19, %v1015_v26  ;;  %v1242_v32 = vmul.f32 %v1015_v26, %v1015_v26 }
  0xf3   :  { %v2982_v33 = vpop.f32.mrf.mxu0  ;;  %v3086_v34 = vpop.f32.mrf.mxu1 }
  0xf4   :  { %v652_v35 = vadd.f32 %v651_v23, %v604_v30  ;;  %v1290_v36 = vadd.f32 %v1289_v24, %v1242_v32  ;;  %v3444_v30 = vld [vmem:[%s4425_s2 + $0x38] sm:$0xff]  }
  0xf5   :  { %v382_v37 = vpop.f32.mrf.mxu0  ;;  %v1020_v38 = vpop.f32.mrf.mxu1  ;;  %3188 = vmatmul.mubr.msk.bf16.gmra.mxu0 %vm225_vm3, %v3438_v27  ;;  %3292 = vmatmul.mubr.msk.bf16.gmra.mxu1 %vm225_vm3, %v3439_v28 }
  0xf6   :  { %v549_v39 = vadd.f32 %v548_v29, %v382_v37  ;;  %v605_v40 = vmul.f32 %v382_v37, %v382_v37  ;;  %v1187_v41 = vadd.f32 %v1186_v31, %v1020_v38  ;;  %v1243_v42 = vmul.f32 %v1020_v38, %v1020_v38  ;;  %3191 = vmatprep.mubr.msk.bf16.mxu0 %vm3484_vm2, %v3482_v0  ;;  %v3445_v31 = vld [vmem:[%s4426_s3 + $0x38] sm:$0xff]  }
  0xf7   :  { %v2985_v43 = vpop.f32.mrf.mxu0  ;;  %v3089_v44 = vpop.f32.mrf.mxu1  ;;  %3295 = vmatprep.mubr.msk.bf16.mxu1 %vm3484_vm2, %v3482_v0 }
  0xf8   :  { %v653_v45 = vadd.f32 %v652_v35, %v605_v40  ;;  %v1291_v46 = vadd.f32 %v1290_v36, %v1243_v42 }
  0xf9   :  { %v385_v47 = vpop.f32.mrf.mxu0  ;;  %v1023_v48 = vpop.f32.mrf.mxu1 }
  0xfa   :  { %v550_v51 = vadd.f32 %v549_v39, %v385_v47  ;;  %v606_v52 = vmul.f32 %v385_v47, %v385_v47  ;;  %v1188_v53 = vadd.f32 %v1187_v41, %v1023_v48  ;;  %v1244_v54 = vmul.f32 %v1023_v48, %v1023_v48 }
  0xfb   :  { %v2986_v55 = vpop.f32.mrf.mxu0  ;;  %v3090_v56 = vpop.f32.mrf.mxu1 }
  0xfc   :  { %v654_v57 = vadd.f32 %v653_v45, %v606_v52  ;;  %v1292_v58 = vadd.f32 %v1291_v46, %v1244_v54  ;;  %v3446_v52 = vld [vmem:[%s4425_s2 + $0x40] sm:$0xff]  }
  0xfd   :  { %v390_v59 = vpop.f32.mrf.mxu0  ;;  %v1028_v60 = vpop.f32.mrf.mxu1  ;;  %3192 = vmatmul.mubr.msk.bf16.gmra.mxu0 %vm225_vm3, %v3440_v49  ;;  %3296 = vmatmul.mubr.msk.bf16.gmra.mxu1 %vm225_vm3, %v3441_v50 }
  0xfe   :  { %v551_v61 = vadd.f32 %v550_v51, %v390_v59  ;;  %v607_v62 = vmul.f32 %v390_v59, %v390_v59  ;;  %v1189_v63 = vadd.f32 %v1188_v53, %v1028_v60  ;;  %v1245_v1 = vmul.f32 %v1028_v60, %v1028_v60  ;;  %3195 = vmatprep.mubr.msk.bf16.mxu0 %vm3484_vm2, %v3482_v0  ;;  %v3447_v53 = vld [vmem:[%s4426_s3 + $0x40] sm:$0xff]  }
  0xff   :  { %v2989_v2 = vpop.f32.mrf.mxu0  ;;  %v3093_v3 = vpop.f32.mrf.mxu1  ;;  %3299 = vmatprep.mubr.msk.bf16.mxu1 %vm3484_vm2, %v3482_v0 }
 0x100   :  { %v655_v4 = vadd.f32 %v654_v57, %v607_v62  ;;  %v1293_v5 = vadd.f32 %v1292_v58, %v1245_v1 }
 0x101   :  { %v393_v6 = vpop.f32.mrf.mxu0  ;;  %v1031_v7 = vpop.f32.mrf.mxu1 }
 0x102   :  { %v552_v10 = vadd.f32 %v551_v61, %v393_v6  ;;  %v608_v11 = vmul.f32 %v393_v6, %v393_v6  ;;  %v1190_v12 = vadd.f32 %v1189_v63, %v1031_v7  ;;  %v1246_v13 = vmul.f32 %v1031_v7, %v1031_v7 }
 0x103   :  { %v2990_v14 = vpop.f32.mrf.mxu0  ;;  %v3094_v15 = vpop.f32.mrf.mxu1 }
 0x104   :  { %v656_v16 = vadd.f32 %v655_v4, %v608_v11  ;;  %v1294_v17 = vadd.f32 %v1293_v5, %v1246_v13  ;;  %v3448_v11 = vld [vmem:[%s4425_s2 + $0x48] sm:$0xff]  }
 0x105   :  { %v398_v18 = vpop.f32.mrf.mxu0  ;;  %v1036_v19 = vpop.f32.mrf.mxu1  ;;  %3196 = vmatmul.mubr.msk.bf16.gmra.mxu0 %vm225_vm3, %v3442_v8  ;;  %3300 = vmatmul.mubr.msk.bf16.gmra.mxu1 %vm225_vm3, %v3443_v9 }
 0x106   :  { %v553_v20 = vadd.f32 %v552_v10, %v398_v18  ;;  %v609_v21 = vmul.f32 %v398_v18, %v398_v18  ;;  %v1191_v22 = vadd.f32 %v1190_v12, %v1036_v19  ;;  %v1247_v23 = vmul.f32 %v1036_v19, %v1036_v19  ;;  %3199 = vmatprep.mubr.msk.bf16.mxu0 %vm3484_vm2, %v3482_v0  ;;  %v3449_v12 = vld [vmem:[%s4426_s3 + $0x48] sm:$0xff]  }
 0x107   :  { %v2993_v24 = vpop.f32.mrf.mxu0  ;;  %v3097_v25 = vpop.f32.mrf.mxu1  ;;  %3303 = vmatprep.mubr.msk.bf16.mxu1 %vm3484_vm2, %v3482_v0 }
 0x108   :  { %v657_v26 = vadd.f32 %v656_v16, %v609_v21  ;;  %v1295_v27 = vadd.f32 %v1294_v17, %v1247_v23 }
 0x109   :  { %v401_v28 = vpop.f32.mrf.mxu0  ;;  %v1039_v29 = vpop.f32.mrf.mxu1 }
 0x10a   :  { %v554_v32 = vadd.f32 %v553_v20, %v401_v28  ;;  %v610_v33 = vmul.f32 %v401_v28, %v401_v28  ;;  %v1192_v34 = vadd.f32 %v1191_v22, %v1039_v29  ;;  %v1248_v35 = vmul.f32 %v1039_v29, %v1039_v29 }
 0x10b   :  { %v2994_v36 = vpop.f32.mrf.mxu0  ;;  %v3098_v37 = vpop.f32.mrf.mxu1 }
 0x10c   :  { %v658_v38 = vadd.f32 %v657_v26, %v610_v33  ;;  %v1296_v39 = vadd.f32 %v1295_v27, %v1248_v35  ;;  %v3450_v33 = vld [vmem:[%s4425_s2 + $0x50] sm:$0xff]  }
 0x10d   :  { %v406_v40 = vpop.f32.mrf.mxu0  ;;  %v1044_v41 = vpop.f32.mrf.mxu1  ;;  %3200 = vmatmul.mubr.msk.bf16.gmra.mxu0 %vm225_vm3, %v3444_v30  ;;  %3304 = vmatmul.mubr.msk.bf16.gmra.mxu1 %vm225_vm3, %v3445_v31 }
 0x10e   :  { %v555_v42 = vadd.f32 %v554_v32, %v406_v40  ;;  %v611_v43 = vmul.f32 %v406_v40, %v406_v40  ;;  %v1193_v44 = vadd.f32 %v1192_v34, %v1044_v41  ;;  %v1249_v45 = vmul.f32 %v1044_v41, %v1044_v41  ;;  %3203 = vmatprep.mubr.msk.bf16.mxu0 %vm3484_vm2, %v3482_v0  ;;  %v3451_v34 = vld [vmem:[%s4426_s3 + $0x50] sm:$0xff]  }
 0x10f   :  { %v2997_v46 = vpop.f32.mrf.mxu0  ;;  %v3101_v47 = vpop.f32.mrf.mxu1  ;;  %3307 = vmatprep.mubr.msk.bf16.mxu1 %vm3484_vm2, %v3482_v0 }
 0x110   :  { %v659_v48 = vadd.f32 %v658_v38, %v611_v43  ;;  %v1297_v49 = vadd.f32 %v1296_v39, %v1249_v45 }
 0x111   :  { %v409_v50 = vpop.f32.mrf.mxu0  ;;  %v1047_v51 = vpop.f32.mrf.mxu1 }
 0x112   :  { %v556_v54 = vadd.f32 %v555_v42, %v409_v50  ;;  %v612_v55 = vmul.f32 %v409_v50, %v409_v50  ;;  %v1194_v56 = vadd.f32 %v1193_v44, %v1047_v51  ;;  %v1250_v57 = vmul.f32 %v1047_v51, %v1047_v51 }
 0x113   :  { %v2998_v58 = vpop.f32.mrf.mxu0  ;;  %v3102_v59 = vpop.f32.mrf.mxu1 }
 0x114   :  { %v660_v60 = vadd.f32 %v659_v48, %v612_v55  ;;  %v1298_v61 = vadd.f32 %v1297_v49, %v1250_v57  ;;  %v3452_v55 = vld [vmem:[%s4425_s2 + $0x58] sm:$0xff]  }
 0x115   :  { %v414_v62 = vpop.f32.mrf.mxu0  ;;  %v1052_v63 = vpop.f32.mrf.mxu1  ;;  %3204 = vmatmul.mubr.msk.bf16.gmra.mxu0 %vm225_vm3, %v3446_v52  ;;  %3308 = vmatmul.mubr.msk.bf16.gmra.mxu1 %vm225_vm3, %v3447_v53 }
 0x116   :  { %v557_v1 = vadd.f32 %v556_v54, %v414_v62  ;;  %v613_v2 = vmul.f32 %v414_v62, %v414_v62  ;;  %v1195_v3 = vadd.f32 %v1194_v56, %v1052_v63  ;;  %v1251_v4 = vmul.f32 %v1052_v63, %v1052_v63  ;;  %3207 = vmatprep.mubr.msk.bf16.mxu0 %vm3484_vm2, %v3482_v0  ;;  %v3453_v56 = vld [vmem:[%s4426_s3 + $0x58] sm:$0xff]  }
 0x117   :  { %v3001_v5 = vpop.f32.mrf.mxu0  ;;  %v3105_v6 = vpop.f32.mrf.mxu1  ;;  %3311 = vmatprep.mubr.msk.bf16.mxu1 %vm3484_vm2, %v3482_v0 }
 0x118   :  { %v661_v7 = vadd.f32 %v660_v60, %v613_v2  ;;  %v1299_v8 = vadd.f32 %v1298_v61, %v1251_v4 }
 0x119   :  { %v417_v9 = vpop.f32.mrf.mxu0  ;;  %v1055_v10 = vpop.f32.mrf.mxu1 }
 0x11a   :  { %v558_v13 = vadd.f32 %v557_v1, %v417_v9  ;;  %v614_v14 = vmul.f32 %v417_v9, %v417_v9  ;;  %v1196_v15 = vadd.f32 %v1195_v3, %v1055_v10  ;;  %v1252_v16 = vmul.f32 %v1055_v10, %v1055_v10 }
 0x11b   :  { %v3002_v17 = vpop.f32.mrf.mxu0  ;;  %v3106_v18 = vpop.f32.mrf.mxu1 }
 0x11c   :  { %v662_v19 = vadd.f32 %v661_v7, %v614_v14  ;;  %v1300_v20 = vadd.f32 %v1299_v8, %v1252_v16  ;;  %v3454_v14 = vld [vmem:[%s4425_s2 + $0x60] sm:$0xff]  }
 0x11d   :  { %v422_v21 = vpop.f32.mrf.mxu0  ;;  %v1060_v22 = vpop.f32.mrf.mxu1  ;;  %3208 = vmatmul.mubr.msk.bf16.gmra.mxu0 %vm225_vm3, %v3448_v11  ;;  %3312 = vmatmul.mubr.msk.bf16.gmra.mxu1 %vm225_vm3, %v3449_v12 }
 0x11e   :  { %v559_v23 = vadd.f32 %v558_v13, %v422_v21  ;;  %v615_v24 = vmul.f32 %v422_v21, %v422_v21  ;;  %v1197_v25 = vadd.f32 %v1196_v15, %v1060_v22  ;;  %v1253_v26 = vmul.f32 %v1060_v22, %v1060_v22  ;;  %3211 = vmatprep.mubr.msk.bf16.mxu0 %vm3484_vm2, %v3482_v0  ;;  %v3455_v15 = vld [vmem:[%s4426_s3 + $0x60] sm:$0xff]  }
 0x11f   :  { %v3005_v27 = vpop.f32.mrf.mxu0  ;;  %v3109_v28 = vpop.f32.mrf.mxu1  ;;  %3315 = vmatprep.mubr.msk.bf16.mxu1 %vm3484_vm2, %v3482_v0 }
 0x120   :  { %v663_v29 = vadd.f32 %v662_v19, %v615_v24  ;;  %v1301_v30 = vadd.f32 %v1300_v20, %v1253_v26 }
 0x121   :  { %v425_v31 = vpop.f32.mrf.mxu0  ;;  %v1063_v32 = vpop.f32.mrf.mxu1 }
 0x122   :  { %v560_v35 = vadd.f32 %v559_v23, %v425_v31  ;;  %v616_v36 = vmul.f32 %v425_v31, %v425_v31  ;;  %v1198_v37 = vadd.f32 %v1197_v25, %v1063_v32  ;;  %v1254_v38 = vmul.f32 %v1063_v32, %v1063_v32 }
 0x123   :  { %v3006_v39 = vpop.f32.mrf.mxu0  ;;  %v3110_v40 = vpop.f32.mrf.mxu1 }
 0x124   :  { %v664_v41 = vadd.f32 %v663_v29, %v616_v36  ;;  %v1302_v42 = vadd.f32 %v1301_v30, %v1254_v38  ;;  %v3456_v36 = vld [vmem:[%s4425_s2 + $0x68] sm:$0xff]  }
 0x125   :  { %v430_v43 = vpop.f32.mrf.mxu0  ;;  %v1068_v44 = vpop.f32.mrf.mxu1  ;;  %3212 = vmatmul.mubr.msk.bf16.gmra.mxu0 %vm225_vm3, %v3450_v33  ;;  %3316 = vmatmul.mubr.msk.bf16.gmra.mxu1 %vm225_vm3, %v3451_v34 }
 0x126   :  { %v561_v45 = vadd.f32 %v560_v35, %v430_v43  ;;  %v617_v46 = vmul.f32 %v430_v43, %v430_v43  ;;  %v1199_v47 = vadd.f32 %v1198_v37, %v1068_v44  ;;  %v1255_v48 = vmul.f32 %v1068_v44, %v1068_v44  ;;  %3215 = vmatprep.mubr.msk.bf16.mxu0 %vm3484_vm2, %v3482_v0  ;;  %v3457_v37 = vld [vmem:[%s4426_s3 + $0x68] sm:$0xff]  }
 0x127   :  { %v3009_v49 = vpop.f32.mrf.mxu0  ;;  %v3113_v50 = vpop.f32.mrf.mxu1  ;;  %3319 = vmatprep.mubr.msk.bf16.mxu1 %vm3484_vm2, %v3482_v0 }
 0x128   :  { %v665_v51 = vadd.f32 %v664_v41, %v617_v46  ;;  %v1303_v52 = vadd.f32 %v1302_v42, %v1255_v48 }
 0x129   :  { %v433_v53 = vpop.f32.mrf.mxu0  ;;  %v1071_v54 = vpop.f32.mrf.mxu1 }
 0x12a   :  { %v562_v57 = vadd.f32 %v561_v45, %v433_v53  ;;  %v618_v58 = vmul.f32 %v433_v53, %v433_v53  ;;  %v1200_v59 = vadd.f32 %v1199_v47, %v1071_v54  ;;  %v1256_v60 = vmul.f32 %v1071_v54, %v1071_v54 }
 0x12b   :  { %v3010_v61 = vpop.f32.mrf.mxu0  ;;  %v3114_v62 = vpop.f32.mrf.mxu1 }
 0x12c   :  { %v666_v63 = vadd.f32 %v665_v51, %v618_v58  ;;  %v1304_v1 = vadd.f32 %v1303_v52, %v1256_v60  ;;  %v3458_v58 = vld [vmem:[%s4425_s2 + $0x70] sm:$0xff]  }
 0x12d   :  { %v438_v2 = vpop.f32.mrf.mxu0  ;;  %v1076_v3 = vpop.f32.mrf.mxu1  ;;  %3216 = vmatmul.mubr.msk.bf16.gmra.mxu0 %vm225_vm3, %v3452_v55  ;;  %3320 = vmatmul.mubr.msk.bf16.gmra.mxu1 %vm225_vm3, %v3453_v56 }
 0x12e   :  { %v563_v4 = vadd.f32 %v562_v57, %v438_v2  ;;  %v619_v5 = vmul.f32 %v438_v2, %v438_v2  ;;  %v1201_v6 = vadd.f32 %v1200_v59, %v1076_v3  ;;  %v1257_v7 = vmul.f32 %v1076_v3, %v1076_v3  ;;  %3219 = vmatprep.mubr.msk.bf16.mxu0 %vm3484_vm2, %v3482_v0  ;;  %v3459_v59 = vld [vmem:[%s4426_s3 + $0x70] sm:$0xff]  }
 0x12f   :  { %v3013_v8 = vpop.f32.mrf.mxu0  ;;  %v3117_v9 = vpop.f32.mrf.mxu1  ;;  %3323 = vmatprep.mubr.msk.bf16.mxu1 %vm3484_vm2, %v3482_v0 }
 0x130   :  { %v667_v10 = vadd.f32 %v666_v63, %v619_v5  ;;  %v1305_v11 = vadd.f32 %v1304_v1, %v1257_v7 }
 0x131   :  { %v441_v12 = vpop.f32.mrf.mxu0  ;;  %v1079_v13 = vpop.f32.mrf.mxu1 }
 0x132   :  { %v564_v16 = vadd.f32 %v563_v4, %v441_v12  ;;  %v620_v17 = vmul.f32 %v441_v12, %v441_v12  ;;  %v1202_v18 = vadd.f32 %v1201_v6, %v1079_v13  ;;  %v1258_v19 = vmul.f32 %v1079_v13, %v1079_v13 }
 0x133   :  { %v3014_v20 = vpop.f32.mrf.mxu0  ;;  %v3118_v21 = vpop.f32.mrf.mxu1 }
 0x134   :  { %v668_v22 = vadd.f32 %v667_v10, %v620_v17  ;;  %v1306_v23 = vadd.f32 %v1305_v11, %v1258_v19  ;;  %v3460_v17 = vld [vmem:[%s4425_s2 + $0x78] sm:$0xff]  }
 0x135   :  { %v446_v24 = vpop.f32.mrf.mxu0  ;;  %v1084_v25 = vpop.f32.mrf.mxu1  ;;  %3220 = vmatmul.mubr.msk.bf16.gmra.mxu0 %vm225_vm3, %v3454_v14  ;;  %3324 = vmatmul.mubr.msk.bf16.gmra.mxu1 %vm225_vm3, %v3455_v15 }
 0x136   :  { %v565_v26 = vadd.f32 %v564_v16, %v446_v24  ;;  %v621_v27 = vmul.f32 %v446_v24, %v446_v24  ;;  %v1203_v28 = vadd.f32 %v1202_v18, %v1084_v25  ;;  %v1259_v29 = vmul.f32 %v1084_v25, %v1084_v25  ;;  %3223 = vmatprep.mubr.msk.bf16.mxu0 %vm3484_vm2, %v3482_v0  ;;  %v3461_v18 = vld [vmem:[%s4426_s3 + $0x78] sm:$0xff]  }
 0x137   :  { %v3017_v30 = vpop.f32.mrf.mxu0  ;;  %v3121_v31 = vpop.f32.mrf.mxu1  ;;  %3327 = vmatprep.mubr.msk.bf16.mxu1 %vm3484_vm2, %v3482_v0 }
 0x138   :  { %v669_v32 = vadd.f32 %v668_v22, %v621_v27  ;;  %v1307_v33 = vadd.f32 %v1306_v23, %v1259_v29 }
 0x139   :  { %v449_v34 = vpop.f32.mrf.mxu0  ;;  %v1087_v35 = vpop.f32.mrf.mxu1 }
 0x13a   :  { %v566_v38 = vadd.f32 %v565_v26, %v449_v34  ;;  %v622_v39 = vmul.f32 %v449_v34, %v449_v34  ;;  %v1204_v40 = vadd.f32 %v1203_v28, %v1087_v35  ;;  %v1260_v41 = vmul.f32 %v1087_v35, %v1087_v35 }
 0x13b   :  { %v3018_v42 = vpop.f32.mrf.mxu0  ;;  %v3122_v43 = vpop.f32.mrf.mxu1 }
 0x13c   :  { %v670_v44 = vadd.f32 %v669_v32, %v622_v39  ;;  %v1308_v45 = vadd.f32 %v1307_v33, %v1260_v41  ;;  %v3462_v39 = vld [vmem:[%s4425_s2 + $0x80] sm:$0xff]  }
 0x13d   :  { %v454_v46 = vpop.f32.mrf.mxu0  ;;  %v1092_v47 = vpop.f32.mrf.mxu1  ;;  %3224 = vmatmul.mubr.msk.bf16.gmra.mxu0 %vm225_vm3, %v3456_v36  ;;  %3328 = vmatmul.mubr.msk.bf16.gmra.mxu1 %vm225_vm3, %v3457_v37 }
 0x13e   :  { %v567_v48 = vadd.f32 %v566_v38, %v454_v46  ;;  %v623_v49 = vmul.f32 %v454_v46, %v454_v46  ;;  %v1205_v50 = vadd.f32 %v1204_v40, %v1092_v47  ;;  %v1261_v51 = vmul.f32 %v1092_v47, %v1092_v47  ;;  %3227 = vmatprep.mubr.msk.bf16.mxu0 %vm3484_vm2, %v3482_v0  ;;  %v3463_v40 = vld [vmem:[%s4426_s3 + $0x80] sm:$0xff]  }
 0x13f   :  { %v3021_v52 = vpop.f32.mrf.mxu0  ;;  %v3125_v53 = vpop.f32.mrf.mxu1  ;;  %3331 = vmatprep.mubr.msk.bf16.mxu1 %vm3484_vm2, %v3482_v0 }
 0x140   :  { %v671_v54 = vadd.f32 %v670_v44, %v623_v49  ;;  %v1309_v55 = vadd.f32 %v1308_v45, %v1261_v51 }
 0x141   :  { %v457_v56 = vpop.f32.mrf.mxu0  ;;  %v1095_v57 = vpop.f32.mrf.mxu1 }
 0x142   :  { %v568_v60 = vadd.f32 %v567_v48, %v457_v56  ;;  %v624_v61 = vmul.f32 %v457_v56, %v457_v56  ;;  %v1206_v62 = vadd.f32 %v1205_v50, %v1095_v57  ;;  %v1262_v63 = vmul.f32 %v1095_v57, %v1095_v57 }
 0x143   :  { %v3022_v1 = vpop.f32.mrf.mxu0  ;;  %v3126_v2 = vpop.f32.mrf.mxu1 }
 0x144   :  { %v672_v3 = vadd.f32 %v671_v54, %v624_v61  ;;  %v1310_v4 = vadd.f32 %v1309_v55, %v1262_v63  ;;  %v3464_v61 = vld [vmem:[%s4425_s2 + $0x88] sm:$0xff]  }
 0x145   :  { %v462_v5 = vpop.f32.mrf.mxu0  ;;  %v1100_v6 = vpop.f32.mrf.mxu1  ;;  %3228 = vmatmul.mubr.msk.bf16.gmra.mxu0 %vm225_vm3, %v3458_v58  ;;  %3332 = vmatmul.mubr.msk.bf16.gmra.mxu1 %vm225_vm3, %v3459_v59 }
 0x146   :  { %v569_v7 = vadd.f32 %v568_v60, %v462_v5  ;;  %v625_v8 = vmul.f32 %v462_v5, %v462_v5  ;;  %v1207_v9 = vadd.f32 %v1206_v62, %v1100_v6  ;;  %v1263_v10 = vmul.f32 %v1100_v6, %v1100_v6  ;;  %3231 = vmatprep.mubr.msk.bf16.mxu0 %vm3484_vm2, %v3482_v0  ;;  %v3465_v62 = vld [vmem:[%s4426_s3 + $0x88] sm:$0xff]  }
 0x147   :  { %v3025_v11 = vpop.f32.mrf.mxu0  ;;  %v3129_v12 = vpop.f32.mrf.mxu1  ;;  %3335 = vmatprep.mubr.msk.bf16.mxu1 %vm3484_vm2, %v3482_v0 }
 0x148   :  { %v673_v13 = vadd.f32 %v672_v3, %v625_v8  ;;  %v1311_v14 = vadd.f32 %v1310_v4, %v1263_v10 }
 0x149   :  { %v465_v15 = vpop.f32.mrf.mxu0  ;;  %v1103_v16 = vpop.f32.mrf.mxu1 }
 0x14a   :  { %v570_v19 = vadd.f32 %v569_v7, %v465_v15  ;;  %v626_v20 = vmul.f32 %v465_v15, %v465_v15  ;;  %v1208_v21 = vadd.f32 %v1207_v9, %v1103_v16  ;;  %v1264_v22 = vmul.f32 %v1103_v16, %v1103_v16 }
 0x14b   :  { %v3026_v23 = vpop.f32.mrf.mxu0  ;;  %v3130_v24 = vpop.f32.mrf.mxu1 }
 0x14c   :  { %v674_v25 = vadd.f32 %v673_v13, %v626_v20  ;;  %v1312_v26 = vadd.f32 %v1311_v14, %v1264_v22  ;;  %v3466_v20 = vld [vmem:[%s4425_s2 + $0x90] sm:$0xff]  }
 0x14d   :  { %v470_v27 = vpop.f32.mrf.mxu0  ;;  %v1108_v28 = vpop.f32.mrf.mxu1  ;;  %3232 = vmatmul.mubr.msk.bf16.gmra.mxu0 %vm225_vm3, %v3460_v17  ;;  %3336 = vmatmul.mubr.msk.bf16.gmra.mxu1 %vm225_vm3, %v3461_v18 }
 0x14e   :  { %v571_v29 = vadd.f32 %v570_v19, %v470_v27  ;;  %v627_v30 = vmul.f32 %v470_v27, %v470_v27  ;;  %v1209_v31 = vadd.f32 %v1208_v21, %v1108_v28  ;;  %v1265_v32 = vmul.f32 %v1108_v28, %v1108_v28  ;;  %3235 = vmatprep.mubr.msk.bf16.mxu0 %vm3484_vm2, %v3482_v0  ;;  %v3467_v21 = vld [vmem:[%s4426_s3 + $0x90] sm:$0xff]  }
 0x14f   :  { %v3029_v33 = vpop.f32.mrf.mxu0  ;;  %v3133_v34 = vpop.f32.mrf.mxu1  ;;  %3339 = vmatprep.mubr.msk.bf16.mxu1 %vm3484_vm2, %v3482_v0 }
 0x150   :  { %v675_v35 = vadd.f32 %v674_v25, %v627_v30  ;;  %v1313_v36 = vadd.f32 %v1312_v26, %v1265_v32 }
 0x151   :  { %v473_v37 = vpop.f32.mrf.mxu0  ;;  %v1111_v38 = vpop.f32.mrf.mxu1 }
 0x152   :  { %v572_v41 = vadd.f32 %v571_v29, %v473_v37  ;;  %v628_v42 = vmul.f32 %v473_v37, %v473_v37  ;;  %v1210_v43 = vadd.f32 %v1209_v31, %v1111_v38  ;;  %v1266_v44 = vmul.f32 %v1111_v38, %v1111_v38 }
 0x153   :  { %v3030_v45 = vpop.f32.mrf.mxu0  ;;  %v3134_v46 = vpop.f32.mrf.mxu1 }
 0x154   :  { %v676_v47 = vadd.f32 %v675_v35, %v628_v42  ;;  %v1314_v48 = vadd.f32 %v1313_v36, %v1266_v44  ;;  %v3468_v42 = vld [vmem:[%s4425_s2 + $0x98] sm:$0xff]  }
 0x155   :  { %v478_v49 = vpop.f32.mrf.mxu0  ;;  %v1116_v50 = vpop.f32.mrf.mxu1  ;;  %3236 = vmatmul.mubr.msk.bf16.gmra.mxu0 %vm225_vm3, %v3462_v39  ;;  %3340 = vmatmul.mubr.msk.bf16.gmra.mxu1 %vm225_vm3, %v3463_v40 }
 0x156   :  { %v573_v51 = vadd.f32 %v572_v41, %v478_v49  ;;  %v629_v52 = vmul.f32 %v478_v49, %v478_v49  ;;  %v1211_v53 = vadd.f32 %v1210_v43, %v1116_v50  ;;  %v1267_v54 = vmul.f32 %v1116_v50, %v1116_v50  ;;  %3239 = vmatprep.mubr.msk.bf16.mxu0 %vm3484_vm2, %v3482_v0  ;;  %v3469_v43 = vld [vmem:[%s4426_s3 + $0x98] sm:$0xff]  }
 0x157   :  { %v3033_v55 = vpop.f32.mrf.mxu0  ;;  %v3137_v56 = vpop.f32.mrf.mxu1  ;;  %3343 = vmatprep.mubr.msk.bf16.mxu1 %vm3484_vm2, %v3482_v0 }
 0x158   :  { %v677_v57 = vadd.f32 %v676_v47, %v629_v52  ;;  %v1315_v58 = vadd.f32 %v1314_v48, %v1267_v54 }
 0x159   :  { %v481_v59 = vpop.f32.mrf.mxu0  ;;  %v1119_v60 = vpop.f32.mrf.mxu1 }
 0x15a   :  { %v574_v63 = vadd.f32 %v573_v51, %v481_v59  ;;  %v630_v1 = vmul.f32 %v481_v59, %v481_v59  ;;  %v1212_v2 = vadd.f32 %v1211_v53, %v1119_v60  ;;  %v1268_v3 = vmul.f32 %v1119_v60, %v1119_v60 }
 0x15b   :  { %v3034_v4 = vpop.f32.mrf.mxu0  ;;  %v3138_v5 = vpop.f32.mrf.mxu1 }
 0x15c   :  { %v678_v6 = vadd.f32 %v677_v57, %v630_v1  ;;  %v1316_v7 = vadd.f32 %v1315_v58, %v1268_v3  ;;  %v3470_v1 = vld [vmem:[%s4425_s2 + $0xa0] sm:$0xff]  }
 0x15d   :  { %v486_v8 = vpop.f32.mrf.mxu0  ;;  %v1124_v9 = vpop.f32.mrf.mxu1  ;;  %3240 = vmatmul.mubr.msk.bf16.gmra.mxu0 %vm225_vm3, %v3464_v61  ;;  %3344 = vmatmul.mubr.msk.bf16.gmra.mxu1 %vm225_vm3, %v3465_v62 }
 0x15e   :  { %v575_v10 = vadd.f32 %v574_v63, %v486_v8  ;;  %v631_v11 = vmul.f32 %v486_v8, %v486_v8  ;;  %v1213_v12 = vadd.f32 %v1212_v2, %v1124_v9  ;;  %v1269_v13 = vmul.f32 %v1124_v9, %v1124_v9  ;;  %3243 = vmatprep.mubr.msk.bf16.mxu0 %vm3484_vm2, %v3482_v0  ;;  %v3471_v2 = vld [vmem:[%s4426_s3 + $0xa0] sm:$0xff]  }
 0x15f   :  { %v3037_v14 = vpop.f32.mrf.mxu0  ;;  %v3141_v15 = vpop.f32.mrf.mxu1  ;;  %3347 = vmatprep.mubr.msk.bf16.mxu1 %vm3484_vm2, %v3482_v0 }
 0x160   :  { %v679_v16 = vadd.f32 %v678_v6, %v631_v11  ;;  %v1317_v17 = vadd.f32 %v1316_v7, %v1269_v13 }
 0x161   :  { %v489_v18 = vpop.f32.mrf.mxu0  ;;  %v1127_v19 = vpop.f32.mrf.mxu1 }
 0x162   :  { %v576_v22 = vadd.f32 %v575_v10, %v489_v18  ;;  %v632_v23 = vmul.f32 %v489_v18, %v489_v18  ;;  %v1214_v24 = vadd.f32 %v1213_v12, %v1127_v19  ;;  %v1270_v25 = vmul.f32 %v1127_v19, %v1127_v19 }
 0x163   :  { %v3038_v26 = vpop.f32.mrf.mxu0  ;;  %v3142_v27 = vpop.f32.mrf.mxu1 }
 0x164   :  { %v680_v28 = vadd.f32 %v679_v16, %v632_v23  ;;  %v1318_v29 = vadd.f32 %v1317_v17, %v1270_v25  ;;  %v3472_v23 = vld [vmem:[%s4425_s2 + $0xa8] sm:$0xff]  }
 0x165   :  { %v494_v30 = vpop.f32.mrf.mxu0  ;;  %v1132_v31 = vpop.f32.mrf.mxu1  ;;  %3244 = vmatmul.mubr.msk.bf16.gmra.mxu0 %vm225_vm3, %v3466_v20  ;;  %3348 = vmatmul.mubr.msk.bf16.gmra.mxu1 %vm225_vm3, %v3467_v21 }
 0x166   :  { %v577_v32 = vadd.f32 %v576_v22, %v494_v30  ;;  %v633_v33 = vmul.f32 %v494_v30, %v494_v30  ;;  %v1215_v34 = vadd.f32 %v1214_v24, %v1132_v31  ;;  %v1271_v35 = vmul.f32 %v1132_v31, %v1132_v31  ;;  %3247 = vmatprep.mubr.msk.bf16.mxu0 %vm3484_vm2, %v3482_v0  ;;  %v3473_v24 = vld [vmem:[%s4426_s3 + $0xa8] sm:$0xff]  }
 0x167   :  { %v3041_v36 = vpop.f32.mrf.mxu0  ;;  %v3145_v37 = vpop.f32.mrf.mxu1  ;;  %3351 = vmatprep.mubr.msk.bf16.mxu1 %vm3484_vm2, %v3482_v0 }
 0x168   :  { %v681_v38 = vadd.f32 %v680_v28, %v633_v33  ;;  %v1319_v39 = vadd.f32 %v1318_v29, %v1271_v35 }
 0x169   :  { %v497_v40 = vpop.f32.mrf.mxu0  ;;  %v1135_v41 = vpop.f32.mrf.mxu1 }
 0x16a   :  { %v578_v44 = vadd.f32 %v577_v32, %v497_v40  ;;  %v634_v45 = vmul.f32 %v497_v40, %v497_v40  ;;  %v1216_v46 = vadd.f32 %v1215_v34, %v1135_v41  ;;  %v1272_v47 = vmul.f32 %v1135_v41, %v1135_v41 }
 0x16b   :  { %v3042_v48 = vpop.f32.mrf.mxu0  ;;  %v3146_v49 = vpop.f32.mrf.mxu1 }
 0x16c   :  { %v682_v50 = vadd.f32 %v681_v38, %v634_v45  ;;  %v1320_v51 = vadd.f32 %v1319_v39, %v1272_v47  ;;  %v3474_v45 = vld [vmem:[%s4425_s2 + $0xb0] sm:$0xff]  }
 0x16d   :  { %v502_v52 = vpop.f32.mrf.mxu0  ;;  %v1140_v53 = vpop.f32.mrf.mxu1  ;;  %3248 = vmatmul.mubr.msk.bf16.gmra.mxu0 %vm225_vm3, %v3468_v42  ;;  %3352 = vmatmul.mubr.msk.bf16.gmra.mxu1 %vm225_vm3, %v3469_v43 }
 0x16e   :  { %v579_v54 = vadd.f32 %v578_v44, %v502_v52  ;;  %v635_v55 = vmul.f32 %v502_v52, %v502_v52  ;;  %v1217_v56 = vadd.f32 %v1216_v46, %v1140_v53  ;;  %v1273_v57 = vmul.f32 %v1140_v53, %v1140_v53  ;;  %3251 = vmatprep.mubr.msk.bf16.mxu0 %vm3484_vm2, %v3482_v0  ;;  %v3475_v46 = vld [vmem:[%s4426_s3 + $0xb0] sm:$0xff]  }
 0x16f   :  { %v3045_v58 = vpop.f32.mrf.mxu0  ;;  %v3149_v59 = vpop.f32.mrf.mxu1  ;;  %3355 = vmatprep.mubr.msk.bf16.mxu1 %vm3484_vm2, %v3482_v0 }
 0x170   :  { %v683_v60 = vadd.f32 %v682_v50, %v635_v55  ;;  %v1321_v61 = vadd.f32 %v1320_v51, %v1273_v57 }
 0x171   :  { %v505_v62 = vpop.f32.mrf.mxu0  ;;  %v1143_v63 = vpop.f32.mrf.mxu1 }
 0x172   :  { %v580_v3 = vadd.f32 %v579_v54, %v505_v62  ;;  %v636_v4 = vmul.f32 %v505_v62, %v505_v62  ;;  %v1218_v5 = vadd.f32 %v1217_v56, %v1143_v63  ;;  %v1274_v6 = vmul.f32 %v1143_v63, %v1143_v63 }
 0x173   :  { %v3046_v7 = vpop.f32.mrf.mxu0  ;;  %v3150_v8 = vpop.f32.mrf.mxu1 }
 0x174   :  { %v684_v9 = vadd.f32 %v683_v60, %v636_v4  ;;  %v1322_v10 = vadd.f32 %v1321_v61, %v1274_v6  ;;  %v3476_v4 = vld [vmem:[%s4425_s2 + $0xb8] sm:$0xff]  }
 0x175   :  { %v510_v11 = vpop.f32.mrf.mxu0  ;;  %v1148_v12 = vpop.f32.mrf.mxu1  ;;  %3252 = vmatmul.mubr.msk.bf16.gmra.mxu0 %vm225_vm3, %v3470_v1  ;;  %3356 = vmatmul.mubr.msk.bf16.gmra.mxu1 %vm225_vm3, %v3471_v2 }
 0x176   :  { %v581_v13 = vadd.f32 %v580_v3, %v510_v11  ;;  %v637_v14 = vmul.f32 %v510_v11, %v510_v11  ;;  %v1219_v15 = vadd.f32 %v1218_v5, %v1148_v12  ;;  %v1275_v16 = vmul.f32 %v1148_v12, %v1148_v12  ;;  %3255 = vmatprep.mubr.msk.bf16.mxu0 %vm3484_vm2, %v3482_v0  ;;  %v3477_v5 = vld [vmem:[%s4426_s3 + $0xb8] sm:$0xff]  }
 0x177   :  { %v3049_v17 = vpop.f32.mrf.mxu0  ;;  %v3153_v18 = vpop.f32.mrf.mxu1  ;;  %3359 = vmatprep.mubr.msk.bf16.mxu1 %vm3484_vm2, %v3482_v0 }
 0x178   :  { %v685_v19 = vadd.f32 %v684_v9, %v637_v14  ;;  %v1323_v20 = vadd.f32 %v1322_v10, %v1275_v16 }
 0x179   :  { %v513_v21 = vpop.f32.mrf.mxu0  ;;  %v1151_v22 = vpop.f32.mrf.mxu1 }
 0x17a   :  { %v582_v25 = vadd.f32 %v581_v13, %v513_v21  ;;  %v638_v26 = vmul.f32 %v513_v21, %v513_v21  ;;  %v1220_v27 = vadd.f32 %v1219_v15, %v1151_v22  ;;  %v1276_v28 = vmul.f32 %v1151_v22, %v1151_v22 }
 0x17b   :  { %v3050_v29 = vpop.f32.mrf.mxu0  ;;  %v3154_v30 = vpop.f32.mrf.mxu1 }
 0x17c   :  { %v686_v31 = vadd.f32 %v685_v19, %v638_v26  ;;  %v1324_v32 = vadd.f32 %v1323_v20, %v1276_v28  ;;  %v3478_v28 = vld [vmem:[%s4425_s2 + $0xc0] ss:$0 sps:$4 sm:$0xff]  }
 0x17d   :  { %v518_v33 = vpop.f32.mrf.mxu0  ;;  %v1156_v34 = vpop.f32.mrf.mxu1  ;;  %3256 = vmatmul.mubr.msk.bf16.gmra.mxu0 %vm225_vm3, %v3472_v23  ;;  %3360 = vmatmul.mubr.msk.bf16.gmra.mxu1 %vm225_vm3, %v3473_v24  ;;  %v3479_v29 = vld [vmem:[%s4426_s3 + $0xc0] ss:$0 sps:$4 sm:$0xff]  }
 0x17e   :  { %v583_v35 = vadd.f32 %v582_v25, %v518_v33  ;;  %v639_v36 = vmul.f32 %v518_v33, %v518_v33  ;;  %v1221_v37 = vadd.f32 %v1220_v27, %v1156_v34  ;;  %v1277_v38 = vmul.f32 %v1156_v34, %v1156_v34  ;;  %3259 = vmatprep.mubr.msk.bf16.mxu0 %vm3484_vm2, %v3482_v0 }
 0x17f   :  { %v3053_v39 = vpop.f32.mrf.mxu0  ;;  %v3157_v40 = vpop.f32.mrf.mxu1  ;;  %3363 = vmatprep.mubr.msk.bf16.mxu1 %vm3484_vm2, %v3482_v0 }
 0x180   :  { %v687_v41 = vadd.f32 %v686_v31, %v639_v36  ;;  %v1325_v42 = vadd.f32 %v1324_v32, %v1277_v38 }
 0x181   :  { %v521_v43 = vpop.f32.mrf.mxu0  ;;  %v1159_v44 = vpop.f32.mrf.mxu1 }
 0x182   :  { %v584_v47 = vadd.f32 %v583_v35, %v521_v43  ;;  %v640_v48 = vmul.f32 %v521_v43, %v521_v43  ;;  %v1222_v49 = vadd.f32 %v1221_v37, %v1159_v44  ;;  %v1278_v50 = vmul.f32 %v1159_v44, %v1159_v44 }
 0x183   :  { %v3054_v51 = vpop.f32.mrf.mxu0  ;;  %v3158_v52 = vpop.f32.mrf.mxu1 }
 0x184   :  { %v688_v53 = vadd.f32 %v687_v41, %v640_v48  ;;  %v1326_v54 = vadd.f32 %v1325_v42, %v1278_v50 }
 0x185   :  { %v526_v55 = vpop.f32.mrf.mxu0  ;;  %v1164_v56 = vpop.f32.mrf.mxu1  ;;  %3260 = vmatmul.mubr.msk.bf16.gmra.mxu0 %vm225_vm3, %v3474_v45  ;;  %3364 = vmatmul.mubr.msk.bf16.gmra.mxu1 %vm225_vm3, %v3475_v46 }
 0x186   :  { %v585_v57 = vadd.f32 %v584_v47, %v526_v55  ;;  %v641_v58 = vmul.f32 %v526_v55, %v526_v55  ;;  %v1223_v59 = vadd.f32 %v1222_v49, %v1164_v56  ;;  %v1279_v60 = vmul.f32 %v1164_v56, %v1164_v56  ;;  %3263 = vmatprep.mubr.msk.bf16.mxu0 %vm3484_vm2, %v3482_v0 }
 0x187   :  { %v3057_v61 = vpop.f32.mrf.mxu0  ;;  %v3161_v62 = vpop.f32.mrf.mxu1  ;;  %3367 = vmatprep.mubr.msk.bf16.mxu1 %vm3484_vm2, %v3482_v0 }
 0x188   :  { %v689_v63 = vadd.f32 %v688_v53, %v641_v58  ;;  %v1327_v1 = vadd.f32 %v1326_v54, %v1279_v60 }
 0x189   :  { %v529_v2 = vpop.f32.mrf.mxu0  ;;  %v1167_v3 = vpop.f32.mrf.mxu1 }
 0x18a   :  { %v586_v6 = vadd.f32 %v585_v57, %v529_v2  ;;  %v642_v7 = vmul.f32 %v529_v2, %v529_v2  ;;  %v1224_v8 = vadd.f32 %v1223_v59, %v1167_v3  ;;  %v1280_v9 = vmul.f32 %v1167_v3, %v1167_v3 }
 0x18b   :  { %v3058_v10 = vpop.f32.mrf.mxu0  ;;  %v3162_v11 = vpop.f32.mrf.mxu1 }
 0x18c   :  { %v690_v12 = vadd.f32 %v689_v63, %v642_v7  ;;  %v1328_v13 = vadd.f32 %v1327_v1, %v1280_v9 }
 0x18d   :  { %v534_v14 = vpop.f32.mrf.mxu0  ;;  %v1172_v15 = vpop.f32.mrf.mxu1  ;;  %3264 = vmatmul.mubr.msk.bf16.gmra.mxu0 %vm225_vm3, %v3476_v4  ;;  %3368 = vmatmul.mubr.msk.bf16.gmra.mxu1 %vm225_vm3, %v3477_v5 }
 0x18e   :  { %v587_v16 = vadd.f32 %v586_v6, %v534_v14  ;;  %v643_v17 = vmul.f32 %v534_v14, %v534_v14  ;;  %v1225_v18 = vadd.f32 %v1224_v8, %v1172_v15  ;;  %v1281_v19 = vmul.f32 %v1172_v15, %v1172_v15  ;;  %3267 = vmatprep.mubr.msk.bf16.mxu0 %vm3484_vm2, %v3482_v0 }
 0x18f   :  { %v3061_v20 = vpop.f32.mrf.mxu0  ;;  %v3165_v21 = vpop.f32.mrf.mxu1  ;;  %3371 = vmatprep.mubr.msk.bf16.mxu1 %vm3484_vm2, %v3482_v0 }
 0x190   :  { %v588_v22 = vrot.slane %v587_v16, 4  ;;  %v691_v23 = vadd.f32 %v690_v12, %v643_v17  ;;  %v1226_v24 = vrot.slane %v1225_v18, 4  ;;  %v1329_v25 = vadd.f32 %v1328_v13, %v1281_v19 }
 0x191   :  { %v537_v26 = vpop.f32.mrf.mxu0  ;;  %v1175_v27 = vpop.f32.mrf.mxu1 }
 0x192   :  { %v589_v30 = vadd.f32 %v588_v22, %v587_v16  ;;  %v692_v31 = vrot.slane %v691_v23, 4  ;;  %v1227_v32 = vadd.f32 %v1226_v24, %v1225_v18  ;;  %v1330_v33 = vrot.slane %v1329_v25, 4 }
 0x193   :  { %v3062_v34 = vpop.f32.mrf.mxu0  ;;  %v3166_v0 = vpop.f32.mrf.mxu1 }
 0x194   :  { %v590_v35 = vrot.slane %v589_v30, 2  ;;  %v693_v36 = vadd.f32 %v692_v31, %v691_v23  ;;  %v1228_v37 = vrot.slane %v1227_v32, 2  ;;  %v1331_v38 = vadd.f32 %v1330_v33, %v1329_v25 }
 0x195   :  { %v1618_v39 = vpop.f32.mrf.mxu0  ;;  %3268 = vmatmul.mubr.msk.bf16.gmra.mxu0 %vm225_vm3, %v3478_v28  ;;  %v2256_v40 = vpop.f32.mrf.mxu1  ;;  %3372 = vmatmul.mubr.msk.bf16.gmra.mxu1 %vm225_vm3, %v3479_v29 }
 0x196   :  { %v591_v41 = vadd.f32 %v590_v35, %v589_v30  ;;  %v694_v42 = vrot.slane %v693_v36, 2  ;;  %v1229_v43 = vadd.f32 %v1228_v37, %v1227_v32  ;;  %v1332_v44 = vrot.slane %v1331_v38, 2 }
 0x197   :  { %v3173_v45 = vpop.f32.mrf.mxu0  ;;  %v3277_v46 = vpop.f32.mrf.mxu1  ;;  %v1871_v51 = vmul.f32 %v1618_v39, %v1618_v39  ;;  %v2509_v52 = vmul.f32 %v2256_v40, %v2256_v40 }
 0x198   :  { %v592_v47 = vrot.slane %v591_v41, 1  ;;  %v695_v48 = vadd.f32 %v694_v42, %v693_v36  ;;  %v1230_v49 = vrot.slane %v1229_v43, 1  ;;  %v1333_v50 = vadd.f32 %v1332_v44, %v1331_v38 }
 0x199   :  { %v1621_v53 = vpop.f32.mrf.mxu0  ;;  %v2259_v54 = vpop.f32.mrf.mxu1 }
 0x19a   :  { %v593_v55 = vadd.f32 %v592_v47, %v591_v41  ;;  %v696_v56 = vrot.slane %v695_v48, 1  ;;  %v1231_v57 = vadd.f32 %v1230_v49, %v1229_v43  ;;  %v1334_v58 = vrot.slane %v1333_v50, 1 }
 0x19b   :  { %v1816_v59 = vadd.f32 %v1621_v53, %v1618_v39  ;;  %v1872_v60 = vmul.f32 %v1621_v53, %v1621_v53  ;;  %v2454_v61 = vadd.f32 %v2259_v54, %v2256_v40  ;;  %v2510_v62 = vmul.f32 %v2259_v54, %v2259_v54  ;;  %v3174_v63 = vpop.f32.mrf.mxu0  ;;  %v3278_v1 = vpop.f32.mrf.mxu1 }
 0x19c   :  { %v697_v2 = vadd.f32 %v696_v56, %v695_v48  ;;  %v4151_v3 = vadd.f32 %v1231_v57, %v593_v55  ;;  %v1335_v4 = vadd.f32 %v1334_v58, %v1333_v50 }
 0x19d   :  { %v1920_v5 = vadd.f32 %v1872_v60, %v1871_v51  ;;  %v2558_v6 = vadd.f32 %v2510_v62, %v2509_v52  ;;  %v1626_v7 = vpop.f32.mrf.mxu0  ;;  %v2264_v8 = vpop.f32.mrf.mxu1 }
 0x19e   :  { %v4153_v9 = vadd.f32 %v1335_v4, %v697_v2  ;;  %v1817_v10 = vadd.f32 %v1816_v59, %v1626_v7  ;;  %v1873_v11 = vmul.f32 %v1626_v7, %v1626_v7  ;;  %v2455_v12 = vadd.f32 %v2454_v61, %v2264_v8 }
 0x19f   :  { %v2511_v13 = vmul.f32 %v2264_v8, %v2264_v8  ;;  %v3177_v14 = vpop.f32.mrf.mxu0  ;;  %v3281_v15 = vpop.f32.mrf.mxu1 }
 0x1a0   :  { %v1921_v16 = vadd.f32 %v1920_v5, %v1873_v11 }
 0x1a1   :  { %v2559_v17 = vadd.f32 %v2558_v6, %v2511_v13  ;;  %v1629_v18 = vpop.f32.mrf.mxu0  ;;  %v2267_v19 = vpop.f32.mrf.mxu1 }
 0x1a2   :  { %v1818_v20 = vadd.f32 %v1817_v10, %v1629_v18  ;;  %v1874_v21 = vmul.f32 %v1629_v18, %v1629_v18  ;;  %v2456_v22 = vadd.f32 %v2455_v12, %v2267_v19  ;;  %v2512_v23 = vmul.f32 %v2267_v19, %v2267_v19 }
 0x1a3   :  { %v3178_v24 = vpop.f32.mrf.mxu0  ;;  %v3282_v25 = vpop.f32.mrf.mxu1 }
 0x1a4   :  { %v1922_v26 = vadd.f32 %v1921_v16, %v1874_v21  ;;  %v2560_v27 = vadd.f32 %v2559_v17, %v2512_v23 }
 0x1a5   :  { %v1634_v28 = vpop.f32.mrf.mxu0  ;;  %v2272_v29 = vpop.f32.mrf.mxu1 }
 0x1a6   :  { %v1819_v30 = vadd.f32 %v1818_v20, %v1634_v28  ;;  %v1875_v31 = vmul.f32 %v1634_v28, %v1634_v28  ;;  %v2457_v32 = vadd.f32 %v2456_v22, %v2272_v29  ;;  %v2513_v33 = vmul.f32 %v2272_v29, %v2272_v29 }
 0x1a7   :  { %v3181_v34 = vpop.f32.mrf.mxu0  ;;  %v3285_v0 = vpop.f32.mrf.mxu1 }
 0x1a8   :  { %v1923_v35 = vadd.f32 %v1922_v26, %v1875_v31  ;;  %v2561_v36 = vadd.f32 %v2560_v27, %v2513_v33 }
 0x1a9   :  { %v1637_v37 = vpop.f32.mrf.mxu0  ;;  %v2275_v38 = vpop.f32.mrf.mxu1 }
 0x1aa   :  { %v1820_v39 = vadd.f32 %v1819_v30, %v1637_v37  ;;  %v1876_v40 = vmul.f32 %v1637_v37, %v1637_v37  ;;  %v2458_v41 = vadd.f32 %v2457_v32, %v2275_v38  ;;  %v2514_v42 = vmul.f32 %v2275_v38, %v2275_v38 }
 0x1ab   :  { %v3182_v43 = vpop.f32.mrf.mxu0  ;;  %v3286_v44 = vpop.f32.mrf.mxu1 }
 0x1ac   :  { %v1924_v45 = vadd.f32 %v1923_v35, %v1876_v40  ;;  %v2562_v46 = vadd.f32 %v2561_v36, %v2514_v42 }
 0x1ad   :  { %v1642_v47 = vpop.f32.mrf.mxu0  ;;  %v2280_v48 = vpop.f32.mrf.mxu1 }
 0x1ae   :  { %v1821_v49 = vadd.f32 %v1820_v39, %v1642_v47  ;;  %v1877_v50 = vmul.f32 %v1642_v47, %v1642_v47  ;;  %v2459_v51 = vadd.f32 %v2458_v41, %v2280_v48  ;;  %v2515_v52 = vmul.f32 %v2280_v48, %v2280_v48 }
 0x1af   :  { %v3185_v53 = vpop.f32.mrf.mxu0  ;;  %v3289_v54 = vpop.f32.mrf.mxu1 }
 0x1b0   :  { %v1925_v55 = vadd.f32 %v1924_v45, %v1877_v50  ;;  %v2563_v56 = vadd.f32 %v2562_v46, %v2515_v52 }
 0x1b1   :  { %v1645_v57 = vpop.f32.mrf.mxu0  ;;  %v2283_v58 = vpop.f32.mrf.mxu1 }
 0x1b2   :  { %v1822_v59 = vadd.f32 %v1821_v49, %v1645_v57  ;;  %v1878_v60 = vmul.f32 %v1645_v57, %v1645_v57  ;;  %v2460_v61 = vadd.f32 %v2459_v51, %v2283_v58  ;;  %v2516_v62 = vmul.f32 %v2283_v58, %v2283_v58 }
 0x1b3   :  { %v3186_v63 = vpop.f32.mrf.mxu0  ;;  %v3290_v1 = vpop.f32.mrf.mxu1 }
 0x1b4   :  { %v1926_v2 = vadd.f32 %v1925_v55, %v1878_v60  ;;  %v2564_v4 = vadd.f32 %v2563_v56, %v2516_v62 }
 0x1b5   :  { %v1650_v5 = vpop.f32.mrf.mxu0  ;;  %v2288_v6 = vpop.f32.mrf.mxu1 }
 0x1b6   :  { %v1823_v7 = vadd.f32 %v1822_v59, %v1650_v5  ;;  %v1879_v8 = vmul.f32 %v1650_v5, %v1650_v5  ;;  %v2461_v10 = vadd.f32 %v2460_v61, %v2288_v6  ;;  %v2517_v11 = vmul.f32 %v2288_v6, %v2288_v6 }
 0x1b7   :  { %v3189_v12 = vpop.f32.mrf.mxu0  ;;  %v3293_v13 = vpop.f32.mrf.mxu1 }
 0x1b8   :  { %v1927_v14 = vadd.f32 %v1926_v2, %v1879_v8  ;;  %v2565_v15 = vadd.f32 %v2564_v4, %v2517_v11 }
 0x1b9   :  { %v1653_v16 = vpop.f32.mrf.mxu0  ;;  %v2291_v17 = vpop.f32.mrf.mxu1 }
 0x1ba   :  { %v1824_v18 = vadd.f32 %v1823_v7, %v1653_v16  ;;  %v1880_v19 = vmul.f32 %v1653_v16, %v1653_v16  ;;  %v2462_v20 = vadd.f32 %v2461_v10, %v2291_v17  ;;  %v2518_v21 = vmul.f32 %v2291_v17, %v2291_v17 }
 0x1bb   :  { %v3190_v22 = vpop.f32.mrf.mxu0  ;;  %v3294_v23 = vpop.f32.mrf.mxu1 }
 0x1bc   :  { %v1928_v24 = vadd.f32 %v1927_v14, %v1880_v19  ;;  %v2566_v25 = vadd.f32 %v2565_v15, %v2518_v21 }
 0x1bd   :  { %v1658_v26 = vpop.f32.mrf.mxu0  ;;  %v2296_v27 = vpop.f32.mrf.mxu1 }
 0x1be   :  { %v1825_v28 = vadd.f32 %v1824_v18, %v1658_v26  ;;  %v1881_v29 = vmul.f32 %v1658_v26, %v1658_v26  ;;  %v2463_v30 = vadd.f32 %v2462_v20, %v2296_v27  ;;  %v2519_v31 = vmul.f32 %v2296_v27, %v2296_v27 }
 0x1bf   :  { %v3193_v32 = vpop.f32.mrf.mxu0  ;;  %v3297_v33 = vpop.f32.mrf.mxu1 }
 0x1c0   :  { %v1929_v34 = vadd.f32 %v1928_v24, %v1881_v29  ;;  %v2567_v0 = vadd.f32 %v2566_v25, %v2519_v31 }
 0x1c1   :  { %v1661_v35 = vpop.f32.mrf.mxu0  ;;  %v2299_v36 = vpop.f32.mrf.mxu1 }
 0x1c2   :  { %v1826_v37 = vadd.f32 %v1825_v28, %v1661_v35  ;;  %v1882_v38 = vmul.f32 %v1661_v35, %v1661_v35  ;;  %v2464_v39 = vadd.f32 %v2463_v30, %v2299_v36  ;;  %v2520_v40 = vmul.f32 %v2299_v36, %v2299_v36 }
 0x1c3   :  { %v3194_v41 = vpop.f32.mrf.mxu0  ;;  %v3298_v42 = vpop.f32.mrf.mxu1 }
 0x1c4   :  { %v1930_v43 = vadd.f32 %v1929_v34, %v1882_v38  ;;  %v2568_v44 = vadd.f32 %v2567_v0, %v2520_v40 }
 0x1c5   :  { %v1666_v45 = vpop.f32.mrf.mxu0  ;;  %v2304_v46 = vpop.f32.mrf.mxu1 }
 0x1c6   :  { %v1827_v47 = vadd.f32 %v1826_v37, %v1666_v45  ;;  %v1883_v48 = vmul.f32 %v1666_v45, %v1666_v45  ;;  %v2465_v49 = vadd.f32 %v2464_v39, %v2304_v46  ;;  %v2521_v50 = vmul.f32 %v2304_v46, %v2304_v46 }
 0x1c7   :  { %v3197_v51 = vpop.f32.mrf.mxu0  ;;  %v3301_v52 = vpop.f32.mrf.mxu1 }
 0x1c8   :  { %v1931_v53 = vadd.f32 %v1930_v43, %v1883_v48  ;;  %v2569_v54 = vadd.f32 %v2568_v44, %v2521_v50 }
 0x1c9   :  { %v1669_v55 = vpop.f32.mrf.mxu0  ;;  %v2307_v56 = vpop.f32.mrf.mxu1 }
 0x1ca   :  { %v1828_v57 = vadd.f32 %v1827_v47, %v1669_v55  ;;  %v1884_v58 = vmul.f32 %v1669_v55, %v1669_v55  ;;  %v2466_v59 = vadd.f32 %v2465_v49, %v2307_v56  ;;  %v2522_v60 = vmul.f32 %v2307_v56, %v2307_v56 }
 0x1cb   :  { %v3198_v61 = vpop.f32.mrf.mxu0  ;;  %v3302_v62 = vpop.f32.mrf.mxu1 }
 0x1cc   :  { %v1932_v63 = vadd.f32 %v1931_v53, %v1884_v58  ;;  %v2570_v1 = vadd.f32 %v2569_v54, %v2522_v60 }
 0x1cd   :  { %v1674_v2 = vpop.f32.mrf.mxu0  ;;  %v2312_v4 = vpop.f32.mrf.mxu1 }
 0x1ce   :  { %v1829_v5 = vadd.f32 %v1828_v57, %v1674_v2  ;;  %v1885_v6 = vmul.f32 %v1674_v2, %v1674_v2  ;;  %v2467_v7 = vadd.f32 %v2466_v59, %v2312_v4  ;;  %v2523_v8 = vmul.f32 %v2312_v4, %v2312_v4 }
 0x1cf   :  { %v3201_v10 = vpop.f32.mrf.mxu0  ;;  %v3305_v11 = vpop.f32.mrf.mxu1 }
 0x1d0   :  { %v1933_v12 = vadd.f32 %v1932_v63, %v1885_v6  ;;  %v2571_v13 = vadd.f32 %v2570_v1, %v2523_v8 }
 0x1d1   :  { %v1677_v14 = vpop.f32.mrf.mxu0  ;;  %v2315_v15 = vpop.f32.mrf.mxu1 }
 0x1d2   :  { %v1830_v16 = vadd.f32 %v1829_v5, %v1677_v14  ;;  %v1886_v17 = vmul.f32 %v1677_v14, %v1677_v14  ;;  %v2468_v18 = vadd.f32 %v2467_v7, %v2315_v15  ;;  %v2524_v19 = vmul.f32 %v2315_v15, %v2315_v15 }
 0x1d3   :  { %v3202_v20 = vpop.f32.mrf.mxu0  ;;  %v3306_v21 = vpop.f32.mrf.mxu1 }
 0x1d4   :  { %v1934_v22 = vadd.f32 %v1933_v12, %v1886_v17  ;;  %v2572_v23 = vadd.f32 %v2571_v13, %v2524_v19 }
 0x1d5   :  { %v1682_v24 = vpop.f32.mrf.mxu0  ;;  %v2320_v25 = vpop.f32.mrf.mxu1 }
 0x1d6   :  { %v4155_v26 = vadd.f32 %v1830_v16, %v1682_v24  ;;  %v1887_v27 = vmul.f32 %v1682_v24, %v1682_v24  ;;  %v2469_v28 = vadd.f32 %v2468_v18, %v2320_v25  ;;  %v2525_v29 = vmul.f32 %v2320_v25, %v2320_v25 }
 0x1d7   :  { %v3205_v30 = vpop.f32.mrf.mxu0  ;;  %v3309_v31 = vpop.f32.mrf.mxu1 }
 0x1d8   :  { %v4157_v32 = vadd.f32 %v1934_v22, %v1887_v27  ;;  %v2573_v33 = vadd.f32 %v2572_v23, %v2525_v29 }
 0x1d9   :  { %v4159_v34 = vpop.f32.mrf.mxu0  ;;  %v2323_v0 = vpop.f32.mrf.mxu1 }
 0x1da   :  { %v4161_v35 = vadd.f32 %v2469_v28, %v2323_v0  ;;  %v2526_v36 = vmul.f32 %v2323_v0, %v2323_v0 }
 0x1db   :  { %v3206_v37 = vpop.f32.mrf.mxu0  ;;  %v3310_v38 = vpop.f32.mrf.mxu1 }
 0x1dc   :  { %v4163_v39 = vadd.f32 %v2573_v33, %v2526_v36  ;;  %v1888_v38 = vmul.f32 %v4159_v34, %v4159_v34 }
 0x1dd   :  { %v4165_v40 = vpop.f32.mrf.mxu0  ;;  %v4167_v41 = vpop.f32.mrf.mxu1 }
 0x1df   :  { %v3209_v42 = vpop.f32.mrf.mxu0  ;;  %v3313_v43 = vpop.f32.mrf.mxu1 }
 0x1e1   :  { %v4169_v44 = vpop.f32.mrf.mxu0  ;;  %v4171_v45 = vpop.f32.mrf.mxu1 }
 0x1e3   :  { %v3210_v46 = vpop.f32.mrf.mxu0  ;;  %v3314_v47 = vpop.f32.mrf.mxu1 }
 0x1e4   :  { %v1889_v46 = vmul.f32 %v4165_v40, %v4165_v40  ;;  %v2527_v47 = vmul.f32 %v4167_v41, %v4167_v41 }
 0x1e5   :  { %v4173_v48 = vpop.f32.mrf.mxu0  ;;  %v4175_v49 = vpop.f32.mrf.mxu1 }
 0x1e7   :  { %v3213_v50 = vpop.f32.mrf.mxu0  ;;  %v3317_v51 = vpop.f32.mrf.mxu1 }
 0x1e9   :  { %v4177_v52 = vpop.f32.mrf.mxu0  ;;  %v4179_v53 = vpop.f32.mrf.mxu1 }
 0x1eb   :  { %v3214_v54 = vpop.f32.mrf.mxu0  ;;  %v3318_v55 = vpop.f32.mrf.mxu1 }
 0x1ec   :  { %v1832_v54 = vadd.f32 %v4155_v26, %v4159_v34  ;;  %v1936_v55 = vadd.f32 %v4157_v32, %v1888_v38  ;;  %v2575_v26 = vadd.f32 %v4163_v39, %v2527_v47  ;;  %v1891_v32 = vmul.f32 %v4173_v48, %v4173_v48 }
 0x1ed   :  { %v4181_v56 = vpop.f32.mrf.mxu0  ;;  %v4183_v57 = vpop.f32.mrf.mxu1  ;;  %v2529_v34 = vmul.f32 %v4175_v49, %v4175_v49  ;;  %v2530_v39 = vmul.f32 %v4179_v53, %v4179_v53 }
 0x1ef   :  { %v3217_v58 = vpop.f32.mrf.mxu0  ;;  %v3321_v59 = vpop.f32.mrf.mxu1 }
 0x1f0   :  { %v1890_v58 = vmul.f32 %v4169_v44, %v4169_v44  ;;  %v2528_v59 = vmul.f32 %v4171_v45, %v4171_v45 }
 0x1f1   :  { %v4185_v60 = vpop.f32.mrf.mxu0  ;;  %v4187_v61 = vpop.f32.mrf.mxu1 }
 0x1f3   :  { %v3218_v62 = vpop.f32.mrf.mxu0  ;;  %v3322_v63 = vpop.f32.mrf.mxu1 }
 0x1f5   :  { %v4189_v1 = vpop.f32.mrf.mxu0  ;;  %v4191_v2 = vpop.f32.mrf.mxu1 }
 0x1f7   :  { %v3221_v4 = vpop.f32.mrf.mxu0  ;;  %v3325_v5 = vpop.f32.mrf.mxu1 }
 0x1f8   :  { %v1833_v4 = vadd.f32 %v1832_v54, %v4165_v40  ;;  %v2471_v5 = vadd.f32 %v4161_v35, %v4167_v41  ;;  %v2576_v40 = vadd.f32 %v2575_v26, %v2528_v59  ;;  %v1892_v35 = vmul.f32 %v4177_v52, %v4177_v52 }
 0x1f9   :  { %v4193_v6 = vpop.f32.mrf.mxu0  ;;  %v4195_v7 = vpop.f32.mrf.mxu1  ;;  %v2533_v59 = vmul.f32 %v4191_v2, %v4191_v2 }
 0x1fb   :  { %v3222_v8 = vpop.f32.mrf.mxu0  ;;  %v3326_v10 = vpop.f32.mrf.mxu1 }
 0x1fc   :  { %v1937_v8 = vadd.f32 %v1936_v55, %v1889_v46 }
 0x1fd   :  { %v4197_v11 = vpop.f32.mrf.mxu0  ;;  %v4199_v12 = vpop.f32.mrf.mxu1 }
 0x1ff   :  { %v3225_v13 = vpop.f32.mrf.mxu0  ;;  %v3329_v14 = vpop.f32.mrf.mxu1 }
 0x200   :  { %v1834_v14 = vadd.f32 %v1833_v4, %v4169_v44  ;;  %v2577_v44 = vadd.f32 %v2576_v40, %v2529_v34  ;;  %v2535_v40 = vmul.f32 %v4199_v12, %v4199_v12 }
 0x201   :  { %v4201_v15 = vpop.f32.mrf.mxu0  ;;  %v4203_v16 = vpop.f32.mrf.mxu1 }
 0x202   :  { %v2578_v47 = vadd.f32 %v2577_v44, %v2530_v39 }
 0x203   :  { %v3226_v17 = vpop.f32.mrf.mxu0  ;;  %v3330_v18 = vpop.f32.mrf.mxu1 }
 0x204   :  { %v2472_v17 = vadd.f32 %v2471_v5, %v4171_v45  ;;  %v1938_v18 = vadd.f32 %v1937_v8, %v1890_v58  ;;  %v1893_v45 = vmul.f32 %v4181_v56, %v4181_v56 }
 0x205   :  { %v4205_v19 = vpop.f32.mrf.mxu0  ;;  %v4207_v20 = vpop.f32.mrf.mxu1 }
 0x207   :  { %v3229_v21 = vpop.f32.mrf.mxu0  ;;  %v3333_v22 = vpop.f32.mrf.mxu1 }
 0x208   :  { %v1835_v22 = vadd.f32 %v1834_v14, %v4173_v48  ;;  %v1894_v48 = vmul.f32 %v4185_v60, %v4185_v60 }
 0x209   :  { %v4209_v23 = vpop.f32.mrf.mxu0  ;;  %v4211_v24 = vpop.f32.mrf.mxu1 }
 0x20b   :  { %v3230_v25 = vpop.f32.mrf.mxu0  ;;  %v3334_v27 = vpop.f32.mrf.mxu1 }
 0x20c   :  { %v2473_v25 = vadd.f32 %v2472_v17, %v4175_v49  ;;  %v1939_v27 = vadd.f32 %v1938_v18, %v1891_v32  ;;  %v2532_v49 = vmul.f32 %v4187_v61, %v4187_v61 }
 0x20d   :  { %v4213_v28 = vpop.f32.mrf.mxu0  ;;  %v4215_v29 = vpop.f32.mrf.mxu1 }
 0x20e   :  { %v2474_v38 = vadd.f32 %v2473_v25, %v4179_v53  ;;  %v1940_v46 = vadd.f32 %v1939_v27, %v1892_v35  ;;  %v1895_v53 = vmul.f32 %v4189_v1, %v4189_v1 }
 0x20f   :  { %v3233_v30 = vpop.f32.mrf.mxu0  ;;  %v3337_v31 = vpop.f32.mrf.mxu1 }
 0x210   :  { %v2531_v30 = vmul.f32 %v4183_v57, %v4183_v57  ;;  %v2475_v55 = vadd.f32 %v2474_v38, %v4183_v57  ;;  %v1941_v58 = vadd.f32 %v1940_v46, %v1893_v45  ;;  %v2534_v57 = vmul.f32 %v4195_v7, %v4195_v7 }
 0x211   :  { %v4217_v33 = vpop.f32.mrf.mxu0  ;;  %v4219_v0 = vpop.f32.mrf.mxu1  ;;  %v2537_v38 = vmul.f32 %v4207_v20, %v4207_v20 }
 0x212   :  { %v2476_v26 = vadd.f32 %v2475_v55, %v4187_v61  ;;  %v1942_v32 = vadd.f32 %v1941_v58, %v1894_v48  ;;  %v1897_v61 = vmul.f32 %v4197_v11, %v4197_v11 }
 0x213   :  { %v3234_v36 = vpop.f32.mrf.mxu0  ;;  %v3338_v37 = vpop.f32.mrf.mxu1 }
 0x214   :  { %v1836_v37 = vadd.f32 %v1835_v22, %v4177_v52  ;;  %v2579_v52 = vadd.f32 %v2578_v47, %v2531_v30  ;;  %v2477_v17 = vadd.f32 %v2476_v26, %v4191_v2  ;;  %v1943_v18 = vadd.f32 %v1942_v32, %v1895_v53 }
 0x215   :  { %v4223_v42 = vpop.f32.mrf.mxu0  ;;  %v4225_v43 = vpop.f32.mrf.mxu1  ;;  %v2536_v2 = vmul.f32 %v4203_v16, %v4203_v16 }
 0x216   :  { %v1837_v54 = vadd.f32 %v1836_v37, %v4181_v56  ;;  %v2580_v34 = vadd.f32 %v2579_v52, %v2532_v49  ;;  %v1896_v56 = vmul.f32 %v4193_v6, %v4193_v6  ;;  %v2478_v25 = vadd.f32 %v2477_v17, %v4195_v7 }
 0x217   :  { %v3237_v50 = vpop.f32.mrf.mxu0  ;;  %v3341_v51 = vpop.f32.mrf.mxu1  ;;  %v1899_v7 = vmul.f32 %v4205_v19, %v4205_v19 }
 0x218   :  { %v1838_v8 = vadd.f32 %v1837_v54, %v4185_v60  ;;  %v2581_v60 = vadd.f32 %v2580_v34, %v2533_v59  ;;  %v1944_v27 = vadd.f32 %v1943_v18, %v1896_v56 }
 0x219   :  { %v4238_v62 = vpop.f32.mrf.mxu0  ;;  %v4240_v63 = vpop.f32.mrf.mxu1 }
 0x21a   :  { %v1839_v14 = vadd.f32 %v1838_v8, %v4189_v1  ;;  %v2582_v44 = vadd.f32 %v2581_v60, %v2534_v57  ;;  %v1898_v1 = vmul.f32 %v4201_v15, %v4201_v15  ;;  %v1945_v37 = vadd.f32 %v1944_v27, %v1897_v61 }
 0x21b   :  { %v3238_v10 = vpop.f32.mrf.mxu0  ;;  %v3342_v13 = vpop.f32.mrf.mxu1 }
 0x21c   :  { %v1840_v22 = vadd.f32 %v1839_v14, %v4193_v6  ;;  %v2583_v6 = vadd.f32 %v2582_v44, %v2535_v40  ;;  %v1946_v54 = vadd.f32 %v1945_v37, %v1898_v1  ;;  %v2541_v40 = vmul.f32 %v4225_v43, %v4225_v43 }
 0x21d   :  { %v4256_v41 = vpop.f32.mrf.mxu0  ;;  %v4258_v21 = vpop.f32.mrf.mxu1 }
 0x21e   :  { %v2584_v55 = vadd.f32 %v2583_v6, %v2536_v2  ;;  %v2543_v6 = vmul.f32 %v4258_v21, %v4258_v21 }
 0x21f   :  { %v3241_v31 = vpop.f32.mrf.mxu0  ;;  %v3345_v36 = vpop.f32.mrf.mxu1 }
 0x220   :  { %v1841_v31 = vadd.f32 %v1840_v22, %v4197_v11  ;;  %v2479_v36 = vadd.f32 %v2478_v25, %v4199_v12  ;;  %v1900_v11 = vmul.f32 %v4209_v23, %v4209_v23  ;;  %v2538_v12 = vmul.f32 %v4211_v24, %v4211_v24 }
 0x221   :  { %v4272_v50 = vpop.f32.mrf.mxu0  ;;  %v4274_v51 = vpop.f32.mrf.mxu1 }
 0x222   :  { %v1842_v48 = vadd.f32 %v1841_v31, %v4201_v15  ;;  %v2480_v49 = vadd.f32 %v2479_v36, %v4203_v16  ;;  %v2585_v15 = vadd.f32 %v2584_v55, %v2537_v38  ;;  %v1901_v16 = vmul.f32 %v4213_v28, %v4213_v28 }
 0x223   :  { %v3242_v4 = vpop.f32.mrf.mxu0  ;;  %v3346_v5 = vpop.f32.mrf.mxu1 }
 0x224   :  { %v1843_v53 = vadd.f32 %v1842_v48, %v4205_v19  ;;  %v2481_v59 = vadd.f32 %v2480_v49, %v4207_v20  ;;  %v1947_v4 = vadd.f32 %v1946_v54, %v1899_v7  ;;  %v2539_v5 = vmul.f32 %v4215_v29, %v4215_v29 }
 0x225   :  { %v4288_v10 = vpop.f32.mrf.mxu0  ;;  %v4290_v13 = vpop.f32.mrf.mxu1  ;;  %v2586_v57 = vadd.f32 %v2585_v15, %v2538_v12  ;;  %v1902_v19 = vmul.f32 %v4217_v33, %v4217_v33  ;;  %v2540_v20 = vmul.f32 %v4219_v0, %v4219_v0 }
 0x226   :  { %v1844_v32 = vadd.f32 %v1843_v53, %v4209_v23  ;;  %v2482_v34 = vadd.f32 %v2481_v59, %v4211_v24  ;;  %v1948_v56 = vadd.f32 %v1947_v4, %v1900_v11  ;;  %v1903_v24 = vmul.f32 %v4223_v42, %v4223_v42 }
 0x227   :  { %v3245_v35 = vpop.f32.mrf.mxu0  ;;  %v3349_v39 = vpop.f32.mrf.mxu1  ;;  %v2587_v23 = vadd.f32 %v2586_v57, %v2539_v5 }
 0x228   :  { %v1845_v18 = vadd.f32 %v1844_v32, %v4213_v28  ;;  %v2483_v60 = vadd.f32 %v2482_v34, %v4215_v29  ;;  %v1949_v61 = vadd.f32 %v1948_v56, %v1901_v16  ;;  %v1904_v28 = vmul.f32 %v4238_v62, %v4238_v62 }
 0x229   :  { %v4304_v45 = vpop.f32.mrf.mxu0  ;;  %v4306_v30 = vpop.f32.mrf.mxu1  ;;  %v2588_v44 = vadd.f32 %v2587_v23, %v2540_v20  ;;  %v2542_v29 = vmul.f32 %v4240_v63, %v4240_v63 }
 0x22a   :  { %v1846_v22 = vadd.f32 %v1845_v18, %v4217_v33  ;;  %v2484_v25 = vadd.f32 %v2483_v60, %v4219_v0  ;;  %v1950_v27 = vadd.f32 %v1949_v61, %v1902_v19  ;;  %v1905_v0 = vmul.f32 %v4256_v41, %v4256_v41 }
 0x22b   :  { %v3246_v46 = vpop.f32.mrf.mxu0  ;;  %v3350_v47 = vpop.f32.mrf.mxu1  ;;  %v2589_v33 = vadd.f32 %v2588_v44, %v2541_v40 }
 0x22c   :  { %v1847_v31 = vadd.f32 %v1846_v22, %v4223_v42  ;;  %v2485_v36 = vadd.f32 %v2484_v25, %v4225_v43  ;;  %v1951_v37 = vadd.f32 %v1950_v27, %v1903_v24  ;;  %v1906_v42 = vmul.f32 %v4272_v50, %v4272_v50 }
 0x22d   :  { %v4320_v58 = vpop.f32.mrf.mxu0  ;;  %v4322_v52 = vpop.f32.mrf.mxu1  ;;  %v2590_v49 = vadd.f32 %v2589_v33, %v2542_v29  ;;  %v2544_v43 = vmul.f32 %v4274_v51, %v4274_v51 }
 0x22e   :  { %v1848_v46 = vadd.f32 %v1847_v31, %v4238_v62  ;;  %v2486_v47 = vadd.f32 %v2485_v36, %v4240_v63  ;;  %v1952_v48 = vadd.f32 %v1951_v37, %v1904_v28  ;;  %v1907_v62 = vmul.f32 %v4288_v10, %v4288_v10 }
 0x22f   :  { %v3249_v8 = vpop.f32.mrf.mxu0  ;;  %v3353_v26 = vpop.f32.mrf.mxu1  ;;  %v2591_v59 = vadd.f32 %v2590_v49, %v2543_v6  ;;  %v2545_v63 = vmul.f32 %v4290_v13, %v4290_v13 }
 0x230   :  { %v1849_v11 = vadd.f32 %v1848_v46, %v4256_v41  ;;  %v2487_v12 = vadd.f32 %v2486_v47, %v4258_v21  ;;  %v1953_v53 = vadd.f32 %v1952_v48, %v1905_v0  ;;  %v1908_v41 = vmul.f32 %v4304_v45, %v4304_v45 }
 0x231   :  { %v4336_v14 = vpop.f32.mrf.mxu0  ;;  %v4338_v17 = vpop.f32.mrf.mxu1  ;;  %v2592_v26 = vadd.f32 %v2591_v59, %v2544_v43  ;;  %v2546_v21 = vmul.f32 %v4306_v30, %v4306_v30 }
 0x232   :  { %v1850_v16 = vadd.f32 %v1849_v11, %v4272_v50  ;;  %v2488_v5 = vadd.f32 %v2487_v12, %v4274_v51  ;;  %v1954_v8 = vadd.f32 %v1953_v53, %v1906_v42  ;;  %v1909_v50 = vmul.f32 %v4320_v58, %v4320_v58 }
 0x233   :  { %v3250_v35 = vpop.f32.mrf.mxu0  ;;  %v3354_v39 = vpop.f32.mrf.mxu1  ;;  %v2593_v20 = vadd.f32 %v2592_v26, %v2545_v63  ;;  %v2547_v51 = vmul.f32 %v4322_v52, %v4322_v52 }
 0x234   :  { %v1851_v56 = vadd.f32 %v1850_v16, %v4288_v10  ;;  %v2489_v57 = vadd.f32 %v2488_v5, %v4290_v13  ;;  %v1955_v19 = vadd.f32 %v1954_v8, %v1907_v62  ;;  %v1910_v10 = vmul.f32 %v4336_v14, %v4336_v14 }
 0x235   :  { %v4352_v1 = vpop.f32.mrf.mxu0  ;;  %v4354_v2 = vpop.f32.mrf.mxu1  ;;  %v2594_v40 = vadd.f32 %v2593_v20, %v2546_v21  ;;  %v2548_v13 = vmul.f32 %v4338_v17, %v4338_v17 }
 0x236   :  { %v1852_v61 = vadd.f32 %v1851_v56, %v4304_v45  ;;  %v2490_v23 = vadd.f32 %v2489_v57, %v4306_v30  ;;  %v1956_v24 = vadd.f32 %v1955_v19, %v1908_v41  ;;  %v1911_v45 = vmul.f32 %v4352_v1, %v4352_v1 }
 0x237   :  { %v3253_v7 = vpop.f32.mrf.mxu0  ;;  %v3357_v38 = vpop.f32.mrf.mxu1  ;;  %v2595_v44 = vadd.f32 %v2594_v40, %v2547_v51  ;;  %v2549_v30 = vmul.f32 %v4354_v2, %v4354_v2 }
 0x238   :  { %v1853_v22 = vadd.f32 %v1852_v61, %v4320_v58  ;;  %v2491_v25 = vadd.f32 %v2490_v23, %v4322_v52  ;;  %v1957_v27 = vadd.f32 %v1956_v24, %v1909_v50 }
 0x239   :  { %v1781_v54 = vpop.f32.mrf.mxu0  ;;  %v2419_v55 = vpop.f32.mrf.mxu1  ;;  %v2596_v33 = vadd.f32 %v2595_v44, %v2548_v13 }
 0x23a   :  { %v1854_v31 = vadd.f32 %v1853_v22, %v4336_v14  ;;  %v2492_v36 = vadd.f32 %v2491_v25, %v4338_v17  ;;  %v1958_v37 = vadd.f32 %v1957_v27, %v1910_v10  ;;  %v1912_v0 = vmul.f32 %v1781_v54, %v1781_v54 }
 0x23b   :  { %v3254_v4 = vpop.f32.mrf.mxu0  ;;  %v3358_v15 = vpop.f32.mrf.mxu1  ;;  %v2550_v58 = vmul.f32 %v2419_v55, %v2419_v55  ;;  %v2597_v47 = vadd.f32 %v2596_v33, %v2549_v30 }
 0x23c   :  { %v1855_v7 = vadd.f32 %v1854_v31, %v4352_v1  ;;  %v2493_v38 = vadd.f32 %v2492_v36, %v4354_v2  ;;  %v1959_v46 = vadd.f32 %v1958_v37, %v1911_v45 }
 0x23d   :  { %v1786_v32 = vpop.f32.mrf.mxu0  ;;  %v2424_v34 = vpop.f32.mrf.mxu1  ;;  %v2598_v17 = vadd.f32 %v2597_v47, %v2550_v58 }
 0x23e   :  { %v1913_v48 = vmul.f32 %v1786_v32, %v1786_v32  ;;  %v2551_v49 = vmul.f32 %v2424_v34, %v2424_v34  ;;  %v1856_v11 = vadd.f32 %v1855_v7, %v1781_v54  ;;  %v2494_v14 = vadd.f32 %v2493_v38, %v2419_v55 }
 0x23f   :  { %v3257_v18 = vpop.f32.mrf.mxu0  ;;  %v3361_v60 = vpop.f32.mrf.mxu1  ;;  %v1960_v12 = vadd.f32 %v1959_v46, %v1912_v0 }
 0x240   :  { %v1857_v4 = vadd.f32 %v1856_v11, %v1786_v32  ;;  %v2495_v15 = vadd.f32 %v2494_v14, %v2424_v34  ;;  %v2599_v1 = vadd.f32 %v2598_v17, %v2551_v49 }
 0x241   :  { %v1789_v35 = vpop.f32.mrf.mxu0  ;;  %v2427_v39 = vpop.f32.mrf.mxu1  ;;  %v1961_v16 = vadd.f32 %v1960_v12, %v1913_v48 }
 0x242   :  { %v1914_v53 = vmul.f32 %v1789_v35, %v1789_v35  ;;  %v2552_v59 = vmul.f32 %v2427_v39, %v2427_v39  ;;  %v1858_v41 = vadd.f32 %v1857_v4, %v1789_v35  ;;  %v2496_v21 = vadd.f32 %v2495_v15, %v2427_v39 }
 0x243   :  { %v3258_v28 = vpop.f32.mrf.mxu0  ;;  %v3362_v29 = vpop.f32.mrf.mxu1 }
 0x244   :  { %v1962_v56 = vadd.f32 %v1961_v16, %v1914_v53  ;;  %v2600_v57 = vadd.f32 %v2599_v1, %v2552_v59 }
 0x245   :  { %v1794_v6 = vpop.f32.mrf.mxu0  ;;  %v2432_v52 = vpop.f32.mrf.mxu1 }
 0x246   :  { %v1915_v5 = vmul.f32 %v1794_v6, %v1794_v6  ;;  %v2553_v2 = vmul.f32 %v2432_v52, %v2432_v52  ;;  %v1859_v50 = vadd.f32 %v1858_v41, %v1794_v6  ;;  %v2497_v51 = vadd.f32 %v2496_v21, %v2432_v52 }
 0x247   :  { %v3261_v42 = vpop.f32.mrf.mxu0  ;;  %v3365_v43 = vpop.f32.mrf.mxu1 }
 0x248   :  { %v1963_v18 = vadd.f32 %v1962_v56, %v1915_v5  ;;  %v2601_v60 = vadd.f32 %v2600_v57, %v2553_v2 }
 0x249   :  { %v1797_v62 = vpop.f32.mrf.mxu0  ;;  %v2435_v63 = vpop.f32.mrf.mxu1 }
 0x24a   :  { %v1916_v54 = vmul.f32 %v1797_v62, %v1797_v62  ;;  %v2554_v55 = vmul.f32 %v2435_v63, %v2435_v63  ;;  %v1860_v24 = vadd.f32 %v1859_v50, %v1797_v62  ;;  %v2498_v40 = vadd.f32 %v2497_v51, %v2435_v63 }
 0x24b   :  { %v3262_v8 = vpop.f32.mrf.mxu0  ;;  %v3366_v26 = vpop.f32.mrf.mxu1 }
 0x24c   :  { %v1964_v10 = vadd.f32 %v1963_v18, %v1916_v54  ;;  %v2602_v13 = vadd.f32 %v2601_v60, %v2554_v55  ;;  %v2613_v18 = vld [vmem:[#allocation2] sm:$0x1] }
 0x24d   :  { %v1802_v19 = vpop.f32.mrf.mxu0  ;;  %v2440_v20 = vpop.f32.mrf.mxu1 }
 0x24e   :  { %v1917_v32 = vmul.f32 %v1802_v19, %v1802_v19  ;;  %v2555_v34 = vmul.f32 %v2440_v20, %v2440_v20  ;;  %v1861_v22 = vadd.f32 %v1860_v24, %v1802_v19  ;;  %v2499_v25 = vadd.f32 %v2498_v40, %v2440_v20 }
 0x24f   :  { %v3265_v61 = vpop.f32.mrf.mxu0  ;;  %v3369_v23 = vpop.f32.mrf.mxu1 }
 0x250   :  { %v1965_v45 = vadd.f32 %v1964_v10, %v1917_v32  ;;  %v2603_v30 = vadd.f32 %v2602_v13, %v2555_v34  ;;  %v2616_v61 = vld [vmem:[#allocation3] sm:$0x1] }
 0x251   :  { %v1805_v35 = vpop.f32.mrf.mxu0  ;;  %v2443_v39 = vpop.f32.mrf.mxu1 }
 0x252   :  { %v1918_v27 = vmul.f32 %v1805_v35, %v1805_v35  ;;  %v2556_v44 = vmul.f32 %v2443_v39, %v2443_v39  ;;  %v1862_v31 = vadd.f32 %v1861_v22, %v1805_v35  ;;  %v2500_v36 = vadd.f32 %v2499_v25, %v2443_v39 }
 0x253   :  { %v3266_v28 = vpop.f32.mrf.mxu0  ;;  %v3370_v29 = vpop.f32.mrf.mxu1 }
 0x254   :  { %v1966_v37 = vadd.f32 %v1965_v45, %v1918_v27  ;;  %v2604_v33 = vadd.f32 %v2603_v30, %v2556_v44  ;;  %v2628_v44 = vld [vmem:[%s4428_s6] sm:$0x1] }
 0x255   :  { %v1810_v0 = vpop.f32.mrf.mxu0  ;;  %v2448_v58 = vpop.f32.mrf.mxu1  ;;  %v2636_v45 = vld [vmem:[%s4427_s5] sm:$0x1] }
 0x256   :  { %v1863_v6 = vadd.f32 %v1862_v31, %v1810_v0  ;;  %v1919_v52 = vmul.f32 %v1810_v0, %v1810_v0  ;;  %v2501_v7 = vadd.f32 %v2500_v36, %v2448_v58  ;;  %v2557_v38 = vmul.f32 %v2448_v58, %v2448_v58  ;;  %v2635_v31 = vld [vmem:[%s4429_s7] sm:$0x1] }
 0x257   :  { %v3269_v46 = vpop.f32.mrf.mxu0  ;;  %v3373_v47 = vpop.f32.mrf.mxu1 }
 0x258   :  { %v1864_v48 = vrot.slane %v1863_v6, 4  ;;  %v1967_v49 = vadd.f32 %v1966_v37, %v1919_v52  ;;  %v2502_v42 = vrot.slane %v2501_v7, 4  ;;  %v2605_v43 = vadd.f32 %v2604_v33, %v2557_v38 }
 0x259   :  { %v1813_v11 = vpop.f32.mrf.mxu0  ;;  %v2451_v14 = vpop.f32.mrf.mxu1 }
 0x25a   :  { %v1865_v12 = vadd.f32 %v1864_v48, %v1863_v6  ;;  %v1968_v17 = vrot.slane %v1967_v49, 4  ;;  %v2503_v53 = vadd.f32 %v2502_v42, %v2501_v7  ;;  %v2606_v59 = vrot.slane %v2605_v43, 4 }
 0x25b   :  { %v3270_v62 = vpop.f32.mrf.mxu0  ;;  %v3374_v63 = vpop.f32.mrf.mxu1 }
 0x25c   :  { %v1866_v4 = vrot.slane %v1865_v12, 2  ;;  %v1969_v15 = vadd.f32 %v1968_v17, %v1967_v49  ;;  %v2504_v16 = vrot.slane %v2503_v53, 2  ;;  %v2607_v1 = vadd.f32 %v2606_v59, %v2605_v43 }
 0x25e   :  { %v1867_v5 = vadd.f32 %v1866_v4, %v1865_v12  ;;  %v1970_v2 = vrot.slane %v1969_v15, 2  ;;  %v2505_v8 = vadd.f32 %v2504_v16, %v2503_v53  ;;  %v2608_v26 = vrot.slane %v2607_v1, 2 }
 0x260   :  { %v1868_v41 = vrot.slane %v1867_v5, 1  ;;  %v1971_v21 = vadd.f32 %v1970_v2, %v1969_v15  ;;  %v2506_v56 = vrot.slane %v2505_v8, 1  ;;  %v2609_v57 = vadd.f32 %v2608_v26, %v2607_v1 }
 0x262   :  { %v1869_v54 = vadd.f32 %v1868_v41, %v1867_v5  ;;  %v1972_v55 = vrot.slane %v1971_v21, 1  ;;  %v2610_v19 = vrot.slane %v2609_v57, 1  ;;  %v2507_v51 = vadd.f32 %v2506_v56, %v2505_v8 }
 0x264   :  { %v1870_v20 = vadd.f32 %v1869_v54, %v4151_v3  ;;  %v1973_v50 = vadd.f32 %v1972_v55, %v1971_v21  ;;  %v2611_v34 = vadd.f32 %v2610_v19, %v2609_v57 }
 0x266   :  { %v1974_v60 = vadd.f32 %v1973_v50, %v4153_v9  ;;  %v2508_v32 = vadd.f32 %v2507_v51, %v1870_v20  ;;  %v2632_v9 = vld [vmem:[%s4427_s5] sm:$0x1] }
 0x268   :  { %v2612_v23 = vadd.f32 %v2611_v34, %v1974_v60  ;;  %v2614_v24 = vadd.f32 %v2613_v18, %v2508_v32 }
 0x26a   :  { %2615 = vst [vmem:[#allocation2] sm:$0x1] %v2614_v24  ;;  %v2617_v40 = vadd.f32 %v2616_v61, %v2612_v23 }
 0x26c   :  { %2618 = vst [vmem:[#allocation3] sm:$0x1] %v2617_v40 }
 0x271   :  { %v2622_v10 = vld [vmem:[#allocation2] sm:$0x1] }
 0x272   :  { %v2623_v13 = vmul.f32 0.0006377551, %v2622_v10 }
 0x273   :  { %v2624_v35 = vld [vmem:[#allocation3] sm:$0x1] }
 0x274   :  { %v2625_v39 = vmul.f32 0.0006377551, %v2624_v35  ;;  %v2626_v22 = vmul.f32 %v2623_v13, %v2623_v13  ;;  %v2633_v27 = vadd.f32 %v2632_v9, %v2623_v13 }
 0x276   :  { %v2627_v25 = vsub.f32 %v2625_v39, %v2626_v22  ;;  %v2637_v29 = vsub.f32 %v2636_v45, %v2633_v27 }
 0x278   :  { %v2629_v3 = vadd.f32 1e-05, %v2627_v25 }
 0x27a   :  { %3480 = vrsqrt.f32 %v2629_v3 }
 0x287   :  { %v3481_v30 = vpop.eup %3480 }
 0x288   :  { %v2631_v28 = vmul.f32 %v3481_v30, %v2628_v44 }
 0x28a   :  { %2634 = vst [vmem:[%s4430_s8] sm:$0x1] %v2631_v28  ;;  %v2638_v36 = vmul.f32 %v2637_v29, %v2631_v28 }
 0x28c   :  { %v2639_v37 = vadd.f32 %v2638_v36, %v2635_v31 }
 0x28e   :  { %2640 = vst [vmem:[%s4431_s9] sm:$0x1] %v2639_v37 }

// kernel: convnet_forward.6
= control target key start
LH: loop header
LB: loop body
LE: loop exit
PB: predicated region body
PF: predicated region fallthrough
CT: control target
= control target key end

     0   :  { %vm292_vm0 = vcmask 1043456   ;;  %vm293_vm1 = vcmask 1044480   ;;  %v5133_v0 = vmov 0.0   ;;  %v3459_v2 = vmov 65535   ;;  %s5125_s4 = inlined_call_operand.vmem [shape: bf16[25,128], index: 4, kind: input, shape index: {}]   ;;  %s5126_s0 = inlined_call_operand.vmem [shape: bf16[392,25], index: 0, kind: input, shape index: {}]   ;;  %s5127_s1 = inlined_call_operand.vmem [shape: bf16[392,25], index: 1, kind: input, shape index: {}]   ;;  %s5128_s2 = inlined_call_operand.vmem [shape: bf16[392,25], index: 2, kind: input, shape index: {}]   ;;  %s5129_s3 = inlined_call_operand.vmem [shape: bf16[392,25], index: 3, kind: input, shape index: {}]   ;;  %s5130_s5 = inlined_call_operand.vmem [shape: f32[1,128], index: 5, kind: input, shape index: {}]   ;;  %s5131_s6 = inlined_call_operand.vmem [shape: f32[1,128], index: 6, kind: input, shape index: {}]   ;;  %s5132_s7 = inlined_call_operand.vmem [shape: f32[392,128], index: 7, kind: output, shape index: {}]  }
   0x1   :  { %2933 = vmatprep.subr.bf16.mxu0 %v5133_v0  ;;  %3037 = vmatprep.subr.bf16.mxu1 %v5133_v0  ;;  %v3352_v1 = vld [vmem:[%s5125_s4 + $0x8] sm:$0x1f]   ;;  %v294_v3 = vsel %vm292_vm0, 4294967295, %v3459_v2  ;;  %vm3460_vm2 = vmmov 0   ;;  %v3353_v6 = vld [vmem:[%s5125_s4] sm:$0xff]   ;;  %vm216_vm3 = vcmask 203776  }
   0x2   :  { %v295_v4 = vsel %vm293_vm1, %v294_v3, 0  ;;  %2937 = vmatprep.mubr.msk.bf16.mxu0 %vm3460_vm2, %v5133_v0  ;;  %3041 = vmatprep.mubr.msk.bf16.mxu1 %vm3460_vm2, %v5133_v0  ;;  %v3354_v7 = vld [vmem:[%s5126_s0] sm:$0xff]   ;;  %v3356_v9 = vld [vmem:[%s5126_s0 + $0x8] sm:$0xff]   ;;  %v3358_v11 = vld [vmem:[%s5126_s0 + $0x10] sm:$0xff]  }
   0x3   :  { %v297_v5 = vand.u32 %v3352_v1, %v295_v4  ;;  %v3355_v8 = vld [vmem:[%s5127_s1] sm:$0xff]   ;;  %v3357_v10 = vld [vmem:[%s5127_s1 + $0x8] sm:$0xff]   ;;  %v3359_v12 = vld [vmem:[%s5127_s1 + $0x10] sm:$0xff]  }
   0x4   :  { %v3360_v13 = vld [vmem:[%s5126_s0 + $0x18] sm:$0xff]   ;;  %v3362_v15 = vld [vmem:[%s5126_s0 + $0x20] sm:$0xff]   ;;  %v3364_v17 = vld [vmem:[%s5126_s0 + $0x28] sm:$0xff]  }
   0x5   :  { %2934 = vmatpush3.bf16.msra.mxu0 %v297_v5  ;;  %3038 = vmatpush3.bf16.msra.mxu1 %v297_v5  ;;  %v3361_v14 = vld [vmem:[%s5127_s1 + $0x18] sm:$0xff]   ;;  %v3363_v16 = vld [vmem:[%s5127_s1 + $0x20] sm:$0xff]   ;;  %v3365_v18 = vld [vmem:[%s5127_s1 + $0x28] sm:$0xff]  }
   0x6   :  { %2935 = vmatprep.subr.bf16.mxu0 %v5133_v0  ;;  %3039 = vmatprep.subr.bf16.mxu1 %v5133_v0  ;;  %v3366_v19 = vld [vmem:[%s5126_s0 + $0x30] sm:$0xff]   ;;  %v3368_v21 = vld [vmem:[%s5126_s0 + $0x38] sm:$0xff]   ;;  %v3370_v23 = vld [vmem:[%s5126_s0 + $0x40] sm:$0xff]  }
   0x7   :  { %v3367_v20 = vld [vmem:[%s5127_s1 + $0x30] sm:$0xff]   ;;  %v3369_v22 = vld [vmem:[%s5127_s1 + $0x38] sm:$0xff]   ;;  %v3371_v24 = vld [vmem:[%s5127_s1 + $0x40] sm:$0xff]  }
   0x8   :  { %v3372_v25 = vld [vmem:[%s5126_s0 + $0x48] sm:$0xff]   ;;  %v3374_v27 = vld [vmem:[%s5126_s0 + $0x50] sm:$0xff]   ;;  %v3376_v29 = vld [vmem:[%s5126_s0 + $0x58] sm:$0xff]  }
   0x9   :  { %2936 = vmatpush3.bf16.msra.mxu0 %v3353_v6  ;;  %3040 = vmatpush3.bf16.msra.mxu1 %v3353_v6  ;;  %v3373_v26 = vld [vmem:[%s5127_s1 + $0x48] sm:$0xff]   ;;  %v3375_v28 = vld [vmem:[%s5127_s1 + $0x50] sm:$0xff]   ;;  %v3377_v30 = vld [vmem:[%s5127_s1 + $0x58] sm:$0xff]  }
   0xa   :  { %3141 = vmatprep.subr.bf16.mxu0 %v5133_v0  ;;  %3245 = vmatprep.subr.bf16.mxu1 %v5133_v0  ;;  %v3378_v31 = vld [vmem:[%s5126_s0 + $0x60] sm:$0xff]   ;;  %v3380_v33 = vld [vmem:[%s5126_s0 + $0x68] sm:$0xff]   ;;  %v3382_v35 = vld [vmem:[%s5126_s0 + $0x70] sm:$0xff]  }
   0xb   :  { %v3379_v32 = vld [vmem:[%s5127_s1 + $0x60] sm:$0xff]   ;;  %v3381_v34 = vld [vmem:[%s5127_s1 + $0x68] sm:$0xff]   ;;  %v3383_v36 = vld [vmem:[%s5127_s1 + $0x70] sm:$0xff]  }
   0xc   :  { %2938 = vmatmul.mubr.msk.bf16.vlgmr.msra.gmra.mxu0 %vm216_vm3, %v3354_v7  ;;  %3042 = vmatmul.mubr.msk.bf16.vlgmr.msra.gmra.mxu1 %vm216_vm3, %v3355_v8  ;;  %v3384_v37 = vld [vmem:[%s5126_s0 + $0x78] sm:$0xff]   ;;  %v3386_v39 = vld [vmem:[%s5126_s0 + $0x80] sm:$0xff]   ;;  %v3388_v41 = vld [vmem:[%s5126_s0 + $0x88] sm:$0xff]  }
   0xd   :  { %3142 = vmatpush3.bf16.msra.mxu0 %v297_v5  ;;  %3246 = vmatpush3.bf16.msra.mxu1 %v297_v5  ;;  %v3385_v38 = vld [vmem:[%s5127_s1 + $0x78] sm:$0xff]   ;;  %v3387_v40 = vld [vmem:[%s5127_s1 + $0x80] sm:$0xff]   ;;  %v3389_v42 = vld [vmem:[%s5127_s1 + $0x88] sm:$0xff]  }
   0xe   :  { %2941 = vmatprep.mubr.msk.bf16.mxu0 %vm3460_vm2, %v5133_v0  ;;  %3045 = vmatprep.mubr.msk.bf16.mxu1 %vm3460_vm2, %v5133_v0  ;;  %v3390_v43 = vld [vmem:[%s5126_s0 + $0x90] sm:$0xff]   ;;  %v3392_v45 = vld [vmem:[%s5126_s0 + $0x98] sm:$0xff]   ;;  %v3394_v47 = vld [vmem:[%s5126_s0 + $0xa0] sm:$0xff]  }
   0xf   :  { %3143 = vmatprep.subr.bf16.mxu0 %v5133_v0  ;;  %3247 = vmatprep.subr.bf16.mxu1 %v5133_v0  ;;  %v3391_v44 = vld [vmem:[%s5127_s1 + $0x90] sm:$0xff]   ;;  %v3393_v46 = vld [vmem:[%s5127_s1 + $0x98] sm:$0xff]   ;;  %v3395_v48 = vld [vmem:[%s5127_s1 + $0xa0] sm:$0xff]  }
  0x10   :  { %v3396_v49 = vld [vmem:[%s5126_s0 + $0xa8] sm:$0xff]   ;;  %v3398_v51 = vld [vmem:[%s5126_s0 + $0xb0] sm:$0xff]   ;;  %v3400_v53 = vld [vmem:[%s5126_s0 + $0xb8] sm:$0xff]  }
  0x11   :  { %3144 = vmatpush3.bf16.msra.mxu0 %v3353_v6  ;;  %3248 = vmatpush3.bf16.msra.mxu1 %v3353_v6  ;;  %v3397_v50 = vld [vmem:[%s5127_s1 + $0xa8] sm:$0xff]   ;;  %v3399_v52 = vld [vmem:[%s5127_s1 + $0xb0] sm:$0xff]   ;;  %v3401_v54 = vld [vmem:[%s5127_s1 + $0xb8] sm:$0xff]  }
  0x12   :  { %v3402_v55 = vld [vmem:[%s5126_s0 + $0xc0] ss:$0 sps:$4 sm:$0xff]  }
  0x13   :  { %v3403_v56 = vld [vmem:[%s5127_s1 + $0xc0] ss:$0 sps:$4 sm:$0xff]  }
  0x14   :  { %2942 = vmatmul.mubr.msk.bf16.gmra.mxu0 %vm216_vm3, %v3356_v9  ;;  %3046 = vmatmul.mubr.msk.bf16.gmra.mxu1 %vm216_vm3, %v3357_v10  ;;  %v3816_v57 = vld [vmem:[%s5130_s5] ss:$0 sm:$0xff] }
  0x15   :  { %2945 = vmatprep.mubr.msk.bf16.mxu0 %vm3460_vm2, %v5133_v0  ;;  %3049 = vmatprep.mubr.msk.bf16.mxu1 %vm3460_vm2, %v5133_v0  ;;  %v3821_v58 = vld [vmem:[%s5131_s6] ss:$0 sm:$0xff] }
  0x16   :  { %v3404_v6 = vld [vmem:[%s5128_s2] sm:$0xff]  }
  0x17   :  { %v3405_v7 = vld [vmem:[%s5129_s3] sm:$0xff]  }
  0x1c   :  { %2946 = vmatmul.mubr.msk.bf16.gmra.mxu0 %vm216_vm3, %v3358_v11  ;;  %3050 = vmatmul.mubr.msk.bf16.gmra.mxu1 %vm216_vm3, %v3359_v12 }
  0x1d   :  { %2949 = vmatprep.mubr.msk.bf16.mxu0 %vm3460_vm2, %v5133_v0  ;;  %3053 = vmatprep.mubr.msk.bf16.mxu1 %vm3460_vm2, %v5133_v0 }
  0x24   :  { %2950 = vmatmul.mubr.msk.bf16.gmra.mxu0 %vm216_vm3, %v3360_v13  ;;  %3054 = vmatmul.mubr.msk.bf16.gmra.mxu1 %vm216_vm3, %v3361_v14 }
  0x25   :  { %2953 = vmatprep.mubr.msk.bf16.mxu0 %vm3460_vm2, %v5133_v0  ;;  %3057 = vmatprep.mubr.msk.bf16.mxu1 %vm3460_vm2, %v5133_v0 }
  0x2c   :  { %2954 = vmatmul.mubr.msk.bf16.gmra.mxu0 %vm216_vm3, %v3362_v15  ;;  %3058 = vmatmul.mubr.msk.bf16.gmra.mxu1 %vm216_vm3, %v3363_v16 }
  0x2d   :  { %2957 = vmatprep.mubr.msk.bf16.mxu0 %vm3460_vm2, %v5133_v0  ;;  %3061 = vmatprep.mubr.msk.bf16.mxu1 %vm3460_vm2, %v5133_v0 }
  0x34   :  { %2958 = vmatmul.mubr.msk.bf16.gmra.mxu0 %vm216_vm3, %v3364_v17  ;;  %3062 = vmatmul.mubr.msk.bf16.gmra.mxu1 %vm216_vm3, %v3365_v18 }
  0x35   :  { %2961 = vmatprep.mubr.msk.bf16.mxu0 %vm3460_vm2, %v5133_v0  ;;  %3065 = vmatprep.mubr.msk.bf16.mxu1 %vm3460_vm2, %v5133_v0 }
  0x3c   :  { %2962 = vmatmul.mubr.msk.bf16.gmra.mxu0 %vm216_vm3, %v3366_v19  ;;  %3066 = vmatmul.mubr.msk.bf16.gmra.mxu1 %vm216_vm3, %v3367_v20 }
  0x3d   :  { %2965 = vmatprep.mubr.msk.bf16.mxu0 %vm3460_vm2, %v5133_v0  ;;  %3069 = vmatprep.mubr.msk.bf16.mxu1 %vm3460_vm2, %v5133_v0 }
  0x44   :  { %2966 = vmatmul.mubr.msk.bf16.gmra.mxu0 %vm216_vm3, %v3368_v21  ;;  %3070 = vmatmul.mubr.msk.bf16.gmra.mxu1 %vm216_vm3, %v3369_v22 }
  0x45   :  { %2969 = vmatprep.mubr.msk.bf16.mxu0 %vm3460_vm2, %v5133_v0  ;;  %3073 = vmatprep.mubr.msk.bf16.mxu1 %vm3460_vm2, %v5133_v0 }
  0x4c   :  { %2970 = vmatmul.mubr.msk.bf16.gmra.mxu0 %vm216_vm3, %v3370_v23  ;;  %3074 = vmatmul.mubr.msk.bf16.gmra.mxu1 %vm216_vm3, %v3371_v24 }
  0x4d   :  { %2973 = vmatprep.mubr.msk.bf16.mxu0 %vm3460_vm2, %v5133_v0  ;;  %3077 = vmatprep.mubr.msk.bf16.mxu1 %vm3460_vm2, %v5133_v0 }
  0x54   :  { %2974 = vmatmul.mubr.msk.bf16.gmra.mxu0 %vm216_vm3, %v3372_v25  ;;  %3078 = vmatmul.mubr.msk.bf16.gmra.mxu1 %vm216_vm3, %v3373_v26  ;;  %v3406_v26 = vld [vmem:[%s5128_s2 + $0x8] sm:$0xff]  }
  0x55   :  { %2977 = vmatprep.mubr.msk.bf16.mxu0 %vm3460_vm2, %v5133_v0  ;;  %3081 = vmatprep.mubr.msk.bf16.mxu1 %vm3460_vm2, %v5133_v0 }
  0x5c   :  { %2978 = vmatmul.mubr.msk.bf16.gmra.mxu0 %vm216_vm3, %v3374_v27  ;;  %3082 = vmatmul.mubr.msk.bf16.gmra.mxu1 %vm216_vm3, %v3375_v28  ;;  %v3407_v27 = vld [vmem:[%s5129_s3 + $0x8] sm:$0xff]  }
  0x5d   :  { %2981 = vmatprep.mubr.msk.bf16.mxu0 %vm3460_vm2, %v5133_v0  ;;  %3085 = vmatprep.mubr.msk.bf16.mxu1 %vm3460_vm2, %v5133_v0 }
  0x64   :  { %2982 = vmatmul.mubr.msk.bf16.gmra.mxu0 %vm216_vm3, %v3376_v29  ;;  %3086 = vmatmul.mubr.msk.bf16.gmra.mxu1 %vm216_vm3, %v3377_v30 }
  0x65   :  { %2985 = vmatprep.mubr.msk.bf16.mxu0 %vm3460_vm2, %v5133_v0  ;;  %3089 = vmatprep.mubr.msk.bf16.mxu1 %vm3460_vm2, %v5133_v0 }
  0x6c   :  { %2986 = vmatmul.mubr.msk.bf16.gmra.mxu0 %vm216_vm3, %v3378_v31  ;;  %3090 = vmatmul.mubr.msk.bf16.gmra.mxu1 %vm216_vm3, %v3379_v32 }
  0x6d   :  { %2989 = vmatprep.mubr.msk.bf16.mxu0 %vm3460_vm2, %v5133_v0  ;;  %3093 = vmatprep.mubr.msk.bf16.mxu1 %vm3460_vm2, %v5133_v0 }
  0x74   :  { %2990 = vmatmul.mubr.msk.bf16.gmra.mxu0 %vm216_vm3, %v3380_v33  ;;  %3094 = vmatmul.mubr.msk.bf16.gmra.mxu1 %vm216_vm3, %v3381_v34 }
  0x75   :  { %2993 = vmatprep.mubr.msk.bf16.mxu0 %vm3460_vm2, %v5133_v0  ;;  %3097 = vmatprep.mubr.msk.bf16.mxu1 %vm3460_vm2, %v5133_v0 }
  0x7c   :  { %2994 = vmatmul.mubr.msk.bf16.gmra.mxu0 %vm216_vm3, %v3382_v35  ;;  %3098 = vmatmul.mubr.msk.bf16.gmra.mxu1 %vm216_vm3, %v3383_v36 }
  0x7d   :  { %2997 = vmatprep.mubr.msk.bf16.mxu0 %vm3460_vm2, %v5133_v0  ;;  %3101 = vmatprep.mubr.msk.bf16.mxu1 %vm3460_vm2, %v5133_v0 }
  0x84   :  { %2998 = vmatmul.mubr.msk.bf16.gmra.mxu0 %vm216_vm3, %v3384_v37  ;;  %3102 = vmatmul.mubr.msk.bf16.gmra.mxu1 %vm216_vm3, %v3385_v38 }
  0x85   :  { %3001 = vmatprep.mubr.msk.bf16.mxu0 %vm3460_vm2, %v5133_v0  ;;  %3105 = vmatprep.mubr.msk.bf16.mxu1 %vm3460_vm2, %v5133_v0 }
  0x8c   :  { %3002 = vmatmul.mubr.msk.bf16.gmra.mxu0 %vm216_vm3, %v3386_v39  ;;  %3106 = vmatmul.mubr.msk.bf16.gmra.mxu1 %vm216_vm3, %v3387_v40 }
  0x8d   :  { %3005 = vmatprep.mubr.msk.bf16.mxu0 %vm3460_vm2, %v5133_v0  ;;  %3109 = vmatprep.mubr.msk.bf16.mxu1 %vm3460_vm2, %v5133_v0 }
  0x94   :  { %3006 = vmatmul.mubr.msk.bf16.gmra.mxu0 %vm216_vm3, %v3388_v41  ;;  %3110 = vmatmul.mubr.msk.bf16.gmra.mxu1 %vm216_vm3, %v3389_v42 }
  0x95   :  { %3009 = vmatprep.mubr.msk.bf16.mxu0 %vm3460_vm2, %v5133_v0  ;;  %3113 = vmatprep.mubr.msk.bf16.mxu1 %vm3460_vm2, %v5133_v0 }
  0x9c   :  { %3010 = vmatmul.mubr.msk.bf16.gmra.mxu0 %vm216_vm3, %v3390_v43  ;;  %3114 = vmatmul.mubr.msk.bf16.gmra.mxu1 %vm216_vm3, %v3391_v44 }
  0x9d   :  { %3013 = vmatprep.mubr.msk.bf16.mxu0 %vm3460_vm2, %v5133_v0  ;;  %3117 = vmatprep.mubr.msk.bf16.mxu1 %vm3460_vm2, %v5133_v0 }
  0xa4   :  { %3014 = vmatmul.mubr.msk.bf16.gmra.mxu0 %vm216_vm3, %v3392_v45  ;;  %3118 = vmatmul.mubr.msk.bf16.gmra.mxu1 %vm216_vm3, %v3393_v46  ;;  %v3408_v46 = vld [vmem:[%s5128_s2 + $0x10] sm:$0xff]  }
  0xa5   :  { %3017 = vmatprep.mubr.msk.bf16.mxu0 %vm3460_vm2, %v5133_v0  ;;  %3121 = vmatprep.mubr.msk.bf16.mxu1 %vm3460_vm2, %v5133_v0 }
  0xac   :  { %3018 = vmatmul.mubr.msk.bf16.gmra.mxu0 %vm216_vm3, %v3394_v47  ;;  %3122 = vmatmul.mubr.msk.bf16.gmra.mxu1 %vm216_vm3, %v3395_v48  ;;  %v3409_v47 = vld [vmem:[%s5129_s3 + $0x10] sm:$0xff]  }
  0xad   :  { %3021 = vmatprep.mubr.msk.bf16.mxu0 %vm3460_vm2, %v5133_v0  ;;  %3125 = vmatprep.mubr.msk.bf16.mxu1 %vm3460_vm2, %v5133_v0 }
  0xb4   :  { %3022 = vmatmul.mubr.msk.bf16.gmra.mxu0 %vm216_vm3, %v3396_v49  ;;  %3126 = vmatmul.mubr.msk.bf16.gmra.mxu1 %vm216_vm3, %v3397_v50 }
  0xb5   :  { %3025 = vmatprep.mubr.msk.bf16.mxu0 %vm3460_vm2, %v5133_v0  ;;  %3129 = vmatprep.mubr.msk.bf16.mxu1 %vm3460_vm2, %v5133_v0 }
  0xbc   :  { %3026 = vmatmul.mubr.msk.bf16.gmra.mxu0 %vm216_vm3, %v3398_v51  ;;  %3130 = vmatmul.mubr.msk.bf16.gmra.mxu1 %vm216_vm3, %v3399_v52 }
  0xbd   :  { %3029 = vmatprep.mubr.msk.bf16.mxu0 %vm3460_vm2, %v5133_v0  ;;  %3133 = vmatprep.mubr.msk.bf16.mxu1 %vm3460_vm2, %v5133_v0 }
  0xc4   :  { %3030 = vmatmul.mubr.msk.bf16.gmra.mxu0 %vm216_vm3, %v3400_v53  ;;  %3134 = vmatmul.mubr.msk.bf16.gmra.mxu1 %vm216_vm3, %v3401_v54 }
  0xc5   :  { %3033 = vmatprep.mubr.msk.bf16.mxu0 %vm3460_vm2, %v5133_v0  ;;  %3137 = vmatprep.mubr.msk.bf16.mxu1 %vm3460_vm2, %v5133_v0 }
  0xcc   :  { %v333_v59 = vpop.f32.mrf.mxu0  ;;  %3034 = vmatmul.mubr.msk.bf16.gmra.mxu0 %vm216_vm3, %v3402_v55  ;;  %v922_v60 = vpop.f32.mrf.mxu1  ;;  %3138 = vmatmul.mubr.msk.bf16.gmra.mxu1 %vm216_vm3, %v3403_v56 }
  0xcd   :  { %v537_v61 = vmul.f32 %v3816_v57, %v333_v59  ;;  %v1120_v62 = vmul.f32 %v3816_v57, %v922_v60  ;;  %3145 = vmatprep.mubr.msk.bf16.mxu0 %vm3460_vm2, %v5133_v0  ;;  %3249 = vmatprep.mubr.msk.bf16.mxu1 %vm3460_vm2, %v5133_v0 }
  0xce   :  { %v2939_v63 = vpop.f32.mrf.mxu0  ;;  %v3043_v1 = vpop.f32.mrf.mxu1 }
  0xcf   :  { %v3832_v2 = vadd.f32 %v3821_v58, %v537_v61  ;;  %v3835_v3 = vadd.f32 %v3821_v58, %v1120_v62 }
  0xd0   :  { %v336_v4 = vpop.f32.mrf.mxu0  ;;  %v925_v5 = vpop.f32.mrf.mxu1 }
  0xd1   :  { %v538_v9 = vmul.f32 %v3816_v57, %v336_v4  ;;  %v1121_v10 = vmul.f32 %v3816_v57, %v925_v5 }
  0xd2   :  { %v2940_v11 = vpop.f32.mrf.mxu0  ;;  %v3044_v12 = vpop.f32.mrf.mxu1 }
  0xd3   :  { %v3848_v13 = vadd.f32 %v3821_v58, %v538_v9  ;;  %v3851_v14 = vadd.f32 %v3821_v58, %v1121_v10  ;;  %v3411_v9 = vld [vmem:[%s5129_s3 + $0x18] sm:$0xff]  }
  0xd4   :  { %v341_v15 = vpop.f32.mrf.mxu0  ;;  %v930_v16 = vpop.f32.mrf.mxu1  ;;  %3146 = vmatmul.mubr.msk.bf16.vlgmr.msra.gmra.mxu0 %vm216_vm3, %v3404_v6  ;;  %3250 = vmatmul.mubr.msk.bf16.vlgmr.msra.gmra.mxu1 %vm216_vm3, %v3405_v7  ;;  %v3410_v7 = vld [vmem:[%s5128_s2 + $0x18] sm:$0xff]  }
  0xd5   :  { %v539_v18 = vmul.f32 %v3816_v57, %v341_v15  ;;  %v1122_v19 = vmul.f32 %v3816_v57, %v930_v16  ;;  %3149 = vmatprep.mubr.msk.bf16.mxu0 %vm3460_vm2, %v5133_v0  ;;  %3253 = vmatprep.mubr.msk.bf16.mxu1 %vm3460_vm2, %v5133_v0 }
  0xd6   :  { %v2943_v20 = vpop.f32.mrf.mxu0  ;;  %v3047_v21 = vpop.f32.mrf.mxu1 }
  0xd7   :  { %v3864_v22 = vadd.f32 %v3821_v58, %v539_v18  ;;  %v3867_v23 = vadd.f32 %v3821_v58, %v1122_v19 }
  0xd8   :  { %v344_v24 = vpop.f32.mrf.mxu0  ;;  %v933_v25 = vpop.f32.mrf.mxu1 }
  0xd9   :  { %v540_v29 = vmul.f32 %v3816_v57, %v344_v24  ;;  %v1123_v30 = vmul.f32 %v3816_v57, %v933_v25 }
  0xda   :  { %v2944_v31 = vpop.f32.mrf.mxu0  ;;  %v3048_v32 = vpop.f32.mrf.mxu1 }
  0xdb   :  { %v3880_v33 = vadd.f32 %v3821_v58, %v540_v29  ;;  %v3883_v34 = vadd.f32 %v3821_v58, %v1123_v30 }
  0xdc   :  { %v349_v35 = vpop.f32.mrf.mxu0  ;;  %v938_v36 = vpop.f32.mrf.mxu1  ;;  %3150 = vmatmul.mubr.msk.bf16.gmra.mxu0 %vm216_vm3, %v3406_v26  ;;  %3254 = vmatmul.mubr.msk.bf16.gmra.mxu1 %vm216_vm3, %v3407_v27 }
  0xdd   :  { %v541_v38 = vmul.f32 %v3816_v57, %v349_v35  ;;  %v1124_v39 = vmul.f32 %v3816_v57, %v938_v36  ;;  %3153 = vmatprep.mubr.msk.bf16.mxu0 %vm3460_vm2, %v5133_v0  ;;  %3257 = vmatprep.mubr.msk.bf16.mxu1 %vm3460_vm2, %v5133_v0  ;;  %v3412_v36 = vld [vmem:[%s5128_s2 + $0x20] sm:$0xff]  }
  0xde   :  { %v2947_v40 = vpop.f32.mrf.mxu0  ;;  %v3051_v41 = vpop.f32.mrf.mxu1 }
  0xdf   :  { %v3896_v42 = vadd.f32 %v3821_v58, %v541_v38  ;;  %v3899_v43 = vadd.f32 %v3821_v58, %v1124_v39  ;;  %v3413_v38 = vld [vmem:[%s5129_s3 + $0x20] sm:$0xff]  }
  0xe0   :  { %v352_v44 = vpop.f32.mrf.mxu0  ;;  %v941_v45 = vpop.f32.mrf.mxu1 }
  0xe1   :  { %v542_v49 = vmul.f32 %v3816_v57, %v352_v44  ;;  %v1125_v50 = vmul.f32 %v3816_v57, %v941_v45 }
  0xe2   :  { %v2948_v51 = vpop.f32.mrf.mxu0  ;;  %v3052_v52 = vpop.f32.mrf.mxu1 }
  0xe3   :  { %v3912_v53 = vadd.f32 %v3821_v58, %v542_v49  ;;  %v3915_v54 = vadd.f32 %v3821_v58, %v1125_v50 }
  0xe4   :  { %v357_v55 = vpop.f32.mrf.mxu0  ;;  %v946_v56 = vpop.f32.mrf.mxu1  ;;  %3154 = vmatmul.mubr.msk.bf16.gmra.mxu0 %vm216_vm3, %v3408_v46  ;;  %3258 = vmatmul.mubr.msk.bf16.gmra.mxu1 %vm216_vm3, %v3409_v47 }
  0xe5   :  { %v543_v60 = vmul.f32 %v3816_v57, %v357_v55  ;;  %v1126_v61 = vmul.f32 %v3816_v57, %v946_v56  ;;  %3157 = vmatprep.mubr.msk.bf16.mxu0 %vm3460_vm2, %v5133_v0  ;;  %3261 = vmatprep.mubr.msk.bf16.mxu1 %vm3460_vm2, %v5133_v0 }
  0xe6   :  { %v2951_v62 = vpop.f32.mrf.mxu0  ;;  %v3055_v63 = vpop.f32.mrf.mxu1 }
  0xe7   :  { %v3928_v1 = vadd.f32 %v3821_v58, %v543_v60  ;;  %v3931_v4 = vadd.f32 %v3821_v58, %v1126_v61 }
  0xe8   :  { %v360_v5 = vpop.f32.mrf.mxu0  ;;  %v949_v6 = vpop.f32.mrf.mxu1 }
  0xe9   :  { %v544_v11 = vmul.f32 %v3816_v57, %v360_v5  ;;  %v1127_v12 = vmul.f32 %v3816_v57, %v949_v6  ;;  %v3414_v6 = vld [vmem:[%s5128_s2 + $0x28] sm:$0xff]  }
  0xea   :  { %v2952_v15 = vpop.f32.mrf.mxu0  ;;  %v3056_v16 = vpop.f32.mrf.mxu1 }
  0xeb   :  { %v3944_v18 = vadd.f32 %v3821_v58, %v544_v11  ;;  %v3947_v19 = vadd.f32 %v3821_v58, %v1127_v12 }
  0xec   :  { %v365_v20 = vpop.f32.mrf.mxu0  ;;  %v954_v21 = vpop.f32.mrf.mxu1  ;;  %3158 = vmatmul.mubr.msk.bf16.gmra.mxu0 %vm216_vm3, %v3410_v7  ;;  %3262 = vmatmul.mubr.msk.bf16.gmra.mxu1 %vm216_vm3, %v3411_v9  ;;  %v3415_v7 = vld [vmem:[%s5129_s3 + $0x28] sm:$0xff]  }
  0xed   :  { %v545_v25 = vmul.f32 %v3816_v57, %v365_v20  ;;  %v1128_v26 = vmul.f32 %v3816_v57, %v954_v21  ;;  %3161 = vmatprep.mubr.msk.bf16.mxu0 %vm3460_vm2, %v5133_v0  ;;  %3265 = vmatprep.mubr.msk.bf16.mxu1 %vm3460_vm2, %v5133_v0 }
  0xee   :  { %v2955_v27 = vpop.f32.mrf.mxu0  ;;  %v3059_v29 = vpop.f32.mrf.mxu1 }
  0xef   :  { %v3960_v30 = vadd.f32 %v3821_v58, %v545_v25  ;;  %v3963_v31 = vadd.f32 %v3821_v58, %v1128_v26 }
  0xf0   :  { %v368_v32 = vpop.f32.mrf.mxu0  ;;  %v957_v35 = vpop.f32.mrf.mxu1 }
  0xf1   :  { %v546_v40 = vmul.f32 %v3816_v57, %v368_v32  ;;  %v1129_v41 = vmul.f32 %v3816_v57, %v957_v35 }
  0xf2   :  { %v2956_v44 = vpop.f32.mrf.mxu0  ;;  %v3060_v45 = vpop.f32.mrf.mxu1 }
  0xf3   :  { %v3976_v46 = vadd.f32 %v3821_v58, %v546_v40  ;;  %v3979_v47 = vadd.f32 %v3821_v58, %v1129_v41  ;;  %v3416_v45 = vld [vmem:[%s5128_s2 + $0x30] sm:$0xff]  }
  0xf4   :  { %v373_v49 = vpop.f32.mrf.mxu0  ;;  %v962_v50 = vpop.f32.mrf.mxu1  ;;  %3162 = vmatmul.mubr.msk.bf16.gmra.mxu0 %vm216_vm3, %v3412_v36  ;;  %3266 = vmatmul.mubr.msk.bf16.gmra.mxu1 %vm216_vm3, %v3413_v38 }
  0xf5   :  { %v547_v52 = vmul.f32 %v3816_v57, %v373_v49  ;;  %v1130_v55 = vmul.f32 %v3816_v57, %v962_v50  ;;  %3165 = vmatprep.mubr.msk.bf16.mxu0 %vm3460_vm2, %v5133_v0  ;;  %3269 = vmatprep.mubr.msk.bf16.mxu1 %vm3460_vm2, %v5133_v0  ;;  %v3417_v49 = vld [vmem:[%s5129_s3 + $0x30] sm:$0xff]  }
  0xf6   :  { %v2959_v56 = vpop.f32.mrf.mxu0  ;;  %v3063_v60 = vpop.f32.mrf.mxu1 }
  0xf7   :  { %v3992_v61 = vadd.f32 %v3821_v58, %v547_v52  ;;  %v3995_v62 = vadd.f32 %v3821_v58, %v1130_v55 }
  0xf8   :  { %v376_v63 = vpop.f32.mrf.mxu0  ;;  %v965_v5 = vpop.f32.mrf.mxu1 }
  0xf9   :  { %v548_v11 = vmul.f32 %v3816_v57, %v376_v63  ;;  %v1131_v12 = vmul.f32 %v3816_v57, %v965_v5 }
  0xfa   :  { %v2960_v15 = vpop.f32.mrf.mxu0  ;;  %v3064_v16 = vpop.f32.mrf.mxu1 }
  0xfb   :  { %v4008_v20 = vadd.f32 %v3821_v58, %v548_v11  ;;  %v4011_v21 = vadd.f32 %v3821_v58, %v1131_v12 }
  0xfc   :  { %v381_v25 = vpop.f32.mrf.mxu0  ;;  %v970_v26 = vpop.f32.mrf.mxu1  ;;  %3166 = vmatmul.mubr.msk.bf16.gmra.mxu0 %vm216_vm3, %v3414_v6  ;;  %3270 = vmatmul.mubr.msk.bf16.gmra.mxu1 %vm216_vm3, %v3415_v7 }
  0xfd   :  { %v549_v29 = vmul.f32 %v3816_v57, %v381_v25  ;;  %v1132_v32 = vmul.f32 %v3816_v57, %v970_v26  ;;  %3169 = vmatprep.mubr.msk.bf16.mxu0 %vm3460_vm2, %v5133_v0  ;;  %3273 = vmatprep.mubr.msk.bf16.mxu1 %vm3460_vm2, %v5133_v0 }
  0xfe   :  { %v2963_v35 = vpop.f32.mrf.mxu0  ;;  %v3067_v36 = vpop.f32.mrf.mxu1 }
  0xff   :  { %v4024_v38 = vadd.f32 %v3821_v58, %v549_v29  ;;  %v4027_v40 = vadd.f32 %v3821_v58, %v1132_v32  ;;  %v3418_v36 = vld [vmem:[%s5128_s2 + $0x38] sm:$0xff]  }
 0x100   :  { %v384_v41 = vpop.f32.mrf.mxu0  ;;  %v973_v44 = vpop.f32.mrf.mxu1 }
 0x101   :  { %v550_v52 = vmul.f32 %v3816_v57, %v384_v41  ;;  %v1133_v55 = vmul.f32 %v3816_v57, %v973_v44  ;;  %v3419_v41 = vld [vmem:[%s5129_s3 + $0x38] sm:$0xff]  }
 0x102   :  { %v2964_v56 = vpop.f32.mrf.mxu0  ;;  %v3068_v60 = vpop.f32.mrf.mxu1 }
 0x103   :  { %v4040_v63 = vadd.f32 %v3821_v58, %v550_v52  ;;  %v4043_v5 = vadd.f32 %v3821_v58, %v1133_v55 }
 0x104   :  { %v389_v6 = vpop.f32.mrf.mxu0  ;;  %v978_v7 = vpop.f32.mrf.mxu1  ;;  %3170 = vmatmul.mubr.msk.bf16.gmra.mxu0 %vm216_vm3, %v3416_v45  ;;  %3274 = vmatmul.mubr.msk.bf16.gmra.mxu1 %vm216_vm3, %v3417_v49 }
 0x105   :  { %v551_v12 = vmul.f32 %v3816_v57, %v389_v6  ;;  %v1134_v15 = vmul.f32 %v3816_v57, %v978_v7  ;;  %3173 = vmatprep.mubr.msk.bf16.mxu0 %vm3460_vm2, %v5133_v0  ;;  %3277 = vmatprep.mubr.msk.bf16.mxu1 %vm3460_vm2, %v5133_v0 }
 0x106   :  { %v2967_v16 = vpop.f32.mrf.mxu0  ;;  %v3071_v25 = vpop.f32.mrf.mxu1 }
 0x107   :  { %v4056_v26 = vadd.f32 %v3821_v58, %v551_v12  ;;  %v4059_v29 = vadd.f32 %v3821_v58, %v1134_v15 }
 0x108   :  { %v392_v32 = vpop.f32.mrf.mxu0  ;;  %v981_v35 = vpop.f32.mrf.mxu1 }
 0x109   :  { %v552_v45 = vmul.f32 %v3816_v57, %v392_v32  ;;  %v1135_v49 = vmul.f32 %v3816_v57, %v981_v35 }
 0x10a   :  { %v2968_v52 = vpop.f32.mrf.mxu0  ;;  %v3072_v55 = vpop.f32.mrf.mxu1 }
 0x10b   :  { %v4072_v56 = vadd.f32 %v3821_v58, %v552_v45  ;;  %v4075_v60 = vadd.f32 %v3821_v58, %v1135_v49  ;;  %v3420_v49 = vld [vmem:[%s5128_s2 + $0x40] sm:$0xff]  }
 0x10c   :  { %v397_v6 = vpop.f32.mrf.mxu0  ;;  %v986_v7 = vpop.f32.mrf.mxu1  ;;  %3174 = vmatmul.mubr.msk.bf16.gmra.mxu0 %vm216_vm3, %v3418_v36  ;;  %3278 = vmatmul.mubr.msk.bf16.gmra.mxu1 %vm216_vm3, %v3419_v41  ;;  %v3421_v52 = vld [vmem:[%s5129_s3 + $0x40] sm:$0xff]  }
 0x10d   :  { %v553_v15 = vmul.f32 %v3816_v57, %v397_v6  ;;  %v1136_v16 = vmul.f32 %v3816_v57, %v986_v7  ;;  %3177 = vmatprep.mubr.msk.bf16.mxu0 %vm3460_vm2, %v5133_v0  ;;  %3281 = vmatprep.mubr.msk.bf16.mxu1 %vm3460_vm2, %v5133_v0 }
 0x10e   :  { %v2971_v25 = vpop.f32.mrf.mxu0  ;;  %v3075_v32 = vpop.f32.mrf.mxu1 }
 0x10f   :  { %v4088_v35 = vadd.f32 %v3821_v58, %v553_v15  ;;  %v4091_v36 = vadd.f32 %v3821_v58, %v1136_v16 }
 0x110   :  { %v400_v41 = vpop.f32.mrf.mxu0  ;;  %v989_v45 = vpop.f32.mrf.mxu1 }
 0x111   :  { %v554_v6 = vmul.f32 %v3816_v57, %v400_v41  ;;  %v1137_v7 = vmul.f32 %v3816_v57, %v989_v45 }
 0x112   :  { %v2972_v15 = vpop.f32.mrf.mxu0  ;;  %v3076_v16 = vpop.f32.mrf.mxu1 }
 0x113   :  { %v4104_v25 = vadd.f32 %v3821_v58, %v554_v6  ;;  %v4107_v32 = vadd.f32 %v3821_v58, %v1137_v7 }
 0x114   :  { %v405_v12 = vpop.f32.mrf.mxu0  ;;  %v994_v44 = vpop.f32.mrf.mxu1  ;;  %3178 = vmatmul.mubr.msk.bf16.gmra.mxu0 %vm216_vm3, %v3420_v49  ;;  %3282 = vmatmul.mubr.msk.bf16.gmra.mxu1 %vm216_vm3, %v3421_v52 }
 0x115   :  { %v555_v41 = vmul.f32 %v3816_v57, %v405_v12  ;;  %v1138_v45 = vmul.f32 %v3816_v57, %v994_v44  ;;  %3181 = vmatprep.mubr.msk.bf16.mxu0 %vm3460_vm2, %v5133_v0  ;;  %3285 = vmatprep.mubr.msk.bf16.mxu1 %vm3460_vm2, %v5133_v0  ;;  %v3422_v44 = vld [vmem:[%s5128_s2 + $0x48] sm:$0xff]  }
 0x116   :  { %v2975_v6 = vpop.f32.mrf.mxu0  ;;  %v3079_v7 = vpop.f32.mrf.mxu1  ;;  %v3423_v12 = vld [vmem:[%s5129_s3 + $0x48] sm:$0xff]  }
 0x117   :  { %v4120_v15 = vadd.f32 %v3821_v58, %v555_v41  ;;  %v4123_v49 = vadd.f32 %v3821_v58, %v1138_v45 }
 0x118   :  { %v408_v52 = vpop.f32.mrf.mxu0  ;;  %v997_v16 = vpop.f32.mrf.mxu1 }
 0x119   :  { %v556_v7 = vmul.f32 %v3816_v57, %v408_v52  ;;  %v1139_v41 = vmul.f32 %v3816_v57, %v997_v16 }
 0x11a   :  { %v2976_v55 = vpop.f32.mrf.mxu0  ;;  %v3080_v45 = vpop.f32.mrf.mxu1 }
 0x11b   :  { %v4136_v11 = vadd.f32 %v3821_v58, %v556_v7  ;;  %v4139_v50 = vadd.f32 %v3821_v58, %v1139_v41 }
 0x11c   :  { %v413_v27 = vpop.f32.mrf.mxu0  ;;  %v1002_v9 = vpop.f32.mrf.mxu1  ;;  %3182 = vmatmul.mubr.msk.bf16.gmra.mxu0 %vm216_vm3, %v3422_v44  ;;  %3286 = vmatmul.mubr.msk.bf16.gmra.mxu1 %vm216_vm3, %v3423_v12 }
 0x11d   :  { %v557_v52 = vmul.f32 %v3816_v57, %v413_v27  ;;  %v1140_v55 = vmul.f32 %v3816_v57, %v1002_v9  ;;  %3185 = vmatprep.mubr.msk.bf16.mxu0 %vm3460_vm2, %v5133_v0  ;;  %3289 = vmatprep.mubr.msk.bf16.mxu1 %vm3460_vm2, %v5133_v0  ;;  %v3424_v9 = vld [vmem:[%s5128_s2 + $0x50] sm:$0xff]  }
 0x11e   :  { %v2979_v16 = vpop.f32.mrf.mxu0  ;;  %v3083_v7 = vpop.f32.mrf.mxu1  ;;  %v3425_v27 = vld [vmem:[%s5129_s3 + $0x50] sm:$0xff]  }
 0x11f   :  { %v4152_v41 = vadd.f32 %v3821_v58, %v557_v52  ;;  %v4155_v44 = vadd.f32 %v3821_v58, %v1140_v55 }
 0x120   :  { %v416_v12 = vpop.f32.mrf.mxu0  ;;  %v1005_v45 = vpop.f32.mrf.mxu1 }
 0x121   :  { %v558_v7 = vmul.f32 %v3816_v57, %v416_v12  ;;  %v1141_v52 = vmul.f32 %v3816_v57, %v1005_v45 }
 0x122   :  { %v2980_v6 = vpop.f32.mrf.mxu0  ;;  %v3084_v55 = vpop.f32.mrf.mxu1 }
 0x123   :  { %v4168_v51 = vadd.f32 %v3821_v58, %v558_v7  ;;  %v4171_v39 = vadd.f32 %v3821_v58, %v1141_v52 }
 0x124   :  { %v421_v24 = vpop.f32.mrf.mxu0  ;;  %v1010_v10 = vpop.f32.mrf.mxu1  ;;  %3186 = vmatmul.mubr.msk.bf16.gmra.mxu0 %vm216_vm3, %v3424_v9  ;;  %3290 = vmatmul.mubr.msk.bf16.gmra.mxu1 %vm216_vm3, %v3425_v27 }
 0x125   :  { %v559_v12 = vmul.f32 %v3816_v57, %v421_v24  ;;  %v1142_v6 = vmul.f32 %v3816_v57, %v1010_v10  ;;  %3189 = vmatprep.mubr.msk.bf16.mxu0 %vm3460_vm2, %v5133_v0  ;;  %3293 = vmatprep.mubr.msk.bf16.mxu1 %vm3460_vm2, %v5133_v0  ;;  %v3426_v10 = vld [vmem:[%s5128_s2 + $0x58] sm:$0xff]  }
 0x126   :  { %v2983_v45 = vpop.f32.mrf.mxu0  ;;  %v3087_v7 = vpop.f32.mrf.mxu1  ;;  %v3427_v24 = vld [vmem:[%s5129_s3 + $0x58] sm:$0xff]  }
 0x127   :  { %v4184_v52 = vadd.f32 %v3821_v58, %v559_v12  ;;  %v4187_v9 = vadd.f32 %v3821_v58, %v1142_v6 }
 0x128   :  { %v424_v27 = vpop.f32.mrf.mxu0  ;;  %v1013_v55 = vpop.f32.mrf.mxu1 }
 0x129   :  { %5189 = vst [vmem:[#allocation2_spill] sm:$0xff] %v4184_v52  ;;  %5190 = vst [vmem:[#allocation3_spill] sm:$0xff] %v4187_v9  ;;  %v560_v7 = vmul.f32 %v3816_v57, %v424_v27  ;;  %v1143_v12 = vmul.f32 %v3816_v57, %v1013_v55  ;;  %v5245_v9 = vmax.f32 %v3848_v13, %v3851_v14 }
 0x12a   :  { %v2984_v16 = vpop.f32.mrf.mxu0  ;;  %v3088_v6 = vpop.f32.mrf.mxu1  ;;  %v5246_v13 = vmax.f32 %v3864_v22, %v3867_v23  ;;  %v5247_v22 = vmax.f32 %v3880_v33, %v3883_v34  ;;  %v5248_v33 = vmax.f32 %v3896_v42, %v3899_v43  ;;  %v5249_v42 = vmax.f32 %v3912_v53, %v3915_v54 }
 0x12b   :  { %v4200_v59 = vadd.f32 %v3821_v58, %v560_v7  ;;  %v4203_v48 = vadd.f32 %v3821_v58, %v1143_v12  ;;  %v5250_v53 = vmax.f32 %v3928_v1, %v3931_v4  ;;  %v5251_v1 = vmax.f32 %v3944_v18, %v3947_v19 }
 0x12c   :  { %v429_v37 = vpop.f32.mrf.mxu0  ;;  %v1018_v28 = vpop.f32.mrf.mxu1  ;;  %3190 = vmatmul.mubr.msk.bf16.gmra.mxu0 %vm216_vm3, %v3426_v10  ;;  %3294 = vmatmul.mubr.msk.bf16.gmra.mxu1 %vm216_vm3, %v3427_v24  ;;  %v5252_v18 = vmax.f32 %v3960_v30, %v3963_v31  ;;  %v5253_v30 = vmax.f32 %v3976_v46, %v3979_v47  ;;  %v5254_v46 = vmax.f32 %v3992_v61, %v3995_v62 }
 0x12d   :  { %5191 = vst [vmem:[#allocation4_spill] sm:$0xff] %v4200_v59  ;;  %5192 = vst [vmem:[#allocation5_spill] sm:$0xff] %v4203_v48  ;;  %v561_v27 = vmul.f32 %v3816_v57, %v429_v37  ;;  %v1144_v16 = vmul.f32 %v3816_v57, %v1018_v28  ;;  %3193 = vmatprep.mubr.msk.bf16.mxu0 %vm3460_vm2, %v5133_v0  ;;  %3297 = vmatprep.mubr.msk.bf16.mxu1 %vm3460_vm2, %v5133_v0  ;;  %v3428_v28 = vld [vmem:[%s5128_s2 + $0x60] sm:$0xff]  }
 0x12e   :  { %v2987_v55 = vpop.f32.mrf.mxu0  ;;  %v3091_v7 = vpop.f32.mrf.mxu1  ;;  %v3429_v37 = vld [vmem:[%s5129_s3 + $0x60] sm:$0xff]   ;;  %v5255_v61 = vmax.f32 %v4008_v20, %v4011_v21  ;;  %v5256_v20 = vmax.f32 %v4024_v38, %v4027_v40  ;;  %v5257_v38 = vmax.f32 %v4040_v63, %v4043_v5  ;;  %v5258_v63 = vmax.f32 %v4056_v26, %v4059_v29 }
 0x12f   :  { %v4216_v12 = vadd.f32 %v3821_v58, %v561_v27  ;;  %v4219_v10 = vadd.f32 %v3821_v58, %v1144_v16  ;;  %v5259_v26 = vmax.f32 %v4072_v56, %v4075_v60  ;;  %v5260_v56 = vmax.f32 %v4088_v35, %v4091_v36 }
 0x130   :  { %v432_v24 = vpop.f32.mrf.mxu0  ;;  %v1021_v6 = vpop.f32.mrf.mxu1  ;;  %v5261_v35 = vmax.f32 %v4104_v25, %v4107_v32  ;;  %v5262_v25 = vmax.f32 %v4120_v15, %v4123_v49  ;;  %v5263_v15 = vmax.f32 %v4136_v11, %v4139_v50  ;;  %v5264_v50 = vmax.f32 %v4152_v41, %v4155_v44 }
 0x131   :  { %5193 = vst [vmem:[#allocation6_spill] sm:$0xff] %v4216_v12  ;;  %5194 = vst [vmem:[#allocation7_spill] sm:$0xff] %v4219_v10  ;;  %v562_v7 = vmul.f32 %v3816_v57, %v432_v24  ;;  %v1145_v27 = vmul.f32 %v3816_v57, %v1021_v6  ;;  %v5197_v6 = vmov 0.0   ;;  %v5265_v41 = vmax.f32 %v4168_v51, %v4171_v39  ;;  %v5266_v39 = vld [vmem:[#allocation2_spill] sm:$0xff]  ;;  %v5267_v51 = vld [vmem:[#allocation3_spill] sm:$0xff] }
 0x132   :  { %v2988_v45 = vpop.f32.mrf.mxu0  ;;  %v3092_v16 = vpop.f32.mrf.mxu1 }
 0x133   :  { %v4232_v17 = vadd.f32 %v3821_v58, %v562_v7  ;;  %v4235_v8 = vadd.f32 %v3821_v58, %v1145_v27 }
 0x134   :  { %v437_v0 = vpop.f32.mrf.mxu0  ;;  %v1026_v48 = vpop.f32.mrf.mxu1  ;;  %3194 = vmatmul.mubr.msk.bf16.gmra.mxu0 %vm216_vm3, %v3428_v28  ;;  %3298 = vmatmul.mubr.msk.bf16.gmra.mxu1 %vm216_vm3, %v3429_v37 }
 0x135   :  { %5195 = vst [vmem:[#allocation8_spill] sm:$0xff] %v4232_v17  ;;  %5196 = vst [vmem:[#allocation9_spill] sm:$0xff] %v4235_v8  ;;  %v563_v24 = vmul.f32 %v3816_v57, %v437_v0  ;;  %v1146_v45 = vmul.f32 %v3816_v57, %v1026_v48  ;;  %3197 = vmatprep.mubr.msk.bf16.mxu0 %vm3460_vm2, %v5197_v6  ;;  %3301 = vmatprep.mubr.msk.bf16.mxu1 %vm3460_vm2, %v5197_v6  ;;  %v3430_v0 = vld [vmem:[%s5128_s2 + $0x68] sm:$0xff]  }
 0x136   :  { %v2991_v7 = vpop.f32.mrf.mxu0  ;;  %v3095_v27 = vpop.f32.mrf.mxu1  ;;  %v3431_v48 = vld [vmem:[%s5129_s3 + $0x68] sm:$0xff]  }
 0x137   :  { %v4248_v16 = vadd.f32 %v3821_v58, %v563_v24  ;;  %v4251_v28 = vadd.f32 %v3821_v58, %v1146_v45 }
 0x138   :  { %v440_v37 = vpop.f32.mrf.mxu0  ;;  %v1029_v55 = vpop.f32.mrf.mxu1 }
 0x139   :  { %5198 = vst [vmem:[#allocation10_spill] sm:$0xff] %v4248_v16  ;;  %5199 = vst [vmem:[#allocation11_spill] sm:$0xff] %v4251_v28  ;;  %v564_v27 = vmul.f32 %v3816_v57, %v440_v37  ;;  %v1147_v24 = vmul.f32 %v3816_v57, %v1029_v55 }
 0x13a   :  { %v2992_v8 = vpop.f32.mrf.mxu0  ;;  %v3096_v45 = vpop.f32.mrf.mxu1 }
 0x13b   :  { %v4264_v17 = vadd.f32 %v3821_v58, %v564_v27  ;;  %v4267_v10 = vadd.f32 %v3821_v58, %v1147_v24 }
 0x13c   :  { %v445_v12 = vpop.f32.mrf.mxu0  ;;  %v1034_v59 = vpop.f32.mrf.mxu1  ;;  %3198 = vmatmul.mubr.msk.bf16.gmra.mxu0 %vm216_vm3, %v3430_v0  ;;  %3302 = vmatmul.mubr.msk.bf16.gmra.mxu1 %vm216_vm3, %v3431_v48 }
 0x13d   :  { %5200 = vst [vmem:[#allocation12_spill] sm:$0xff] %v4264_v17  ;;  %5201 = vst [vmem:[#allocation13_spill] sm:$0xff] %v4267_v10  ;;  %v565_v37 = vmul.f32 %v3816_v57, %v445_v12  ;;  %v1148_v8 = vmul.f32 %v3816_v57, %v1034_v59  ;;  %3201 = vmatprep.mubr.msk.bf16.mxu0 %vm3460_vm2, %v5197_v6  ;;  %3305 = vmatprep.mubr.msk.bf16.mxu1 %vm3460_vm2, %v5197_v6  ;;  %v3432_v59 = vld [vmem:[%s5128_s2 + $0x70] sm:$0xff]  }
 0x13e   :  { %v2995_v55 = vpop.f32.mrf.mxu0  ;;  %v3099_v27 = vpop.f32.mrf.mxu1  ;;  %v3433_v12 = vld [vmem:[%s5129_s3 + $0x70] sm:$0xff]  }
 0x13f   :  { %v4280_v24 = vadd.f32 %v3821_v58, %v565_v37  ;;  %v4283_v0 = vadd.f32 %v3821_v58, %v1148_v8 }
 0x140   :  { %v448_v48 = vpop.f32.mrf.mxu0  ;;  %v1037_v45 = vpop.f32.mrf.mxu1 }
 0x141   :  { %5202 = vst [vmem:[#allocation14_spill] sm:$0xff] %v4280_v24  ;;  %5203 = vst [vmem:[#allocation15_spill] sm:$0xff] %v4283_v0  ;;  %v566_v27 = vmul.f32 %v3816_v57, %v448_v48  ;;  %v1149_v37 = vmul.f32 %v3816_v57, %v1037_v45 }
 0x142   :  { %v2996_v7 = vpop.f32.mrf.mxu0  ;;  %v3100_v8 = vpop.f32.mrf.mxu1 }
 0x143   :  { %v4296_v10 = vadd.f32 %v3821_v58, %v566_v27  ;;  %v4299_v17 = vadd.f32 %v3821_v58, %v1149_v37 }
 0x144   :  { %v453_v28 = vpop.f32.mrf.mxu0  ;;  %v1042_v16 = vpop.f32.mrf.mxu1  ;;  %3202 = vmatmul.mubr.msk.bf16.gmra.mxu0 %vm216_vm3, %v3432_v59  ;;  %3306 = vmatmul.mubr.msk.bf16.gmra.mxu1 %vm216_vm3, %v3433_v12 }
 0x145   :  { %5204 = vst [vmem:[#allocation16_spill] sm:$0xff] %v4296_v10  ;;  %5205 = vst [vmem:[#allocation17_spill] sm:$0xff] %v4299_v17  ;;  %v567_v48 = vmul.f32 %v3816_v57, %v453_v28  ;;  %v1150_v7 = vmul.f32 %v3816_v57, %v1042_v16  ;;  %3205 = vmatprep.mubr.msk.bf16.mxu0 %vm3460_vm2, %v5197_v6  ;;  %3309 = vmatprep.mubr.msk.bf16.mxu1 %vm3460_vm2, %v5197_v6  ;;  %v3434_v16 = vld [vmem:[%s5128_s2 + $0x78] sm:$0xff]  }
 0x146   :  { %v2999_v45 = vpop.f32.mrf.mxu0  ;;  %v3103_v27 = vpop.f32.mrf.mxu1  ;;  %v3435_v28 = vld [vmem:[%s5129_s3 + $0x78] sm:$0xff]  }
 0x147   :  { %v4312_v37 = vadd.f32 %v3821_v58, %v567_v48  ;;  %v4315_v59 = vadd.f32 %v3821_v58, %v1150_v7 }
 0x148   :  { %v456_v12 = vpop.f32.mrf.mxu0  ;;  %v1045_v8 = vpop.f32.mrf.mxu1 }
 0x149   :  { %5206 = vst [vmem:[#allocation18_spill] sm:$0xff] %v4312_v37  ;;  %5207 = vst [vmem:[#allocation19_spill] sm:$0xff] %v4315_v59  ;;  %v568_v27 = vmul.f32 %v3816_v57, %v456_v12  ;;  %v1151_v48 = vmul.f32 %v3816_v57, %v1045_v8 }
 0x14a   :  { %v3000_v55 = vpop.f32.mrf.mxu0  ;;  %v3104_v7 = vpop.f32.mrf.mxu1 }
 0x14b   :  { %v4328_v17 = vadd.f32 %v3821_v58, %v568_v27  ;;  %v4331_v10 = vadd.f32 %v3821_v58, %v1151_v48 }
 0x14c   :  { %v461_v0 = vpop.f32.mrf.mxu0  ;;  %v1050_v24 = vpop.f32.mrf.mxu1  ;;  %3206 = vmatmul.mubr.msk.bf16.gmra.mxu0 %vm216_vm3, %v3434_v16  ;;  %3310 = vmatmul.mubr.msk.bf16.gmra.mxu1 %vm216_vm3, %v3435_v28 }
 0x14d   :  { %5208 = vst [vmem:[#allocation20_spill] sm:$0xff] %v4328_v17  ;;  %5209 = vst [vmem:[#allocation21_spill] sm:$0xff] %v4331_v10  ;;  %v569_v12 = vmul.f32 %v3816_v57, %v461_v0  ;;  %v1152_v55 = vmul.f32 %v3816_v57, %v1050_v24  ;;  %3209 = vmatprep.mubr.msk.bf16.mxu0 %vm3460_vm2, %v5197_v6  ;;  %3313 = vmatprep.mubr.msk.bf16.mxu1 %vm3460_vm2, %v5197_v6  ;;  %v3436_v24 = vld [vmem:[%s5128_s2 + $0x80] sm:$0xff]  }
 0x14e   :  { %v3003_v8 = vpop.f32.mrf.mxu0  ;;  %v3107_v27 = vpop.f32.mrf.mxu1  ;;  %v3437_v0 = vld [vmem:[%s5129_s3 + $0x80] sm:$0xff]  }
 0x14f   :  { %v4344_v48 = vadd.f32 %v3821_v58, %v569_v12  ;;  %v4347_v16 = vadd.f32 %v3821_v58, %v1152_v55 }
 0x150   :  { %v464_v28 = vpop.f32.mrf.mxu0  ;;  %v1053_v7 = vpop.f32.mrf.mxu1 }
 0x151   :  { %5210 = vst [vmem:[#allocation22_spill] sm:$0xff] %v4344_v48  ;;  %5211 = vst [vmem:[#allocation23_spill] sm:$0xff] %v4347_v16  ;;  %v570_v27 = vmul.f32 %v3816_v57, %v464_v28  ;;  %v1153_v12 = vmul.f32 %v3816_v57, %v1053_v7 }
 0x152   :  { %v3004_v45 = vpop.f32.mrf.mxu0  ;;  %v3108_v55 = vpop.f32.mrf.mxu1 }
 0x153   :  { %v4360_v10 = vadd.f32 %v3821_v58, %v570_v27  ;;  %v4363_v17 = vadd.f32 %v3821_v58, %v1153_v12 }
 0x154   :  { %v469_v59 = vpop.f32.mrf.mxu0  ;;  %v1058_v37 = vpop.f32.mrf.mxu1  ;;  %3210 = vmatmul.mubr.msk.bf16.gmra.mxu0 %vm216_vm3, %v3436_v24  ;;  %3314 = vmatmul.mubr.msk.bf16.gmra.mxu1 %vm216_vm3, %v3437_v0 }
 0x155   :  { %5212 = vst [vmem:[#allocation24_spill] sm:$0xff] %v4360_v10  ;;  %5213 = vst [vmem:[#allocation25_spill] sm:$0xff] %v4363_v17  ;;  %v571_v28 = vmul.f32 %v3816_v57, %v469_v59  ;;  %v1154_v45 = vmul.f32 %v3816_v57, %v1058_v37  ;;  %3213 = vmatprep.mubr.msk.bf16.mxu0 %vm3460_vm2, %v5197_v6  ;;  %3317 = vmatprep.mubr.msk.bf16.mxu1 %vm3460_vm2, %v5197_v6  ;;  %v3438_v37 = vld [vmem:[%s5128_s2 + $0x88] sm:$0xff]  }
 0x156   :  { %v3007_v7 = vpop.f32.mrf.mxu0  ;;  %v3111_v27 = vpop.f32.mrf.mxu1  ;;  %v3439_v59 = vld [vmem:[%s5129_s3 + $0x88] sm:$0xff]  }
 0x157   :  { %v4376_v12 = vadd.f32 %v3821_v58, %v571_v28  ;;  %v4379_v24 = vadd.f32 %v3821_v58, %v1154_v45 }
 0x158   :  { %v472_v0 = vpop.f32.mrf.mxu0  ;;  %v1061_v55 = vpop.f32.mrf.mxu1 }
 0x159   :  { %5214 = vst [vmem:[#allocation26_spill] sm:$0xff] %v4376_v12  ;;  %5215 = vst [vmem:[#allocation27_spill] sm:$0xff] %v4379_v24  ;;  %v572_v27 = vmul.f32 %v3816_v57, %v472_v0  ;;  %v1155_v28 = vmul.f32 %v3816_v57, %v1061_v55 }
 0x15a   :  { %v3008_v8 = vpop.f32.mrf.mxu0  ;;  %v3112_v45 = vpop.f32.mrf.mxu1 }
 0x15b   :  { %v4392_v17 = vadd.f32 %v3821_v58, %v572_v27  ;;  %v4395_v10 = vadd.f32 %v3821_v58, %v1155_v28 }
 0x15c   :  { %v477_v16 = vpop.f32.mrf.mxu0  ;;  %v1066_v48 = vpop.f32.mrf.mxu1  ;;  %3214 = vmatmul.mubr.msk.bf16.gmra.mxu0 %vm216_vm3, %v3438_v37  ;;  %3318 = vmatmul.mubr.msk.bf16.gmra.mxu1 %vm216_vm3, %v3439_v59 }
 0x15d   :  { %5216 = vst [vmem:[#allocation28_spill] sm:$0xff] %v4392_v17  ;;  %5217 = vst [vmem:[#allocation29_spill] sm:$0xff] %v4395_v10  ;;  %v573_v0 = vmul.f32 %v3816_v57, %v477_v16  ;;  %v1156_v8 = vmul.f32 %v3816_v57, %v1066_v48  ;;  %3217 = vmatprep.mubr.msk.bf16.mxu0 %vm3460_vm2, %v5197_v6  ;;  %3321 = vmatprep.mubr.msk.bf16.mxu1 %vm3460_vm2, %v5197_v6  ;;  %v3440_v48 = vld [vmem:[%s5128_s2 + $0x90] sm:$0xff]  }
 0x15e   :  { %v3011_v55 = vpop.f32.mrf.mxu0  ;;  %v3115_v27 = vpop.f32.mrf.mxu1  ;;  %v3441_v16 = vld [vmem:[%s5129_s3 + $0x90] sm:$0xff]  }
 0x15f   :  { %v4408_v28 = vadd.f32 %v3821_v58, %v573_v0  ;;  %v4411_v37 = vadd.f32 %v3821_v58, %v1156_v8 }
 0x160   :  { %v480_v59 = vpop.f32.mrf.mxu0  ;;  %v1069_v45 = vpop.f32.mrf.mxu1 }
 0x161   :  { %5218 = vst [vmem:[#allocation30_spill] sm:$0xff] %v4408_v28  ;;  %5219 = vst [vmem:[#allocation31_spill] sm:$0xff] %v4411_v37  ;;  %v574_v27 = vmul.f32 %v3816_v57, %v480_v59  ;;  %v1157_v0 = vmul.f32 %v3816_v57, %v1069_v45 }
 0x162   :  { %v3012_v7 = vpop.f32.mrf.mxu0  ;;  %v3116_v8 = vpop.f32.mrf.mxu1 }
 0x163   :  { %v4424_v10 = vadd.f32 %v3821_v58, %v574_v27  ;;  %v4427_v17 = vadd.f32 %v3821_v58, %v1157_v0 }
 0x164   :  { %v485_v24 = vpop.f32.mrf.mxu0  ;;  %v1074_v12 = vpop.f32.mrf.mxu1  ;;  %3218 = vmatmul.mubr.msk.bf16.gmra.mxu0 %vm216_vm3, %v3440_v48  ;;  %3322 = vmatmul.mubr.msk.bf16.gmra.mxu1 %vm216_vm3, %v3441_v16 }
 0x165   :  { %5220 = vst [vmem:[#allocation32_spill] sm:$0xff] %v4424_v10  ;;  %5221 = vst [vmem:[#allocation33_spill] sm:$0xff] %v4427_v17  ;;  %v575_v59 = vmul.f32 %v3816_v57, %v485_v24  ;;  %v1158_v7 = vmul.f32 %v3816_v57, %v1074_v12  ;;  %3221 = vmatprep.mubr.msk.bf16.mxu0 %vm3460_vm2, %v5197_v6  ;;  %3325 = vmatprep.mubr.msk.bf16.mxu1 %vm3460_vm2, %v5197_v6  ;;  %v3442_v12 = vld [vmem:[%s5128_s2 + $0x98] sm:$0xff]  }
 0x166   :  { %v3015_v45 = vpop.f32.mrf.mxu0  ;;  %v3119_v27 = vpop.f32.mrf.mxu1  ;;  %v3443_v24 = vld [vmem:[%s5129_s3 + $0x98] sm:$0xff]  }
 0x167   :  { %v4440_v0 = vadd.f32 %v3821_v58, %v575_v59  ;;  %v4443_v48 = vadd.f32 %v3821_v58, %v1158_v7 }
 0x168   :  { %v488_v16 = vpop.f32.mrf.mxu0  ;;  %v1077_v8 = vpop.f32.mrf.mxu1 }
 0x169   :  { %5222 = vst [vmem:[#allocation34_spill] sm:$0xff] %v4440_v0  ;;  %5223 = vst [vmem:[#allocation35_spill] sm:$0xff] %v4443_v48  ;;  %v576_v27 = vmul.f32 %v3816_v57, %v488_v16  ;;  %v1159_v59 = vmul.f32 %v3816_v57, %v1077_v8 }
 0x16a   :  { %v3016_v55 = vpop.f32.mrf.mxu0  ;;  %v3120_v7 = vpop.f32.mrf.mxu1 }
 0x16b   :  { %v4456_v17 = vadd.f32 %v3821_v58, %v576_v27  ;;  %v4459_v10 = vadd.f32 %v3821_v58, %v1159_v59 }
 0x16c   :  { %v493_v37 = vpop.f32.mrf.mxu0  ;;  %v1082_v28 = vpop.f32.mrf.mxu1  ;;  %3222 = vmatmul.mubr.msk.bf16.gmra.mxu0 %vm216_vm3, %v3442_v12  ;;  %3326 = vmatmul.mubr.msk.bf16.gmra.mxu1 %vm216_vm3, %v3443_v24 }
 0x16d   :  { %5224 = vst [vmem:[#allocation36_spill] sm:$0xff] %v4456_v17  ;;  %5225 = vst [vmem:[#allocation37_spill] sm:$0xff] %v4459_v10  ;;  %v577_v16 = vmul.f32 %v3816_v57, %v493_v37  ;;  %v1160_v55 = vmul.f32 %v3816_v57, %v1082_v28  ;;  %3225 = vmatprep.mubr.msk.bf16.mxu0 %vm3460_vm2, %v5197_v6  ;;  %3329 = vmatprep.mubr.msk.bf16.mxu1 %vm3460_vm2, %v5197_v6  ;;  %v3444_v28 = vld [vmem:[%s5128_s2 + $0xa0] sm:$0xff]  }
 0x16e   :  { %v3019_v8 = vpop.f32.mrf.mxu0  ;;  %v3123_v27 = vpop.f32.mrf.mxu1  ;;  %v3445_v37 = vld [vmem:[%s5129_s3 + $0xa0] sm:$0xff]  }
 0x16f   :  { %v4472_v59 = vadd.f32 %v3821_v58, %v577_v16  ;;  %v4475_v12 = vadd.f32 %v3821_v58, %v1160_v55 }
 0x170   :  { %v496_v24 = vpop.f32.mrf.mxu0  ;;  %v1085_v7 = vpop.f32.mrf.mxu1 }
 0x171   :  { %5226 = vst [vmem:[#allocation38_spill] sm:$0xff] %v4472_v59  ;;  %5227 = vst [vmem:[#allocation39_spill] sm:$0xff] %v4475_v12  ;;  %v578_v27 = vmul.f32 %v3816_v57, %v496_v24  ;;  %v1161_v16 = vmul.f32 %v3816_v57, %v1085_v7 }
 0x172   :  { %v3020_v45 = vpop.f32.mrf.mxu0  ;;  %v3124_v55 = vpop.f32.mrf.mxu1 }
 0x173   :  { %v4488_v10 = vadd.f32 %v3821_v58, %v578_v27  ;;  %v4491_v17 = vadd.f32 %v3821_v58, %v1161_v16  ;;  %v3446_v27 = vld [vmem:[%s5128_s2 + $0xa8] sm:$0xff]  }
 0x174   :  { %v501_v48 = vpop.f32.mrf.mxu0  ;;  %v1090_v0 = vpop.f32.mrf.mxu1  ;;  %3226 = vmatmul.mubr.msk.bf16.gmra.mxu0 %vm216_vm3, %v3444_v28  ;;  %3330 = vmatmul.mubr.msk.bf16.gmra.mxu1 %vm216_vm3, %v3445_v37  ;;  %v4506_v28 = vld [vmem:[%s5131_s6] ss:$0 sm:$0xff]  ;;  %v3447_v16 = vld [vmem:[%s5129_s3 + $0xa8] sm:$0xff]  }
 0x175   :  { %5228 = vst [vmem:[#allocation40_spill] sm:$0xff] %v4488_v10  ;;  %5229 = vst [vmem:[#allocation41_spill] sm:$0xff] %v4491_v17  ;;  %v579_v24 = vmul.f32 %v3816_v57, %v501_v48  ;;  %v1162_v45 = vmul.f32 %v3816_v57, %v1090_v0  ;;  %3229 = vmatprep.mubr.msk.bf16.mxu0 %vm3460_vm2, %v5197_v6  ;;  %3333 = vmatprep.mubr.msk.bf16.mxu1 %vm3460_vm2, %v5197_v6 }
 0x176   :  { %v3023_v58 = vpop.f32.mrf.mxu0  ;;  %v3127_v7 = vpop.f32.mrf.mxu1 }
 0x177   :  { %v4509_v37 = vadd.f32 %v4506_v28, %v579_v24  ;;  %v4512_v48 = vadd.f32 %v4506_v28, %v1162_v45  ;;  %v4525_v24 = vld [vmem:[%s5130_s5] ss:$0 sm:$0xff] }
 0x178   :  { %v504_v57 = vpop.f32.mrf.mxu0  ;;  %v1093_v0 = vpop.f32.mrf.mxu1 }
 0x179   :  { %5230 = vst [vmem:[#allocation42_spill] sm:$0xff] %v4509_v37  ;;  %5231 = vst [vmem:[#allocation43_spill] sm:$0xff] %v4512_v48  ;;  %v580_v45 = vmul.f32 %v4525_v24, %v504_v57  ;;  %v1163_v58 = vmul.f32 %v4525_v24, %v1093_v0 }
 0x17a   :  { %v3024_v7 = vpop.f32.mrf.mxu0  ;;  %v3128_v8 = vpop.f32.mrf.mxu1 }
 0x17b   :  { %v4530_v17 = vadd.f32 %v4506_v28, %v580_v45  ;;  %v4533_v10 = vadd.f32 %v4506_v28, %v1163_v58 }
 0x17c   :  { %v509_v12 = vpop.f32.mrf.mxu0  ;;  %v1098_v59 = vpop.f32.mrf.mxu1  ;;  %3230 = vmatmul.mubr.msk.bf16.gmra.mxu0 %vm216_vm3, %v3446_v27  ;;  %3334 = vmatmul.mubr.msk.bf16.gmra.mxu1 %vm216_vm3, %v3447_v16 }
 0x17d   :  { %5232 = vst [vmem:[#allocation44_spill] sm:$0xff] %v4530_v17  ;;  %5233 = vst [vmem:[#allocation45_spill] sm:$0xff] %v4533_v10  ;;  %v581_v57 = vmul.f32 %v4525_v24, %v509_v12  ;;  %v1164_v0 = vmul.f32 %v4525_v24, %v1098_v59  ;;  %3233 = vmatprep.mubr.msk.bf16.mxu0 %vm3460_vm2, %v5197_v6  ;;  %3337 = vmatprep.mubr.msk.bf16.mxu1 %vm3460_vm2, %v5197_v6  ;;  %v3448_v59 = vld [vmem:[%s5128_s2 + $0xb0] sm:$0xff]  }
 0x17e   :  { %v3027_v8 = vpop.f32.mrf.mxu0  ;;  %v3131_v45 = vpop.f32.mrf.mxu1  ;;  %v3449_v12 = vld [vmem:[%s5129_s3 + $0xb0] sm:$0xff]  }
 0x17f   :  { %v4546_v58 = vadd.f32 %v4506_v28, %v581_v57  ;;  %v4549_v27 = vadd.f32 %v4506_v28, %v1164_v0 }
 0x180   :  { %v512_v16 = vpop.f32.mrf.mxu0  ;;  %v1101_v7 = vpop.f32.mrf.mxu1 }
 0x181   :  { %5234 = vst [vmem:[#allocation46_spill] sm:$0xff] %v4546_v58  ;;  %5235 = vst [vmem:[#allocation47_spill] sm:$0xff] %v4549_v27  ;;  %v582_v45 = vmul.f32 %v4525_v24, %v512_v16  ;;  %v1165_v57 = vmul.f32 %v4525_v24, %v1101_v7 }
 0x182   :  { %v3028_v55 = vpop.f32.mrf.mxu0  ;;  %v3132_v0 = vpop.f32.mrf.mxu1 }
 0x183   :  { %v4562_v10 = vadd.f32 %v4506_v28, %v582_v45  ;;  %v4565_v17 = vadd.f32 %v4506_v28, %v1165_v57 }
 0x184   :  { %v517_v48 = vpop.f32.mrf.mxu0  ;;  %v1106_v37 = vpop.f32.mrf.mxu1  ;;  %3234 = vmatmul.mubr.msk.bf16.gmra.mxu0 %vm216_vm3, %v3448_v59  ;;  %3338 = vmatmul.mubr.msk.bf16.gmra.mxu1 %vm216_vm3, %v3449_v12 }
 0x185   :  { %5236 = vst [vmem:[#allocation48_spill] sm:$0xff] %v4562_v10  ;;  %5237 = vst [vmem:[#allocation49_spill] sm:$0xff] %v4565_v17  ;;  %v583_v16 = vmul.f32 %v4525_v24, %v517_v48  ;;  %v1166_v55 = vmul.f32 %v4525_v24, %v1106_v37  ;;  %3237 = vmatprep.mubr.msk.bf16.mxu0 %vm3460_vm2, %v5197_v6  ;;  %3341 = vmatprep.mubr.msk.bf16.mxu1 %vm3460_vm2, %v5197_v6  ;;  %v3450_v37 = vld [vmem:[%s5128_s2 + $0xb8] sm:$0xff]  }
 0x186   :  { %v3031_v7 = vpop.f32.mrf.mxu0  ;;  %v3135_v45 = vpop.f32.mrf.mxu1  ;;  %v3451_v48 = vld [vmem:[%s5129_s3 + $0xb8] sm:$0xff]  }
 0x187   :  { %v4578_v57 = vadd.f32 %v4506_v28, %v583_v16  ;;  %v4581_v59 = vadd.f32 %v4506_v28, %v1166_v55 }
 0x188   :  { %v520_v12 = vpop.f32.mrf.mxu0  ;;  %v1109_v0 = vpop.f32.mrf.mxu1 }
 0x189   :  { %5238 = vst [vmem:[#allocation50_spill] sm:$0xff] %v4578_v57  ;;  %5239 = vst [vmem:[#allocation51_spill] sm:$0xff] %v4581_v59  ;;  %v584_v45 = vmul.f32 %v4525_v24, %v520_v12  ;;  %v1167_v16 = vmul.f32 %v4525_v24, %v1109_v0 }
 0x18a   :  { %v3032_v8 = vpop.f32.mrf.mxu0  ;;  %v3136_v55 = vpop.f32.mrf.mxu1 }
 0x18b   :  { %v4594_v17 = vadd.f32 %v4506_v28, %v584_v45  ;;  %v4597_v10 = vadd.f32 %v4506_v28, %v1167_v16 }
 0x18c   :  { %v525_v27 = vpop.f32.mrf.mxu0  ;;  %v1114_v58 = vpop.f32.mrf.mxu1  ;;  %3238 = vmatmul.mubr.msk.bf16.gmra.mxu0 %vm216_vm3, %v3450_v37  ;;  %3342 = vmatmul.mubr.msk.bf16.gmra.mxu1 %vm216_vm3, %v3451_v48 }
 0x18d   :  { %5240 = vst [vmem:[#allocation52_spill] sm:$0xff] %v4594_v17  ;;  %5241 = vst [vmem:[#allocation53_spill] sm:$0xff] %v4597_v10  ;;  %v585_v12 = vmul.f32 %v4525_v24, %v525_v27  ;;  %v1168_v8 = vmul.f32 %v4525_v24, %v1114_v58  ;;  %3241 = vmatprep.mubr.msk.bf16.mxu0 %vm3460_vm2, %v5197_v6  ;;  %3345 = vmatprep.mubr.msk.bf16.mxu1 %vm3460_vm2, %v5197_v6  ;;  %v3452_v58 = vld [vmem:[%s5128_s2 + $0xc0] ss:$0 sps:$4 sm:$0xff]  }
 0x18e   :  { %v3035_v0 = vpop.f32.mrf.mxu0  ;;  %v3139_v45 = vpop.f32.mrf.mxu1  ;;  %v3453_v27 = vld [vmem:[%s5129_s3 + $0xc0] ss:$0 sps:$4 sm:$0xff]  }
 0x18f   :  { %v4610_v16 = vadd.f32 %v4506_v28, %v585_v12  ;;  %v4613_v37 = vadd.f32 %v4506_v28, %v1168_v8 }
 0x190   :  { %v528_v48 = vpop.f32.mrf.mxu0  ;;  %v1117_v55 = vpop.f32.mrf.mxu1 }
 0x191   :  { %5242 = vst [vmem:[#allocation54_spill] sm:$0xff] %v4610_v16  ;;  %5243 = vst [vmem:[#allocation55_spill] sm:$0xff] %v4613_v37 }
 0x192   :  { %v3036_v0 = vpop.f32.mrf.mxu0  ;;  %v3140_v45 = vpop.f32.mrf.mxu1 }
 0x193   :  { %v5244_v0 = vmax.f32 %v3832_v2, %v3835_v3 }
 0x194   :  { %v1548_v12 = vpop.f32.mrf.mxu0  ;;  %3242 = vmatmul.mubr.msk.bf16.gmra.mxu0 %vm216_vm3, %v3452_v58  ;;  %v2174_v8 = vpop.f32.mrf.mxu1  ;;  %3346 = vmatmul.mubr.msk.bf16.gmra.mxu1 %vm216_vm3, %v3453_v27 }
 0x195   :  { %v1746_v48 = vmul.f32 %v4525_v24, %v1548_v12  ;;  %v2372_v55 = vmul.f32 %v4525_v24, %v2174_v8 }
 0x196   :  { %v3147_v7 = vpop.f32.mrf.mxu0  ;;  %v3251_v10 = vpop.f32.mrf.mxu1 }
 0x197   :  { %v1795_v17 = vadd.f32 %v4506_v28, %v1746_v48  ;;  %v2421_v59 = vadd.f32 %v4506_v28, %v2372_v55 }
 0x198   :  { %v1551_v57 = vpop.f32.mrf.mxu0  ;;  %v2177_v6 = vpop.f32.mrf.mxu1 }
 0x199   :  { %v1844_v45 = vmax.f32 %v5244_v0, %v1795_v17  ;;  %v1747_v58 = vmul.f32 %v4525_v24, %v1551_v57  ;;  %v2373_v27 = vmul.f32 %v4525_v24, %v2177_v6 }
 0x19a   :  { %v3148_v37 = vpop.f32.mrf.mxu0  ;;  %v3252_v12 = vpop.f32.mrf.mxu1 }
 0x19b   :  { %v2470_v16 = vmax.f32 %v1844_v45, %v2421_v59  ;;  %v1796_v7 = vadd.f32 %v4506_v28, %v1747_v58  ;;  %v2422_v10 = vadd.f32 %v4506_v28, %v2373_v27 }
 0x19c   :  { %v1556_v8 = vpop.f32.mrf.mxu0  ;;  %v2182_v48 = vpop.f32.mrf.mxu1 }
 0x19d   :  { %v2519_v55 = vmax.f32 %v2470_v16, 0.0  ;;  %v1845_v52 = vmax.f32 %v5245_v9, %v1796_v7  ;;  %v1748_v2 = vmul.f32 %v4525_v24, %v1556_v8  ;;  %v2374_v3 = vmul.f32 %v4525_v24, %v2182_v48 }
 0x19e   :  { %v3151_v17 = vpop.f32.mrf.mxu0  ;;  %v3255_v57 = vpop.f32.mrf.mxu1 }
 0x19f   :  { %2568 = vst [vmem:[%s5132_s7] sm:$0xff] %v2519_v55  ;;  %v2471_v59 = vmax.f32 %v1845_v52, %v2422_v10  ;;  %v1797_v37 = vadd.f32 %v4506_v28, %v1748_v2  ;;  %v2423_v6 = vadd.f32 %v4506_v28, %v2374_v3 }
 0x1a0   :  { %v1559_v16 = vpop.f32.mrf.mxu0  ;;  %v2185_v0 = vpop.f32.mrf.mxu1 }
 0x1a1   :  { %v2520_v45 = vmax.f32 %v2471_v59, 0.0  ;;  %v1846_v14 = vmax.f32 %v5246_v13, %v1797_v37  ;;  %v1749_v9 = vmul.f32 %v4525_v24, %v1559_v16  ;;  %v2375_v58 = vmul.f32 %v4525_v24, %v2185_v0 }
 0x1a2   :  { %v3152_v27 = vpop.f32.mrf.mxu0  ;;  %v3256_v12 = vpop.f32.mrf.mxu1 }
 0x1a3   :  { %2569 = vst [vmem:[%s5132_s7 + $0x8] sm:$0xff] %v2520_v45  ;;  %v2472_v52 = vmax.f32 %v1846_v14, %v2423_v6  ;;  %v1798_v7 = vadd.f32 %v4506_v28, %v1749_v9  ;;  %v2424_v10 = vadd.f32 %v4506_v28, %v2375_v58 }
 0x1a4   :  { %v1564_v8 = vpop.f32.mrf.mxu0  ;;  %v2190_v48 = vpop.f32.mrf.mxu1 }
 0x1a5   :  { %v2521_v55 = vmax.f32 %v2472_v52, 0.0  ;;  %v1847_v23 = vmax.f32 %v5247_v22, %v1798_v7  ;;  %v1750_v2 = vmul.f32 %v4525_v24, %v1564_v8  ;;  %v2376_v3 = vmul.f32 %v4525_v24, %v2190_v48 }
 0x1a6   :  { %v3155_v17 = vpop.f32.mrf.mxu0  ;;  %v3259_v57 = vpop.f32.mrf.mxu1 }
 0x1a7   :  { %2570 = vst [vmem:[%s5132_s7 + $0x10] sm:$0xff] %v2521_v55  ;;  %v2473_v59 = vmax.f32 %v1847_v23, %v2424_v10  ;;  %v1799_v37 = vadd.f32 %v4506_v28, %v1750_v2  ;;  %v2425_v6 = vadd.f32 %v4506_v28, %v2376_v3 }
 0x1a8   :  { %v1567_v16 = vpop.f32.mrf.mxu0  ;;  %v2193_v0 = vpop.f32.mrf.mxu1 }
 0x1a9   :  { %v2522_v45 = vmax.f32 %v2473_v59, 0.0  ;;  %v1848_v34 = vmax.f32 %v5248_v33, %v1799_v37  ;;  %v1751_v13 = vmul.f32 %v4525_v24, %v1567_v16  ;;  %v2377_v14 = vmul.f32 %v4525_v24, %v2193_v0 }
 0x1aa   :  { %v3156_v9 = vpop.f32.mrf.mxu0  ;;  %v3260_v58 = vpop.f32.mrf.mxu1 }
 0x1ab   :  { %2571 = vst [vmem:[%s5132_s7 + $0x18] sm:$0xff] %v2522_v45  ;;  %v2474_v27 = vmax.f32 %v1848_v34, %v2425_v6  ;;  %v1800_v12 = vadd.f32 %v4506_v28, %v1751_v13  ;;  %v2426_v52 = vadd.f32 %v4506_v28, %v2377_v14 }
 0x1ac   :  { %v1572_v7 = vpop.f32.mrf.mxu0  ;;  %v2198_v10 = vpop.f32.mrf.mxu1 }
 0x1ad   :  { %v2523_v8 = vmax.f32 %v2474_v27, 0.0  ;;  %v1849_v43 = vmax.f32 %v5249_v42, %v1800_v12  ;;  %v1752_v48 = vmul.f32 %v4525_v24, %v1572_v7  ;;  %v2378_v55 = vmul.f32 %v4525_v24, %v2198_v10 }
 0x1ae   :  { %v3159_v22 = vpop.f32.mrf.mxu0  ;;  %v3263_v23 = vpop.f32.mrf.mxu1 }
 0x1af   :  { %2572 = vst [vmem:[%s5132_s7 + $0x20] sm:$0xff] %v2523_v8  ;;  %v2475_v2 = vmax.f32 %v1849_v43, %v2426_v52  ;;  %v1801_v3 = vadd.f32 %v4506_v28, %v1752_v48  ;;  %v2427_v17 = vadd.f32 %v4506_v28, %v2378_v55 }
 0x1b0   :  { %v1575_v57 = vpop.f32.mrf.mxu0  ;;  %v2201_v59 = vpop.f32.mrf.mxu1 }
 0x1b1   :  { %v2524_v37 = vmax.f32 %v2475_v2, 0.0  ;;  %v1850_v54 = vmax.f32 %v5250_v53, %v1801_v3  ;;  %v1753_v6 = vmul.f32 %v4525_v24, %v1575_v57  ;;  %v2379_v16 = vmul.f32 %v4525_v24, %v2201_v59 }
 0x1b2   :  { %v3160_v0 = vpop.f32.mrf.mxu0  ;;  %v3264_v45 = vpop.f32.mrf.mxu1 }
 0x1b3   :  { %2573 = vst [vmem:[%s5132_s7 + $0x28] sm:$0xff] %v2524_v37  ;;  %v2476_v33 = vmax.f32 %v1850_v54, %v2427_v17  ;;  %v1802_v34 = vadd.f32 %v4506_v28, %v1753_v6  ;;  %v2428_v13 = vadd.f32 %v4506_v28, %v2379_v16 }
 0x1b4   :  { %v1580_v14 = vpop.f32.mrf.mxu0  ;;  %v2206_v9 = vpop.f32.mrf.mxu1 }
 0x1b5   :  { %v2525_v58 = vmax.f32 %v2476_v33, 0.0  ;;  %v1851_v4 = vmax.f32 %v5251_v1, %v1802_v34  ;;  %v1754_v27 = vmul.f32 %v4525_v24, %v1580_v14  ;;  %v2380_v12 = vmul.f32 %v4525_v24, %v2206_v9 }
 0x1b6   :  { %v3163_v52 = vpop.f32.mrf.mxu0  ;;  %v3267_v7 = vpop.f32.mrf.mxu1 }
 0x1b7   :  { %2574 = vst [vmem:[%s5132_s7 + $0x30] sm:$0xff] %v2525_v58  ;;  %v2477_v10 = vmax.f32 %v1851_v4, %v2428_v13  ;;  %v1803_v8 = vadd.f32 %v4506_v28, %v1754_v27  ;;  %v2429_v42 = vadd.f32 %v4506_v28, %v2380_v12 }
 0x1b8   :  { %v1583_v43 = vpop.f32.mrf.mxu0  ;;  %v2209_v48 = vpop.f32.mrf.mxu1 }
 0x1b9   :  { %v2526_v55 = vmax.f32 %v2477_v10, 0.0  ;;  %v1852_v19 = vmax.f32 %v5252_v18, %v1803_v8  ;;  %v1755_v22 = vmul.f32 %v4525_v24, %v1583_v43  ;;  %v2381_v23 = vmul.f32 %v4525_v24, %v2209_v48 }
 0x1ba   :  { %v3164_v2 = vpop.f32.mrf.mxu0  ;;  %v3268_v3 = vpop.f32.mrf.mxu1 }
 0x1bb   :  { %2575 = vst [vmem:[%s5132_s7 + $0x38] sm:$0xff] %v2526_v55  ;;  %v2478_v17 = vmax.f32 %v1852_v19, %v2429_v42  ;;  %v1804_v57 = vadd.f32 %v4506_v28, %v1755_v22  ;;  %v2430_v59 = vadd.f32 %v4506_v28, %v2381_v23 }
 0x1bc   :  { %v1588_v37 = vpop.f32.mrf.mxu0  ;;  %v2214_v53 = vpop.f32.mrf.mxu1 }
 0x1bd   :  { %v2527_v54 = vmax.f32 %v2478_v17, 0.0  ;;  %v1853_v31 = vmax.f32 %v5253_v30, %v1804_v57  ;;  %v1756_v6 = vmul.f32 %v4525_v24, %v1588_v37  ;;  %v2382_v16 = vmul.f32 %v4525_v24, %v2214_v53 }
 0x1be   :  { %v3167_v0 = vpop.f32.mrf.mxu0  ;;  %v3271_v45 = vpop.f32.mrf.mxu1 }
 0x1bf   :  { %2576 = vst [vmem:[%s5132_s7 + $0x40] sm:$0xff] %v2527_v54  ;;  %v2479_v33 = vmax.f32 %v1853_v31, %v2430_v59  ;;  %v1805_v34 = vadd.f32 %v4506_v28, %v1756_v6  ;;  %v2431_v13 = vadd.f32 %v4506_v28, %v2382_v16 }
 0x1c0   :  { %v1591_v14 = vpop.f32.mrf.mxu0  ;;  %v2217_v9 = vpop.f32.mrf.mxu1 }
 0x1c1   :  { %v2528_v58 = vmax.f32 %v2479_v33, 0.0  ;;  %v1854_v47 = vmax.f32 %v5254_v46, %v1805_v34  ;;  %v1757_v1 = vmul.f32 %v4525_v24, %v1591_v14  ;;  %v2383_v4 = vmul.f32 %v4525_v24, %v2217_v9 }
 0x1c2   :  { %v3168_v27 = vpop.f32.mrf.mxu0  ;;  %v3272_v12 = vpop.f32.mrf.mxu1 }
 0x1c3   :  { %2577 = vst [vmem:[%s5132_s7 + $0x48] sm:$0xff] %v2528_v58  ;;  %v2480_v52 = vmax.f32 %v1854_v47, %v2431_v13  ;;  %v1806_v7 = vadd.f32 %v4506_v28, %v1757_v1  ;;  %v2432_v10 = vadd.f32 %v4506_v28, %v2383_v4 }
 0x1c4   :  { %v1596_v8 = vpop.f32.mrf.mxu0  ;;  %v2222_v42 = vpop.f32.mrf.mxu1 }
 0x1c5   :  { %v2529_v43 = vmax.f32 %v2480_v52, 0.0  ;;  %v1855_v62 = vmax.f32 %v5255_v61, %v1806_v7  ;;  %v1758_v48 = vmul.f32 %v4525_v24, %v1596_v8  ;;  %v2384_v55 = vmul.f32 %v4525_v24, %v2222_v42 }
 0x1c6   :  { %v3171_v18 = vpop.f32.mrf.mxu0  ;;  %v3275_v19 = vpop.f32.mrf.mxu1 }
 0x1c7   :  { %2578 = vst [vmem:[%s5132_s7 + $0x50] sm:$0xff] %v2529_v43  ;;  %v2481_v22 = vmax.f32 %v1855_v62, %v2432_v10  ;;  %v1807_v23 = vadd.f32 %v4506_v28, %v1758_v48  ;;  %v2433_v2 = vadd.f32 %v4506_v28, %v2384_v55 }
 0x1c8   :  { %v1599_v3 = vpop.f32.mrf.mxu0  ;;  %v2225_v17 = vpop.f32.mrf.mxu1 }
 0x1c9   :  { %v2530_v57 = vmax.f32 %v2481_v22, 0.0  ;;  %v1856_v21 = vmax.f32 %v5256_v20, %v1807_v23  ;;  %v1759_v59 = vmul.f32 %v4525_v24, %v1599_v3  ;;  %v2385_v37 = vmul.f32 %v4525_v24, %v2225_v17 }
 0x1ca   :  { %v3172_v53 = vpop.f32.mrf.mxu0  ;;  %v3276_v54 = vpop.f32.mrf.mxu1 }
 0x1cb   :  { %2579 = vst [vmem:[%s5132_s7 + $0x58] sm:$0xff] %v2530_v57  ;;  %v2482_v30 = vmax.f32 %v1856_v21, %v2433_v2  ;;  %v1808_v31 = vadd.f32 %v4506_v28, %v1759_v59  ;;  %v2434_v6 = vadd.f32 %v4506_v28, %v2385_v37 }
 0x1cc   :  { %v1604_v16 = vpop.f32.mrf.mxu0  ;;  %v2230_v0 = vpop.f32.mrf.mxu1 }
 0x1cd   :  { %v2531_v45 = vmax.f32 %v2482_v30, 0.0  ;;  %v1857_v40 = vmax.f32 %v5257_v38, %v1808_v31  ;;  %v1760_v33 = vmul.f32 %v4525_v24, %v1604_v16  ;;  %v2386_v34 = vmul.f32 %v4525_v24, %v2230_v0 }
 0x1ce   :  { %v3175_v13 = vpop.f32.mrf.mxu0  ;;  %v3279_v14 = vpop.f32.mrf.mxu1 }
 0x1cf   :  { %2580 = vst [vmem:[%s5132_s7 + $0x60] sm:$0xff] %v2531_v45  ;;  %v2483_v9 = vmax.f32 %v1857_v40, %v2434_v6  ;;  %v1809_v58 = vadd.f32 %v4506_v28, %v1760_v33  ;;  %v2435_v46 = vadd.f32 %v4506_v28, %v2386_v34 }
 0x1d0   :  { %v1607_v47 = vpop.f32.mrf.mxu0  ;;  %v2233_v1 = vpop.f32.mrf.mxu1 }
 0x1d1   :  { %v2532_v4 = vmax.f32 %v2483_v9, 0.0  ;;  %v1858_v5 = vmax.f32 %v5258_v63, %v1809_v58  ;;  %v1761_v27 = vmul.f32 %v4525_v24, %v1607_v47  ;;  %v2387_v12 = vmul.f32 %v4525_v24, %v2233_v1 }
 0x1d2   :  { %v3176_v52 = vpop.f32.mrf.mxu0  ;;  %v3280_v7 = vpop.f32.mrf.mxu1 }
 0x1d3   :  { %2581 = vst [vmem:[%s5132_s7 + $0x68] sm:$0xff] %v2532_v4  ;;  %v2484_v10 = vmax.f32 %v1858_v5, %v2435_v46  ;;  %v1810_v8 = vadd.f32 %v4506_v28, %v1761_v27  ;;  %v2436_v42 = vadd.f32 %v4506_v28, %v2387_v12 }
 0x1d4   :  { %v1612_v43 = vpop.f32.mrf.mxu0  ;;  %v2238_v61 = vpop.f32.mrf.mxu1 }
 0x1d5   :  { %v2533_v62 = vmax.f32 %v2484_v10, 0.0  ;;  %v1859_v29 = vmax.f32 %v5259_v26, %v1810_v8  ;;  %v1762_v48 = vmul.f32 %v4525_v24, %v1612_v43  ;;  %v2388_v55 = vmul.f32 %v4525_v24, %v2238_v61 }
 0x1d6   :  { %v3179_v18 = vpop.f32.mrf.mxu0  ;;  %v3283_v19 = vpop.f32.mrf.mxu1 }
 0x1d7   :  { %2582 = vst [vmem:[%s5132_s7 + $0x70] sm:$0xff] %v2533_v62  ;;  %v2485_v22 = vmax.f32 %v1859_v29, %v2436_v42  ;;  %v1811_v23 = vadd.f32 %v4506_v28, %v1762_v48  ;;  %v2437_v2 = vadd.f32 %v4506_v28, %v2388_v55 }
 0x1d8   :  { %v1615_v3 = vpop.f32.mrf.mxu0  ;;  %v2241_v17 = vpop.f32.mrf.mxu1 }
 0x1d9   :  { %v2534_v57 = vmax.f32 %v2485_v22, 0.0  ;;  %v1860_v60 = vmax.f32 %v5260_v56, %v1811_v23  ;;  %v1763_v20 = vmul.f32 %v4525_v24, %v1615_v3  ;;  %v2389_v21 = vmul.f32 %v4525_v24, %v2241_v17 }
 0x1da   :  { %v3180_v59 = vpop.f32.mrf.mxu0  ;;  %v3284_v37 = vpop.f32.mrf.mxu1 }
 0x1db   :  { %2583 = vst [vmem:[%s5132_s7 + $0x78] sm:$0xff] %v2534_v57  ;;  %v2486_v53 = vmax.f32 %v1860_v60, %v2437_v2  ;;  %v1812_v54 = vadd.f32 %v4506_v28, %v1763_v20  ;;  %v2438_v30 = vadd.f32 %v4506_v28, %v2389_v21 }
 0x1dc   :  { %v1620_v31 = vpop.f32.mrf.mxu0  ;;  %v2246_v6 = vpop.f32.mrf.mxu1 }
 0x1dd   :  { %v2535_v16 = vmax.f32 %v2486_v53, 0.0  ;;  %v1861_v36 = vmax.f32 %v5261_v35, %v1812_v54  ;;  %v1764_v0 = vmul.f32 %v4525_v24, %v1620_v31  ;;  %v2390_v45 = vmul.f32 %v4525_v24, %v2246_v6 }
 0x1de   :  { %v3183_v38 = vpop.f32.mrf.mxu0  ;;  %v3287_v40 = vpop.f32.mrf.mxu1  ;;  %v5268_v35 = vmax.f32 %v5266_v39, %v5267_v51 }
 0x1df   :  { %2584 = vst [vmem:[%s5132_s7 + $0x80] sm:$0xff] %v2535_v16  ;;  %v2487_v33 = vmax.f32 %v1861_v36, %v2438_v30  ;;  %v1813_v34 = vadd.f32 %v4506_v28, %v1764_v0  ;;  %v2439_v13 = vadd.f32 %v4506_v28, %v2390_v45 }
 0x1e0   :  { %v1623_v14 = vpop.f32.mrf.mxu0  ;;  %v2249_v9 = vpop.f32.mrf.mxu1 }
 0x1e1   :  { %v2536_v58 = vmax.f32 %v2487_v33, 0.0  ;;  %v1862_v32 = vmax.f32 %v5262_v25, %v1813_v34  ;;  %v1765_v46 = vmul.f32 %v4525_v24, %v1623_v14  ;;  %v2391_v47 = vmul.f32 %v4525_v24, %v2249_v9  ;;  %v5269_v25 = vld [vmem:[#allocation4_spill] sm:$0xff] }
 0x1e2   :  { %v3184_v1 = vpop.f32.mrf.mxu0  ;;  %v3288_v4 = vpop.f32.mrf.mxu1 }
 0x1e3   :  { %2585 = vst [vmem:[%s5132_s7 + $0x88] sm:$0xff] %v2536_v58  ;;  %v2488_v63 = vmax.f32 %v1862_v32, %v2439_v13  ;;  %v1814_v5 = vadd.f32 %v4506_v28, %v1765_v46  ;;  %v2440_v27 = vadd.f32 %v4506_v28, %v2391_v47  ;;  %v5270_v32 = vld [vmem:[#allocation5_spill] sm:$0xff] }
 0x1e4   :  { %v1628_v12 = vpop.f32.mrf.mxu0  ;;  %v2254_v52 = vpop.f32.mrf.mxu1  ;;  %v5271_v46 = vmax.f32 %v5269_v25, %v5270_v32 }
 0x1e5   :  { %v2537_v7 = vmax.f32 %v2488_v63, 0.0  ;;  %v1863_v49 = vmax.f32 %v5263_v15, %v1814_v5  ;;  %v1766_v10 = vmul.f32 %v4525_v24, %v1628_v12  ;;  %v2392_v8 = vmul.f32 %v4525_v24, %v2254_v52 }
 0x1e6   :  { %v3187_v42 = vpop.f32.mrf.mxu0  ;;  %v3291_v43 = vpop.f32.mrf.mxu1 }
 0x1e7   :  { %2586 = vst [vmem:[%s5132_s7 + $0x90] sm:$0xff] %v2537_v7  ;;  %v2489_v61 = vmax.f32 %v1863_v49, %v2440_v27  ;;  %v1815_v62 = vadd.f32 %v4506_v28, %v1766_v10  ;;  %v2441_v26 = vadd.f32 %v4506_v28, %v2392_v8  ;;  %v5272_v10 = vld [vmem:[#allocation6_spill] sm:$0xff]  ;;  %v5273_v8 = vld [vmem:[#allocation7_spill] sm:$0xff] }
 0x1e8   :  { %v1631_v29 = vpop.f32.mrf.mxu0  ;;  %v2257_v48 = vpop.f32.mrf.mxu1  ;;  %v5274_v42 = vmax.f32 %v5272_v10, %v5273_v8 }
 0x1e9   :  { %v2538_v55 = vmax.f32 %v2489_v61, 0.0  ;;  %v1864_v11 = vmax.f32 %v5264_v50, %v1815_v62  ;;  %v1767_v18 = vmul.f32 %v4525_v24, %v1631_v29  ;;  %v2393_v19 = vmul.f32 %v4525_v24, %v2257_v48 }
 0x1ea   :  { %v3188_v22 = vpop.f32.mrf.mxu0  ;;  %v3292_v23 = vpop.f32.mrf.mxu1 }
 0x1eb   :  { %2587 = vst [vmem:[%s5132_s7 + $0x98] sm:$0xff] %v2538_v55  ;;  %v2490_v2 = vmax.f32 %v1864_v11, %v2441_v26  ;;  %v1816_v3 = vadd.f32 %v4506_v28, %v1767_v18  ;;  %v2442_v17 = vadd.f32 %v4506_v28, %v2393_v19  ;;  %v5275_v22 = vld [vmem:[#allocation8_spill] sm:$0xff]  ;;  %v5276_v23 = vld [vmem:[#allocation9_spill] sm:$0xff] }
 0x1ec   :  { %v1636_v57 = vpop.f32.mrf.mxu0  ;;  %v2262_v56 = vpop.f32.mrf.mxu1 }
 0x1ed   :  { %v2539_v60 = vmax.f32 %v2490_v2, 0.0  ;;  %v1865_v44 = vmax.f32 %v5265_v41, %v1816_v3  ;;  %v1768_v20 = vmul.f32 %v4525_v24, %v1636_v57  ;;  %v2394_v21 = vmul.f32 %v4525_v24, %v2262_v56 }
 0x1ee   :  { %v3191_v59 = vpop.f32.mrf.mxu0  ;;  %v3295_v37 = vpop.f32.mrf.mxu1  ;;  %v5277_v2 = vmax.f32 %v5275_v22, %v5276_v23 }
 0x1ef   :  { %2588 = vst [vmem:[%s5132_s7 + $0xa0] sm:$0xff] %v2539_v60  ;;  %v2491_v53 = vmax.f32 %v1865_v44, %v2442_v17  ;;  %v1817_v54 = vadd.f32 %v4506_v28, %v1768_v20  ;;  %v2443_v30 = vadd.f32 %v4506_v28, %v2394_v21 }
 0x1f0   :  { %v1639_v31 = vpop.f32.mrf.mxu0  ;;  %v2265_v6 = vpop.f32.mrf.mxu1 }
 0x1f1   :  { %v2540_v16 = vmax.f32 %v2491_v53, 0.0  ;;  %v1866_v36 = vmax.f32 %v5268_v35, %v1817_v54  ;;  %v1769_v0 = vmul.f32 %v4525_v24, %v1639_v31  ;;  %v2395_v45 = vmul.f32 %v4525_v24, %v2265_v6  ;;  %v5278_v53 = vld [vmem:[#allocation10_spill] sm:$0xff]  ;;  %v5279_v54 = vld [vmem:[#allocation11_spill] sm:$0xff] }
 0x1f2   :  { %v3192_v38 = vpop.f32.mrf.mxu0  ;;  %v3296_v40 = vpop.f32.mrf.mxu1 }
 0x1f3   :  { %2589 = vst [vmem:[%s5132_s7 + $0xa8] sm:$0xff] %v2540_v16  ;;  %v2492_v33 = vmax.f32 %v1866_v36, %v2443_v30  ;;  %v1818_v34 = vadd.f32 %v4506_v28, %v1769_v0  ;;  %v2444_v13 = vadd.f32 %v4506_v28, %v2395_v45  ;;  %v5280_v30 = vmax.f32 %v5278_v53, %v5279_v54 }
 0x1f4   :  { %v1644_v14 = vpop.f32.mrf.mxu0  ;;  %v2270_v9 = vpop.f32.mrf.mxu1 }
 0x1f5   :  { %v2541_v58 = vmax.f32 %v2492_v33, 0.0  ;;  %v1867_v47 = vmax.f32 %v5271_v46, %v1818_v34  ;;  %v1770_v1 = vmul.f32 %v4525_v24, %v1644_v14  ;;  %v2396_v4 = vmul.f32 %v4525_v24, %v2270_v9  ;;  %v5281_v33 = vld [vmem:[#allocation12_spill] sm:$0xff]  ;;  %v5282_v34 = vld [vmem:[#allocation13_spill] sm:$0xff] }
 0x1f6   :  { %v3195_v63 = vpop.f32.mrf.mxu0  ;;  %v3299_v5 = vpop.f32.mrf.mxu1 }
 0x1f7   :  { %2590 = vst [vmem:[%s5132_s7 + $0xb0] sm:$0xff] %v2541_v58  ;;  %v2493_v27 = vmax.f32 %v1867_v47, %v2444_v13  ;;  %v1819_v12 = vadd.f32 %v4506_v28, %v1770_v1  ;;  %v2445_v52 = vadd.f32 %v4506_v28, %v2396_v4  ;;  %v5283_v13 = vmax.f32 %v5281_v33, %v5282_v34 }
 0x1f8   :  { %v1647_v7 = vpop.f32.mrf.mxu0  ;;  %v2273_v15 = vpop.f32.mrf.mxu1 }
 0x1f9   :  { %v2542_v49 = vmax.f32 %v2493_v27, 0.0  ;;  %v1868_v43 = vmax.f32 %v5274_v42, %v1819_v12  ;;  %v1771_v61 = vmul.f32 %v4525_v24, %v1647_v7  ;;  %v2397_v62 = vmul.f32 %v4525_v24, %v2273_v15  ;;  %v5284_v27 = vld [vmem:[#allocation14_spill] sm:$0xff]  ;;  %v5285_v12 = vld [vmem:[#allocation15_spill] sm:$0xff] }
 0x1fa   :  { %v3196_v26 = vpop.f32.mrf.mxu0  ;;  %v3300_v29 = vpop.f32.mrf.mxu1 }
 0x1fb   :  { %2591 = vst [vmem:[%s5132_s7 + $0xb8] sm:$0xff] %v2542_v49  ;;  %v2494_v48 = vmax.f32 %v1868_v43, %v2445_v52  ;;  %v1820_v55 = vadd.f32 %v4506_v28, %v1771_v61  ;;  %v2446_v50 = vadd.f32 %v4506_v28, %v2397_v62  ;;  %v5286_v52 = vmax.f32 %v5284_v27, %v5285_v12 }
 0x1fc   :  { %v1652_v11 = vpop.f32.mrf.mxu0  ;;  %v2278_v18 = vpop.f32.mrf.mxu1 }
 0x1fd   :  { %v2543_v19 = vmax.f32 %v2494_v48, 0.0  ;;  %v1869_v3 = vmax.f32 %v5277_v2, %v1820_v55  ;;  %v1772_v17 = vmul.f32 %v4525_v24, %v1652_v11  ;;  %v2398_v57 = vmul.f32 %v4525_v24, %v2278_v18  ;;  %v5287_v48 = vld [vmem:[#allocation16_spill] sm:$0xff]  ;;  %v5288_v55 = vld [vmem:[#allocation17_spill] sm:$0xff] }
 0x1fe   :  { %v3199_v56 = vpop.f32.mrf.mxu0  ;;  %v3303_v60 = vpop.f32.mrf.mxu1 }
 0x1ff   :  { %2592 = vst [vmem:[%s5132_s7 + $0xc0] sm:$0xff] %v2543_v19  ;;  %v2495_v41 = vmax.f32 %v1869_v3, %v2446_v50  ;;  %v1821_v44 = vadd.f32 %v4506_v28, %v1772_v17  ;;  %v2447_v20 = vadd.f32 %v4506_v28, %v2398_v57  ;;  %v5289_v50 = vmax.f32 %v5287_v48, %v5288_v55 }
 0x200   :  { %v1655_v21 = vpop.f32.mrf.mxu0  ;;  %v2281_v59 = vpop.f32.mrf.mxu1 }
 0x201   :  { %v2544_v37 = vmax.f32 %v2495_v41, 0.0  ;;  %v1870_v31 = vmax.f32 %v5280_v30, %v1821_v44  ;;  %v1773_v6 = vmul.f32 %v4525_v24, %v1655_v21  ;;  %v2399_v16 = vmul.f32 %v4525_v24, %v2281_v59  ;;  %v5290_v41 = vld [vmem:[#allocation18_spill] sm:$0xff]  ;;  %v5291_v44 = vld [vmem:[#allocation19_spill] sm:$0xff] }
 0x202   :  { %v3200_v39 = vpop.f32.mrf.mxu0  ;;  %v3304_v51 = vpop.f32.mrf.mxu1 }
 0x203   :  { %2593 = vst [vmem:[%s5132_s7 + $0xc8] sm:$0xff] %v2544_v37  ;;  %v2496_v35 = vmax.f32 %v1870_v31, %v2447_v20  ;;  %v1822_v36 = vadd.f32 %v4506_v28, %v1773_v6  ;;  %v2448_v0 = vadd.f32 %v4506_v28, %v2399_v16  ;;  %v5292_v20 = vmax.f32 %v5290_v41, %v5291_v44 }
 0x204   :  { %v1660_v45 = vpop.f32.mrf.mxu0  ;;  %v2286_v38 = vpop.f32.mrf.mxu1 }
 0x205   :  { %v2545_v40 = vmax.f32 %v2496_v35, 0.0  ;;  %v1871_v14 = vmax.f32 %v5283_v13, %v1822_v36  ;;  %v1774_v9 = vmul.f32 %v4525_v24, %v1660_v45  ;;  %v2400_v58 = vmul.f32 %v4525_v24, %v2286_v38  ;;  %v5293_v35 = vld [vmem:[#allocation20_spill] sm:$0xff]  ;;  %v5294_v36 = vld [vmem:[#allocation21_spill] sm:$0xff] }
 0x206   :  { %v3203_v25 = vpop.f32.mrf.mxu0  ;;  %v3307_v32 = vpop.f32.mrf.mxu1 }
 0x207   :  { %2594 = vst [vmem:[%s5132_s7 + $0xd0] sm:$0xff] %v2545_v40  ;;  %v2497_v46 = vmax.f32 %v1871_v14, %v2448_v0  ;;  %v1823_v47 = vadd.f32 %v4506_v28, %v1774_v9  ;;  %v2449_v1 = vadd.f32 %v4506_v28, %v2400_v58  ;;  %v5295_v0 = vmax.f32 %v5293_v35, %v5294_v36 }
 0x208   :  { %v1663_v4 = vpop.f32.mrf.mxu0  ;;  %v2289_v63 = vpop.f32.mrf.mxu1 }
 0x209   :  { %v2546_v5 = vmax.f32 %v2497_v46, 0.0  ;;  %v1872_v7 = vmax.f32 %v5286_v52, %v1823_v47  ;;  %v1775_v15 = vmul.f32 %v4525_v24, %v1663_v4  ;;  %v2401_v49 = vmul.f32 %v4525_v24, %v2289_v63  ;;  %v5296_v46 = vld [vmem:[#allocation22_spill] sm:$0xff]  ;;  %v5297_v47 = vld [vmem:[#allocation23_spill] sm:$0xff] }
 0x20a   :  { %v3204_v10 = vpop.f32.mrf.mxu0  ;;  %v3308_v8 = vpop.f32.mrf.mxu1 }
 0x20b   :  { %2595 = vst [vmem:[%s5132_s7 + $0xd8] sm:$0xff] %v2546_v5  ;;  %v2498_v42 = vmax.f32 %v1872_v7, %v2449_v1  ;;  %v1824_v43 = vadd.f32 %v4506_v28, %v1775_v15  ;;  %v2450_v61 = vadd.f32 %v4506_v28, %v2401_v49  ;;  %v5298_v1 = vmax.f32 %v5296_v46, %v5297_v47 }
 0x20c   :  { %v1668_v62 = vpop.f32.mrf.mxu0  ;;  %v2294_v26 = vpop.f32.mrf.mxu1 }
 0x20d   :  { %v2547_v29 = vmax.f32 %v2498_v42, 0.0  ;;  %v1873_v11 = vmax.f32 %v5289_v50, %v1824_v43  ;;  %v1776_v18 = vmul.f32 %v4525_v24, %v1668_v62  ;;  %v2402_v19 = vmul.f32 %v4525_v24, %v2294_v26  ;;  %v5299_v42 = vld [vmem:[#allocation24_spill] sm:$0xff]  ;;  %v5300_v43 = vld [vmem:[#allocation25_spill] sm:$0xff] }
 0x20e   :  { %v3207_v22 = vpop.f32.mrf.mxu0  ;;  %v3311_v23 = vpop.f32.mrf.mxu1 }
 0x20f   :  { %2596 = vst [vmem:[%s5132_s7 + $0xe0] sm:$0xff] %v2547_v29  ;;  %v2499_v2 = vmax.f32 %v1873_v11, %v2450_v61  ;;  %v1825_v3 = vadd.f32 %v4506_v28, %v1776_v18  ;;  %v2451_v17 = vadd.f32 %v4506_v28, %v2402_v19  ;;  %v5301_v61 = vmax.f32 %v5299_v42, %v5300_v43 }
 0x210   :  { %v1671_v57 = vpop.f32.mrf.mxu0  ;;  %v2297_v56 = vpop.f32.mrf.mxu1 }
 0x211   :  { %v2548_v60 = vmax.f32 %v2499_v2, 0.0  ;;  %v1874_v21 = vmax.f32 %v5292_v20, %v1825_v3  ;;  %v1777_v59 = vmul.f32 %v4525_v24, %v1671_v57  ;;  %v2403_v37 = vmul.f32 %v4525_v24, %v2297_v56  ;;  %v5302_v2 = vld [vmem:[#allocation26_spill] sm:$0xff]  ;;  %v5303_v3 = vld [vmem:[#allocation27_spill] sm:$0xff] }
 0x212   :  { %v3208_v53 = vpop.f32.mrf.mxu0  ;;  %v3312_v54 = vpop.f32.mrf.mxu1 }
 0x213   :  { %2597 = vst [vmem:[%s5132_s7 + $0xe8] sm:$0xff] %v2548_v60  ;;  %v2500_v30 = vmax.f32 %v1874_v21, %v2451_v17  ;;  %v1826_v31 = vadd.f32 %v4506_v28, %v1777_v59  ;;  %v2452_v6 = vadd.f32 %v4506_v28, %v2403_v37  ;;  %v5304_v17 = vmax.f32 %v5302_v2, %v5303_v3 }
 0x214   :  { %v1676_v16 = vpop.f32.mrf.mxu0  ;;  %v2302_v39 = vpop.f32.mrf.mxu1 }
 0x215   :  { %v2549_v51 = vmax.f32 %v2500_v30, 0.0  ;;  %v1875_v45 = vmax.f32 %v5295_v0, %v1826_v31  ;;  %v1778_v38 = vmul.f32 %v4525_v24, %v1676_v16  ;;  %v2404_v40 = vmul.f32 %v4525_v24, %v2302_v39  ;;  %v5305_v30 = vld [vmem:[#allocation28_spill] sm:$0xff]  ;;  %v5306_v31 = vld [vmem:[#allocation29_spill] sm:$0xff] }
 0x216   :  { %v3211_v33 = vpop.f32.mrf.mxu0  ;;  %v3315_v34 = vpop.f32.mrf.mxu1 }
 0x217   :  { %2598 = vst [vmem:[%s5132_s7 + $0xf0] sm:$0xff] %v2549_v51  ;;  %v2501_v13 = vmax.f32 %v1875_v45, %v2452_v6  ;;  %v1827_v14 = vadd.f32 %v4506_v28, %v1778_v38  ;;  %v2453_v9 = vadd.f32 %v4506_v28, %v2404_v40  ;;  %v5307_v6 = vmax.f32 %v5305_v30, %v5306_v31 }
 0x218   :  { %v1679_v58 = vpop.f32.mrf.mxu0  ;;  %v2305_v25 = vpop.f32.mrf.mxu1 }
 0x219   :  { %v2550_v32 = vmax.f32 %v2501_v13, 0.0  ;;  %v1876_v4 = vmax.f32 %v5298_v1, %v1827_v14  ;;  %v1779_v63 = vmul.f32 %v4525_v24, %v1679_v58  ;;  %v2405_v5 = vmul.f32 %v4525_v24, %v2305_v25  ;;  %v5309_v13 = vld [vmem:[#allocation31_spill] sm:$0xff]  ;;  %v4997_v58 = vld [vmem:[%s5130_s5] ss:$0 sm:$0xff] }
 0x21a   :  { %v3212_v27 = vpop.f32.mrf.mxu0  ;;  %v3316_v12 = vpop.f32.mrf.mxu1 }
 0x21b   :  { %2599 = vst [vmem:[%s5132_s7 + $0xf8] sm:$0xff] %v2550_v32  ;;  %v2502_v52 = vmax.f32 %v1876_v4, %v2453_v9  ;;  %v1828_v7 = vadd.f32 %v4506_v28, %v1779_v63  ;;  %v2454_v15 = vadd.f32 %v4506_v28, %v2405_v5 }
 0x21c   :  { %v1684_v49 = vpop.f32.mrf.mxu0  ;;  %v2310_v10 = vpop.f32.mrf.mxu1 }
 0x21d   :  { %v2551_v8 = vmax.f32 %v2502_v52, 0.0  ;;  %v1877_v62 = vmax.f32 %v5301_v61, %v1828_v7  ;;  %v1780_v26 = vmul.f32 %v4525_v24, %v1684_v49  ;;  %v2406_v29 = vmul.f32 %v4525_v24, %v2310_v10  ;;  %v5311_v52 = vld [vmem:[#allocation32_spill] sm:$0xff]  ;;  %v5312_v7 = vld [vmem:[#allocation33_spill] sm:$0xff] }
 0x21e   :  { %v3215_v48 = vpop.f32.mrf.mxu0  ;;  %v3319_v55 = vpop.f32.mrf.mxu1 }
 0x21f   :  { %2600 = vst [vmem:[%s5132_s7 + $0x100] sm:$0xff] %v2551_v8  ;;  %v2503_v50 = vmax.f32 %v1877_v62, %v2454_v15  ;;  %v1829_v11 = vadd.f32 %v4506_v28, %v1780_v26  ;;  %v2455_v18 = vadd.f32 %v4506_v28, %v2406_v29  ;;  %v5313_v15 = vmax.f32 %v5311_v52, %v5312_v7 }
 0x220   :  { %v1687_v19 = vpop.f32.mrf.mxu0  ;;  %v2313_v22 = vpop.f32.mrf.mxu1 }
 0x221   :  { %v2552_v23 = vmax.f32 %v2503_v50, 0.0  ;;  %v1878_v57 = vmax.f32 %v5304_v17, %v1829_v11  ;;  %v1781_v56 = vmul.f32 %v4525_v24, %v1687_v19  ;;  %v2407_v60 = vmul.f32 %v4525_v24, %v2313_v22  ;;  %v5314_v50 = vld [vmem:[#allocation34_spill] sm:$0xff]  ;;  %v5315_v11 = vld [vmem:[#allocation35_spill] sm:$0xff] }
 0x222   :  { %v3216_v41 = vpop.f32.mrf.mxu0  ;;  %v3320_v44 = vpop.f32.mrf.mxu1 }
 0x223   :  { %2601 = vst [vmem:[%s5132_s7 + $0x108] sm:$0xff] %v2552_v23  ;;  %v2504_v20 = vmax.f32 %v1878_v57, %v2455_v18  ;;  %v1830_v21 = vadd.f32 %v4506_v28, %v1781_v56  ;;  %v2456_v59 = vadd.f32 %v4506_v28, %v2407_v60  ;;  %v4987_v28 = vld [vmem:[%s5131_s6] ss:$0 sm:$0xff]  ;;  %v5316_v18 = vmax.f32 %v5314_v50, %v5315_v11 }
 0x224   :  { %v1692_v37 = vpop.f32.mrf.mxu0  ;;  %v2318_v53 = vpop.f32.mrf.mxu1 }
 0x225   :  { %v2553_v54 = vmax.f32 %v2504_v20, 0.0  ;;  %v1879_v16 = vmax.f32 %v5307_v6, %v1830_v21  ;;  %v1782_v39 = vmul.f32 %v4525_v24, %v1692_v37  ;;  %v2408_v51 = vmul.f32 %v4525_v24, %v2318_v53  ;;  %v5308_v24 = vld [vmem:[#allocation30_spill] sm:$0xff]  ;;  %v5317_v20 = vld [vmem:[#allocation36_spill] sm:$0xff]  ;;  %v5318_v21 = vld [vmem:[#allocation37_spill] sm:$0xff] }
 0x226   :  { %v3219_v35 = vpop.f32.mrf.mxu0  ;;  %v3323_v36 = vpop.f32.mrf.mxu1  ;;  %v5310_v14 = vmax.f32 %v5308_v24, %v5309_v13 }
 0x227   :  { %2602 = vst [vmem:[%s5132_s7 + $0x110] sm:$0xff] %v2553_v54  ;;  %v2505_v0 = vmax.f32 %v1879_v16, %v2456_v59  ;;  %v1831_v45 = vadd.f32 %v4987_v28, %v1782_v39  ;;  %v2457_v38 = vadd.f32 %v4987_v28, %v2408_v51  ;;  %v5319_v59 = vmax.f32 %v5317_v20, %v5318_v21 }
 0x228   :  { %v1695_v40 = vpop.f32.mrf.mxu0  ;;  %v2321_v33 = vpop.f32.mrf.mxu1 }
 0x229   :  { %v2554_v34 = vmax.f32 %v2505_v0, 0.0  ;;  %v1880_v9 = vmax.f32 %v5310_v14, %v1831_v45  ;;  %v1783_v25 = vmul.f32 %v4997_v58, %v1695_v40  ;;  %v2409_v32 = vmul.f32 %v4997_v58, %v2321_v33  ;;  %v5320_v0 = vld [vmem:[#allocation38_spill] sm:$0xff]  ;;  %v5321_v45 = vld [vmem:[#allocation39_spill] sm:$0xff] }
 0x22a   :  { %v3220_v46 = vpop.f32.mrf.mxu0  ;;  %v3324_v47 = vpop.f32.mrf.mxu1 }
 0x22b   :  { %2603 = vst [vmem:[%s5132_s7 + $0x118] sm:$0xff] %v2554_v34  ;;  %v2506_v1 = vmax.f32 %v1880_v9, %v2457_v38  ;;  %v1832_v4 = vadd.f32 %v4987_v28, %v1783_v25  ;;  %v2458_v63 = vadd.f32 %v4987_v28, %v2409_v32  ;;  %v5322_v38 = vmax.f32 %v5320_v0, %v5321_v45 }
 0x22c   :  { %v1700_v5 = vpop.f32.mrf.mxu0  ;;  %v2326_v27 = vpop.f32.mrf.mxu1 }
 0x22d   :  { %v2555_v12 = vmax.f32 %v2506_v1, 0.0  ;;  %v1881_v49 = vmax.f32 %v5313_v15, %v1832_v4  ;;  %v1784_v10 = vmul.f32 %v4997_v58, %v1700_v5  ;;  %v2410_v8 = vmul.f32 %v4997_v58, %v2326_v27  ;;  %v5323_v1 = vld [vmem:[#allocation40_spill] sm:$0xff]  ;;  %v5324_v4 = vld [vmem:[#allocation41_spill] sm:$0xff] }
 0x22e   :  { %v3223_v42 = vpop.f32.mrf.mxu0  ;;  %v3327_v43 = vpop.f32.mrf.mxu1 }
 0x22f   :  { %2604 = vst [vmem:[%s5132_s7 + $0x120] sm:$0xff] %v2555_v12  ;;  %v2507_v61 = vmax.f32 %v1881_v49, %v2458_v63  ;;  %v1833_v62 = vadd.f32 %v4987_v28, %v1784_v10  ;;  %v2459_v26 = vadd.f32 %v4987_v28, %v2410_v8  ;;  %v5325_v63 = vmax.f32 %v5323_v1, %v5324_v4 }
 0x230   :  { %v1703_v29 = vpop.f32.mrf.mxu0  ;;  %v2329_v48 = vpop.f32.mrf.mxu1 }
 0x231   :  { %v2556_v55 = vmax.f32 %v2507_v61, 0.0  ;;  %v1882_v19 = vmax.f32 %v5316_v18, %v1833_v62  ;;  %v1785_v22 = vmul.f32 %v4997_v58, %v1703_v29  ;;  %v2411_v23 = vmul.f32 %v4997_v58, %v2329_v48  ;;  %v5326_v61 = vld [vmem:[#allocation42_spill] sm:$0xff]  ;;  %v5327_v62 = vld [vmem:[#allocation43_spill] sm:$0xff] }
 0x232   :  { %v3224_v2 = vpop.f32.mrf.mxu0  ;;  %v3328_v3 = vpop.f32.mrf.mxu1 }
 0x233   :  { %2605 = vst [vmem:[%s5132_s7 + $0x128] sm:$0xff] %v2556_v55  ;;  %v2508_v17 = vmax.f32 %v1882_v19, %v2459_v26  ;;  %v1834_v57 = vadd.f32 %v4987_v28, %v1785_v22  ;;  %v2460_v56 = vadd.f32 %v4987_v28, %v2411_v23  ;;  %v5328_v26 = vmax.f32 %v5326_v61, %v5327_v62 }
 0x234   :  { %v1708_v60 = vpop.f32.mrf.mxu0  ;;  %v2334_v41 = vpop.f32.mrf.mxu1 }
 0x235   :  { %v2557_v44 = vmax.f32 %v2508_v17, 0.0  ;;  %v1883_v37 = vmax.f32 %v5319_v59, %v1834_v57  ;;  %v1786_v53 = vmul.f32 %v4997_v58, %v1708_v60  ;;  %v2412_v54 = vmul.f32 %v4997_v58, %v2334_v41  ;;  %v5329_v17 = vld [vmem:[#allocation44_spill] sm:$0xff]  ;;  %v5330_v57 = vld [vmem:[#allocation45_spill] sm:$0xff] }
 0x236   :  { %v3227_v30 = vpop.f32.mrf.mxu0  ;;  %v3331_v31 = vpop.f32.mrf.mxu1 }
 0x237   :  { %2606 = vst [vmem:[%s5132_s7 + $0x130] sm:$0xff] %v2557_v44  ;;  %v2509_v6 = vmax.f32 %v1883_v37, %v2460_v56  ;;  %v1835_v16 = vadd.f32 %v4987_v28, %v1786_v53  ;;  %v2461_v39 = vadd.f32 %v4987_v28, %v2412_v54  ;;  %v5331_v56 = vmax.f32 %v5329_v17, %v5330_v57 }
 0x238   :  { %v1711_v51 = vpop.f32.mrf.mxu0  ;;  %v2337_v35 = vpop.f32.mrf.mxu1 }
 0x239   :  { %v2558_v36 = vmax.f32 %v2509_v6, 0.0  ;;  %v1884_v40 = vmax.f32 %v5322_v38, %v1835_v16  ;;  %v1787_v33 = vmul.f32 %v4997_v58, %v1711_v51  ;;  %v2413_v34 = vmul.f32 %v4997_v58, %v2337_v35  ;;  %v5332_v6 = vld [vmem:[#allocation46_spill] sm:$0xff]  ;;  %v5333_v16 = vld [vmem:[#allocation47_spill] sm:$0xff] }
 0x23a   :  { %v3228_v24 = vpop.f32.mrf.mxu0  ;;  %v3332_v13 = vpop.f32.mrf.mxu1 }
 0x23b   :  { %2607 = vst [vmem:[%s5132_s7 + $0x138] sm:$0xff] %v2558_v36  ;;  %v2510_v14 = vmax.f32 %v1884_v40, %v2461_v39  ;;  %v1836_v9 = vadd.f32 %v4987_v28, %v1787_v33  ;;  %v2462_v25 = vadd.f32 %v4987_v28, %v2413_v34  ;;  %v5334_v39 = vmax.f32 %v5332_v6, %v5333_v16 }
 0x23c   :  { %v1716_v32 = vpop.f32.mrf.mxu0  ;;  %v2342_v46 = vpop.f32.mrf.mxu1 }
 0x23d   :  { %v2559_v47 = vmax.f32 %v2510_v14, 0.0  ;;  %v1885_v5 = vmax.f32 %v5325_v63, %v1836_v9  ;;  %v1788_v27 = vmul.f32 %v4997_v58, %v1716_v32  ;;  %v2414_v12 = vmul.f32 %v4997_v58, %v2342_v46  ;;  %v5335_v14 = vld [vmem:[#allocation48_spill] sm:$0xff]  ;;  %v5336_v9 = vld [vmem:[#allocation49_spill] sm:$0xff] }
 0x23e   :  { %v3231_v52 = vpop.f32.mrf.mxu0  ;;  %v3335_v7 = vpop.f32.mrf.mxu1 }
 0x23f   :  { %2608 = vst [vmem:[%s5132_s7 + $0x140] sm:$0xff] %v2559_v47  ;;  %v2511_v15 = vmax.f32 %v1885_v5, %v2462_v25  ;;  %v1837_v49 = vadd.f32 %v4987_v28, %v1788_v27  ;;  %v2463_v10 = vadd.f32 %v4987_v28, %v2414_v12  ;;  %v5337_v25 = vmax.f32 %v5335_v14, %v5336_v9 }
 0x240   :  { %v1719_v8 = vpop.f32.mrf.mxu0  ;;  %v2345_v42 = vpop.f32.mrf.mxu1 }
 0x241   :  { %v2560_v43 = vmax.f32 %v2511_v15, 0.0  ;;  %v1886_v29 = vmax.f32 %v5328_v26, %v1837_v49  ;;  %v1789_v48 = vmul.f32 %v4997_v58, %v1719_v8  ;;  %v2415_v55 = vmul.f32 %v4997_v58, %v2345_v42  ;;  %v5338_v15 = vld [vmem:[#allocation50_spill] sm:$0xff]  ;;  %v5339_v49 = vld [vmem:[#allocation51_spill] sm:$0xff] }
 0x242   :  { %v3232_v50 = vpop.f32.mrf.mxu0  ;;  %v3336_v11 = vpop.f32.mrf.mxu1 }
 0x243   :  { %2609 = vst [vmem:[%s5132_s7 + $0x148] sm:$0xff] %v2560_v43  ;;  %v2512_v18 = vmax.f32 %v1886_v29, %v2463_v10  ;;  %v1838_v19 = vadd.f32 %v4987_v28, %v1789_v48  ;;  %v2464_v22 = vadd.f32 %v4987_v28, %v2415_v55  ;;  %v5340_v10 = vmax.f32 %v5338_v15, %v5339_v49 }
 0x244   :  { %v1724_v23 = vpop.f32.mrf.mxu0  ;;  %v2350_v2 = vpop.f32.mrf.mxu1 }
 0x245   :  { %v2561_v3 = vmax.f32 %v2512_v18, 0.0  ;;  %v1887_v60 = vmax.f32 %v5331_v56, %v1838_v19  ;;  %v1790_v41 = vmul.f32 %v4997_v58, %v1724_v23  ;;  %v2416_v44 = vmul.f32 %v4997_v58, %v2350_v2  ;;  %v5341_v18 = vld [vmem:[#allocation52_spill] sm:$0xff]  ;;  %v5342_v19 = vld [vmem:[#allocation53_spill] sm:$0xff] }
 0x246   :  { %v3235_v20 = vpop.f32.mrf.mxu0  ;;  %v3339_v21 = vpop.f32.mrf.mxu1 }
 0x247   :  { %2610 = vst [vmem:[%s5132_s7 + $0x150] sm:$0xff] %v2561_v3  ;;  %v2513_v59 = vmax.f32 %v1887_v60, %v2464_v22  ;;  %v1839_v37 = vadd.f32 %v4987_v28, %v1790_v41  ;;  %v2465_v53 = vadd.f32 %v4987_v28, %v2416_v44  ;;  %v5343_v22 = vmax.f32 %v5341_v18, %v5342_v19 }
 0x248   :  { %v1727_v54 = vpop.f32.mrf.mxu0  ;;  %v2353_v30 = vpop.f32.mrf.mxu1 }
 0x249   :  { %v2562_v31 = vmax.f32 %v2513_v59, 0.0  ;;  %v1888_v51 = vmax.f32 %v5334_v39, %v1839_v37  ;;  %v1791_v35 = vmul.f32 %v4997_v58, %v1727_v54  ;;  %v2417_v36 = vmul.f32 %v4997_v58, %v2353_v30  ;;  %v5344_v59 = vld [vmem:[#allocation54_spill] sm:$0xff]  ;;  %v5345_v37 = vld [vmem:[#allocation55_spill] sm:$0xff] }
 0x24a   :  { %v3236_v0 = vpop.f32.mrf.mxu0  ;;  %v3340_v45 = vpop.f32.mrf.mxu1 }
 0x24b   :  { %2611 = vst [vmem:[%s5132_s7 + $0x158] sm:$0xff] %v2562_v31  ;;  %v2514_v38 = vmax.f32 %v1888_v51, %v2465_v53  ;;  %v1840_v40 = vadd.f32 %v4987_v28, %v1791_v35  ;;  %v2466_v33 = vadd.f32 %v4987_v28, %v2417_v36  ;;  %v5346_v53 = vmax.f32 %v5344_v59, %v5345_v37 }
 0x24c   :  { %v1732_v34 = vpop.f32.mrf.mxu0  ;;  %v2358_v24 = vpop.f32.mrf.mxu1 }
 0x24d   :  { %v2563_v13 = vmax.f32 %v2514_v38, 0.0  ;;  %v1889_v32 = vmax.f32 %v5337_v25, %v1840_v40  ;;  %v1792_v46 = vmul.f32 %v4997_v58, %v1732_v34  ;;  %v2418_v47 = vmul.f32 %v4997_v58, %v2358_v24 }
 0x24e   :  { %v3239_v1 = vpop.f32.mrf.mxu0  ;;  %v3343_v4 = vpop.f32.mrf.mxu1 }
 0x24f   :  { %2612 = vst [vmem:[%s5132_s7 + $0x160] sm:$0xff] %v2563_v13  ;;  %v2515_v63 = vmax.f32 %v1889_v32, %v2466_v33  ;;  %v1841_v5 = vadd.f32 %v4987_v28, %v1792_v46  ;;  %v2467_v27 = vadd.f32 %v4987_v28, %v2418_v47 }
 0x250   :  { %v1735_v12 = vpop.f32.mrf.mxu0  ;;  %v2361_v52 = vpop.f32.mrf.mxu1 }
 0x251   :  { %v2564_v7 = vmax.f32 %v2515_v63, 0.0  ;;  %v1890_v8 = vmax.f32 %v5340_v10, %v1841_v5  ;;  %v1793_v42 = vmul.f32 %v4997_v58, %v1735_v12  ;;  %v2419_v43 = vmul.f32 %v4997_v58, %v2361_v52 }
 0x252   :  { %v3240_v61 = vpop.f32.mrf.mxu0  ;;  %v3344_v62 = vpop.f32.mrf.mxu1 }
 0x253   :  { %2613 = vst [vmem:[%s5132_s7 + $0x168] sm:$0xff] %v2564_v7  ;;  %v2516_v26 = vmax.f32 %v1890_v8, %v2467_v27  ;;  %v1842_v29 = vadd.f32 %v4987_v28, %v1793_v42  ;;  %v2468_v48 = vadd.f32 %v4987_v28, %v2419_v43 }
 0x254   :  { %v1740_v55 = vpop.f32.mrf.mxu0  ;;  %v2366_v50 = vpop.f32.mrf.mxu1 }
 0x255   :  { %v2565_v11 = vmax.f32 %v2516_v26, 0.0  ;;  %v1891_v23 = vmax.f32 %v5343_v22, %v1842_v29  ;;  %v1794_v2 = vmul.f32 %v4997_v58, %v1740_v55  ;;  %v2420_v3 = vmul.f32 %v4997_v58, %v2366_v50 }
 0x256   :  { %v3243_v17 = vpop.f32.mrf.mxu0  ;;  %v3347_v57 = vpop.f32.mrf.mxu1 }
 0x257   :  { %2614 = vst [vmem:[%s5132_s7 + $0x170] sm:$0xff] %v2565_v11  ;;  %v2517_v56 = vmax.f32 %v1891_v23, %v2468_v48  ;;  %v1843_v60 = vadd.f32 %v4987_v28, %v1794_v2  ;;  %v2469_v41 = vadd.f32 %v4987_v28, %v2420_v3 }
 0x258   :  { %v1743_v44 = vpop.f32.mrf.mxu0  ;;  %v2369_v20 = vpop.f32.mrf.mxu1 }
 0x259   :  { %v2566_v21 = vmax.f32 %v2517_v56, 0.0  ;;  %v1892_v54 = vmax.f32 %v5346_v53, %v1843_v60 }
 0x25a   :  { %v3244_v30 = vpop.f32.mrf.mxu0  ;;  %v3348_v58 = vpop.f32.mrf.mxu1 }
 0x25b   :  { %2615 = vst [vmem:[%s5132_s7 + $0x178] sm:$0xff] %v2566_v21  ;;  %v2518_v31 = vmax.f32 %v1892_v54, %v2469_v41 }
 0x25d   :  { %v2567_v6 = vmax.f32 %v2518_v31, 0.0 }
 0x25f   :  { %2616 = vst [vmem:[%s5132_s7 + $0x180] sm:$0xff] %v2567_v6 }

// kernel: convnet_forward.7
= control target key start
LH: loop header
LB: loop body
LE: loop exit
PB: predicated region body
PF: predicated region fallthrough
CT: control target
= control target key end

     0   :  { %v2474_v0 = vmov 0   ;;  %vm391_vm0 = vcmask 130048   ;;  %vm600_vm1 = vcmask 1041408   ;;  %s3173_s4 = inlined_call_operand.vmem [shape: bf16[400,128], index: 4, kind: input, shape index: {}]   ;;  %s3174_s0 = inlined_call_operand.vmem [shape: bf16[98,400], index: 0, kind: input, shape index: {}]   ;;  %s3175_s1 = inlined_call_operand.vmem [shape: bf16[98,400], index: 1, kind: input, shape index: {}]   ;;  %s3176_s2 = inlined_call_operand.vmem [shape: bf16[98,400], index: 2, kind: input, shape index: {}]   ;;  %s3177_s3 = inlined_call_operand.vmem [shape: bf16[98,400], index: 3, kind: input, shape index: {}]   ;;  %s3178_s5 = inlined_call_operand.vmem [shape: f32[1,128], index: 5, kind: input, shape index: {}]   ;;  %s3179_s6 = inlined_call_operand.vmem [shape: f32[1,128], index: 6, kind: input, shape index: {}]   ;;  %s3180_s7 = inlined_call_operand.vmem [shape: f32[1,128], index: 7, kind: input, shape index: {}]   ;;  %s3181_s8 = inlined_call_operand.vmem [shape: f32[1,128], index: 8, kind: output, shape index: {0}]   ;;  %s3182_s9 = inlined_call_operand.vmem [shape: f32[1,128], index: 9, kind: output, shape index: {1}]  }
   0x1   :  { %501 = vmatprep.subr.bf16.mxu1 %v2474_v0  ;;  %v2530_v1 = vld [vmem:[%s3173_s4 + $0x78] sm:$0xff]   ;;  %v2547_v4 = vld [vmem:[%s3173_s4 + $0x70] sm:$0xff]   ;;  %v2565_v7 = vld [vmem:[%s3173_s4 + $0x68] sm:$0xff]  }
   0x2   :  { %v2535_v2 = vld [vmem:[%s3173_s4 + $0xb8] sm:$0xff]   ;;  %2053 = vmatprep.subr.bf16.mxu0 %v2530_v1  ;;  %v2554_v5 = vld [vmem:[%s3173_s4 + $0xb0] sm:$0xff]   ;;  %v2571_v8 = vld [vmem:[%s3173_s4 + $0xa8] sm:$0xff]  }
   0x3   :  { %v2541_v3 = vld [vmem:[%s3173_s4 + $0x38] sm:$0xff]   ;;  %502 = vmatpush1.bf16.msra.mxu1 %v2535_v2  ;;  %v2560_v6 = vld [vmem:[%s3173_s4 + $0x30] sm:$0xff]   ;;  %v2578_v9 = vld [vmem:[%s3173_s4 + $0x28] sm:$0xff]  }
   0x4   :  { %2054 = vmatpush3.bf16.msra.mxu0 %v2541_v3  ;;  %503 = vmatprep.subr.bf16.mxu1 %v2474_v0  ;;  %v2584_v10 = vld [vmem:[%s3173_s4 + $0x60] sm:$0xff]   ;;  %v2603_v13 = vld [vmem:[%s3173_s4 + $0x58] sm:$0xff]   ;;  %v2622_v16 = vld [vmem:[%s3173_s4 + $0x50] sm:$0xff]  }
   0x5   :  { %2055 = vmatprep.subr.bf16.mxu0 %v2547_v4  ;;  %v2590_v11 = vld [vmem:[%s3173_s4 + $0xa0] sm:$0xff]   ;;  %v2609_v14 = vld [vmem:[%s3173_s4 + $0x98] sm:$0xff]   ;;  %v2628_v17 = vld [vmem:[%s3173_s4 + $0x90] sm:$0xff]  }
   0x6   :  { %v2597_v12 = vld [vmem:[%s3173_s4 + $0x20] sm:$0xff]   ;;  %v2616_v15 = vld [vmem:[%s3173_s4 + $0x18] sm:$0xff]   ;;  %v2635_v18 = vld [vmem:[%s3173_s4 + $0x10] sm:$0xff]  }
   0x7   :  { %504 = vmatpush1.bf16.msra.mxu1 %v2554_v5  ;;  %v2641_v19 = vld [vmem:[%s3173_s4 + $0x48] sm:$0xff]   ;;  %v2659_v22 = vld [vmem:[%s3173_s4 + $0x40] sm:$0xff]  }
   0x8   :  { %2056 = vmatpush3.bf16.msra.mxu0 %v2560_v6  ;;  %505 = vmatprep.subr.bf16.mxu1 %v2474_v0  ;;  %v2646_v20 = vld [vmem:[%s3173_s4 + $0x88] sm:$0xff]   ;;  %v2313_v23 = vld [vmem:[%s3174_s0 + $0x4] ss:$16 sps:$4 sm:$0xff]   ;;  %v2311_v27 = vld [vmem:[%s3174_s0] ss:$16 sps:$4 sm:$0xff]  }
   0x9   :  { %2057 = vmatprep.subr.bf16.mxu0 %v2565_v7  ;;  %v2652_v21 = vld [vmem:[%s3173_s4 + $0x8] sm:$0xff]   ;;  %v2669_v24 = vld [vmem:[%s3173_s4 + $0x80] sm:$0xff]   ;;  %445 = vmatprep.mubr.bf16.mxu0 %v2313_v23 }
   0xa   :  { %v2317_v25 = vld [vmem:[%s3174_s0 + $0xc] ss:$16 sps:$4 sm:$0xff]   ;;  %v2679_v26 = vld [vmem:[%s3173_s4] sm:$0xff]   ;;  %v2315_v30 = vld [vmem:[%s3174_s0 + $0x8] ss:$16 sps:$4 sm:$0xff]  }
   0xb   :  { %506 = vmatpush1.bf16.msra.mxu1 %v2571_v8  ;;  %1941 = vmatprep.mubr.msk.bf16.mxu1 %vm391_vm0, %v2317_v25  ;;  %v2690_v28 = vld [vmem:[%s3173_s4 + $0xc0] sm:$0xff]   ;;  %v2321_v31 = vld [vmem:[%s3174_s0 + $0x2c] ss:$16 sps:$4 sm:$0xff]   ;;  %v2323_v34 = vld [vmem:[%s3174_s0 + $0x28] ss:$16 sps:$4 sm:$0xff]  }
   0xc   :  { %2058 = vmatpush3.bf16.msra.mxu0 %v2578_v9  ;;  %507 = vmatprep.subr.bf16.mxu1 %v2474_v0  ;;  %v2318_v29 = vld [vmem:[%s3174_s0 + $0x24] ss:$16 sps:$4 sm:$0xff]   ;;  %v2320_v32 = vld [vmem:[%s3174_s0 + $0x20] ss:$16 sps:$4 sm:$0xff]   ;;  %v2327_v35 = vld [vmem:[%s3174_s0 + $0x4c] ss:$16 sps:$4 sm:$0xff]  }
   0xd   :  { %2059 = vmatprep.subr.bf16.mxu0 %v2584_v10  ;;  %v2324_v33 = vld [vmem:[%s3174_s0 + $0x44] ss:$16 sps:$4 sm:$0xff]   ;;  %v2326_v36 = vld [vmem:[%s3174_s0 + $0x40] ss:$16 sps:$4 sm:$0xff]   ;;  %v2329_v38 = vld [vmem:[%s3174_s0 + $0x48] ss:$16 sps:$4 sm:$0xff]  }
   0xe   :  { %v2330_v37 = vld [vmem:[%s3174_s0 + $0x64] ss:$16 sps:$4 sm:$0xff]   ;;  %v2333_v39 = vld [vmem:[%s3174_s0 + $0x6c] ss:$16 sps:$4 sm:$0xff]   ;;  %v2332_v40 = vld [vmem:[%s3174_s0 + $0x60] ss:$16 sps:$4 sm:$0xff]  }
   0xf   :  { %508 = vmatpush1.bf16.msra.mxu1 %v2590_v11  ;;  %v2336_v41 = vld [vmem:[%s3174_s0 + $0x84] ss:$16 sps:$4 sm:$0xff]   ;;  %v2335_v42 = vld [vmem:[%s3174_s0 + $0x68] ss:$16 sps:$4 sm:$0xff]   ;;  %v2339_v43 = vld [vmem:[%s3174_s0 + $0x8c] ss:$16 sps:$4 sm:$0xff]  }
  0x10   :  { %2060 = vmatpush3.bf16.msra.mxu0 %v2597_v12  ;;  %509 = vmatprep.subr.bf16.mxu1 %v2474_v0  ;;  %v2338_v44 = vld [vmem:[%s3174_s0 + $0x80] ss:$16 sps:$4 sm:$0xff]   ;;  %v2342_v45 = vld [vmem:[%s3174_s0 + $0xa4] ss:$16 sps:$4 sm:$0xff]   ;;  %v2341_v46 = vld [vmem:[%s3174_s0 + $0x88] ss:$16 sps:$4 sm:$0xff]  }
  0x11   :  { %2061 = vmatprep.subr.bf16.mxu0 %v2603_v13  ;;  %v2345_v47 = vld [vmem:[%s3174_s0 + $0xac] ss:$16 sps:$4 sm:$0xff]   ;;  %v112_v48 = vld [vmem:[%s3174_s0 + $0xc0] sm:$0x11]  ;;  %v2347_v52 = vld [vmem:[%s3174_s0 + $0xa8] ss:$16 sps:$4 sm:$0xff]  }
  0x12   :  { %v2344_v49 = vld [vmem:[%s3174_s0 + $0xa0] ss:$16 sps:$4 sm:$0xff]   ;;  %v1913_v50 = vcombine.high %v112_v48, %v112_v48  ;;  %v113_v51 = vld [vmem:[%s3174_s0 + $0xc8] sm:$0x11]  ;;  %v2354_v54 = vld [vmem:[%s3175_s1 + $0x4] ss:$16 sps:$4 sm:$0xff]   ;;  %v1912_v55 = vcombine.low %v112_v48, %v112_v48 }
  0x13   :  { %510 = vmatpush1.bf16.msra.mxu1 %v2609_v14  ;;  %v1915_v53 = vcombine.high %v113_v51, %v113_v51  ;;  %v1914_v56 = vcombine.low %v113_v51, %v113_v51  ;;  %v2357_v57 = vld [vmem:[%s3175_s1 + $0xc] ss:$16 sps:$4 sm:$0xff]   ;;  %v2352_v58 = vld [vmem:[%s3175_s1] ss:$16 sps:$4 sm:$0xff]   ;;  %v2358_v59 = vld [vmem:[%s3175_s1 + $0x24] ss:$16 sps:$4 sm:$0xff]  }
  0x14   :  { %2062 = vmatpush3.bf16.msra.mxu0 %v2616_v15  ;;  %511 = vmatprep.subr.bf16.mxu1 %v2474_v0  ;;  %v2355_v60 = vld [vmem:[%s3175_s1 + $0x8] ss:$16 sps:$4 sm:$0xff]   ;;  %v2361_v61 = vld [vmem:[%s3175_s1 + $0x2c] ss:$16 sps:$4 sm:$0xff]   ;;  %v2360_v62 = vld [vmem:[%s3175_s1 + $0x20] ss:$16 sps:$4 sm:$0xff]  }
  0x15   :  { %2063 = vmatprep.subr.bf16.mxu0 %v2622_v16  ;;  %v2364_v63 = vld [vmem:[%s3175_s1 + $0x44] ss:$16 sps:$4 sm:$0xff]   ;;  %v2363_v23 = vld [vmem:[%s3175_s1 + $0x28] ss:$16 sps:$4 sm:$0xff]   ;;  %v2367_v25 = vld [vmem:[%s3175_s1 + $0x4c] ss:$16 sps:$4 sm:$0xff]  }
  0x16   :  { %v2397_v48 = vld [vmem:[%s3176_s2 + $0xc] ss:$16 sps:$4 sm:$0xff]   ;;  %v2395_v51 = vld [vmem:[%s3176_s2 + $0x8] ss:$16 sps:$4 sm:$0xff]  }
  0x17   :  { %512 = vmatpush1.bf16.msra.mxu1 %v2628_v17 }
  0x18   :  { %2064 = vmatpush3.bf16.msra.mxu0 %v2635_v18  ;;  %513 = vmatprep.subr.bf16.mxu1 %v2474_v0 }
  0x19   :  { %2065 = vmatprep.subr.bf16.mxu0 %v2641_v19 }
  0x1b   :  { %514 = vmatpush1.bf16.msra.mxu1 %v2646_v20 }
  0x1c   :  { %2066 = vmatpush3.bf16.msra.mxu0 %v2652_v21  ;;  %515 = vmatprep.subr.bf16.mxu1 %v2474_v0 }
  0x1d   :  { %2067 = vmatprep.subr.bf16.mxu0 %v2659_v22 }
  0x1f   :  { %516 = vmatpush1.bf16.msra.mxu1 %v2669_v24 }
  0x20   :  { %2068 = vmatpush3.bf16.msra.mxu0 %v2679_v26  ;;  %531 = vmatprep.subr.bf16.mxu1 %v2474_v0 }
  0x21   :  { %2111 = vmatprep.subr.bf16.mxu0 %v2530_v1 }
  0x23   :  { %446 = vmatmul.mubr.bf16.vlgmr.msra.gmra.mxu0 %v2311_v27  ;;  %532 = vmatpush2.bf16.msra.mxu1 %v2690_v28  ;;  %v2366_v27 = vld [vmem:[%s3175_s1 + $0x40] ss:$16 sps:$4 sm:$0xff]  }
  0x24   :  { %2112 = vmatpush3.bf16.msra.mxu0 %v2541_v3  ;;  %905 = vmatprep.subr.bf16.mxu1 %v2474_v0 }
  0x25   :  { %453 = vmatprep.mubr.bf16.mxu0 %v2318_v29  ;;  %2113 = vmatprep.subr.bf16.mxu0 %v2547_v4  ;;  %v2370_v29 = vld [vmem:[%s3175_s1 + $0x64] ss:$16 sps:$4 sm:$0xff]  }
  0x26   :  { %534 = vmatmul.mubr.bf16.vlgmr.msra.gmra.mxu1 %v2315_v30  ;;  %v2369_v30 = vld [vmem:[%s3175_s1 + $0x48] ss:$16 sps:$4 sm:$0xff]  }
  0x27   :  { %906 = vmatpush1.bf16.msra.mxu1 %v2535_v2  ;;  %1942 = vmatprep.mubr.msk.bf16.mxu1 %vm391_vm0, %v2321_v31  ;;  %v2373_v31 = vld [vmem:[%s3175_s1 + $0x6c] ss:$16 sps:$4 sm:$0xff]  }
  0x28   :  { %2114 = vmatpush3.bf16.msra.mxu0 %v2560_v6  ;;  %907 = vmatprep.subr.bf16.mxu1 %v2474_v0 }
  0x29   :  { %2115 = vmatprep.subr.bf16.mxu0 %v2565_v7 }
  0x2b   :  { %454 = vmatmul.mubr.bf16.gmra.mxu0 %v2320_v32  ;;  %908 = vmatpush1.bf16.msra.mxu1 %v2554_v5  ;;  %v2372_v32 = vld [vmem:[%s3175_s1 + $0x60] ss:$16 sps:$4 sm:$0xff]  }
  0x2c   :  { %461 = vmatprep.mubr.bf16.mxu0 %v2324_v33  ;;  %2116 = vmatpush3.bf16.msra.mxu0 %v2578_v9  ;;  %v2376_v33 = vld [vmem:[%s3175_s1 + $0x84] ss:$16 sps:$4 sm:$0xff]  }
  0x2d   :  { %909 = vmatprep.subr.bf16.mxu1 %v2474_v0  ;;  %2117 = vmatprep.subr.bf16.mxu0 %v2584_v10 }
  0x2e   :  { %542 = vmatmul.mubr.bf16.gmra.mxu1 %v2323_v34  ;;  %v2375_v34 = vld [vmem:[%s3175_s1 + $0x68] ss:$16 sps:$4 sm:$0xff]  }
  0x2f   :  { %1943 = vmatprep.mubr.msk.bf16.mxu1 %vm391_vm0, %v2327_v35  ;;  %910 = vmatpush1.bf16.msra.mxu1 %v2571_v8  ;;  %v2379_v35 = vld [vmem:[%s3175_s1 + $0x8c] ss:$16 sps:$4 sm:$0xff]  }
  0x30   :  { %2118 = vmatpush3.bf16.msra.mxu0 %v2597_v12  ;;  %911 = vmatprep.subr.bf16.mxu1 %v2474_v0 }
  0x31   :  { %2119 = vmatprep.subr.bf16.mxu0 %v2603_v13 }
  0x33   :  { %462 = vmatmul.mubr.bf16.gmra.mxu0 %v2326_v36  ;;  %912 = vmatpush1.bf16.msra.mxu1 %v2590_v11  ;;  %v2378_v36 = vld [vmem:[%s3175_s1 + $0x80] ss:$16 sps:$4 sm:$0xff]  }
  0x34   :  { %469 = vmatprep.mubr.bf16.mxu0 %v2330_v37  ;;  %2120 = vmatpush3.bf16.msra.mxu0 %v2616_v15  ;;  %v2382_v37 = vld [vmem:[%s3175_s1 + $0xa4] ss:$16 sps:$4 sm:$0xff]  }
  0x35   :  { %913 = vmatprep.subr.bf16.mxu1 %v2474_v0  ;;  %2121 = vmatprep.subr.bf16.mxu0 %v2622_v16 }
  0x36   :  { %550 = vmatmul.mubr.bf16.gmra.mxu1 %v2329_v38  ;;  %v2381_v38 = vld [vmem:[%s3175_s1 + $0x88] ss:$16 sps:$4 sm:$0xff]  }
  0x37   :  { %1944 = vmatprep.mubr.msk.bf16.mxu1 %vm391_vm0, %v2333_v39  ;;  %914 = vmatpush1.bf16.msra.mxu1 %v2609_v14  ;;  %v2385_v39 = vld [vmem:[%s3175_s1 + $0xac] ss:$16 sps:$4 sm:$0xff]  }
  0x38   :  { %2122 = vmatpush3.bf16.msra.mxu0 %v2635_v18  ;;  %915 = vmatprep.subr.bf16.mxu1 %v2474_v0 }
  0x39   :  { %2123 = vmatprep.subr.bf16.mxu0 %v2641_v19 }
  0x3b   :  { %470 = vmatmul.mubr.bf16.gmra.mxu0 %v2332_v40  ;;  %916 = vmatpush1.bf16.msra.mxu1 %v2628_v17  ;;  %v667_v40 = vld [vmem:[%s3175_s1 + $0xc0] sm:$0x11] }
  0x3c   :  { %477 = vmatprep.mubr.bf16.mxu0 %v2336_v41  ;;  %917 = vmatprep.subr.bf16.mxu1 %v2474_v0  ;;  %v2384_v41 = vld [vmem:[%s3175_s1 + $0xa0] ss:$16 sps:$4 sm:$0xff]  }
  0x3d   :  { %2124 = vmatpush3.bf16.msra.mxu0 %v2652_v21 }
  0x3e   :  { %558 = vmatmul.mubr.bf16.gmra.mxu1 %v2335_v42  ;;  %2125 = vmatprep.subr.bf16.mxu0 %v2659_v22  ;;  %v668_v42 = vld [vmem:[%s3175_s1 + $0xc8] sm:$0x11] }
  0x3f   :  { %1945 = vmatprep.mubr.msk.bf16.mxu1 %vm391_vm0, %v2339_v43  ;;  %918 = vmatpush1.bf16.msra.mxu1 %v2646_v20  ;;  %v2387_v43 = vld [vmem:[%s3175_s1 + $0xa8] ss:$16 sps:$4 sm:$0xff]  }
  0x40   :  { %919 = vmatprep.subr.bf16.mxu1 %v2474_v0 }
  0x41   :  { %2126 = vmatpush3.bf16.msra.mxu0 %v2679_v26 }
  0x42   :  { %2169 = vmatprep.subr.bf16.mxu0 %v2530_v1 }
  0x43   :  { %478 = vmatmul.mubr.bf16.gmra.mxu0 %v2338_v44  ;;  %920 = vmatpush1.bf16.msra.mxu1 %v2669_v24  ;;  %v1975_v44 = vcombine.high %v668_v42, %v668_v42 }
  0x44   :  { %485 = vmatprep.mubr.bf16.mxu0 %v2342_v45  ;;  %935 = vmatprep.subr.bf16.mxu1 %v2474_v0  ;;  %v1972_v45 = vcombine.low %v667_v40, %v667_v40 }
  0x46   :  { %566 = vmatmul.mubr.bf16.gmra.mxu1 %v2341_v46  ;;  %v2394_v46 = vld [vmem:[%s3176_s2 + $0x4] ss:$16 sps:$4 sm:$0xff]  }
  0x47   :  { %1946 = vmatprep.mubr.msk.bf16.mxu1 %vm391_vm0, %v2345_v47  ;;  %936 = vmatpush2.bf16.msra.mxu1 %v2690_v28  ;;  %v1974_v47 = vcombine.low %v668_v42, %v668_v42 }
  0x48   :  { %1308 = vmatprep.subr.bf16.mxu1 %v2474_v0 }
  0x4b   :  { %486 = vmatmul.mubr.bf16.gmra.mxu0 %v2344_v49  ;;  %v2392_v49 = vld [vmem:[%s3176_s2] ss:$16 sps:$4 sm:$0xff]  }
  0x4c   :  { %493 = vmatprep.mubr.bf16.mxu0 %v1913_v50  ;;  %v2398_v50 = vld [vmem:[%s3176_s2 + $0x24] ss:$16 sps:$4 sm:$0xff]  }
  0x4e   :  { %574 = vmatmul.mubr.bf16.gmra.mxu1 %v2347_v52  ;;  %v2401_v52 = vld [vmem:[%s3176_s2 + $0x2c] ss:$16 sps:$4 sm:$0xff]  }
  0x4f   :  { %1947 = vmatprep.mubr.msk.bf16.mxu1 %vm391_vm0, %v1915_v53  ;;  %v2400_v53 = vld [vmem:[%s3176_s2 + $0x20] ss:$16 sps:$4 sm:$0xff]  }
  0x53   :  { %494 = vmatmul.mubr.bf16.gmra.mxu0 %v1912_v55  ;;  %v2438_v55 = vld [vmem:[%s3177_s3 + $0x24] ss:$16 sps:$4 sm:$0xff]  }
  0x54   :  { %849 = vmatprep.mubr.bf16.mxu0 %v2354_v54  ;;  %v2432_v54 = vld [vmem:[%s3177_s3] ss:$16 sps:$4 sm:$0xff]  }
  0x56   :  { %582 = vmatmul.mubr.bf16.gmra.mxu1 %v1914_v56  ;;  %v2435_v56 = vld [vmem:[%s3177_s3 + $0x8] ss:$16 sps:$4 sm:$0xff]  }
  0x57   :  { %1976 = vmatprep.mubr.msk.bf16.mxu1 %vm391_vm0, %v2357_v57  ;;  %v2441_v57 = vld [vmem:[%s3177_s3 + $0x2c] ss:$16 sps:$4 sm:$0xff]  }
  0x5b   :  { %850 = vmatmul.mubr.bf16.vlgmr.msra.gmra.mxu0 %v2352_v58  ;;  %v2440_v58 = vld [vmem:[%s3177_s3 + $0x20] ss:$16 sps:$4 sm:$0xff]  }
  0x5c   :  { %2170 = vmatpush3.bf16.msra.mxu0 %v2541_v3  ;;  %857 = vmatprep.mubr.bf16.mxu0 %v2358_v59  ;;  %v2444_v59 = vld [vmem:[%s3177_s3 + $0x44] ss:$16 sps:$4 sm:$0xff]  }
  0x5d   :  { %2171 = vmatprep.subr.bf16.mxu0 %v2547_v4 }
  0x5e   :  { %938 = vmatmul.mubr.bf16.vlgmr.msra.gmra.mxu1 %v2355_v60  ;;  %v2443_v60 = vld [vmem:[%s3177_s3 + $0x28] ss:$16 sps:$4 sm:$0xff]  }
  0x5f   :  { %1309 = vmatpush1.bf16.msra.mxu1 %v2535_v2  ;;  %1977 = vmatprep.mubr.msk.bf16.mxu1 %vm391_vm0, %v2361_v61  ;;  %v2447_v61 = vld [vmem:[%s3177_s3 + $0x4c] ss:$16 sps:$4 sm:$0xff]  }
  0x60   :  { %2172 = vmatpush3.bf16.msra.mxu0 %v2560_v6  ;;  %1310 = vmatprep.subr.bf16.mxu1 %v2474_v0 }
  0x61   :  { %2173 = vmatprep.subr.bf16.mxu0 %v2565_v7 }
  0x63   :  { %858 = vmatmul.mubr.bf16.gmra.mxu0 %v2360_v62  ;;  %1311 = vmatpush1.bf16.msra.mxu1 %v2554_v5  ;;  %v2446_v62 = vld [vmem:[%s3177_s3 + $0x40] ss:$16 sps:$4 sm:$0xff]  }
  0x64   :  { %865 = vmatprep.mubr.bf16.mxu0 %v2364_v63  ;;  %2174 = vmatpush3.bf16.msra.mxu0 %v2578_v9  ;;  %v2450_v63 = vld [vmem:[%s3177_s3 + $0x64] ss:$16 sps:$4 sm:$0xff]  }
  0x65   :  { %1312 = vmatprep.subr.bf16.mxu1 %v2474_v0  ;;  %2175 = vmatprep.subr.bf16.mxu0 %v2584_v10 }
  0x66   :  { %946 = vmatmul.mubr.bf16.gmra.mxu1 %v2363_v23  ;;  %v2449_v23 = vld [vmem:[%s3177_s3 + $0x48] ss:$16 sps:$4 sm:$0xff]  }
  0x67   :  { %1978 = vmatprep.mubr.msk.bf16.mxu1 %vm391_vm0, %v2367_v25  ;;  %1313 = vmatpush1.bf16.msra.mxu1 %v2571_v8  ;;  %v2453_v25 = vld [vmem:[%s3177_s3 + $0x6c] ss:$16 sps:$4 sm:$0xff]  }
  0x68   :  { %2176 = vmatpush3.bf16.msra.mxu0 %v2597_v12  ;;  %1314 = vmatprep.subr.bf16.mxu1 %v2474_v0 }
  0x69   :  { %2177 = vmatprep.subr.bf16.mxu0 %v2603_v13 }
  0x6b   :  { %866 = vmatmul.mubr.bf16.gmra.mxu0 %v2366_v27  ;;  %1315 = vmatpush1.bf16.msra.mxu1 %v2590_v11  ;;  %v2452_v27 = vld [vmem:[%s3177_s3 + $0x60] ss:$16 sps:$4 sm:$0xff]  }
  0x6c   :  { %873 = vmatprep.mubr.bf16.mxu0 %v2370_v29  ;;  %2178 = vmatpush3.bf16.msra.mxu0 %v2616_v15  ;;  %v2456_v29 = vld [vmem:[%s3177_s3 + $0x84] ss:$16 sps:$4 sm:$0xff]  }
  0x6d   :  { %1316 = vmatprep.subr.bf16.mxu1 %v2474_v0  ;;  %2179 = vmatprep.subr.bf16.mxu0 %v2622_v16 }
  0x6e   :  { %954 = vmatmul.mubr.bf16.gmra.mxu1 %v2369_v30  ;;  %v2455_v30 = vld [vmem:[%s3177_s3 + $0x68] ss:$16 sps:$4 sm:$0xff]  }
  0x6f   :  { %1979 = vmatprep.mubr.msk.bf16.mxu1 %vm391_vm0, %v2373_v31  ;;  %1317 = vmatpush1.bf16.msra.mxu1 %v2609_v14 }
  0x70   :  { %2180 = vmatpush3.bf16.msra.mxu0 %v2635_v18  ;;  %1318 = vmatprep.subr.bf16.mxu1 %v2474_v0 }
  0x71   :  { %2181 = vmatprep.subr.bf16.mxu0 %v2641_v19 }
  0x73   :  { %874 = vmatmul.mubr.bf16.gmra.mxu0 %v2372_v32  ;;  %1319 = vmatpush1.bf16.msra.mxu1 %v2628_v17  ;;  %v2459_v32 = vld [vmem:[%s3177_s3 + $0x8c] ss:$16 sps:$4 sm:$0xff]  }
  0x74   :  { %881 = vmatprep.mubr.bf16.mxu0 %v2376_v33  ;;  %1320 = vmatprep.subr.bf16.mxu1 %v2474_v0 }
  0x75   :  { %2182 = vmatpush3.bf16.msra.mxu0 %v2652_v21 }
  0x76   :  { %962 = vmatmul.mubr.bf16.gmra.mxu1 %v2375_v34  ;;  %2183 = vmatprep.subr.bf16.mxu0 %v2659_v22 }
  0x77   :  { %1980 = vmatprep.mubr.msk.bf16.mxu1 %vm391_vm0, %v2379_v35  ;;  %1321 = vmatpush1.bf16.msra.mxu1 %v2646_v20 }
  0x78   :  { %1322 = vmatprep.subr.bf16.mxu1 %v2474_v0 }
  0x79   :  { %2184 = vmatpush3.bf16.msra.mxu0 %v2679_v26 }
  0x7a   :  { %2227 = vmatprep.subr.bf16.mxu0 %v2530_v1  ;;  %v1973_v1 = vcombine.high %v667_v40, %v667_v40  ;;  %v2462_v40 = vld [vmem:[%s3177_s3 + $0xa4] ss:$16 sps:$4 sm:$0xff]  }
  0x7b   :  { %882 = vmatmul.mubr.bf16.gmra.mxu0 %v2378_v36  ;;  %1323 = vmatpush1.bf16.msra.mxu1 %v2669_v24 }
  0x7c   :  { %889 = vmatprep.mubr.bf16.mxu0 %v2382_v37  ;;  %1338 = vmatprep.subr.bf16.mxu1 %v2474_v0  ;;  %v2458_v37 = vld [vmem:[%s3177_s3 + $0x80] ss:$16 sps:$4 sm:$0xff]  }
  0x7e   :  { %970 = vmatmul.mubr.bf16.gmra.mxu1 %v2381_v38 }
  0x7f   :  { %1981 = vmatprep.mubr.msk.bf16.mxu1 %vm391_vm0, %v2385_v39  ;;  %1339 = vmatpush2.bf16.msra.mxu1 %v2690_v28 }
  0x80   :  { %1711 = vmatprep.subr.bf16.mxu1 %v2474_v0 }
  0x83   :  { %890 = vmatmul.mubr.bf16.gmra.mxu0 %v2384_v41 }
  0x84   :  { %897 = vmatprep.mubr.bf16.mxu0 %v1973_v1 }
  0x86   :  { %978 = vmatmul.mubr.bf16.gmra.mxu1 %v2387_v43  ;;  %v2461_v43 = vld [vmem:[%s3177_s3 + $0x88] ss:$16 sps:$4 sm:$0xff]  }
  0x87   :  { %1982 = vmatprep.mubr.msk.bf16.mxu1 %vm391_vm0, %v1975_v44 }
  0x8b   :  { %898 = vmatmul.mubr.bf16.gmra.mxu0 %v1972_v45  ;;  %v2465_v45 = vld [vmem:[%s3177_s3 + $0xac] ss:$16 sps:$4 sm:$0xff]  }
  0x8c   :  { %1252 = vmatprep.mubr.bf16.mxu0 %v2394_v46 }
  0x8e   :  { %986 = vmatmul.mubr.bf16.gmra.mxu1 %v1974_v47 }
  0x8f   :  { %2011 = vmatprep.mubr.msk.bf16.mxu1 %vm391_vm0, %v2397_v48 }
  0x93   :  { %1253 = vmatmul.mubr.bf16.vlgmr.msra.gmra.mxu0 %v2392_v49  ;;  %v1473_v49 = vld [vmem:[%s3177_s3 + $0xc0] sm:$0x11] }
  0x94   :  { %2228 = vmatpush3.bf16.msra.mxu0 %v2541_v3  ;;  %1260 = vmatprep.mubr.bf16.mxu0 %v2398_v50  ;;  %v2404_v3 = vld [vmem:[%s3176_s2 + $0x44] ss:$16 sps:$4 sm:$0xff]  }
  0x95   :  { %2229 = vmatprep.subr.bf16.mxu0 %v2547_v4  ;;  %v2407_v4 = vld [vmem:[%s3176_s2 + $0x4c] ss:$16 sps:$4 sm:$0xff]  }
  0x96   :  { %1341 = vmatmul.mubr.bf16.vlgmr.msra.gmra.mxu1 %v2395_v51 }
  0x97   :  { %1712 = vmatpush1.bf16.msra.mxu1 %v2535_v2  ;;  %2012 = vmatprep.mubr.msk.bf16.mxu1 %vm391_vm0, %v2401_v52  ;;  %v2403_v2 = vld [vmem:[%s3176_s2 + $0x28] ss:$16 sps:$4 sm:$0xff]  }
  0x98   :  { %2230 = vmatpush3.bf16.msra.mxu0 %v2560_v6  ;;  %1713 = vmatprep.subr.bf16.mxu1 %v2474_v0  ;;  %v2406_v6 = vld [vmem:[%s3176_s2 + $0x40] ss:$16 sps:$4 sm:$0xff]  }
  0x99   :  { %2231 = vmatprep.subr.bf16.mxu0 %v2565_v7  ;;  %v2409_v7 = vld [vmem:[%s3176_s2 + $0x48] ss:$16 sps:$4 sm:$0xff]  }
  0x9b   :  { %1261 = vmatmul.mubr.bf16.gmra.mxu0 %v2400_v53  ;;  %1714 = vmatpush1.bf16.msra.mxu1 %v2554_v5  ;;  %v2410_v5 = vld [vmem:[%s3176_s2 + $0x64] ss:$16 sps:$4 sm:$0xff]  }
  0x9c   :  { %1268 = vmatprep.mubr.bf16.mxu0 %v2404_v3  ;;  %2232 = vmatpush3.bf16.msra.mxu0 %v2578_v9  ;;  %v2412_v9 = vld [vmem:[%s3176_s2 + $0x60] ss:$16 sps:$4 sm:$0xff]  }
  0x9d   :  { %1715 = vmatprep.subr.bf16.mxu1 %v2474_v0  ;;  %2233 = vmatprep.subr.bf16.mxu0 %v2584_v10  ;;  %v2416_v10 = vld [vmem:[%s3176_s2 + $0x84] ss:$16 sps:$4 sm:$0xff]  }
  0x9e   :  { %1349 = vmatmul.mubr.bf16.gmra.mxu1 %v2403_v2 }
  0x9f   :  { %2013 = vmatprep.mubr.msk.bf16.mxu1 %vm391_vm0, %v2407_v4  ;;  %1716 = vmatpush1.bf16.msra.mxu1 %v2571_v8  ;;  %v2413_v8 = vld [vmem:[%s3176_s2 + $0x6c] ss:$16 sps:$4 sm:$0xff]   ;;  %v2464_v4 = vld [vmem:[%s3177_s3 + $0xa0] ss:$16 sps:$4 sm:$0xff]  }
  0xa0   :  { %2234 = vmatpush3.bf16.msra.mxu0 %v2597_v12  ;;  %1717 = vmatprep.subr.bf16.mxu1 %v2474_v0  ;;  %v2419_v12 = vld [vmem:[%s3176_s2 + $0x8c] ss:$16 sps:$4 sm:$0xff]  }
  0xa1   :  { %2235 = vmatprep.subr.bf16.mxu0 %v2603_v13  ;;  %v2418_v13 = vld [vmem:[%s3176_s2 + $0x80] ss:$16 sps:$4 sm:$0xff]  }
  0xa3   :  { %1269 = vmatmul.mubr.bf16.gmra.mxu0 %v2406_v6  ;;  %1718 = vmatpush1.bf16.msra.mxu1 %v2590_v11  ;;  %v2415_v11 = vld [vmem:[%s3176_s2 + $0x68] ss:$16 sps:$4 sm:$0xff]  }
  0xa4   :  { %1276 = vmatprep.mubr.bf16.mxu0 %v2410_v5  ;;  %2236 = vmatpush3.bf16.msra.mxu0 %v2616_v15  ;;  %v2421_v15 = vld [vmem:[%s3176_s2 + $0x88] ss:$16 sps:$4 sm:$0xff]  }
  0xa5   :  { %1719 = vmatprep.subr.bf16.mxu1 %v2474_v0  ;;  %2237 = vmatprep.subr.bf16.mxu0 %v2622_v16  ;;  %v2425_v16 = vld [vmem:[%s3176_s2 + $0xac] ss:$16 sps:$4 sm:$0xff]  }
  0xa6   :  { %1357 = vmatmul.mubr.bf16.gmra.mxu1 %v2409_v7 }
  0xa7   :  { %2014 = vmatprep.mubr.msk.bf16.mxu1 %vm391_vm0, %v2413_v8  ;;  %1720 = vmatpush1.bf16.msra.mxu1 %v2609_v14  ;;  %v2422_v14 = vld [vmem:[%s3176_s2 + $0xa4] ss:$16 sps:$4 sm:$0xff]   ;;  %v2043_v8 = vcombine.high %v1473_v49, %v1473_v49 }
  0xa8   :  { %2238 = vmatpush3.bf16.msra.mxu0 %v2635_v18  ;;  %1721 = vmatprep.subr.bf16.mxu1 %v2474_v0  ;;  %v2424_v18 = vld [vmem:[%s3176_s2 + $0xa0] ss:$16 sps:$4 sm:$0xff]  }
  0xa9   :  { %2239 = vmatprep.subr.bf16.mxu0 %v2641_v19 }
  0xab   :  { %1277 = vmatmul.mubr.bf16.gmra.mxu0 %v2412_v9  ;;  %1722 = vmatpush1.bf16.msra.mxu1 %v2628_v17  ;;  %v1070_v17 = vld [vmem:[%s3176_s2 + $0xc0] sm:$0x11]  ;;  %v1474_v9 = vld [vmem:[%s3177_s3 + $0xc8] sm:$0x11] }
  0xac   :  { %1284 = vmatprep.mubr.bf16.mxu0 %v2416_v10  ;;  %1723 = vmatprep.subr.bf16.mxu1 %v2474_v0  ;;  %v2008_v19 = vcombine.high %v1070_v17, %v1070_v17 }
  0xad   :  { %2240 = vmatpush3.bf16.msra.mxu0 %v2652_v21 }
  0xae   :  { %1365 = vmatmul.mubr.bf16.gmra.mxu1 %v2415_v11  ;;  %2241 = vmatprep.subr.bf16.mxu0 %v2659_v22  ;;  %v2007_v22 = vcombine.low %v1070_v17, %v1070_v17  ;;  %v2045_v17 = vcombine.high %v1474_v9, %v1474_v9 }
  0xaf   :  { %2015 = vmatprep.mubr.msk.bf16.mxu1 %vm391_vm0, %v2419_v12  ;;  %1724 = vmatpush1.bf16.msra.mxu1 %v2646_v20  ;;  %v1071_v20 = vld [vmem:[%s3176_s2 + $0xc8] sm:$0x11] }
  0xb0   :  { %1725 = vmatprep.subr.bf16.mxu1 %v2474_v0  ;;  %v2010_v21 = vcombine.high %v1071_v20, %v1071_v20 }
  0xb1   :  { %2242 = vmatpush3.bf16.msra.mxu0 %v2679_v26  ;;  %v2009_v26 = vcombine.low %v1071_v20, %v1071_v20 }
  0xb3   :  { %1285 = vmatmul.mubr.bf16.gmra.mxu0 %v2418_v13  ;;  %1726 = vmatpush1.bf16.msra.mxu1 %v2669_v24  ;;  %v2434_v24 = vld [vmem:[%s3177_s3 + $0x4] ss:$16 sps:$4 sm:$0xff]  }
  0xb4   :  { %1292 = vmatprep.mubr.bf16.mxu0 %v2422_v14  ;;  %1741 = vmatprep.subr.bf16.mxu1 %v2474_v0  ;;  %v2427_v0 = vld [vmem:[%s3176_s2 + $0xa8] ss:$16 sps:$4 sm:$0xff]  }
  0xb6   :  { %1373 = vmatmul.mubr.bf16.gmra.mxu1 %v2421_v15  ;;  %v2467_v15 = vld [vmem:[%s3177_s3 + $0xa8] ss:$16 sps:$4 sm:$0xff]  }
  0xb7   :  { %2016 = vmatprep.mubr.msk.bf16.mxu1 %vm391_vm0, %v2425_v16  ;;  %1742 = vmatpush2.bf16.msra.mxu1 %v2690_v28  ;;  %v2437_v28 = vld [vmem:[%s3177_s3 + $0xc] ss:$16 sps:$4 sm:$0xff]  }
  0xbb   :  { %1293 = vmatmul.mubr.bf16.gmra.mxu0 %v2424_v18 }
  0xbc   :  { %1300 = vmatprep.mubr.bf16.mxu0 %v2008_v19 }
  0xbe   :  { %1381 = vmatmul.mubr.bf16.gmra.mxu1 %v2427_v0 }
  0xbf   :  { %2017 = vmatprep.mubr.msk.bf16.mxu1 %vm391_vm0, %v2010_v21 }
  0xc3   :  { %1301 = vmatmul.mubr.bf16.gmra.mxu0 %v2007_v22 }
  0xc4   :  { %1655 = vmatprep.mubr.bf16.mxu0 %v2434_v24 }
  0xc6   :  { %1389 = vmatmul.mubr.bf16.gmra.mxu1 %v2009_v26 }
  0xc7   :  { %2046 = vmatprep.mubr.msk.bf16.mxu1 %vm391_vm0, %v2437_v28 }
  0xcb   :  { %1656 = vmatmul.mubr.bf16.vlgmr.msra.gmra.mxu0 %v2432_v54  ;;  %v2042_v54 = vcombine.low %v1473_v49, %v1473_v49 }
  0xcc   :  { %1663 = vmatprep.mubr.bf16.mxu0 %v2438_v55 }
  0xce   :  { %1744 = vmatmul.mubr.bf16.vlgmr.msra.gmra.mxu1 %v2435_v56 }
  0xcf   :  { %2047 = vmatprep.mubr.msk.bf16.mxu1 %vm391_vm0, %v2441_v57 }
  0xd3   :  { %1664 = vmatmul.mubr.bf16.gmra.mxu0 %v2440_v58 }
  0xd4   :  { %1671 = vmatprep.mubr.bf16.mxu0 %v2444_v59 }
  0xd6   :  { %1752 = vmatmul.mubr.bf16.gmra.mxu1 %v2443_v60 }
  0xd7   :  { %2048 = vmatprep.mubr.msk.bf16.mxu1 %vm391_vm0, %v2447_v61 }
  0xdb   :  { %1672 = vmatmul.mubr.bf16.gmra.mxu0 %v2446_v62 }
  0xdc   :  { %1679 = vmatprep.mubr.bf16.mxu0 %v2450_v63  ;;  %v2044_v63 = vcombine.low %v1474_v9, %v1474_v9 }
  0xde   :  { %1760 = vmatmul.mubr.bf16.gmra.mxu1 %v2449_v23 }
  0xdf   :  { %2049 = vmatprep.mubr.msk.bf16.mxu1 %vm391_vm0, %v2453_v25 }
  0xe3   :  { %v2069_v31 = vpop.f32.mrf.mxu0  ;;  %1680 = vmatmul.mubr.bf16.gmra.mxu0 %v2452_v27 }
  0xe4   :  { %1687 = vmatprep.mubr.bf16.mxu0 %v2456_v29 }
  0xe5   :  { %v2070_v33 = vpop.f32.mrf.mxu0 }
  0xe6   :  { %v2071_v34 = vadd.f32 %v2070_v33, %v2069_v31  ;;  %v535_v35 = vpop.f32.mrf.mxu1  ;;  %1768 = vmatmul.mubr.bf16.gmra.mxu1 %v2455_v30 }
  0xe7   :  { %v2072_v36 = vpop.f32.mrf.mxu0  ;;  %2050 = vmatprep.mubr.msk.bf16.mxu1 %vm391_vm0, %v2459_v32 }
  0xe8   :  { %v536_v38 = vadd.f32 %v2071_v34, %v535_v35  ;;  %v537_v39 = vpop.f32.mrf.mxu1 }
  0xe9   :  { %v2073_v41 = vpop.f32.mrf.mxu0 }
  0xea   :  { %v2074_v1 = vadd.f32 %v2073_v41, %v2072_v36  ;;  %v538_v42 = vpop.f32.mrf.mxu1  ;;  %v610_v50 = vmul.f32 %v536_v38, %v536_v38 }
  0xeb   :  { %v2075_v44 = vpop.f32.mrf.mxu0  ;;  %1688 = vmatmul.mubr.bf16.gmra.mxu0 %v2458_v37 }
  0xec   :  { %v539_v46 = vadd.f32 %v2074_v1, %v538_v42  ;;  %v540_v47 = vpop.f32.mrf.mxu1  ;;  %1695 = vmatprep.mubr.bf16.mxu0 %v2462_v40 }
  0xed   :  { %v2076_v48 = vpop.f32.mrf.mxu0 }
  0xee   :  { %v589_v51 = vadd.f32 %v539_v46, %v536_v38  ;;  %v611_v52 = vmul.f32 %v539_v46, %v539_v46  ;;  %v2077_v53 = vadd.f32 %v2076_v48, %v2075_v44  ;;  %v543_v3 = vpop.f32.mrf.mxu1  ;;  %1776 = vmatmul.mubr.bf16.gmra.mxu1 %v2461_v43 }
  0xef   :  { %v2078_v2 = vpop.f32.mrf.mxu0  ;;  %2051 = vmatprep.mubr.msk.bf16.mxu1 %vm391_vm0, %v2465_v45 }
  0xf0   :  { %v623_v6 = vadd.f32 %v611_v52, %v610_v50  ;;  %v544_v5 = vadd.f32 %v2077_v53, %v543_v3  ;;  %v545_v7 = vpop.f32.mrf.mxu1 }
  0xf1   :  { %v2079_v10 = vpop.f32.mrf.mxu0 }
  0xf2   :  { %v590_v11 = vadd.f32 %v589_v51, %v544_v5  ;;  %v612_v12 = vmul.f32 %v544_v5, %v544_v5  ;;  %v2080_v13 = vadd.f32 %v2079_v10, %v2078_v2  ;;  %v546_v14 = vpop.f32.mrf.mxu1 }
  0xf3   :  { %v2081_v16 = vpop.f32.mrf.mxu0  ;;  %1696 = vmatmul.mubr.bf16.gmra.mxu0 %v2464_v4 }
  0xf4   :  { %v624_v18 = vadd.f32 %v623_v6, %v612_v12  ;;  %v547_v19 = vadd.f32 %v2080_v13, %v546_v14  ;;  %v548_v20 = vpop.f32.mrf.mxu1  ;;  %1703 = vmatprep.mubr.bf16.mxu0 %v2043_v8 }
  0xf5   :  { %v2082_v0 = vpop.f32.mrf.mxu0 }
  0xf6   :  { %v591_v21 = vadd.f32 %v590_v11, %v547_v19  ;;  %v613_v22 = vmul.f32 %v547_v19, %v547_v19  ;;  %v2083_v24 = vadd.f32 %v2082_v0, %v2081_v16  ;;  %v551_v26 = vpop.f32.mrf.mxu1  ;;  %1784 = vmatmul.mubr.bf16.gmra.mxu1 %v2467_v15 }
  0xf7   :  { %v2084_v28 = vpop.f32.mrf.mxu0  ;;  %2052 = vmatprep.mubr.msk.bf16.mxu1 %vm391_vm0, %v2045_v17 }
  0xf8   :  { %v625_v55 = vadd.f32 %v624_v18, %v613_v22  ;;  %v552_v56 = vadd.f32 %v2083_v24, %v551_v26  ;;  %v553_v57 = vpop.f32.mrf.mxu1 }
  0xf9   :  { %v2085_v58 = vpop.f32.mrf.mxu0 }
  0xfa   :  { %v592_v59 = vadd.f32 %v591_v21, %v552_v56  ;;  %v614_v60 = vmul.f32 %v552_v56, %v552_v56  ;;  %v2086_v61 = vadd.f32 %v2085_v58, %v2084_v28  ;;  %v554_v62 = vpop.f32.mrf.mxu1 }
  0xfb   :  { %v2087_v23 = vpop.f32.mrf.mxu0  ;;  %1704 = vmatmul.mubr.bf16.gmra.mxu0 %v2042_v54 }
  0xfc   :  { %v626_v25 = vadd.f32 %v625_v55, %v614_v60  ;;  %v555_v27 = vadd.f32 %v2086_v61, %v554_v62  ;;  %v556_v29 = vpop.f32.mrf.mxu1 }
  0xfd   :  { %v2088_v30 = vpop.f32.mrf.mxu0 }
  0xfe   :  { %v593_v31 = vadd.f32 %v592_v59, %v555_v27  ;;  %v615_v32 = vmul.f32 %v555_v27, %v555_v27  ;;  %v2089_v33 = vadd.f32 %v2088_v30, %v2087_v23  ;;  %v559_v34 = vpop.f32.mrf.mxu1  ;;  %1792 = vmatmul.mubr.bf16.gmra.mxu1 %v2044_v63 }
  0xff   :  { %v2090_v35 = vpop.f32.mrf.mxu0 }
 0x100   :  { %v627_v36 = vadd.f32 %v626_v25, %v615_v32  ;;  %v560_v37 = vadd.f32 %v2089_v33, %v559_v34  ;;  %v561_v38 = vpop.f32.mrf.mxu1 }
 0x101   :  { %v2091_v39 = vpop.f32.mrf.mxu0 }
 0x102   :  { %v594_v40 = vadd.f32 %v593_v31, %v560_v37  ;;  %v616_v41 = vmul.f32 %v560_v37, %v560_v37  ;;  %v2092_v1 = vadd.f32 %v2091_v39, %v2090_v35  ;;  %v562_v42 = vpop.f32.mrf.mxu1 }
 0x103   :  { %v2093_v43 = vpop.f32.mrf.mxu0 }
 0x104   :  { %v628_v44 = vadd.f32 %v627_v36, %v616_v41  ;;  %v563_v45 = vadd.f32 %v2092_v1, %v562_v42  ;;  %v564_v46 = vpop.f32.mrf.mxu1 }
 0x105   :  { %v2094_v47 = vpop.f32.mrf.mxu0 }
 0x106   :  { %v595_v48 = vadd.f32 %v594_v40, %v563_v45  ;;  %v617_v49 = vmul.f32 %v563_v45, %v563_v45  ;;  %v2095_v50 = vadd.f32 %v2094_v47, %v2093_v43  ;;  %v567_v51 = vpop.f32.mrf.mxu1 }
 0x107   :  { %v2096_v52 = vpop.f32.mrf.mxu0 }
 0x108   :  { %v629_v53 = vadd.f32 %v628_v44, %v617_v49  ;;  %v568_v3 = vadd.f32 %v2095_v50, %v567_v51  ;;  %v569_v2 = vpop.f32.mrf.mxu1 }
 0x109   :  { %v2097_v4 = vpop.f32.mrf.mxu0 }
 0x10a   :  { %v596_v6 = vadd.f32 %v595_v48, %v568_v3  ;;  %v618_v5 = vmul.f32 %v568_v3, %v568_v3  ;;  %v2098_v7 = vadd.f32 %v2097_v4, %v2096_v52  ;;  %v570_v8 = vpop.f32.mrf.mxu1 }
 0x10b   :  { %v2099_v9 = vpop.f32.mrf.mxu0 }
 0x10c   :  { %v630_v10 = vadd.f32 %v629_v53, %v618_v5  ;;  %v571_v11 = vadd.f32 %v2098_v7, %v570_v8  ;;  %v572_v12 = vpop.f32.mrf.mxu1 }
 0x10d   :  { %v2100_v13 = vpop.f32.mrf.mxu0 }
 0x10e   :  { %v597_v14 = vadd.f32 %v596_v6, %v571_v11  ;;  %v619_v15 = vmul.f32 %v571_v11, %v571_v11  ;;  %v2101_v16 = vadd.f32 %v2100_v13, %v2099_v9  ;;  %v575_v17 = vpop.f32.mrf.mxu1 }
 0x10f   :  { %v2102_v18 = vpop.f32.mrf.mxu0 }
 0x110   :  { %v631_v19 = vadd.f32 %v630_v10, %v619_v15  ;;  %v576_v20 = vadd.f32 %v2101_v16, %v575_v17  ;;  %v577_v0 = vpop.f32.mrf.mxu1 }
 0x111   :  { %v2103_v21 = vpop.f32.mrf.mxu0 }
 0x112   :  { %v598_v22 = vadd.f32 %v597_v14, %v576_v20  ;;  %v620_v24 = vmul.f32 %v576_v20, %v576_v20  ;;  %v2104_v26 = vadd.f32 %v2103_v21, %v2102_v18  ;;  %v578_v28 = vpop.f32.mrf.mxu1 }
 0x113   :  { %v2105_v54 = vpop.f32.mrf.mxu0 }
 0x114   :  { %v632_v55 = vadd.f32 %v631_v19, %v620_v24  ;;  %v579_v56 = vadd.f32 %v2104_v26, %v578_v28  ;;  %v580_v57 = vpop.f32.mrf.mxu1 }
 0x115   :  { %v2106_v58 = vpop.f32.mrf.mxu0 }
 0x116   :  { %v599_v59 = vadd.f32 %v598_v22, %v579_v56  ;;  %v621_v60 = vmul.f32 %v579_v56, %v579_v56  ;;  %v2107_v61 = vadd.f32 %v2106_v58, %v2105_v54  ;;  %v583_v62 = vpop.f32.mrf.mxu1 }
 0x117   :  { %v2108_v63 = vpop.f32.mrf.mxu0 }
 0x118   :  { %v633_v23 = vadd.f32 %v632_v55, %v621_v60  ;;  %v584_v25 = vadd.f32 %v2107_v61, %v583_v62  ;;  %v585_v27 = vpop.f32.mrf.mxu1 }
 0x119   :  { %v2109_v29 = vpop.f32.mrf.mxu0 }
 0x11a   :  { %v601_v30 = vsel %vm600_vm1, %v584_v25, 0.0  ;;  %v622_v31 = vmul.f32 %v584_v25, %v584_v25  ;;  %v586_v32 = vpop.f32.mrf.mxu1 }
 0x11b   :  { %v3128_v33 = vadd.f32 %v601_v30, %v599_v59  ;;  %v2127_v34 = vpop.f32.mrf.mxu0 }
 0x11c   :  { %v634_v35 = vsel %vm600_vm1, %v622_v31, 0.0  ;;  %v587_v36 = vpop.f32.mrf.mxu1 }
 0x11d   :  { %v3131_v37 = vadd.f32 %v634_v35, %v633_v23  ;;  %v2128_v38 = vpop.f32.mrf.mxu0 }
 0x11e   :  { %v2129_v39 = vadd.f32 %v2128_v38, %v2127_v34  ;;  %v939_v40 = vpop.f32.mrf.mxu1 }
 0x11f   :  { %v2130_v41 = vpop.f32.mrf.mxu0 }
 0x120   :  { %v940_v1 = vadd.f32 %v2129_v39, %v939_v40  ;;  %v941_v42 = vpop.f32.mrf.mxu1 }
 0x121   :  { %v2131_v43 = vpop.f32.mrf.mxu0 }
 0x122   :  { %v2132_v44 = vadd.f32 %v2131_v43, %v2130_v41  ;;  %v942_v45 = vpop.f32.mrf.mxu1  ;;  %v1013_v50 = vmul.f32 %v940_v1, %v940_v1 }
 0x123   :  { %v2133_v46 = vpop.f32.mrf.mxu0 }
 0x124   :  { %v943_v47 = vadd.f32 %v2132_v44, %v942_v45  ;;  %v944_v48 = vpop.f32.mrf.mxu1 }
 0x125   :  { %v2134_v49 = vpop.f32.mrf.mxu0 }
 0x126   :  { %v993_v51 = vadd.f32 %v943_v47, %v940_v1  ;;  %v1014_v52 = vmul.f32 %v943_v47, %v943_v47  ;;  %v2135_v53 = vadd.f32 %v2134_v49, %v2133_v46  ;;  %v947_v3 = vpop.f32.mrf.mxu1 }
 0x127   :  { %v2136_v2 = vpop.f32.mrf.mxu0 }
 0x128   :  { %v1026_v4 = vadd.f32 %v1014_v52, %v1013_v50  ;;  %v948_v6 = vadd.f32 %v2135_v53, %v947_v3  ;;  %v949_v5 = vpop.f32.mrf.mxu1  ;;  %v2475_v52 = vmov 0.0  }
 0x129   :  { %v2137_v7 = vpop.f32.mrf.mxu0  ;;  %36 = vst [vmem:[#allocation2] sm:$0x1] %v2475_v52  ;;  %37 = vst [vmem:[#allocation3] sm:$0x1] %v2475_v52 }
 0x12a   :  { %v994_v8 = vadd.f32 %v993_v51, %v948_v6  ;;  %v1015_v9 = vmul.f32 %v948_v6, %v948_v6  ;;  %v2138_v10 = vadd.f32 %v2137_v7, %v2136_v2  ;;  %v950_v11 = vpop.f32.mrf.mxu1 }
 0x12b   :  { %v2139_v12 = vpop.f32.mrf.mxu0 }
 0x12c   :  { %v1027_v13 = vadd.f32 %v1026_v4, %v1015_v9  ;;  %v951_v14 = vadd.f32 %v2138_v10, %v950_v11  ;;  %v952_v15 = vpop.f32.mrf.mxu1 }
 0x12d   :  { %v2140_v16 = vpop.f32.mrf.mxu0 }
 0x12e   :  { %v995_v17 = vadd.f32 %v994_v8, %v951_v14  ;;  %v1016_v18 = vmul.f32 %v951_v14, %v951_v14  ;;  %v2141_v19 = vadd.f32 %v2140_v16, %v2139_v12  ;;  %v955_v20 = vpop.f32.mrf.mxu1 }
 0x12f   :  { %v2142_v0 = vpop.f32.mrf.mxu0 }
 0x130   :  { %v1028_v21 = vadd.f32 %v1027_v13, %v1016_v18  ;;  %v956_v22 = vadd.f32 %v2141_v19, %v955_v20  ;;  %v957_v24 = vpop.f32.mrf.mxu1 }
 0x131   :  { %v2143_v26 = vpop.f32.mrf.mxu0 }
 0x132   :  { %v996_v28 = vadd.f32 %v995_v17, %v956_v22  ;;  %v1017_v54 = vmul.f32 %v956_v22, %v956_v22  ;;  %v2144_v55 = vadd.f32 %v2143_v26, %v2142_v0  ;;  %v958_v56 = vpop.f32.mrf.mxu1  ;;  %v603_v22 = vrot.slane %v3128_v33, 4 }
 0x133   :  { %v2145_v57 = vpop.f32.mrf.mxu0 }
 0x134   :  { %v1029_v58 = vadd.f32 %v1028_v21, %v1017_v54  ;;  %v959_v59 = vadd.f32 %v2144_v55, %v958_v56  ;;  %v960_v60 = vpop.f32.mrf.mxu1  ;;  %v636_v55 = vrot.slane %v3131_v37, 4 }
 0x135   :  { %v2146_v61 = vpop.f32.mrf.mxu0 }
 0x136   :  { %v997_v62 = vadd.f32 %v996_v28, %v959_v59  ;;  %v1018_v63 = vmul.f32 %v959_v59, %v959_v59  ;;  %v2147_v23 = vadd.f32 %v2146_v61, %v2145_v57  ;;  %v963_v25 = vpop.f32.mrf.mxu1  ;;  %v604_v61 = vadd.f32 %v603_v22, %v3128_v33 }
 0x137   :  { %v2148_v27 = vpop.f32.mrf.mxu0 }
 0x138   :  { %v1030_v29 = vadd.f32 %v1029_v58, %v1018_v63  ;;  %v964_v30 = vadd.f32 %v2147_v23, %v963_v25  ;;  %v965_v31 = vpop.f32.mrf.mxu1 }
 0x139   :  { %v2149_v32 = vpop.f32.mrf.mxu0 }
 0x13a   :  { %v998_v34 = vadd.f32 %v997_v62, %v964_v30  ;;  %v1019_v35 = vmul.f32 %v964_v30, %v964_v30  ;;  %v2150_v36 = vadd.f32 %v2149_v32, %v2148_v27  ;;  %v966_v38 = vpop.f32.mrf.mxu1  ;;  %v637_v27 = vadd.f32 %v636_v55, %v3131_v37 }
 0x13b   :  { %v2151_v39 = vpop.f32.mrf.mxu0 }
 0x13c   :  { %v1031_v40 = vadd.f32 %v1030_v29, %v1019_v35  ;;  %v967_v41 = vadd.f32 %v2150_v36, %v966_v38  ;;  %v968_v1 = vpop.f32.mrf.mxu1 }
 0x13d   :  { %v2152_v42 = vpop.f32.mrf.mxu0 }
 0x13e   :  { %v999_v43 = vadd.f32 %v998_v34, %v967_v41  ;;  %v1020_v44 = vmul.f32 %v967_v41, %v967_v41  ;;  %v2153_v45 = vadd.f32 %v2152_v42, %v2151_v39  ;;  %v971_v46 = vpop.f32.mrf.mxu1  ;;  %v605_v34 = vrot.slane %v604_v61, 2 }
 0x13f   :  { %v2154_v47 = vpop.f32.mrf.mxu0 }
 0x140   :  { %v1032_v48 = vadd.f32 %v1031_v40, %v1020_v44  ;;  %v972_v49 = vadd.f32 %v2153_v45, %v971_v46  ;;  %v973_v50 = vpop.f32.mrf.mxu1  ;;  %v638_v40 = vrot.slane %v637_v27, 2  ;;  %v606_v44 = vadd.f32 %v605_v34, %v604_v61 }
 0x141   :  { %v2155_v51 = vpop.f32.mrf.mxu0 }
 0x142   :  { %v1000_v53 = vadd.f32 %v999_v43, %v972_v49  ;;  %v1021_v3 = vmul.f32 %v972_v49, %v972_v49  ;;  %v2156_v2 = vadd.f32 %v2155_v51, %v2154_v47  ;;  %v974_v4 = vpop.f32.mrf.mxu1  ;;  %v639_v49 = vadd.f32 %v638_v40, %v637_v27 }
 0x143   :  { %v2157_v6 = vpop.f32.mrf.mxu0 }
 0x144   :  { %v1033_v5 = vadd.f32 %v1032_v48, %v1021_v3  ;;  %v975_v7 = vadd.f32 %v2156_v2, %v974_v4  ;;  %v976_v8 = vpop.f32.mrf.mxu1  ;;  %v607_v2 = vrot.slane %v606_v44, 1 }
 0x145   :  { %v2158_v9 = vpop.f32.mrf.mxu0 }
 0x146   :  { %v1001_v10 = vadd.f32 %v1000_v53, %v975_v7  ;;  %v1022_v11 = vmul.f32 %v975_v7, %v975_v7  ;;  %v2159_v12 = vadd.f32 %v2158_v9, %v2157_v6  ;;  %v979_v13 = vpop.f32.mrf.mxu1  ;;  %v640_v9 = vrot.slane %v639_v49, 1 }
 0x147   :  { %v2160_v14 = vpop.f32.mrf.mxu0 }
 0x148   :  { %v1034_v15 = vadd.f32 %v1033_v5, %v1022_v11  ;;  %v980_v16 = vadd.f32 %v2159_v12, %v979_v13  ;;  %v981_v17 = vpop.f32.mrf.mxu1 }
 0x149   :  { %v2161_v18 = vpop.f32.mrf.mxu0 }
 0x14a   :  { %v1002_v19 = vadd.f32 %v1001_v10, %v980_v16  ;;  %v1023_v20 = vmul.f32 %v980_v16, %v980_v16  ;;  %v2162_v0 = vadd.f32 %v2161_v18, %v2160_v14  ;;  %v982_v21 = vpop.f32.mrf.mxu1  ;;  %v608_v18 = vadd.f32 %v607_v2, %v606_v44 }
 0x14b   :  { %v2163_v24 = vpop.f32.mrf.mxu0 }
 0x14c   :  { %v1035_v26 = vadd.f32 %v1034_v15, %v1023_v20  ;;  %v983_v28 = vadd.f32 %v2162_v0, %v982_v21  ;;  %v984_v54 = vpop.f32.mrf.mxu1 }
 0x14d   :  { %v2164_v56 = vpop.f32.mrf.mxu0 }
 0x14e   :  { %v1003_v57 = vadd.f32 %v1002_v19, %v983_v28  ;;  %v1024_v58 = vmul.f32 %v983_v28, %v983_v28  ;;  %v2165_v59 = vadd.f32 %v2164_v56, %v2163_v24  ;;  %v987_v60 = vpop.f32.mrf.mxu1 }
 0x14f   :  { %v2166_v62 = vpop.f32.mrf.mxu0 }
 0x150   :  { %v1036_v63 = vadd.f32 %v1035_v26, %v1024_v58  ;;  %v988_v23 = vadd.f32 %v2165_v59, %v987_v60  ;;  %v989_v25 = vpop.f32.mrf.mxu1  ;;  %v641_v26 = vadd.f32 %v640_v9, %v639_v49 }
 0x151   :  { %v2167_v29 = vpop.f32.mrf.mxu0 }
 0x152   :  { %v1004_v30 = vsel %vm600_vm1, %v988_v23, 0.0  ;;  %v1025_v31 = vmul.f32 %v988_v23, %v988_v23  ;;  %v990_v32 = vpop.f32.mrf.mxu1 }
 0x153   :  { %v1005_v35 = vadd.f32 %v1004_v30, %v1003_v57  ;;  %v2185_v36 = vpop.f32.mrf.mxu0 }
 0x154   :  { %v1037_v38 = vsel %vm600_vm1, %v1025_v31, 0.0  ;;  %v991_v39 = vpop.f32.mrf.mxu1 }
 0x155   :  { %v1006_v41 = vrot.slane %v1005_v35, 4  ;;  %v1038_v33 = vadd.f32 %v1037_v38, %v1036_v63  ;;  %v2186_v1 = vpop.f32.mrf.mxu0 }
 0x156   :  { %v2187_v42 = vadd.f32 %v2186_v1, %v2185_v36  ;;  %v1342_v43 = vpop.f32.mrf.mxu1 }
 0x157   :  { %v1007_v45 = vadd.f32 %v1006_v41, %v1005_v35  ;;  %v1039_v37 = vrot.slane %v1038_v33, 4  ;;  %v2188_v46 = vpop.f32.mrf.mxu0 }
 0x158   :  { %v1343_v47 = vadd.f32 %v2187_v42, %v1342_v43  ;;  %v1344_v48 = vpop.f32.mrf.mxu1 }
 0x159   :  { %v1008_v50 = vrot.slane %v1007_v45, 2  ;;  %v1040_v51 = vadd.f32 %v1039_v37, %v1038_v33  ;;  %v2189_v52 = vpop.f32.mrf.mxu0 }
 0x15a   :  { %v2190_v53 = vadd.f32 %v2189_v52, %v2188_v46  ;;  %v1345_v3 = vpop.f32.mrf.mxu1  ;;  %v1416_v13 = vmul.f32 %v1343_v47, %v1343_v47 }
 0x15b   :  { %v1009_v4 = vadd.f32 %v1008_v50, %v1007_v45  ;;  %v1041_v6 = vrot.slane %v1040_v51, 2  ;;  %v2191_v5 = vpop.f32.mrf.mxu0 }
 0x15c   :  { %v1346_v7 = vadd.f32 %v2190_v53, %v1345_v3  ;;  %v1347_v8 = vpop.f32.mrf.mxu1 }
 0x15d   :  { %v1010_v10 = vrot.slane %v1009_v4, 1  ;;  %v1042_v11 = vadd.f32 %v1041_v6, %v1040_v51  ;;  %v2192_v12 = vpop.f32.mrf.mxu0 }
 0x15e   :  { %v1396_v14 = vadd.f32 %v1346_v7, %v1343_v47  ;;  %v1417_v15 = vmul.f32 %v1346_v7, %v1346_v7  ;;  %v2193_v16 = vadd.f32 %v2192_v12, %v2191_v5  ;;  %v1350_v17 = vpop.f32.mrf.mxu1 }
 0x15f   :  { %v1011_v19 = vadd.f32 %v1010_v10, %v1009_v4  ;;  %v1043_v20 = vrot.slane %v1042_v11, 1  ;;  %v2194_v0 = vpop.f32.mrf.mxu0 }
 0x160   :  { %v1429_v21 = vadd.f32 %v1417_v15, %v1416_v13  ;;  %v1351_v22 = vadd.f32 %v2193_v16, %v1350_v17  ;;  %v1352_v24 = vpop.f32.mrf.mxu1 }
 0x161   :  { %v3139_v28 = vadd.f32 %v1011_v19, %v608_v18  ;;  %v1044_v54 = vadd.f32 %v1043_v20, %v1042_v11  ;;  %v2195_v55 = vpop.f32.mrf.mxu0 }
 0x162   :  { %v1397_v56 = vadd.f32 %v1396_v14, %v1351_v22  ;;  %v1418_v57 = vmul.f32 %v1351_v22, %v1351_v22  ;;  %v2196_v58 = vadd.f32 %v2195_v55, %v2194_v0  ;;  %v1353_v59 = vpop.f32.mrf.mxu1 }
 0x163   :  { %v3141_v60 = vadd.f32 %v1044_v54, %v641_v26  ;;  %v2197_v61 = vpop.f32.mrf.mxu0 }
 0x164   :  { %v1430_v62 = vadd.f32 %v1429_v21, %v1418_v57  ;;  %v1354_v63 = vadd.f32 %v2196_v58, %v1353_v59  ;;  %v1355_v23 = vpop.f32.mrf.mxu1 }
 0x165   :  { %v2198_v25 = vpop.f32.mrf.mxu0 }
 0x166   :  { %v1398_v27 = vadd.f32 %v1397_v56, %v1354_v63  ;;  %v1419_v29 = vmul.f32 %v1354_v63, %v1354_v63  ;;  %v2199_v30 = vadd.f32 %v2198_v25, %v2197_v61  ;;  %v1358_v31 = vpop.f32.mrf.mxu1 }
 0x167   :  { %v2200_v32 = vpop.f32.mrf.mxu0 }
 0x168   :  { %v1431_v34 = vadd.f32 %v1430_v62, %v1419_v29  ;;  %v1359_v35 = vadd.f32 %v2199_v30, %v1358_v31  ;;  %v1360_v36 = vpop.f32.mrf.mxu1 }
 0x169   :  { %v2201_v38 = vpop.f32.mrf.mxu0 }
 0x16a   :  { %v1399_v39 = vadd.f32 %v1398_v27, %v1359_v35  ;;  %v1420_v40 = vmul.f32 %v1359_v35, %v1359_v35  ;;  %v2202_v41 = vadd.f32 %v2201_v38, %v2200_v32  ;;  %v1361_v33 = vpop.f32.mrf.mxu1 }
 0x16b   :  { %v2203_v1 = vpop.f32.mrf.mxu0 }
 0x16c   :  { %v1432_v42 = vadd.f32 %v1431_v34, %v1420_v40  ;;  %v1362_v43 = vadd.f32 %v2202_v41, %v1361_v33  ;;  %v1363_v44 = vpop.f32.mrf.mxu1 }
 0x16d   :  { %v2204_v45 = vpop.f32.mrf.mxu0 }
 0x16e   :  { %v1400_v37 = vadd.f32 %v1399_v39, %v1362_v43  ;;  %v1421_v46 = vmul.f32 %v1362_v43, %v1362_v43  ;;  %v2205_v47 = vadd.f32 %v2204_v45, %v2203_v1  ;;  %v1366_v48 = vpop.f32.mrf.mxu1 }
 0x16f   :  { %v2206_v49 = vpop.f32.mrf.mxu0 }
 0x170   :  { %v1433_v50 = vadd.f32 %v1432_v42, %v1421_v46  ;;  %v1367_v51 = vadd.f32 %v2205_v47, %v1366_v48  ;;  %v1368_v52 = vpop.f32.mrf.mxu1 }
 0x171   :  { %v2207_v53 = vpop.f32.mrf.mxu0 }
 0x172   :  { %v1401_v3 = vadd.f32 %v1400_v37, %v1367_v51  ;;  %v1422_v2 = vmul.f32 %v1367_v51, %v1367_v51  ;;  %v2208_v4 = vadd.f32 %v2207_v53, %v2206_v49  ;;  %v1369_v6 = vpop.f32.mrf.mxu1 }
 0x173   :  { %v2209_v5 = vpop.f32.mrf.mxu0 }
 0x174   :  { %v1434_v7 = vadd.f32 %v1433_v50, %v1422_v2  ;;  %v1370_v8 = vadd.f32 %v2208_v4, %v1369_v6  ;;  %v1371_v9 = vpop.f32.mrf.mxu1 }
 0x175   :  { %v2210_v10 = vpop.f32.mrf.mxu0 }
 0x176   :  { %v1402_v11 = vadd.f32 %v1401_v3, %v1370_v8  ;;  %v1423_v12 = vmul.f32 %v1370_v8, %v1370_v8  ;;  %v2211_v13 = vadd.f32 %v2210_v10, %v2209_v5  ;;  %v1374_v14 = vpop.f32.mrf.mxu1 }
 0x177   :  { %v2212_v15 = vpop.f32.mrf.mxu0 }
 0x178   :  { %v1435_v16 = vadd.f32 %v1434_v7, %v1423_v12  ;;  %v1375_v17 = vadd.f32 %v2211_v13, %v1374_v14  ;;  %v1376_v18 = vpop.f32.mrf.mxu1 }
 0x179   :  { %v2213_v19 = vpop.f32.mrf.mxu0 }
 0x17a   :  { %v1403_v20 = vadd.f32 %v1402_v11, %v1375_v17  ;;  %v1424_v0 = vmul.f32 %v1375_v17, %v1375_v17  ;;  %v1377_v21 = vpop.f32.mrf.mxu1  ;;  %v2214_v22 = vadd.f32 %v2213_v19, %v2212_v15 }
 0x17b   :  { %v2215_v24 = vpop.f32.mrf.mxu0 }
 0x17c   :  { %v1436_v26 = vadd.f32 %v1435_v16, %v1424_v0  ;;  %v1379_v54 = vpop.f32.mrf.mxu1  ;;  %v1378_v58 = vadd.f32 %v2214_v22, %v1377_v21 }
 0x17d   :  { %v2216_v55 = vpop.f32.mrf.mxu0 }
 0x17e   :  { %v2217_v56 = vadd.f32 %v2216_v55, %v2215_v24  ;;  %v1382_v57 = vpop.f32.mrf.mxu1  ;;  %v1425_v27 = vmul.f32 %v1378_v58, %v1378_v58  ;;  %v1404_v32 = vadd.f32 %v1403_v20, %v1378_v58 }
 0x17f   :  { %v2218_v59 = vpop.f32.mrf.mxu0 }
 0x180   :  { %v1384_v61 = vpop.f32.mrf.mxu1  ;;  %v1383_v62 = vadd.f32 %v2217_v56, %v1382_v57  ;;  %v1437_v39 = vadd.f32 %v1436_v26, %v1425_v27 }
 0x181   :  { %v2219_v63 = vpop.f32.mrf.mxu0 }
 0x182   :  { %v2220_v23 = vadd.f32 %v2219_v63, %v2218_v59  ;;  %v1385_v25 = vpop.f32.mrf.mxu1  ;;  %v1426_v34 = vmul.f32 %v1383_v62, %v1383_v62  ;;  %v1405_v40 = vadd.f32 %v1404_v32, %v1383_v62 }
 0x183   :  { %v2221_v29 = vpop.f32.mrf.mxu0 }
 0x184   :  { %v1386_v30 = vadd.f32 %v2220_v23, %v1385_v25  ;;  %v1387_v31 = vpop.f32.mrf.mxu1  ;;  %v1438_v43 = vadd.f32 %v1437_v39, %v1426_v34 }
 0x185   :  { %v2222_v35 = vpop.f32.mrf.mxu0 }
 0x186   :  { %v2223_v36 = vadd.f32 %v2222_v35, %v2221_v29  ;;  %v1390_v38 = vpop.f32.mrf.mxu1  ;;  %v1427_v41 = vmul.f32 %v1386_v30, %v1386_v30  ;;  %v1406_v44 = vadd.f32 %v1405_v40, %v1386_v30 }
 0x187   :  { %v2224_v33 = vpop.f32.mrf.mxu0 }
 0x188   :  { %v1391_v1 = vadd.f32 %v2223_v36, %v1390_v38  ;;  %v1392_v42 = vpop.f32.mrf.mxu1  ;;  %v1439_v48 = vadd.f32 %v1438_v43, %v1427_v41 }
 0x189   :  { %v2225_v45 = vpop.f32.mrf.mxu0 }
 0x18a   :  { %v1407_v37 = vsel %vm600_vm1, %v1391_v1, 0.0  ;;  %v1428_v46 = vmul.f32 %v1391_v1, %v1391_v1  ;;  %v1393_v47 = vpop.f32.mrf.mxu1 }
 0x18b   :  { %v1408_v49 = vadd.f32 %v1407_v37, %v1406_v44  ;;  %v2243_v50 = vpop.f32.mrf.mxu0 }
 0x18c   :  { %v1440_v51 = vsel %vm600_vm1, %v1428_v46, 0.0  ;;  %v1394_v52 = vpop.f32.mrf.mxu1 }
 0x18d   :  { %v1409_v53 = vrot.slane %v1408_v49, 4  ;;  %v1441_v3 = vadd.f32 %v1440_v51, %v1439_v48  ;;  %v2244_v2 = vpop.f32.mrf.mxu0 }
 0x18e   :  { %v1745_v4 = vpop.f32.mrf.mxu1  ;;  %v2245_v31 = vadd.f32 %v2244_v2, %v2243_v50 }
 0x18f   :  { %v1410_v6 = vadd.f32 %v1409_v53, %v1408_v49  ;;  %v1442_v5 = vrot.slane %v1441_v3, 4  ;;  %v2246_v7 = vpop.f32.mrf.mxu0 }
 0x190   :  { %v1747_v8 = vpop.f32.mrf.mxu1 }
 0x191   :  { %v1411_v9 = vrot.slane %v1410_v6, 2  ;;  %v1443_v10 = vadd.f32 %v1442_v5, %v1441_v3  ;;  %v2247_v11 = vpop.f32.mrf.mxu0 }
 0x192   :  { %v1748_v12 = vpop.f32.mrf.mxu1  ;;  %v2248_v27 = vadd.f32 %v2247_v11, %v2246_v7 }
 0x193   :  { %v1412_v13 = vadd.f32 %v1411_v9, %v1410_v6  ;;  %v1444_v14 = vrot.slane %v1443_v10, 2  ;;  %v2249_v15 = vpop.f32.mrf.mxu0 }
 0x194   :  { %v1750_v16 = vpop.f32.mrf.mxu1  ;;  %v1749_v35 = vadd.f32 %v2248_v27, %v1748_v12 }
 0x195   :  { %v1413_v17 = vrot.slane %v1412_v13, 1  ;;  %v1445_v18 = vadd.f32 %v1444_v14, %v1443_v10  ;;  %v2250_v19 = vpop.f32.mrf.mxu0 }
 0x196   :  { %v1753_v20 = vpop.f32.mrf.mxu1  ;;  %v2251_v32 = vadd.f32 %v2250_v19, %v2249_v15  ;;  %v1820_v42 = vmul.f32 %v1749_v35, %v1749_v35 }
 0x197   :  { %v1414_v0 = vadd.f32 %v1413_v17, %v1412_v13  ;;  %v1446_v21 = vrot.slane %v1445_v18, 1  ;;  %v2252_v22 = vpop.f32.mrf.mxu0 }
 0x198   :  { %v1755_v24 = vpop.f32.mrf.mxu1  ;;  %v1754_v40 = vadd.f32 %v2251_v32, %v1753_v20 }
 0x199   :  { %v3146_v26 = vadd.f32 %v1414_v0, %v3139_v28  ;;  %v1447_v54 = vadd.f32 %v1446_v21, %v1445_v18  ;;  %v2253_v55 = vpop.f32.mrf.mxu0 }
 0x19a   :  { %v1756_v56 = vpop.f32.mrf.mxu1  ;;  %v2254_v36 = vadd.f32 %v2253_v55, %v2252_v22  ;;  %v1821_v47 = vmul.f32 %v1754_v40, %v1754_v40 }
 0x19b   :  { %v3149_v57 = vadd.f32 %v1447_v54, %v3141_v60  ;;  %v2255_v58 = vpop.f32.mrf.mxu0  ;;  %v1746_v60 = vadd.f32 %v2245_v31, %v1745_v4 }
 0x19c   :  { %v1758_v59 = vpop.f32.mrf.mxu1  ;;  %v1757_v43 = vadd.f32 %v2254_v36, %v1756_v56 }
 0x19d   :  { %v2256_v61 = vpop.f32.mrf.mxu0  ;;  %v1819_v46 = vmul.f32 %v1746_v60, %v1746_v60  ;;  %v1799_v49 = vadd.f32 %v1749_v35, %v1746_v60 }
 0x19e   :  { %v1761_v62 = vpop.f32.mrf.mxu1  ;;  %v2257_v33 = vadd.f32 %v2256_v61, %v2255_v58  ;;  %v1822_v3 = vmul.f32 %v1757_v43, %v1757_v43 }
 0x19f   :  { %v2258_v63 = vpop.f32.mrf.mxu0  ;;  %v1832_v53 = vadd.f32 %v1820_v42, %v1819_v46  ;;  %v1800_v4 = vadd.f32 %v1799_v49, %v1754_v40 }
 0x1a0   :  { %v1763_v23 = vpop.f32.mrf.mxu1  ;;  %v1762_v50 = vadd.f32 %v2257_v33, %v1761_v62 }
 0x1a1   :  { %v2259_v25 = vpop.f32.mrf.mxu0  ;;  %v1833_v8 = vadd.f32 %v1832_v53, %v1821_v47  ;;  %v1801_v10 = vadd.f32 %v1800_v4, %v1757_v43 }
 0x1a2   :  { %v1764_v29 = vpop.f32.mrf.mxu1  ;;  %v2260_v45 = vadd.f32 %v2259_v25, %v2258_v63  ;;  %v1823_v11 = vmul.f32 %v1762_v50, %v1762_v50 }
 0x1a3   :  { %v2261_v30 = vpop.f32.mrf.mxu0  ;;  %v1834_v15 = vadd.f32 %v1833_v8, %v1822_v3  ;;  %v1802_v17 = vadd.f32 %v1801_v10, %v1762_v50 }
 0x1a4   :  { %v1766_v28 = vpop.f32.mrf.mxu1  ;;  %v1765_v6 = vadd.f32 %v2260_v45, %v1764_v29 }
 0x1a5   :  { %v2262_v34 = vpop.f32.mrf.mxu0  ;;  %v1835_v22 = vadd.f32 %v1834_v15, %v1823_v11 }
 0x1a6   :  { %v1769_v38 = vpop.f32.mrf.mxu1  ;;  %v2263_v51 = vadd.f32 %v2262_v34, %v2261_v30  ;;  %v1824_v18 = vmul.f32 %v1765_v6, %v1765_v6  ;;  %v1803_v24 = vadd.f32 %v1802_v17, %v1765_v6 }
 0x1a7   :  { %v2264_v39 = vpop.f32.mrf.mxu0 }
 0x1a8   :  { %v1771_v41 = vpop.f32.mrf.mxu1  ;;  %v1770_v12 = vadd.f32 %v2263_v51, %v1769_v38  ;;  %v1836_v61 = vadd.f32 %v1835_v22, %v1824_v18 }
 0x1a9   :  { %v2265_v1 = vpop.f32.mrf.mxu0 }
 0x1aa   :  { %v1772_v44 = vpop.f32.mrf.mxu1  ;;  %v2266_v5 = vadd.f32 %v2265_v1, %v2264_v39  ;;  %v1825_v54 = vmul.f32 %v1770_v12, %v1770_v12  ;;  %v1804_v62 = vadd.f32 %v1803_v24, %v1770_v12  ;;  %v1855_v24 = vld [vmem:[#allocation3] sm:$0x1] }
 0x1ab   :  { %v2267_v37 = vpop.f32.mrf.mxu0 }
 0x1ac   :  { %v1774_v48 = vpop.f32.mrf.mxu1  ;;  %v1773_v19 = vadd.f32 %v2266_v5, %v1772_v44  ;;  %v1837_v29 = vadd.f32 %v1836_v61, %v1825_v54 }
 0x1ad   :  { %v2268_v52 = vpop.f32.mrf.mxu0 }
 0x1ae   :  { %v1777_v2 = vpop.f32.mrf.mxu1  ;;  %v2269_v13 = vadd.f32 %v2268_v52, %v2267_v37  ;;  %v1826_v63 = vmul.f32 %v1773_v19, %v1773_v19  ;;  %v1805_v30 = vadd.f32 %v1804_v62, %v1773_v19 }
 0x1af   :  { %v2270_v7 = vpop.f32.mrf.mxu0 }
 0x1b0   :  { %v1779_v9 = vpop.f32.mrf.mxu1  ;;  %v1778_v55 = vadd.f32 %v2269_v13, %v1777_v2  ;;  %v1838_v36 = vadd.f32 %v1837_v29, %v1826_v63  ;;  %v1875_v29 = vld [vmem:[%s3178_s5] sm:$0x1] }
 0x1b1   :  { %v2271_v14 = vpop.f32.mrf.mxu0 }
 0x1b2   :  { %v1780_v16 = vpop.f32.mrf.mxu1  ;;  %v2272_v20 = vadd.f32 %v2271_v14, %v2270_v7  ;;  %v1827_v31 = vmul.f32 %v1778_v55, %v1778_v55  ;;  %v1806_v38 = vadd.f32 %v1805_v30, %v1778_v55 }
 0x1b3   :  { %v2273_v0 = vpop.f32.mrf.mxu0 }
 0x1b4   :  { %v1782_v21 = vpop.f32.mrf.mxu1  ;;  %v1781_v23 = vadd.f32 %v2272_v20, %v1780_v16  ;;  %v1839_v33 = vadd.f32 %v1838_v36, %v1827_v31 }
 0x1b5   :  { %v2274_v56 = vpop.f32.mrf.mxu0 }
 0x1b6   :  { %v2275_v58 = vadd.f32 %v2274_v56, %v2273_v0  ;;  %v1785_v59 = vpop.f32.mrf.mxu1  ;;  %v1828_v39 = vmul.f32 %v1781_v23, %v1781_v23  ;;  %v1807_v1 = vadd.f32 %v1806_v38, %v1781_v23  ;;  %v1852_v0 = vld [vmem:[#allocation2] sm:$0x1] }
 0x1b7   :  { %v2276_v25 = vpop.f32.mrf.mxu0 }
 0x1b8   :  { %v1787_v27 = vpop.f32.mrf.mxu1  ;;  %v1786_v32 = vadd.f32 %v2275_v58, %v1785_v59  ;;  %v1840_v37 = vadd.f32 %v1839_v33, %v1828_v39 }
 0x1b9   :  { %v2277_v28 = vpop.f32.mrf.mxu0 }
 0x1ba   :  { %v2278_v34 = vadd.f32 %v2277_v28, %v2276_v25  ;;  %v1788_v35 = vpop.f32.mrf.mxu1  ;;  %v1829_v42 = vmul.f32 %v1786_v32, %v1786_v32  ;;  %v1808_v46 = vadd.f32 %v1807_v1, %v1786_v32  ;;  %v1874_v28 = vld [vmem:[%s3180_s7] sm:$0x1] }
 0x1bb   :  { %v2279_v60 = vpop.f32.mrf.mxu0 }
 0x1bc   :  { %v1789_v40 = vadd.f32 %v2278_v34, %v1788_v35  ;;  %v1790_v41 = vpop.f32.mrf.mxu1  ;;  %v1841_v51 = vadd.f32 %v1840_v37, %v1829_v42 }
 0x1bd   :  { %v2280_v43 = vpop.f32.mrf.mxu0 }
 0x1be   :  { %v2281_v44 = vadd.f32 %v2280_v43, %v2279_v60  ;;  %v1793_v45 = vpop.f32.mrf.mxu1  ;;  %v1830_v47 = vmul.f32 %v1789_v40, %v1789_v40  ;;  %v1809_v52 = vadd.f32 %v1808_v46, %v1789_v40 }
 0x1bf   :  { %v2282_v48 = vpop.f32.mrf.mxu0 }
 0x1c0   :  { %v1794_v49 = vadd.f32 %v2281_v44, %v1793_v45  ;;  %v1795_v50 = vpop.f32.mrf.mxu1  ;;  %v1842_v6 = vadd.f32 %v1841_v51, %v1830_v47 }
 0x1c1   :  { %v2283_v53 = vpop.f32.mrf.mxu0 }
 0x1c2   :  { %v1810_v3 = vsel %vm600_vm1, %v1794_v49, 0.0  ;;  %v1831_v2 = vmul.f32 %v1794_v49, %v1794_v49  ;;  %v1796_v4 = vpop.f32.mrf.mxu1 }
 0x1c3   :  { %v1811_v5 = vadd.f32 %v1810_v3, %v1809_v52 }
 0x1c4   :  { %v1843_v7 = vsel %vm600_vm1, %v1831_v2, 0.0  ;;  %v1797_v8 = vpop.f32.mrf.mxu1 }
 0x1c5   :  { %v1812_v9 = vrot.slane %v1811_v5, 4  ;;  %v1844_v10 = vadd.f32 %v1843_v7, %v1842_v6 }
 0x1c7   :  { %v1813_v11 = vadd.f32 %v1812_v9, %v1811_v5  ;;  %v1845_v12 = vrot.slane %v1844_v10, 4 }
 0x1c9   :  { %v1814_v13 = vrot.slane %v1813_v11, 2  ;;  %v1846_v14 = vadd.f32 %v1845_v12, %v1844_v10 }
 0x1cb   :  { %v1815_v15 = vadd.f32 %v1814_v13, %v1813_v11  ;;  %v1847_v16 = vrot.slane %v1846_v14, 2 }
 0x1cd   :  { %v1816_v17 = vrot.slane %v1815_v15, 1  ;;  %v1848_v18 = vadd.f32 %v1847_v16, %v1846_v14 }
 0x1cf   :  { %v1817_v19 = vadd.f32 %v1816_v17, %v1815_v15  ;;  %v1849_v20 = vrot.slane %v1848_v18, 1 }
 0x1d1   :  { %v1818_v21 = vadd.f32 %v1817_v19, %v3146_v26  ;;  %v1850_v22 = vadd.f32 %v1849_v20, %v1848_v18  ;;  %v1871_v26 = vld [vmem:[%s3178_s5] sm:$0x1] }
 0x1d3   :  { %v1851_v54 = vadd.f32 %v1850_v22, %v3149_v57  ;;  %v1853_v55 = vadd.f32 %v1852_v0, %v1818_v21  ;;  %v1867_v57 = vld [vmem:[%s3179_s6] sm:$0x1] }
 0x1d5   :  { %1854 = vst [vmem:[#allocation2] sm:$0x1] %v1853_v55  ;;  %v1856_v56 = vadd.f32 %v1855_v24, %v1851_v54 }
 0x1d7   :  { %1857 = vst [vmem:[#allocation3] sm:$0x1] %v1856_v56 }
 0x1dc   :  { %v1861_v58 = vld [vmem:[#allocation2] sm:$0x1] }
 0x1dd   :  { %v1862_v59 = vmul.f32 0.0025510204, %v1861_v58 }
 0x1de   :  { %v1863_v61 = vld [vmem:[#allocation3] sm:$0x1] }
 0x1df   :  { %v1864_v62 = vmul.f32 0.0025510204, %v1863_v61  ;;  %v1865_v63 = vmul.f32 %v1862_v59, %v1862_v59  ;;  %v1872_v27 = vadd.f32 %v1871_v26, %v1862_v59 }
 0x1e1   :  { %v1866_v23 = vsub.f32 %v1864_v62, %v1865_v63  ;;  %v1876_v32 = vsub.f32 %v1875_v29, %v1872_v27 }
 0x1e3   :  { %v1868_v25 = vadd.f32 1e-05, %v1866_v23 }
 0x1e5   :  { %2472 = vrsqrt.f32 %v1868_v25 }
 0x1f2   :  { %v2473_v30 = vpop.eup %2472 }
 0x1f3   :  { %v1870_v31 = vmul.f32 %v2473_v30, %v1867_v57 }
 0x1f5   :  { %1873 = vst [vmem:[%s3181_s8] sm:$0x1] %v1870_v31  ;;  %v1877_v34 = vmul.f32 %v1876_v32, %v1870_v31 }
 0x1f7   :  { %v1878_v35 = vadd.f32 %v1877_v34, %v1874_v28 }
 0x1f9   :  { %1879 = vst [vmem:[%s3182_s9] sm:$0x1] %v1878_v35 }

// kernel: convnet_forward.8
= control target key start
LH: loop header
LB: loop body
LE: loop exit
PB: predicated region body
PF: predicated region fallthrough
CT: control target
= control target key end

     0   :  { %v2400_v0 = vmov 0   ;;  %vm382_vm0 = vcmask 130048   ;;  %s3432_s4 = inlined_call_operand.vmem [shape: bf16[400,128], index: 4, kind: input, shape index: {}]   ;;  %s3433_s0 = inlined_call_operand.vmem [shape: bf16[98,400], index: 0, kind: input, shape index: {}]   ;;  %s3434_s1 = inlined_call_operand.vmem [shape: bf16[98,400], index: 1, kind: input, shape index: {}]   ;;  %s3435_s2 = inlined_call_operand.vmem [shape: bf16[98,400], index: 2, kind: input, shape index: {}]   ;;  %s3436_s3 = inlined_call_operand.vmem [shape: bf16[98,400], index: 3, kind: input, shape index: {}]   ;;  %s3437_s5 = inlined_call_operand.vmem [shape: f32[1,128], index: 5, kind: input, shape index: {}]   ;;  %s3438_s6 = inlined_call_operand.vmem [shape: f32[1,128], index: 6, kind: input, shape index: {}]   ;;  %s3439_s7 = inlined_call_operand.vmem [shape: f32[98,128], index: 7, kind: output, shape index: {}]  }
   0x1   :  { %492 = vmatprep.subr.bf16.mxu1 %v2400_v0  ;;  %v2445_v1 = vld [vmem:[%s3432_s4 + $0x78] sm:$0xff]   ;;  %v2462_v4 = vld [vmem:[%s3432_s4 + $0x70] sm:$0xff]   ;;  %v2480_v7 = vld [vmem:[%s3432_s4 + $0x68] sm:$0xff]  }
   0x2   :  { %v2450_v2 = vld [vmem:[%s3432_s4 + $0xb8] sm:$0xff]   ;;  %1982 = vmatprep.subr.bf16.mxu0 %v2445_v1  ;;  %v2469_v5 = vld [vmem:[%s3432_s4 + $0xb0] sm:$0xff]   ;;  %v2486_v8 = vld [vmem:[%s3432_s4 + $0xa8] sm:$0xff]  }
   0x3   :  { %v2456_v3 = vld [vmem:[%s3432_s4 + $0x38] sm:$0xff]   ;;  %493 = vmatpush1.bf16.msra.mxu1 %v2450_v2  ;;  %v2475_v6 = vld [vmem:[%s3432_s4 + $0x30] sm:$0xff]   ;;  %v2493_v9 = vld [vmem:[%s3432_s4 + $0x28] sm:$0xff]  }
   0x4   :  { %1983 = vmatpush3.bf16.msra.mxu0 %v2456_v3  ;;  %494 = vmatprep.subr.bf16.mxu1 %v2400_v0  ;;  %v2499_v10 = vld [vmem:[%s3432_s4 + $0x60] sm:$0xff]   ;;  %v2518_v13 = vld [vmem:[%s3432_s4 + $0x58] sm:$0xff]   ;;  %v2537_v16 = vld [vmem:[%s3432_s4 + $0x50] sm:$0xff]  }
   0x5   :  { %1984 = vmatprep.subr.bf16.mxu0 %v2462_v4  ;;  %v2505_v11 = vld [vmem:[%s3432_s4 + $0xa0] sm:$0xff]   ;;  %v2524_v14 = vld [vmem:[%s3432_s4 + $0x98] sm:$0xff]   ;;  %v2543_v17 = vld [vmem:[%s3432_s4 + $0x90] sm:$0xff]  }
   0x6   :  { %v2512_v12 = vld [vmem:[%s3432_s4 + $0x20] sm:$0xff]   ;;  %v2531_v15 = vld [vmem:[%s3432_s4 + $0x18] sm:$0xff]   ;;  %v2550_v18 = vld [vmem:[%s3432_s4 + $0x10] sm:$0xff]  }
   0x7   :  { %495 = vmatpush1.bf16.msra.mxu1 %v2469_v5  ;;  %v2556_v19 = vld [vmem:[%s3432_s4 + $0x48] sm:$0xff]   ;;  %v2574_v22 = vld [vmem:[%s3432_s4 + $0x40] sm:$0xff]  }
   0x8   :  { %1985 = vmatpush3.bf16.msra.mxu0 %v2475_v6  ;;  %496 = vmatprep.subr.bf16.mxu1 %v2400_v0  ;;  %v2561_v20 = vld [vmem:[%s3432_s4 + $0x88] sm:$0xff]   ;;  %v2241_v23 = vld [vmem:[%s3433_s0 + $0x4] ss:$16 sps:$4 sm:$0xff]   ;;  %v2239_v27 = vld [vmem:[%s3433_s0] ss:$16 sps:$4 sm:$0xff]  }
   0x9   :  { %1986 = vmatprep.subr.bf16.mxu0 %v2480_v7  ;;  %v2567_v21 = vld [vmem:[%s3432_s4 + $0x8] sm:$0xff]   ;;  %v2584_v24 = vld [vmem:[%s3432_s4 + $0x80] sm:$0xff]   ;;  %436 = vmatprep.mubr.bf16.mxu0 %v2241_v23 }
   0xa   :  { %v2245_v25 = vld [vmem:[%s3433_s0 + $0xc] ss:$16 sps:$4 sm:$0xff]   ;;  %v2594_v26 = vld [vmem:[%s3432_s4] sm:$0xff]   ;;  %v2243_v30 = vld [vmem:[%s3433_s0 + $0x8] ss:$16 sps:$4 sm:$0xff]  }
   0xb   :  { %497 = vmatpush1.bf16.msra.mxu1 %v2486_v8  ;;  %1868 = vmatprep.mubr.msk.bf16.mxu1 %vm382_vm0, %v2245_v25  ;;  %v2605_v28 = vld [vmem:[%s3432_s4 + $0xc0] sm:$0xff]   ;;  %v2249_v31 = vld [vmem:[%s3433_s0 + $0x2c] ss:$16 sps:$4 sm:$0xff]   ;;  %v2251_v34 = vld [vmem:[%s3433_s0 + $0x28] ss:$16 sps:$4 sm:$0xff]  }
   0xc   :  { %1987 = vmatpush3.bf16.msra.mxu0 %v2493_v9  ;;  %498 = vmatprep.subr.bf16.mxu1 %v2400_v0  ;;  %v2246_v29 = vld [vmem:[%s3433_s0 + $0x24] ss:$16 sps:$4 sm:$0xff]   ;;  %v2248_v32 = vld [vmem:[%s3433_s0 + $0x20] ss:$16 sps:$4 sm:$0xff]   ;;  %v2255_v35 = vld [vmem:[%s3433_s0 + $0x4c] ss:$16 sps:$4 sm:$0xff]  }
   0xd   :  { %1988 = vmatprep.subr.bf16.mxu0 %v2499_v10  ;;  %v2252_v33 = vld [vmem:[%s3433_s0 + $0x44] ss:$16 sps:$4 sm:$0xff]   ;;  %v2254_v36 = vld [vmem:[%s3433_s0 + $0x40] ss:$16 sps:$4 sm:$0xff]   ;;  %v2257_v38 = vld [vmem:[%s3433_s0 + $0x48] ss:$16 sps:$4 sm:$0xff]  }
   0xe   :  { %v2258_v37 = vld [vmem:[%s3433_s0 + $0x64] ss:$16 sps:$4 sm:$0xff]   ;;  %v2261_v39 = vld [vmem:[%s3433_s0 + $0x6c] ss:$16 sps:$4 sm:$0xff]   ;;  %v2260_v40 = vld [vmem:[%s3433_s0 + $0x60] ss:$16 sps:$4 sm:$0xff]  }
   0xf   :  { %499 = vmatpush1.bf16.msra.mxu1 %v2505_v11  ;;  %v2264_v41 = vld [vmem:[%s3433_s0 + $0x84] ss:$16 sps:$4 sm:$0xff]   ;;  %v2263_v42 = vld [vmem:[%s3433_s0 + $0x68] ss:$16 sps:$4 sm:$0xff]   ;;  %v2267_v43 = vld [vmem:[%s3433_s0 + $0x8c] ss:$16 sps:$4 sm:$0xff]  }
  0x10   :  { %1989 = vmatpush3.bf16.msra.mxu0 %v2512_v12  ;;  %500 = vmatprep.subr.bf16.mxu1 %v2400_v0  ;;  %v2266_v44 = vld [vmem:[%s3433_s0 + $0x80] ss:$16 sps:$4 sm:$0xff]   ;;  %v2270_v45 = vld [vmem:[%s3433_s0 + $0xa4] ss:$16 sps:$4 sm:$0xff]   ;;  %v2269_v46 = vld [vmem:[%s3433_s0 + $0x88] ss:$16 sps:$4 sm:$0xff]  }
  0x11   :  { %1990 = vmatprep.subr.bf16.mxu0 %v2518_v13  ;;  %v2273_v47 = vld [vmem:[%s3433_s0 + $0xac] ss:$16 sps:$4 sm:$0xff]   ;;  %v103_v48 = vld [vmem:[%s3433_s0 + $0xc0] sm:$0x11]  ;;  %v2275_v52 = vld [vmem:[%s3433_s0 + $0xa8] ss:$16 sps:$4 sm:$0xff]  }
  0x12   :  { %v2272_v49 = vld [vmem:[%s3433_s0 + $0xa0] ss:$16 sps:$4 sm:$0xff]   ;;  %v1840_v50 = vcombine.high %v103_v48, %v103_v48  ;;  %v104_v51 = vld [vmem:[%s3433_s0 + $0xc8] sm:$0x11]  ;;  %v2282_v54 = vld [vmem:[%s3434_s1 + $0x4] ss:$16 sps:$4 sm:$0xff]   ;;  %v1839_v55 = vcombine.low %v103_v48, %v103_v48 }
  0x13   :  { %501 = vmatpush1.bf16.msra.mxu1 %v2524_v14  ;;  %v1842_v53 = vcombine.high %v104_v51, %v104_v51  ;;  %v1841_v56 = vcombine.low %v104_v51, %v104_v51  ;;  %v2285_v57 = vld [vmem:[%s3434_s1 + $0xc] ss:$16 sps:$4 sm:$0xff]   ;;  %v2280_v58 = vld [vmem:[%s3434_s1] ss:$16 sps:$4 sm:$0xff]   ;;  %v2286_v59 = vld [vmem:[%s3434_s1 + $0x24] ss:$16 sps:$4 sm:$0xff]  }
  0x14   :  { %1991 = vmatpush3.bf16.msra.mxu0 %v2531_v15  ;;  %502 = vmatprep.subr.bf16.mxu1 %v2400_v0  ;;  %v2283_v60 = vld [vmem:[%s3434_s1 + $0x8] ss:$16 sps:$4 sm:$0xff]   ;;  %v2289_v61 = vld [vmem:[%s3434_s1 + $0x2c] ss:$16 sps:$4 sm:$0xff]   ;;  %v2288_v62 = vld [vmem:[%s3434_s1 + $0x20] ss:$16 sps:$4 sm:$0xff]  }
  0x15   :  { %1992 = vmatprep.subr.bf16.mxu0 %v2537_v16  ;;  %v2292_v63 = vld [vmem:[%s3434_s1 + $0x44] ss:$16 sps:$4 sm:$0xff]   ;;  %v2291_v23 = vld [vmem:[%s3434_s1 + $0x28] ss:$16 sps:$4 sm:$0xff]   ;;  %v2295_v25 = vld [vmem:[%s3434_s1 + $0x4c] ss:$16 sps:$4 sm:$0xff]  }
  0x16   :  { %v2325_v48 = vld [vmem:[%s3435_s2 + $0xc] ss:$16 sps:$4 sm:$0xff]   ;;  %v2323_v51 = vld [vmem:[%s3435_s2 + $0x8] ss:$16 sps:$4 sm:$0xff]  }
  0x17   :  { %503 = vmatpush1.bf16.msra.mxu1 %v2543_v17 }
  0x18   :  { %1993 = vmatpush3.bf16.msra.mxu0 %v2550_v18  ;;  %504 = vmatprep.subr.bf16.mxu1 %v2400_v0 }
  0x19   :  { %1994 = vmatprep.subr.bf16.mxu0 %v2556_v19 }
  0x1b   :  { %505 = vmatpush1.bf16.msra.mxu1 %v2561_v20 }
  0x1c   :  { %1995 = vmatpush3.bf16.msra.mxu0 %v2567_v21  ;;  %506 = vmatprep.subr.bf16.mxu1 %v2400_v0 }
  0x1d   :  { %1996 = vmatprep.subr.bf16.mxu0 %v2574_v22 }
  0x1f   :  { %507 = vmatpush1.bf16.msra.mxu1 %v2584_v24 }
  0x20   :  { %1997 = vmatpush3.bf16.msra.mxu0 %v2594_v26  ;;  %522 = vmatprep.subr.bf16.mxu1 %v2400_v0 }
  0x21   :  { %2040 = vmatprep.subr.bf16.mxu0 %v2445_v1 }
  0x23   :  { %437 = vmatmul.mubr.bf16.vlgmr.msra.gmra.mxu0 %v2239_v27  ;;  %523 = vmatpush2.bf16.msra.mxu1 %v2605_v28  ;;  %v2294_v27 = vld [vmem:[%s3434_s1 + $0x40] ss:$16 sps:$4 sm:$0xff]  }
  0x24   :  { %2041 = vmatpush3.bf16.msra.mxu0 %v2456_v3  ;;  %880 = vmatprep.subr.bf16.mxu1 %v2400_v0 }
  0x25   :  { %444 = vmatprep.mubr.bf16.mxu0 %v2246_v29  ;;  %2042 = vmatprep.subr.bf16.mxu0 %v2462_v4  ;;  %v2298_v29 = vld [vmem:[%s3434_s1 + $0x64] ss:$16 sps:$4 sm:$0xff]  }
  0x26   :  { %525 = vmatmul.mubr.bf16.vlgmr.msra.gmra.mxu1 %v2243_v30  ;;  %v2297_v30 = vld [vmem:[%s3434_s1 + $0x48] ss:$16 sps:$4 sm:$0xff]  }
  0x27   :  { %881 = vmatpush1.bf16.msra.mxu1 %v2450_v2  ;;  %1869 = vmatprep.mubr.msk.bf16.mxu1 %vm382_vm0, %v2249_v31  ;;  %v2301_v31 = vld [vmem:[%s3434_s1 + $0x6c] ss:$16 sps:$4 sm:$0xff]  }
  0x28   :  { %2043 = vmatpush3.bf16.msra.mxu0 %v2475_v6  ;;  %882 = vmatprep.subr.bf16.mxu1 %v2400_v0 }
  0x29   :  { %2044 = vmatprep.subr.bf16.mxu0 %v2480_v7 }
  0x2b   :  { %445 = vmatmul.mubr.bf16.gmra.mxu0 %v2248_v32  ;;  %883 = vmatpush1.bf16.msra.mxu1 %v2469_v5  ;;  %v2300_v32 = vld [vmem:[%s3434_s1 + $0x60] ss:$16 sps:$4 sm:$0xff]  }
  0x2c   :  { %452 = vmatprep.mubr.bf16.mxu0 %v2252_v33  ;;  %2045 = vmatpush3.bf16.msra.mxu0 %v2493_v9  ;;  %v2304_v33 = vld [vmem:[%s3434_s1 + $0x84] ss:$16 sps:$4 sm:$0xff]  }
  0x2d   :  { %884 = vmatprep.subr.bf16.mxu1 %v2400_v0  ;;  %2046 = vmatprep.subr.bf16.mxu0 %v2499_v10 }
  0x2e   :  { %533 = vmatmul.mubr.bf16.gmra.mxu1 %v2251_v34  ;;  %v2303_v34 = vld [vmem:[%s3434_s1 + $0x68] ss:$16 sps:$4 sm:$0xff]  }
  0x2f   :  { %1870 = vmatprep.mubr.msk.bf16.mxu1 %vm382_vm0, %v2255_v35  ;;  %885 = vmatpush1.bf16.msra.mxu1 %v2486_v8  ;;  %v2307_v35 = vld [vmem:[%s3434_s1 + $0x8c] ss:$16 sps:$4 sm:$0xff]  }
  0x30   :  { %2047 = vmatpush3.bf16.msra.mxu0 %v2512_v12  ;;  %886 = vmatprep.subr.bf16.mxu1 %v2400_v0 }
  0x31   :  { %2048 = vmatprep.subr.bf16.mxu0 %v2518_v13 }
  0x33   :  { %453 = vmatmul.mubr.bf16.gmra.mxu0 %v2254_v36  ;;  %887 = vmatpush1.bf16.msra.mxu1 %v2505_v11  ;;  %v2306_v36 = vld [vmem:[%s3434_s1 + $0x80] ss:$16 sps:$4 sm:$0xff]  }
  0x34   :  { %460 = vmatprep.mubr.bf16.mxu0 %v2258_v37  ;;  %2049 = vmatpush3.bf16.msra.mxu0 %v2531_v15  ;;  %v2310_v37 = vld [vmem:[%s3434_s1 + $0xa4] ss:$16 sps:$4 sm:$0xff]  }
  0x35   :  { %888 = vmatprep.subr.bf16.mxu1 %v2400_v0  ;;  %2050 = vmatprep.subr.bf16.mxu0 %v2537_v16 }
  0x36   :  { %541 = vmatmul.mubr.bf16.gmra.mxu1 %v2257_v38  ;;  %v2309_v38 = vld [vmem:[%s3434_s1 + $0x88] ss:$16 sps:$4 sm:$0xff]  }
  0x37   :  { %1871 = vmatprep.mubr.msk.bf16.mxu1 %vm382_vm0, %v2261_v39  ;;  %889 = vmatpush1.bf16.msra.mxu1 %v2524_v14  ;;  %v2313_v39 = vld [vmem:[%s3434_s1 + $0xac] ss:$16 sps:$4 sm:$0xff]  }
  0x38   :  { %2051 = vmatpush3.bf16.msra.mxu0 %v2550_v18  ;;  %890 = vmatprep.subr.bf16.mxu1 %v2400_v0 }
  0x39   :  { %2052 = vmatprep.subr.bf16.mxu0 %v2556_v19 }
  0x3b   :  { %461 = vmatmul.mubr.bf16.gmra.mxu0 %v2260_v40  ;;  %891 = vmatpush1.bf16.msra.mxu1 %v2543_v17  ;;  %v642_v40 = vld [vmem:[%s3434_s1 + $0xc0] sm:$0x11] }
  0x3c   :  { %468 = vmatprep.mubr.bf16.mxu0 %v2264_v41  ;;  %892 = vmatprep.subr.bf16.mxu1 %v2400_v0  ;;  %v2312_v41 = vld [vmem:[%s3434_s1 + $0xa0] ss:$16 sps:$4 sm:$0xff]  }
  0x3d   :  { %2053 = vmatpush3.bf16.msra.mxu0 %v2567_v21 }
  0x3e   :  { %549 = vmatmul.mubr.bf16.gmra.mxu1 %v2263_v42  ;;  %2054 = vmatprep.subr.bf16.mxu0 %v2574_v22  ;;  %v643_v42 = vld [vmem:[%s3434_s1 + $0xc8] sm:$0x11] }
  0x3f   :  { %1872 = vmatprep.mubr.msk.bf16.mxu1 %vm382_vm0, %v2267_v43  ;;  %893 = vmatpush1.bf16.msra.mxu1 %v2561_v20  ;;  %v2315_v43 = vld [vmem:[%s3434_s1 + $0xa8] ss:$16 sps:$4 sm:$0xff]  }
  0x40   :  { %894 = vmatprep.subr.bf16.mxu1 %v2400_v0 }
  0x41   :  { %2055 = vmatpush3.bf16.msra.mxu0 %v2594_v26 }
  0x42   :  { %2098 = vmatprep.subr.bf16.mxu0 %v2445_v1 }
  0x43   :  { %469 = vmatmul.mubr.bf16.gmra.mxu0 %v2266_v44  ;;  %895 = vmatpush1.bf16.msra.mxu1 %v2584_v24  ;;  %v1904_v44 = vcombine.high %v643_v42, %v643_v42 }
  0x44   :  { %476 = vmatprep.mubr.bf16.mxu0 %v2270_v45  ;;  %910 = vmatprep.subr.bf16.mxu1 %v2400_v0  ;;  %v1901_v45 = vcombine.low %v642_v40, %v642_v40 }
  0x46   :  { %557 = vmatmul.mubr.bf16.gmra.mxu1 %v2269_v46  ;;  %v2322_v46 = vld [vmem:[%s3435_s2 + $0x4] ss:$16 sps:$4 sm:$0xff]  }
  0x47   :  { %1873 = vmatprep.mubr.msk.bf16.mxu1 %vm382_vm0, %v2273_v47  ;;  %911 = vmatpush2.bf16.msra.mxu1 %v2605_v28  ;;  %v1903_v47 = vcombine.low %v643_v42, %v643_v42 }
  0x48   :  { %1269 = vmatprep.subr.bf16.mxu1 %v2400_v0 }
  0x4b   :  { %477 = vmatmul.mubr.bf16.gmra.mxu0 %v2272_v49  ;;  %v2320_v49 = vld [vmem:[%s3435_s2] ss:$16 sps:$4 sm:$0xff]  }
  0x4c   :  { %484 = vmatprep.mubr.bf16.mxu0 %v1840_v50  ;;  %v2326_v50 = vld [vmem:[%s3435_s2 + $0x24] ss:$16 sps:$4 sm:$0xff]  }
  0x4e   :  { %565 = vmatmul.mubr.bf16.gmra.mxu1 %v2275_v52  ;;  %v2329_v52 = vld [vmem:[%s3435_s2 + $0x2c] ss:$16 sps:$4 sm:$0xff]  }
  0x4f   :  { %1874 = vmatprep.mubr.msk.bf16.mxu1 %vm382_vm0, %v1842_v53  ;;  %v2328_v53 = vld [vmem:[%s3435_s2 + $0x20] ss:$16 sps:$4 sm:$0xff]  }
  0x53   :  { %485 = vmatmul.mubr.bf16.gmra.mxu0 %v1839_v55  ;;  %v2366_v55 = vld [vmem:[%s3436_s3 + $0x24] ss:$16 sps:$4 sm:$0xff]  }
  0x54   :  { %824 = vmatprep.mubr.bf16.mxu0 %v2282_v54  ;;  %v2360_v54 = vld [vmem:[%s3436_s3] ss:$16 sps:$4 sm:$0xff]  }
  0x56   :  { %573 = vmatmul.mubr.bf16.gmra.mxu1 %v1841_v56  ;;  %v2363_v56 = vld [vmem:[%s3436_s3 + $0x8] ss:$16 sps:$4 sm:$0xff]  }
  0x57   :  { %1905 = vmatprep.mubr.msk.bf16.mxu1 %vm382_vm0, %v2285_v57  ;;  %v2369_v57 = vld [vmem:[%s3436_s3 + $0x2c] ss:$16 sps:$4 sm:$0xff]  }
  0x5b   :  { %825 = vmatmul.mubr.bf16.vlgmr.msra.gmra.mxu0 %v2280_v58  ;;  %v2368_v58 = vld [vmem:[%s3436_s3 + $0x20] ss:$16 sps:$4 sm:$0xff]  }
  0x5c   :  { %2099 = vmatpush3.bf16.msra.mxu0 %v2456_v3  ;;  %832 = vmatprep.mubr.bf16.mxu0 %v2286_v59  ;;  %v2372_v59 = vld [vmem:[%s3436_s3 + $0x44] ss:$16 sps:$4 sm:$0xff]  }
  0x5d   :  { %2100 = vmatprep.subr.bf16.mxu0 %v2462_v4 }
  0x5e   :  { %913 = vmatmul.mubr.bf16.vlgmr.msra.gmra.mxu1 %v2283_v60  ;;  %v2371_v60 = vld [vmem:[%s3436_s3 + $0x28] ss:$16 sps:$4 sm:$0xff]  }
  0x5f   :  { %1270 = vmatpush1.bf16.msra.mxu1 %v2450_v2  ;;  %1906 = vmatprep.mubr.msk.bf16.mxu1 %vm382_vm0, %v2289_v61  ;;  %v2375_v61 = vld [vmem:[%s3436_s3 + $0x4c] ss:$16 sps:$4 sm:$0xff]  }
  0x60   :  { %2101 = vmatpush3.bf16.msra.mxu0 %v2475_v6  ;;  %1271 = vmatprep.subr.bf16.mxu1 %v2400_v0 }
  0x61   :  { %2102 = vmatprep.subr.bf16.mxu0 %v2480_v7 }
  0x63   :  { %833 = vmatmul.mubr.bf16.gmra.mxu0 %v2288_v62  ;;  %1272 = vmatpush1.bf16.msra.mxu1 %v2469_v5  ;;  %v2374_v62 = vld [vmem:[%s3436_s3 + $0x40] ss:$16 sps:$4 sm:$0xff]  }
  0x64   :  { %840 = vmatprep.mubr.bf16.mxu0 %v2292_v63  ;;  %2103 = vmatpush3.bf16.msra.mxu0 %v2493_v9  ;;  %v2378_v63 = vld [vmem:[%s3436_s3 + $0x64] ss:$16 sps:$4 sm:$0xff]  }
  0x65   :  { %1273 = vmatprep.subr.bf16.mxu1 %v2400_v0  ;;  %2104 = vmatprep.subr.bf16.mxu0 %v2499_v10 }
  0x66   :  { %921 = vmatmul.mubr.bf16.gmra.mxu1 %v2291_v23  ;;  %v2377_v23 = vld [vmem:[%s3436_s3 + $0x48] ss:$16 sps:$4 sm:$0xff]  }
  0x67   :  { %1907 = vmatprep.mubr.msk.bf16.mxu1 %vm382_vm0, %v2295_v25  ;;  %1274 = vmatpush1.bf16.msra.mxu1 %v2486_v8  ;;  %v2381_v25 = vld [vmem:[%s3436_s3 + $0x6c] ss:$16 sps:$4 sm:$0xff]  }
  0x68   :  { %2105 = vmatpush3.bf16.msra.mxu0 %v2512_v12  ;;  %1275 = vmatprep.subr.bf16.mxu1 %v2400_v0 }
  0x69   :  { %2106 = vmatprep.subr.bf16.mxu0 %v2518_v13 }
  0x6b   :  { %841 = vmatmul.mubr.bf16.gmra.mxu0 %v2294_v27  ;;  %1276 = vmatpush1.bf16.msra.mxu1 %v2505_v11  ;;  %v2380_v27 = vld [vmem:[%s3436_s3 + $0x60] ss:$16 sps:$4 sm:$0xff]  }
  0x6c   :  { %848 = vmatprep.mubr.bf16.mxu0 %v2298_v29  ;;  %2107 = vmatpush3.bf16.msra.mxu0 %v2531_v15  ;;  %v2384_v29 = vld [vmem:[%s3436_s3 + $0x84] ss:$16 sps:$4 sm:$0xff]  }
  0x6d   :  { %1277 = vmatprep.subr.bf16.mxu1 %v2400_v0  ;;  %2108 = vmatprep.subr.bf16.mxu0 %v2537_v16 }
  0x6e   :  { %929 = vmatmul.mubr.bf16.gmra.mxu1 %v2297_v30  ;;  %v2383_v30 = vld [vmem:[%s3436_s3 + $0x68] ss:$16 sps:$4 sm:$0xff]  }
  0x6f   :  { %1908 = vmatprep.mubr.msk.bf16.mxu1 %vm382_vm0, %v2301_v31  ;;  %1278 = vmatpush1.bf16.msra.mxu1 %v2524_v14 }
  0x70   :  { %2109 = vmatpush3.bf16.msra.mxu0 %v2550_v18  ;;  %1279 = vmatprep.subr.bf16.mxu1 %v2400_v0 }
  0x71   :  { %2110 = vmatprep.subr.bf16.mxu0 %v2556_v19 }
  0x73   :  { %849 = vmatmul.mubr.bf16.gmra.mxu0 %v2300_v32  ;;  %1280 = vmatpush1.bf16.msra.mxu1 %v2543_v17  ;;  %v2387_v32 = vld [vmem:[%s3436_s3 + $0x8c] ss:$16 sps:$4 sm:$0xff]  }
  0x74   :  { %856 = vmatprep.mubr.bf16.mxu0 %v2304_v33  ;;  %1281 = vmatprep.subr.bf16.mxu1 %v2400_v0 }
  0x75   :  { %2111 = vmatpush3.bf16.msra.mxu0 %v2567_v21 }
  0x76   :  { %937 = vmatmul.mubr.bf16.gmra.mxu1 %v2303_v34  ;;  %2112 = vmatprep.subr.bf16.mxu0 %v2574_v22 }
  0x77   :  { %1909 = vmatprep.mubr.msk.bf16.mxu1 %vm382_vm0, %v2307_v35  ;;  %1282 = vmatpush1.bf16.msra.mxu1 %v2561_v20 }
  0x78   :  { %1283 = vmatprep.subr.bf16.mxu1 %v2400_v0 }
  0x79   :  { %2113 = vmatpush3.bf16.msra.mxu0 %v2594_v26 }
  0x7a   :  { %2156 = vmatprep.subr.bf16.mxu0 %v2445_v1  ;;  %v1902_v1 = vcombine.high %v642_v40, %v642_v40  ;;  %v2390_v40 = vld [vmem:[%s3436_s3 + $0xa4] ss:$16 sps:$4 sm:$0xff]  }
  0x7b   :  { %857 = vmatmul.mubr.bf16.gmra.mxu0 %v2306_v36  ;;  %1284 = vmatpush1.bf16.msra.mxu1 %v2584_v24 }
  0x7c   :  { %864 = vmatprep.mubr.bf16.mxu0 %v2310_v37  ;;  %1299 = vmatprep.subr.bf16.mxu1 %v2400_v0  ;;  %v2386_v37 = vld [vmem:[%s3436_s3 + $0x80] ss:$16 sps:$4 sm:$0xff]  }
  0x7e   :  { %945 = vmatmul.mubr.bf16.gmra.mxu1 %v2309_v38 }
  0x7f   :  { %1910 = vmatprep.mubr.msk.bf16.mxu1 %vm382_vm0, %v2313_v39  ;;  %1300 = vmatpush2.bf16.msra.mxu1 %v2605_v28 }
  0x80   :  { %1658 = vmatprep.subr.bf16.mxu1 %v2400_v0 }
  0x83   :  { %865 = vmatmul.mubr.bf16.gmra.mxu0 %v2312_v41 }
  0x84   :  { %872 = vmatprep.mubr.bf16.mxu0 %v1902_v1 }
  0x86   :  { %953 = vmatmul.mubr.bf16.gmra.mxu1 %v2315_v43  ;;  %v2389_v43 = vld [vmem:[%s3436_s3 + $0x88] ss:$16 sps:$4 sm:$0xff]  }
  0x87   :  { %1911 = vmatprep.mubr.msk.bf16.mxu1 %vm382_vm0, %v1904_v44 }
  0x8b   :  { %873 = vmatmul.mubr.bf16.gmra.mxu0 %v1901_v45  ;;  %v2393_v45 = vld [vmem:[%s3436_s3 + $0xac] ss:$16 sps:$4 sm:$0xff]  }
  0x8c   :  { %1213 = vmatprep.mubr.bf16.mxu0 %v2322_v46 }
  0x8e   :  { %961 = vmatmul.mubr.bf16.gmra.mxu1 %v1903_v47 }
  0x8f   :  { %1940 = vmatprep.mubr.msk.bf16.mxu1 %vm382_vm0, %v2325_v48 }
  0x93   :  { %1214 = vmatmul.mubr.bf16.vlgmr.msra.gmra.mxu0 %v2320_v49  ;;  %v1420_v49 = vld [vmem:[%s3436_s3 + $0xc0] sm:$0x11] }
  0x94   :  { %2157 = vmatpush3.bf16.msra.mxu0 %v2456_v3  ;;  %1221 = vmatprep.mubr.bf16.mxu0 %v2326_v50  ;;  %v2332_v3 = vld [vmem:[%s3435_s2 + $0x44] ss:$16 sps:$4 sm:$0xff]  }
  0x95   :  { %2158 = vmatprep.subr.bf16.mxu0 %v2462_v4  ;;  %v2335_v4 = vld [vmem:[%s3435_s2 + $0x4c] ss:$16 sps:$4 sm:$0xff]  }
  0x96   :  { %1302 = vmatmul.mubr.bf16.vlgmr.msra.gmra.mxu1 %v2323_v51 }
  0x97   :  { %1659 = vmatpush1.bf16.msra.mxu1 %v2450_v2  ;;  %1941 = vmatprep.mubr.msk.bf16.mxu1 %vm382_vm0, %v2329_v52  ;;  %v2331_v2 = vld [vmem:[%s3435_s2 + $0x28] ss:$16 sps:$4 sm:$0xff]  }
  0x98   :  { %2159 = vmatpush3.bf16.msra.mxu0 %v2475_v6  ;;  %1660 = vmatprep.subr.bf16.mxu1 %v2400_v0  ;;  %v2334_v6 = vld [vmem:[%s3435_s2 + $0x40] ss:$16 sps:$4 sm:$0xff]  }
  0x99   :  { %2160 = vmatprep.subr.bf16.mxu0 %v2480_v7  ;;  %v2337_v7 = vld [vmem:[%s3435_s2 + $0x48] ss:$16 sps:$4 sm:$0xff]  }
  0x9b   :  { %1222 = vmatmul.mubr.bf16.gmra.mxu0 %v2328_v53  ;;  %1661 = vmatpush1.bf16.msra.mxu1 %v2469_v5  ;;  %v2338_v5 = vld [vmem:[%s3435_s2 + $0x64] ss:$16 sps:$4 sm:$0xff]   ;;  %v2392_v53 = vld [vmem:[%s3436_s3 + $0xa0] ss:$16 sps:$4 sm:$0xff]  }
  0x9c   :  { %1229 = vmatprep.mubr.bf16.mxu0 %v2332_v3  ;;  %2161 = vmatpush3.bf16.msra.mxu0 %v2493_v9  ;;  %v2340_v9 = vld [vmem:[%s3435_s2 + $0x60] ss:$16 sps:$4 sm:$0xff]  }
  0x9d   :  { %1662 = vmatprep.subr.bf16.mxu1 %v2400_v0  ;;  %2162 = vmatprep.subr.bf16.mxu0 %v2499_v10  ;;  %v2344_v10 = vld [vmem:[%s3435_s2 + $0x84] ss:$16 sps:$4 sm:$0xff]  }
  0x9e   :  { %1310 = vmatmul.mubr.bf16.gmra.mxu1 %v2331_v2 }
  0x9f   :  { %1942 = vmatprep.mubr.msk.bf16.mxu1 %vm382_vm0, %v2335_v4  ;;  %1663 = vmatpush1.bf16.msra.mxu1 %v2486_v8  ;;  %v2341_v8 = vld [vmem:[%s3435_s2 + $0x6c] ss:$16 sps:$4 sm:$0xff]   ;;  %v1972_v4 = vcombine.high %v1420_v49, %v1420_v49 }
  0xa0   :  { %2163 = vmatpush3.bf16.msra.mxu0 %v2512_v12  ;;  %1664 = vmatprep.subr.bf16.mxu1 %v2400_v0  ;;  %v2347_v12 = vld [vmem:[%s3435_s2 + $0x8c] ss:$16 sps:$4 sm:$0xff]  }
  0xa1   :  { %2164 = vmatprep.subr.bf16.mxu0 %v2518_v13  ;;  %v2346_v13 = vld [vmem:[%s3435_s2 + $0x80] ss:$16 sps:$4 sm:$0xff]  }
  0xa3   :  { %1230 = vmatmul.mubr.bf16.gmra.mxu0 %v2334_v6  ;;  %1665 = vmatpush1.bf16.msra.mxu1 %v2505_v11  ;;  %v2343_v11 = vld [vmem:[%s3435_s2 + $0x68] ss:$16 sps:$4 sm:$0xff]  }
  0xa4   :  { %1237 = vmatprep.mubr.bf16.mxu0 %v2338_v5  ;;  %2165 = vmatpush3.bf16.msra.mxu0 %v2531_v15  ;;  %v2349_v15 = vld [vmem:[%s3435_s2 + $0x88] ss:$16 sps:$4 sm:$0xff]  }
  0xa5   :  { %1666 = vmatprep.subr.bf16.mxu1 %v2400_v0  ;;  %2166 = vmatprep.subr.bf16.mxu0 %v2537_v16  ;;  %v2353_v16 = vld [vmem:[%s3435_s2 + $0xac] ss:$16 sps:$4 sm:$0xff]  }
  0xa6   :  { %1318 = vmatmul.mubr.bf16.gmra.mxu1 %v2337_v7  ;;  %v1421_v6 = vld [vmem:[%s3436_s3 + $0xc8] sm:$0x11] }
  0xa7   :  { %1943 = vmatprep.mubr.msk.bf16.mxu1 %vm382_vm0, %v2341_v8  ;;  %1667 = vmatpush1.bf16.msra.mxu1 %v2524_v14  ;;  %v2350_v14 = vld [vmem:[%s3435_s2 + $0xa4] ss:$16 sps:$4 sm:$0xff]  }
  0xa8   :  { %2167 = vmatpush3.bf16.msra.mxu0 %v2550_v18  ;;  %1668 = vmatprep.subr.bf16.mxu1 %v2400_v0  ;;  %v2352_v18 = vld [vmem:[%s3435_s2 + $0xa0] ss:$16 sps:$4 sm:$0xff]  }
  0xa9   :  { %2168 = vmatprep.subr.bf16.mxu0 %v2556_v19 }
  0xab   :  { %1238 = vmatmul.mubr.bf16.gmra.mxu0 %v2340_v9  ;;  %1669 = vmatpush1.bf16.msra.mxu1 %v2543_v17  ;;  %v1031_v17 = vld [vmem:[%s3435_s2 + $0xc0] sm:$0x11]  ;;  %v2395_v9 = vld [vmem:[%s3436_s3 + $0xa8] ss:$16 sps:$4 sm:$0xff]  }
  0xac   :  { %1245 = vmatprep.mubr.bf16.mxu0 %v2344_v10  ;;  %1670 = vmatprep.subr.bf16.mxu1 %v2400_v0  ;;  %v1937_v19 = vcombine.high %v1031_v17, %v1031_v17 }
  0xad   :  { %2169 = vmatpush3.bf16.msra.mxu0 %v2567_v21 }
  0xae   :  { %1326 = vmatmul.mubr.bf16.gmra.mxu1 %v2343_v11  ;;  %2170 = vmatprep.subr.bf16.mxu0 %v2574_v22  ;;  %v1936_v22 = vcombine.low %v1031_v17, %v1031_v17  ;;  %v1974_v11 = vcombine.high %v1421_v6, %v1421_v6 }
  0xaf   :  { %1944 = vmatprep.mubr.msk.bf16.mxu1 %vm382_vm0, %v2347_v12  ;;  %1671 = vmatpush1.bf16.msra.mxu1 %v2561_v20  ;;  %v1032_v20 = vld [vmem:[%s3435_s2 + $0xc8] sm:$0x11] }
  0xb0   :  { %1672 = vmatprep.subr.bf16.mxu1 %v2400_v0  ;;  %v1939_v21 = vcombine.high %v1032_v20, %v1032_v20 }
  0xb1   :  { %2171 = vmatpush3.bf16.msra.mxu0 %v2594_v26  ;;  %v1938_v26 = vcombine.low %v1032_v20, %v1032_v20 }
  0xb3   :  { %1246 = vmatmul.mubr.bf16.gmra.mxu0 %v2346_v13  ;;  %1673 = vmatpush1.bf16.msra.mxu1 %v2584_v24  ;;  %v2362_v24 = vld [vmem:[%s3436_s3 + $0x4] ss:$16 sps:$4 sm:$0xff]  }
  0xb4   :  { %1253 = vmatprep.mubr.bf16.mxu0 %v2350_v14  ;;  %1688 = vmatprep.subr.bf16.mxu1 %v2400_v0  ;;  %v2355_v0 = vld [vmem:[%s3435_s2 + $0xa8] ss:$16 sps:$4 sm:$0xff]  }
  0xb6   :  { %1334 = vmatmul.mubr.bf16.gmra.mxu1 %v2349_v15 }
  0xb7   :  { %1945 = vmatprep.mubr.msk.bf16.mxu1 %vm382_vm0, %v2353_v16  ;;  %1689 = vmatpush2.bf16.msra.mxu1 %v2605_v28  ;;  %v2365_v28 = vld [vmem:[%s3436_s3 + $0xc] ss:$16 sps:$4 sm:$0xff]  }
  0xbb   :  { %1254 = vmatmul.mubr.bf16.gmra.mxu0 %v2352_v18  ;;  %v1971_v18 = vcombine.low %v1420_v49, %v1420_v49 }
  0xbc   :  { %1261 = vmatprep.mubr.bf16.mxu0 %v1937_v19 }
  0xbe   :  { %1342 = vmatmul.mubr.bf16.gmra.mxu1 %v2355_v0 }
  0xbf   :  { %1946 = vmatprep.mubr.msk.bf16.mxu1 %vm382_vm0, %v1939_v21 }
  0xc3   :  { %1262 = vmatmul.mubr.bf16.gmra.mxu0 %v1936_v22 }
  0xc4   :  { %1602 = vmatprep.mubr.bf16.mxu0 %v2362_v24  ;;  %v1973_v24 = vcombine.low %v1421_v6, %v1421_v6 }
  0xc6   :  { %1350 = vmatmul.mubr.bf16.gmra.mxu1 %v1938_v26 }
  0xc7   :  { %1975 = vmatprep.mubr.msk.bf16.mxu1 %vm382_vm0, %v2365_v28 }
  0xcb   :  { %1603 = vmatmul.mubr.bf16.vlgmr.msra.gmra.mxu0 %v2360_v54 }
  0xcc   :  { %1610 = vmatprep.mubr.bf16.mxu0 %v2366_v55 }
  0xce   :  { %1691 = vmatmul.mubr.bf16.vlgmr.msra.gmra.mxu1 %v2363_v56 }
  0xcf   :  { %1976 = vmatprep.mubr.msk.bf16.mxu1 %vm382_vm0, %v2369_v57 }
  0xd3   :  { %1611 = vmatmul.mubr.bf16.gmra.mxu0 %v2368_v58 }
  0xd4   :  { %1618 = vmatprep.mubr.bf16.mxu0 %v2372_v59 }
  0xd6   :  { %1699 = vmatmul.mubr.bf16.gmra.mxu1 %v2371_v60 }
  0xd7   :  { %1977 = vmatprep.mubr.msk.bf16.mxu1 %vm382_vm0, %v2375_v61 }
  0xdb   :  { %1619 = vmatmul.mubr.bf16.gmra.mxu0 %v2374_v62 }
  0xdc   :  { %1626 = vmatprep.mubr.bf16.mxu0 %v2378_v63 }
  0xde   :  { %1707 = vmatmul.mubr.bf16.gmra.mxu1 %v2377_v23 }
  0xdf   :  { %1978 = vmatprep.mubr.msk.bf16.mxu1 %vm382_vm0, %v2381_v25 }
  0xe3   :  { %v1998_v31 = vpop.f32.mrf.mxu0  ;;  %1627 = vmatmul.mubr.bf16.gmra.mxu0 %v2380_v27 }
  0xe4   :  { %1634 = vmatprep.mubr.bf16.mxu0 %v2384_v29 }
  0xe5   :  { %v1999_v33 = vpop.f32.mrf.mxu0 }
  0xe6   :  { %v2000_v34 = vadd.f32 %v1999_v33, %v1998_v31  ;;  %v526_v35 = vpop.f32.mrf.mxu1  ;;  %1715 = vmatmul.mubr.bf16.gmra.mxu1 %v2383_v30 }
  0xe7   :  { %v2001_v36 = vpop.f32.mrf.mxu0  ;;  %1979 = vmatprep.mubr.msk.bf16.mxu1 %vm382_vm0, %v2387_v32 }
  0xe8   :  { %v3019_v38 = vadd.f32 %v2000_v34, %v526_v35  ;;  %v528_v39 = vpop.f32.mrf.mxu1 }
  0xe9   :  { %v2002_v41 = vpop.f32.mrf.mxu0 }
  0xea   :  { %v2003_v1 = vadd.f32 %v2002_v41, %v2001_v36  ;;  %v529_v42 = vpop.f32.mrf.mxu1 }
  0xeb   :  { %v2004_v44 = vpop.f32.mrf.mxu0  ;;  %1635 = vmatmul.mubr.bf16.gmra.mxu0 %v2386_v37 }
  0xec   :  { %v3030_v46 = vadd.f32 %v2003_v1, %v529_v42  ;;  %v531_v47 = vpop.f32.mrf.mxu1  ;;  %1642 = vmatprep.mubr.bf16.mxu0 %v2390_v40 }
  0xed   :  { %v2005_v48 = vpop.f32.mrf.mxu0 }
  0xee   :  { %v2006_v50 = vadd.f32 %v2005_v48, %v2004_v44  ;;  %v534_v51 = vpop.f32.mrf.mxu1  ;;  %1723 = vmatmul.mubr.bf16.gmra.mxu1 %v2389_v43 }
  0xef   :  { %v2007_v52 = vpop.f32.mrf.mxu0  ;;  %1980 = vmatprep.mubr.msk.bf16.mxu1 %vm382_vm0, %v2393_v45 }
  0xf0   :  { %v3039_v3 = vadd.f32 %v2006_v50, %v534_v51  ;;  %v536_v2 = vpop.f32.mrf.mxu1 }
  0xf1   :  { %v2008_v5 = vpop.f32.mrf.mxu0 }
  0xf2   :  { %v2009_v7 = vadd.f32 %v2008_v5, %v2007_v52  ;;  %v537_v8 = vpop.f32.mrf.mxu1 }
  0xf3   :  { %v2010_v10 = vpop.f32.mrf.mxu0  ;;  %1643 = vmatmul.mubr.bf16.gmra.mxu0 %v2392_v53 }
  0xf4   :  { %v3047_v12 = vadd.f32 %v2009_v7, %v537_v8  ;;  %v539_v13 = vpop.f32.mrf.mxu1  ;;  %1650 = vmatprep.mubr.bf16.mxu0 %v1972_v4 }
  0xf5   :  { %v2011_v14 = vpop.f32.mrf.mxu0 }
  0xf6   :  { %v2012_v15 = vadd.f32 %v2011_v14, %v2010_v10  ;;  %v542_v16 = vpop.f32.mrf.mxu1  ;;  %1731 = vmatmul.mubr.bf16.gmra.mxu1 %v2395_v9  ;;  %v3071_v14 = vld [vmem:[%s3437_s5] ss:$0 sm:$0xff] }
  0xf7   :  { %v2013_v17 = vpop.f32.mrf.mxu0  ;;  %1981 = vmatprep.mubr.msk.bf16.mxu1 %vm382_vm0, %v1974_v11 }
  0xf8   :  { %v3050_v19 = vadd.f32 %v2012_v15, %v542_v16  ;;  %v544_v20 = vpop.f32.mrf.mxu1 }
  0xf9   :  { %v2014_v0 = vpop.f32.mrf.mxu0  ;;  %v586_v20 = vmul.f32 %v3071_v14, %v3019_v38 }
  0xfa   :  { %v2015_v21 = vadd.f32 %v2014_v0, %v2013_v17  ;;  %v545_v22 = vpop.f32.mrf.mxu1 }
  0xfb   :  { %v2016_v26 = vpop.f32.mrf.mxu0  ;;  %1651 = vmatmul.mubr.bf16.gmra.mxu0 %v1971_v18 }
  0xfc   :  { %v3052_v28 = vadd.f32 %v2015_v21, %v545_v22  ;;  %v547_v54 = vpop.f32.mrf.mxu1  ;;  %v3078_v22 = vld [vmem:[%s3438_s6] ss:$0 sm:$0xff] }
  0xfd   :  { %v2017_v55 = vpop.f32.mrf.mxu0 }
  0xfe   :  { %v2018_v56 = vadd.f32 %v2017_v55, %v2016_v26  ;;  %v550_v57 = vpop.f32.mrf.mxu1  ;;  %1739 = vmatmul.mubr.bf16.gmra.mxu1 %v1973_v24 }
  0xff   :  { %v2019_v58 = vpop.f32.mrf.mxu0 }
 0x100   :  { %v3054_v59 = vadd.f32 %v2018_v56, %v550_v57  ;;  %v552_v60 = vpop.f32.mrf.mxu1  ;;  %v3082_v57 = vadd.f32 %v3078_v22, %v586_v20 }
 0x101   :  { %v2020_v61 = vpop.f32.mrf.mxu0 }
 0x102   :  { %v2021_v62 = vadd.f32 %v2020_v61, %v2019_v58  ;;  %v553_v63 = vpop.f32.mrf.mxu1  ;;  %v587_v58 = vmul.f32 %v3071_v14, %v3030_v46  ;;  %v588_v46 = vmul.f32 %v3071_v14, %v3039_v3  ;;  %v589_v3 = vmul.f32 %v3071_v14, %v3047_v12 }
 0x103   :  { %v2022_v23 = vpop.f32.mrf.mxu0  ;;  %v590_v12 = vmul.f32 %v3071_v14, %v3050_v19  ;;  %v591_v19 = vmul.f32 %v3071_v14, %v3052_v28  ;;  %v592_v28 = vmul.f32 %v3071_v14, %v3054_v59 }
 0x104   :  { %v3056_v25 = vadd.f32 %v2021_v62, %v553_v63  ;;  %v555_v27 = vpop.f32.mrf.mxu1 }
 0x105   :  { %v2023_v29 = vpop.f32.mrf.mxu0 }
 0x106   :  { %v2024_v30 = vadd.f32 %v2023_v29, %v2022_v23  ;;  %v558_v31 = vpop.f32.mrf.mxu1  ;;  %v593_v59 = vmul.f32 %v3071_v14, %v3056_v25 }
 0x107   :  { %v2025_v32 = vpop.f32.mrf.mxu0 }
 0x108   :  { %v3058_v33 = vadd.f32 %v2024_v30, %v558_v31  ;;  %v560_v34 = vpop.f32.mrf.mxu1  ;;  %v3093_v31 = vadd.f32 %v3078_v22, %v587_v58 }
 0x109   :  { %v2026_v35 = vpop.f32.mrf.mxu0 }
 0x10a   :  { %v2027_v36 = vadd.f32 %v2026_v35, %v2025_v32  ;;  %v561_v37 = vpop.f32.mrf.mxu1  ;;  %v594_v25 = vmul.f32 %v3071_v14, %v3058_v33 }
 0x10b   :  { %v2028_v39 = vpop.f32.mrf.mxu0 }
 0x10c   :  { %v3060_v40 = vadd.f32 %v2027_v36, %v561_v37  ;;  %v563_v41 = vpop.f32.mrf.mxu1 }
 0x10d   :  { %v2029_v1 = vpop.f32.mrf.mxu0 }
 0x10e   :  { %v2030_v42 = vadd.f32 %v2029_v1, %v2028_v39  ;;  %v566_v43 = vpop.f32.mrf.mxu1  ;;  %v595_v33 = vmul.f32 %v3071_v14, %v3060_v40 }
 0x10f   :  { %v2031_v44 = vpop.f32.mrf.mxu0 }
 0x110   :  { %v3062_v45 = vadd.f32 %v2030_v42, %v566_v43  ;;  %v568_v47 = vpop.f32.mrf.mxu1  ;;  %v3104_v43 = vadd.f32 %v3078_v22, %v588_v46 }
 0x111   :  { %v2032_v48 = vpop.f32.mrf.mxu0 }
 0x112   :  { %v2033_v49 = vadd.f32 %v2032_v48, %v2031_v44  ;;  %v569_v50 = vpop.f32.mrf.mxu1  ;;  %v596_v40 = vmul.f32 %v3071_v14, %v3062_v45 }
 0x113   :  { %v2034_v51 = vpop.f32.mrf.mxu0 }
 0x114   :  { %v3064_v52 = vadd.f32 %v2033_v49, %v569_v50  ;;  %v571_v53 = vpop.f32.mrf.mxu1 }
 0x115   :  { %v2035_v2 = vpop.f32.mrf.mxu0 }
 0x116   :  { %v2036_v4 = vadd.f32 %v2035_v2, %v2034_v51  ;;  %v574_v6 = vpop.f32.mrf.mxu1  ;;  %v597_v45 = vmul.f32 %v3071_v14, %v3064_v52 }
 0x117   :  { %v2037_v5 = vpop.f32.mrf.mxu0 }
 0x118   :  { %v3066_v7 = vadd.f32 %v2036_v4, %v574_v6  ;;  %v576_v8 = vpop.f32.mrf.mxu1  ;;  %v3115_v6 = vadd.f32 %v3078_v22, %v589_v3 }
 0x119   :  { %v2038_v9 = vpop.f32.mrf.mxu0 }
 0x11a   :  { %v577_v10 = vpop.f32.mrf.mxu1  ;;  %v598_v52 = vmul.f32 %v3071_v14, %v3066_v7 }
 0x11b   :  { %v2056_v11 = vpop.f32.mrf.mxu0 }
 0x11c   :  { %v578_v13 = vpop.f32.mrf.mxu1 }
 0x11d   :  { %v2057_v15 = vpop.f32.mrf.mxu0 }
 0x11e   :  { %v2058_v16 = vadd.f32 %v2057_v15, %v2056_v11  ;;  %v914_v17 = vpop.f32.mrf.mxu1 }
 0x11f   :  { %v2059_v18 = vpop.f32.mrf.mxu0 }
 0x120   :  { %v915_v0 = vadd.f32 %v2058_v16, %v914_v17  ;;  %v916_v21 = vpop.f32.mrf.mxu1 }
 0x121   :  { %v2060_v24 = vpop.f32.mrf.mxu0 }
 0x122   :  { %v968_v26 = vmul.f32 %v3071_v14, %v915_v0  ;;  %v2061_v54 = vadd.f32 %v2060_v24, %v2059_v18  ;;  %v917_v55 = vpop.f32.mrf.mxu1  ;;  %v3126_v18 = vadd.f32 %v3078_v22, %v590_v12 }
 0x123   :  { %v2062_v56 = vpop.f32.mrf.mxu0 }
 0x124   :  { %v3087_v38 = vadd.f32 %v3078_v22, %v968_v26  ;;  %v918_v60 = vadd.f32 %v2061_v54, %v917_v55  ;;  %v919_v61 = vpop.f32.mrf.mxu1 }
 0x125   :  { %v2063_v62 = vpop.f32.mrf.mxu0 }
 0x126   :  { %v969_v23 = vmul.f32 %v3071_v14, %v918_v60  ;;  %v2064_v27 = vadd.f32 %v2063_v62, %v2062_v56  ;;  %v922_v29 = vpop.f32.mrf.mxu1  ;;  %v3137_v60 = vadd.f32 %v3078_v22, %v591_v19 }
 0x127   :  { %v2065_v30 = vpop.f32.mrf.mxu0 }
 0x128   :  { %v3098_v32 = vadd.f32 %v3078_v22, %v969_v23  ;;  %v923_v34 = vadd.f32 %v2064_v27, %v922_v29  ;;  %v924_v35 = vpop.f32.mrf.mxu1 }
 0x129   :  { %v2066_v36 = vpop.f32.mrf.mxu0 }
 0x12a   :  { %v970_v39 = vmul.f32 %v3071_v14, %v923_v34  ;;  %v2067_v41 = vadd.f32 %v2066_v36, %v2065_v30  ;;  %v925_v1 = vpop.f32.mrf.mxu1  ;;  %v3148_v36 = vadd.f32 %v3078_v22, %v592_v28 }
 0x12b   :  { %v2068_v42 = vpop.f32.mrf.mxu0 }
 0x12c   :  { %v3109_v44 = vadd.f32 %v3078_v22, %v970_v39  ;;  %v926_v47 = vadd.f32 %v2067_v41, %v925_v1  ;;  %v927_v48 = vpop.f32.mrf.mxu1 }
 0x12d   :  { %v2069_v49 = vpop.f32.mrf.mxu0 }
 0x12e   :  { %v971_v51 = vmul.f32 %v3071_v14, %v926_v47  ;;  %v2070_v53 = vadd.f32 %v2069_v49, %v2068_v42  ;;  %v930_v2 = vpop.f32.mrf.mxu1 }
 0x12f   :  { %v2071_v4 = vpop.f32.mrf.mxu0 }
 0x130   :  { %v3120_v5 = vadd.f32 %v3078_v22, %v971_v51  ;;  %v931_v8 = vadd.f32 %v2070_v53, %v930_v2  ;;  %v932_v9 = vpop.f32.mrf.mxu1  ;;  %v3159_v53 = vadd.f32 %v3078_v22, %v593_v59 }
 0x131   :  { %v2072_v10 = vpop.f32.mrf.mxu0 }
 0x132   :  { %v972_v13 = vmul.f32 %v3071_v14, %v931_v8  ;;  %v2073_v15 = vadd.f32 %v2072_v10, %v2071_v4  ;;  %v933_v16 = vpop.f32.mrf.mxu1  ;;  %3452 = vst [vmem:[#allocation2_spill] sm:$0xff] %v3159_v53 }
 0x133   :  { %v2074_v17 = vpop.f32.mrf.mxu0 }
 0x134   :  { %v3131_v20 = vadd.f32 %v3078_v22, %v972_v13  ;;  %v934_v0 = vadd.f32 %v2073_v15, %v933_v16  ;;  %v935_v21 = vpop.f32.mrf.mxu1 }
 0x135   :  { %v2075_v24 = vpop.f32.mrf.mxu0 }
 0x136   :  { %v973_v54 = vmul.f32 %v3071_v14, %v934_v0  ;;  %v2076_v55 = vadd.f32 %v2075_v24, %v2074_v17  ;;  %v938_v56 = vpop.f32.mrf.mxu1  ;;  %v3170_v17 = vadd.f32 %v3078_v22, %v594_v25 }
 0x137   :  { %v2077_v58 = vpop.f32.mrf.mxu0 }
 0x138   :  { %v3142_v61 = vadd.f32 %v3078_v22, %v973_v54  ;;  %v939_v62 = vadd.f32 %v2076_v55, %v938_v56  ;;  %v940_v23 = vpop.f32.mrf.mxu1  ;;  %3454 = vst [vmem:[#allocation4_spill] sm:$0xff] %v3170_v17 }
 0x139   :  { %v2078_v27 = vpop.f32.mrf.mxu0 }
 0x13a   :  { %v974_v30 = vmul.f32 %v3071_v14, %v939_v62  ;;  %v2079_v46 = vadd.f32 %v2078_v27, %v2077_v58  ;;  %v941_v34 = vpop.f32.mrf.mxu1  ;;  %v3181_v62 = vadd.f32 %v3078_v22, %v595_v33 }
 0x13b   :  { %v2080_v35 = vpop.f32.mrf.mxu0 }
 0x13c   :  { %v3153_v39 = vadd.f32 %v3078_v22, %v974_v30  ;;  %v942_v41 = vadd.f32 %v2079_v46, %v941_v34  ;;  %v943_v1 = vpop.f32.mrf.mxu1  ;;  %3456 = vst [vmem:[#allocation6_spill] sm:$0xff] %v3181_v62 }
 0x13d   :  { %v2081_v42 = vpop.f32.mrf.mxu0 }
 0x13e   :  { %v975_v47 = vmul.f32 %v3071_v14, %v942_v41  ;;  %v2082_v48 = vadd.f32 %v2081_v42, %v2080_v35  ;;  %v946_v49 = vpop.f32.mrf.mxu1  ;;  %v3192_v42 = vadd.f32 %v3078_v22, %v596_v40 }
 0x13f   :  { %v2083_v51 = vpop.f32.mrf.mxu0 }
 0x140   :  { %v3164_v2 = vadd.f32 %v3078_v22, %v975_v47  ;;  %v947_v4 = vadd.f32 %v2082_v48, %v946_v49  ;;  %v948_v12 = vpop.f32.mrf.mxu1  ;;  %3458 = vst [vmem:[#allocation8_spill] sm:$0xff] %v3192_v42 }
 0x141   :  { %v2084_v8 = vpop.f32.mrf.mxu0 }
 0x142   :  { %3453 = vst [vmem:[#allocation3_spill] sm:$0xff] %v3164_v2  ;;  %v976_v10 = vmul.f32 %v3071_v14, %v947_v4  ;;  %v2085_v13 = vadd.f32 %v2084_v8, %v2083_v51  ;;  %v949_v15 = vpop.f32.mrf.mxu1 }
 0x143   :  { %v2086_v16 = vpop.f32.mrf.mxu0 }
 0x144   :  { %v3175_v19 = vadd.f32 %v3078_v22, %v976_v10  ;;  %v950_v0 = vadd.f32 %v2085_v13, %v949_v15  ;;  %v951_v21 = vpop.f32.mrf.mxu1  ;;  %v3203_v13 = vadd.f32 %v3078_v22, %v597_v45 }
 0x145   :  { %v2087_v24 = vpop.f32.mrf.mxu0 }
 0x146   :  { %3455 = vst [vmem:[#allocation5_spill] sm:$0xff] %v3175_v19  ;;  %v977_v55 = vmul.f32 %v3071_v14, %v950_v0  ;;  %v2088_v56 = vadd.f32 %v2087_v24, %v2086_v16  ;;  %v954_v58 = vpop.f32.mrf.mxu1  ;;  %3460 = vst [vmem:[#allocation10_spill] sm:$0xff] %v3203_v13 }
 0x147   :  { %v2089_v28 = vpop.f32.mrf.mxu0 }
 0x148   :  { %v3186_v23 = vadd.f32 %v3078_v22, %v977_v55  ;;  %v955_v27 = vadd.f32 %v2088_v56, %v954_v58  ;;  %v956_v30 = vpop.f32.mrf.mxu1  ;;  %v3214_v58 = vadd.f32 %v3078_v22, %v598_v52 }
 0x149   :  { %v2090_v46 = vpop.f32.mrf.mxu0 }
 0x14a   :  { %3457 = vst [vmem:[#allocation7_spill] sm:$0xff] %v3186_v23  ;;  %v978_v35 = vmul.f32 %v3071_v14, %v955_v27  ;;  %v2091_v59 = vadd.f32 %v2090_v46, %v2089_v28  ;;  %v957_v41 = vpop.f32.mrf.mxu1  ;;  %3462 = vst [vmem:[#allocation12_spill] sm:$0xff] %v3214_v58 }
 0x14b   :  { %v2092_v1 = vpop.f32.mrf.mxu0 }
 0x14c   :  { %v3197_v47 = vadd.f32 %v3078_v22, %v978_v35  ;;  %v958_v48 = vadd.f32 %v2091_v59, %v957_v41  ;;  %v959_v49 = vpop.f32.mrf.mxu1 }
 0x14d   :  { %v2093_v51 = vpop.f32.mrf.mxu0 }
 0x14e   :  { %3459 = vst [vmem:[#allocation9_spill] sm:$0xff] %v3197_v47  ;;  %v979_v4 = vmul.f32 %v3071_v14, %v958_v48  ;;  %v2094_v12 = vadd.f32 %v2093_v51, %v2092_v1  ;;  %v962_v8 = vpop.f32.mrf.mxu1 }
 0x14f   :  { %v2095_v10 = vpop.f32.mrf.mxu0 }
 0x150   :  { %v3208_v15 = vadd.f32 %v3078_v22, %v979_v4  ;;  %v963_v16 = vadd.f32 %v2094_v12, %v962_v8  ;;  %v964_v33 = vpop.f32.mrf.mxu1 }
 0x151   :  { %v2096_v0 = vpop.f32.mrf.mxu0 }
 0x152   :  { %3461 = vst [vmem:[#allocation11_spill] sm:$0xff] %v3208_v15  ;;  %v980_v24 = vmul.f32 %v3071_v14, %v963_v16  ;;  %v965_v55 = vpop.f32.mrf.mxu1 }
 0x153   :  { %v2114_v56 = vpop.f32.mrf.mxu0 }
 0x154   :  { %v3217_v28 = vadd.f32 %v3078_v22, %v980_v24  ;;  %v966_v7 = vpop.f32.mrf.mxu1 }
 0x155   :  { %v2115_v40 = vpop.f32.mrf.mxu0 }
 0x156   :  { %3463 = vst [vmem:[#allocation13_spill] sm:$0xff] %v3217_v28  ;;  %v1303_v30 = vpop.f32.mrf.mxu1 }
 0x157   :  { %v2117_v46 = vpop.f32.mrf.mxu0 }
 0x158   :  { %v1305_v35 = vpop.f32.mrf.mxu1 }
 0x159   :  { %v2118_v59 = vpop.f32.mrf.mxu0 }
 0x15a   :  { %v1306_v41 = vpop.f32.mrf.mxu1 }
 0x15b   :  { %v2120_v1 = vpop.f32.mrf.mxu0 }
 0x15c   :  { %v1308_v45 = vpop.f32.mrf.mxu1 }
 0x15d   :  { %v2121_v48 = vpop.f32.mrf.mxu0 }
 0x15e   :  { %v1311_v49 = vpop.f32.mrf.mxu1 }
 0x15f   :  { %v2123_v51 = vpop.f32.mrf.mxu0 }
 0x160   :  { %v1313_v4 = vpop.f32.mrf.mxu1 }
 0x161   :  { %v2124_v12 = vpop.f32.mrf.mxu0 }
 0x162   :  { %v3221_v8 = vpop.f32.mrf.mxu1 }
 0x163   :  { %v3223_v10 = vpop.f32.mrf.mxu0 }
 0x164   :  { %v1316_v52 = vpop.f32.mrf.mxu1 }
 0x165   :  { %v2127_v16 = vpop.f32.mrf.mxu0 }
 0x166   :  { %v3225_v33 = vpop.f32.mrf.mxu1 }
 0x167   :  { %v3227_v0 = vpop.f32.mrf.mxu0 }
 0x168   :  { %v1321_v24 = vpop.f32.mrf.mxu1 }
 0x169   :  { %v3229_v55 = vpop.f32.mrf.mxu0 }
 0x16a   :  { %v3231_v7 = vpop.f32.mrf.mxu1 }
 0x16b   :  { %v3233_v35 = vpop.f32.mrf.mxu0 }
 0x16c   :  { %v1324_v45 = vpop.f32.mrf.mxu1 }
 0x16d   :  { %v3235_v4 = vpop.f32.mrf.mxu0 }
 0x16e   :  { %v3237_v27 = vpop.f32.mrf.mxu1 }
 0x16f   :  { %v3239_v21 = vpop.f32.mrf.mxu0 }
 0x170   :  { %v1329_v52 = vpop.f32.mrf.mxu1 }
 0x171   :  { %v3241_v25 = vpop.f32.mrf.mxu0 }
 0x172   :  { %v3243_v34 = vpop.f32.mrf.mxu1 }
 0x173   :  { %v3245_v54 = vpop.f32.mrf.mxu0 }
 0x174   :  { %v1332_v24 = vpop.f32.mrf.mxu1 }
 0x175   :  { %v3247_v9 = vpop.f32.mrf.mxu0 }
 0x176   :  { %v3249_v3 = vpop.f32.mrf.mxu1 }
 0x177   :  { %v3251_v29 = vpop.f32.mrf.mxu0 }
 0x178   :  { %v1337_v45 = vpop.f32.mrf.mxu1 }
 0x179   :  { %v3253_v26 = vpop.f32.mrf.mxu0  ;;  %v2116_v45 = vadd.f32 %v2115_v40, %v2114_v56  ;;  %v2125_v40 = vadd.f32 %v2124_v12, %v2123_v51 }
 0x17a   :  { %v3255_v11 = vpop.f32.mrf.mxu1 }
 0x17b   :  { %v3257_v50 = vpop.f32.mrf.mxu0  ;;  %v1304_v19 = vadd.f32 %v2116_v45, %v1303_v30 }
 0x17c   :  { %v1340_v52 = vpop.f32.mrf.mxu1 }
 0x17d   :  { %v3259_v37 = vpop.f32.mrf.mxu0  ;;  %v2119_v52 = vadd.f32 %v2118_v59, %v2117_v46 }
 0x17e   :  { %3464 = vst [vmem:[#allocation14_spill] sm:$0xff] %v3259_v37  ;;  %v3261_v63 = vpop.f32.mrf.mxu1 }
 0x17f   :  { %3465 = vst [vmem:[#allocation15_spill] sm:$0xff] %v3261_v63  ;;  %v3263_v28 = vpop.f32.mrf.mxu0  ;;  %v2122_v63 = vadd.f32 %v2121_v48, %v2120_v1 }
 0x180   :  { %3466 = vst [vmem:[#allocation16_spill] sm:$0xff] %v3263_v28  ;;  %v1345_v24 = vpop.f32.mrf.mxu1  ;;  %v1307_v28 = vadd.f32 %v2119_v52, %v1306_v41 }
 0x181   :  { %v3265_v58 = vpop.f32.mrf.mxu0 }
 0x182   :  { %3467 = vst [vmem:[#allocation17_spill] sm:$0xff] %v3265_v58  ;;  %v3267_v15 = vpop.f32.mrf.mxu1  ;;  %v1357_v58 = vmul.f32 %v3071_v14, %v1304_v19 }
 0x183   :  { %3468 = vst [vmem:[#allocation18_spill] sm:$0xff] %v3267_v15  ;;  %v3269_v13 = vpop.f32.mrf.mxu0 }
 0x184   :  { %3469 = vst [vmem:[#allocation19_spill] sm:$0xff] %v3269_v13  ;;  %v1348_v47 = vpop.f32.mrf.mxu1  ;;  %v1370_v46 = vadd.f32 %v3078_v22, %v1357_v58 }
 0x185   :  { %v3271_v42 = vpop.f32.mrf.mxu0  ;;  %v1358_v47 = vmul.f32 %v3071_v14, %v1307_v28  ;;  %v3471_v28 = vmax.f32 %v3082_v57, %v3087_v38  ;;  %v2131_v38 = vadd.f32 %v3229_v55, %v3227_v0 }
 0x186   :  { %3470 = vst [vmem:[#allocation20_spill] sm:$0xff] %v3271_v42  ;;  %v3273_v23 = vpop.f32.mrf.mxu1 }
 0x187   :  { %v2153_v62 = vpop.f32.mrf.mxu0  ;;  %v1371_v19 = vadd.f32 %v3078_v22, %v1358_v47  ;;  %v1383_v48 = vmax.f32 %v3471_v28, %v1370_v46 }
 0x188   :  { %v1353_v17 = vpop.f32.mrf.mxu1  ;;  %v1312_v62 = vadd.f32 %v2122_v63, %v1311_v49 }
 0x189   :  { %v2154_v2 = vpop.f32.mrf.mxu0 }
 0x18a   :  { %v1354_v53 = vpop.f32.mrf.mxu1  ;;  %v1359_v63 = vmul.f32 %v3071_v14, %v1312_v62 }
 0x18b   :  { %v2172_v24 = vpop.f32.mrf.mxu0 }
 0x18c   :  { %v1355_v15 = vpop.f32.mrf.mxu1 }
 0x18d   :  { %v2173_v37 = vpop.f32.mrf.mxu0  ;;  %v1315_v15 = vadd.f32 %v2125_v40, %v3221_v8  ;;  %v3472_v8 = vmax.f32 %v3093_v31, %v3098_v32 }
 0x18e   :  { %v2174_v13 = vadd.f32 %v2173_v37, %v2172_v24  ;;  %v1692_v56 = vpop.f32.mrf.mxu1  ;;  %v2128_v37 = vadd.f32 %v2127_v16, %v3223_v10 }
 0x18f   :  { %v2175_v42 = vpop.f32.mrf.mxu0  ;;  %v1384_v10 = vmax.f32 %v3472_v8, %v1371_v19  ;;  %v1360_v16 = vmul.f32 %v3071_v14, %v1315_v15 }
 0x190   :  { %v1693_v30 = vadd.f32 %v2174_v13, %v1692_v56  ;;  %v1694_v17 = vpop.f32.mrf.mxu1  ;;  %v1320_v57 = vadd.f32 %v2128_v37, %v3225_v33  ;;  %v1372_v56 = vadd.f32 %v3078_v22, %v1359_v63 }
 0x191   :  { %v2176_v2 = vpop.f32.mrf.mxu0  ;;  %v1373_v0 = vadd.f32 %v3078_v22, %v1360_v16 }
 0x192   :  { %v1746_v53 = vmul.f32 %v3071_v14, %v1693_v30  ;;  %v2177_v59 = vadd.f32 %v2176_v2, %v2175_v42  ;;  %v1695_v41 = vpop.f32.mrf.mxu1  ;;  %v1361_v55 = vmul.f32 %v3071_v14, %v1320_v57  ;;  %v1323_v2 = vadd.f32 %v2131_v38, %v3231_v7 }
 0x193   :  { %v2178_v1 = vpop.f32.mrf.mxu0 }
 0x194   :  { %v1759_v13 = vadd.f32 %v3078_v22, %v1746_v53  ;;  %v1696_v58 = vadd.f32 %v2177_v59, %v1695_v41  ;;  %v1697_v49 = vpop.f32.mrf.mxu1  ;;  %v2134_v53 = vadd.f32 %v3235_v4, %v3233_v35  ;;  %v3473_v41 = vmax.f32 %v3104_v43, %v3109_v44 }
 0x195   :  { %v2179_v51 = vpop.f32.mrf.mxu0  ;;  %v3474_v4 = vmax.f32 %v3115_v6, %v3120_v5  ;;  %v1374_v44 = vadd.f32 %v3078_v22, %v1361_v55 }
 0x196   :  { %v1772_v42 = vmax.f32 %v1383_v48, %v1759_v13  ;;  %v1747_v12 = vmul.f32 %v3071_v14, %v1696_v58  ;;  %v2180_v45 = vadd.f32 %v2179_v51, %v2178_v1  ;;  %v1700_v52 = vpop.f32.mrf.mxu1  ;;  %v1385_v19 = vmax.f32 %v3473_v41, %v1372_v56 }
 0x197   :  { %v2181_v24 = vpop.f32.mrf.mxu0  ;;  %v1386_v43 = vmax.f32 %v3474_v4, %v1373_v0  ;;  %v1362_v58 = vmul.f32 %v3071_v14, %v1323_v2  ;;  %v1328_v49 = vadd.f32 %v2134_v53, %v3237_v27  ;;  %v3475_v27 = vmax.f32 %v3126_v18, %v3131_v20 }
 0x198   :  { %v1785_v47 = vmax.f32 %v1772_v42, 0.0  ;;  %v1760_v40 = vadd.f32 %v3078_v22, %v1747_v12  ;;  %v1701_v46 = vadd.f32 %v2180_v45, %v1700_v52  ;;  %v1702_v62 = vpop.f32.mrf.mxu1  ;;  %v2137_v42 = vadd.f32 %v3241_v25, %v3239_v21 }
 0x199   :  { %v2182_v30 = vpop.f32.mrf.mxu0  ;;  %v1387_v38 = vmax.f32 %v3475_v27, %v1374_v44  ;;  %v1375_v25 = vadd.f32 %v3078_v22, %v1362_v58  ;;  %v1363_v21 = vmul.f32 %v3071_v14, %v1328_v49  ;;  %v2143_v0 = vadd.f32 %v3253_v26, %v3251_v29 }
 0x19a   :  { %1798 = vst [vmem:[%s3439_s7] sm:$0xff] %v1785_v47  ;;  %v1773_v31 = vmax.f32 %v1384_v10, %v1760_v40  ;;  %v1748_v32 = vmul.f32 %v3071_v14, %v1701_v46  ;;  %v2183_v33 = vadd.f32 %v2182_v30, %v2181_v24  ;;  %v1703_v17 = vpop.f32.mrf.mxu1  ;;  %v2140_v24 = vadd.f32 %v3247_v9, %v3245_v54 }
 0x19b   :  { %v2184_v59 = vpop.f32.mrf.mxu0  ;;  %v1331_v47 = vadd.f32 %v2137_v42, %v3243_v34  ;;  %v3476_v9 = vmax.f32 %v3137_v60, %v3142_v61  ;;  %v1376_v34 = vadd.f32 %v3078_v22, %v1363_v21  ;;  %v3477_v26 = vmax.f32 %v3148_v36, %v3153_v39  ;;  %v3479_v42 = vld [vmem:[#allocation15_spill] sm:$0xff] }
 0x19c   :  { %v1786_v15 = vmax.f32 %v1773_v31, 0.0  ;;  %v1761_v37 = vadd.f32 %v3078_v22, %v1748_v32  ;;  %v1704_v1 = vadd.f32 %v2183_v33, %v1703_v17  ;;  %v1705_v28 = vpop.f32.mrf.mxu1  ;;  %v1336_v17 = vadd.f32 %v2140_v24, %v3249_v3 }
 0x19d   :  { %v2185_v48 = vpop.f32.mrf.mxu0  ;;  %v1388_v54 = vmax.f32 %v3476_v9, %v1375_v25  ;;  %v1364_v2 = vmul.f32 %v3071_v14, %v1331_v47  ;;  %v1389_v29 = vmax.f32 %v3477_v26, %v1376_v34  ;;  %v1339_v28 = vadd.f32 %v2143_v0, %v3255_v11  ;;  %v3489_v34 = vld [vmem:[#allocation19_spill] sm:$0xff] }
 0x19e   :  { %1799 = vst [vmem:[%s3439_s7 + $0x8] sm:$0xff] %v1786_v15  ;;  %v1774_v63 = vmax.f32 %v1385_v19, %v1761_v37  ;;  %v1749_v7 = vmul.f32 %v3071_v14, %v1704_v1  ;;  %v2186_v13 = vadd.f32 %v2185_v48, %v2184_v59  ;;  %v1708_v35 = vpop.f32.mrf.mxu1  ;;  %v1365_v1 = vmul.f32 %v3071_v14, %v1336_v17  ;;  %v3478_v48 = vld [vmem:[#allocation14_spill] sm:$0xff]  ;;  %v3490_v17 = vld [vmem:[#allocation20_spill] sm:$0xff] }
 0x19f   :  { %v2187_v51 = vpop.f32.mrf.mxu0  ;;  %v2152_v0 = vadd.f32 %v3490_v17, %v3489_v34 }
 0x1a0   :  { %v1787_v12 = vmax.f32 %v1774_v63, 0.0  ;;  %v1762_v45 = vadd.f32 %v3078_v22, %v1749_v7  ;;  %v1709_v52 = vadd.f32 %v2186_v13, %v1708_v35  ;;  %v1710_v8 = vpop.f32.mrf.mxu1  ;;  %v2146_v63 = vadd.f32 %v3478_v48, %v3257_v50 }
 0x1a1   :  { %v2188_v10 = vpop.f32.mrf.mxu0  ;;  %v1377_v13 = vadd.f32 %v3078_v22, %v1364_v2  ;;  %v1378_v50 = vadd.f32 %v3078_v22, %v1365_v1 }
 0x1a2   :  { %1800 = vst [vmem:[%s3439_s7 + $0x10] sm:$0xff] %v1787_v12  ;;  %v1775_v6 = vmax.f32 %v1386_v43, %v1762_v45  ;;  %v1750_v5 = vmul.f32 %v3071_v14, %v1709_v52  ;;  %v2189_v16 = vadd.f32 %v2188_v10, %v2187_v51  ;;  %v1711_v57 = vpop.f32.mrf.mxu1  ;;  %v1366_v51 = vmul.f32 %v3071_v14, %v1339_v28  ;;  %v3480_v45 = vld [vmem:[#allocation16_spill] sm:$0xff]  ;;  %v3481_v52 = vld [vmem:[#allocation17_spill] sm:$0xff] }
 0x1a3   :  { %v2190_v56 = vpop.f32.mrf.mxu0  ;;  %v1344_v12 = vadd.f32 %v2146_v63, %v3479_v42  ;;  %v2149_v8 = vadd.f32 %v3481_v52, %v3480_v45  ;;  %v1352_v63 = vadd.f32 %v2152_v0, %v3273_v23 }
 0x1a4   :  { %v1788_v40 = vmax.f32 %v1775_v6, 0.0  ;;  %v1763_v46 = vadd.f32 %v3078_v22, %v1750_v5  ;;  %v1712_v62 = vadd.f32 %v2189_v16, %v1711_v57  ;;  %v1713_v30 = vpop.f32.mrf.mxu1  ;;  %v3482_v6 = vld [vmem:[#allocation2_spill] sm:$0xff]  ;;  %v3483_v5 = vld [vmem:[#allocation3_spill] sm:$0xff] }
 0x1a5   :  { %v2191_v31 = vpop.f32.mrf.mxu0  ;;  %v3484_v16 = vmax.f32 %v3482_v6, %v3483_v5  ;;  %v3486_v30 = vld [vmem:[#allocation5_spill] sm:$0xff] }
 0x1a6   :  { %1801 = vst [vmem:[%s3439_s7 + $0x18] sm:$0xff] %v1788_v40  ;;  %v1776_v18 = vmax.f32 %v1387_v38, %v1763_v46  ;;  %v1751_v20 = vmul.f32 %v3071_v14, %v1712_v62  ;;  %v2192_v32 = vadd.f32 %v2191_v31, %v2190_v56  ;;  %v1716_v33 = vpop.f32.mrf.mxu1  ;;  %v3485_v62 = vld [vmem:[#allocation4_spill] sm:$0xff] }
 0x1a7   :  { %v2193_v55 = vpop.f32.mrf.mxu0  ;;  %v1390_v57 = vmax.f32 %v3484_v16, %v1377_v13  ;;  %v3487_v31 = vmax.f32 %v3485_v62, %v3486_v30 }
 0x1a8   :  { %v1789_v53 = vmax.f32 %v1776_v18, 0.0  ;;  %v1764_v59 = vadd.f32 %v3078_v22, %v1751_v20  ;;  %v1717_v41 = vadd.f32 %v2192_v32, %v1716_v33  ;;  %v1718_v19 = vpop.f32.mrf.mxu1  ;;  %v1379_v20 = vadd.f32 %v3078_v22, %v1366_v51  ;;  %v3488_v33 = vld [vmem:[#allocation18_spill] sm:$0xff] }
 0x1a9   :  { %v2194_v15 = vpop.f32.mrf.mxu0  ;;  %v1391_v18 = vmax.f32 %v3487_v31, %v1378_v50  ;;  %v1367_v32 = vmul.f32 %v3071_v14, %v1344_v12  ;;  %v1347_v9 = vadd.f32 %v2149_v8, %v3488_v33  ;;  %v1369_v12 = vmul.f32 %v3071_v14, %v1352_v63  ;;  %v3500_v33 = vld [vmem:[#allocation12_spill] sm:$0xff] }
 0x1aa   :  { %1802 = vst [vmem:[%s3439_s7 + $0x20] sm:$0xff] %v1789_v53  ;;  %v1777_v60 = vmax.f32 %v1388_v54, %v1764_v59  ;;  %v1752_v61 = vmul.f32 %v3071_v14, %v1717_v41  ;;  %v2195_v3 = vadd.f32 %v2194_v15, %v2193_v55  ;;  %v1719_v37 = vpop.f32.mrf.mxu1 }
 0x1ab   :  { %v2196_v7 = vpop.f32.mrf.mxu0  ;;  %v1380_v1 = vadd.f32 %v3078_v22, %v1367_v32  ;;  %v1368_v28 = vmul.f32 %v3071_v14, %v1347_v9  ;;  %v3501_v9 = vld [vmem:[#allocation13_spill] sm:$0xff] }
 0x1ac   :  { %v1790_v35 = vmax.f32 %v1777_v60, 0.0  ;;  %v1765_v4 = vadd.f32 %v3078_v22, %v1752_v61  ;;  %v1720_v43 = vadd.f32 %v2195_v3, %v1719_v37  ;;  %v1721_v44 = vpop.f32.mrf.mxu1  ;;  %v3491_v3 = vld [vmem:[#allocation6_spill] sm:$0xff]  ;;  %v3492_v37 = vld [vmem:[#allocation7_spill] sm:$0xff] }
 0x1ad   :  { %v2197_v58 = vpop.f32.mrf.mxu0  ;;  %v3493_v26 = vmax.f32 %v3491_v3, %v3492_v37  ;;  %v1381_v23 = vadd.f32 %v3078_v22, %v1368_v28 }
 0x1ae   :  { %1803 = vst [vmem:[%s3439_s7 + $0x28] sm:$0xff] %v1790_v35  ;;  %v1778_v36 = vmax.f32 %v1389_v29, %v1765_v4  ;;  %v1753_v39 = vmul.f32 %v3071_v14, %v1720_v43  ;;  %v2198_v11 = vadd.f32 %v2197_v58, %v2196_v7  ;;  %v1724_v49 = vpop.f32.mrf.mxu1 }
 0x1af   :  { %v2199_v10 = vpop.f32.mrf.mxu0  ;;  %v1392_v29 = vmax.f32 %v3493_v26, %v1379_v20 }
 0x1b0   :  { %v1791_v27 = vmax.f32 %v1778_v36, 0.0  ;;  %v1766_v38 = vadd.f32 %v3078_v22, %v1753_v39  ;;  %v1725_v25 = vadd.f32 %v2198_v11, %v1724_v49  ;;  %v1726_v21 = vpop.f32.mrf.mxu1  ;;  %v3494_v11 = vld [vmem:[#allocation8_spill] sm:$0xff]  ;;  %v3495_v49 = vld [vmem:[#allocation9_spill] sm:$0xff] }
 0x1b1   :  { %v2200_v24 = vpop.f32.mrf.mxu0  ;;  %v3496_v50 = vmax.f32 %v3494_v11, %v3495_v49 }
 0x1b2   :  { %1804 = vst [vmem:[%s3439_s7 + $0x30] sm:$0xff] %v1791_v27  ;;  %v1779_v56 = vmax.f32 %v1390_v57, %v1766_v38  ;;  %v1754_v47 = vmul.f32 %v3071_v14, %v1725_v25  ;;  %v2201_v40 = vadd.f32 %v2200_v24, %v2199_v10  ;;  %v1727_v46 = vpop.f32.mrf.mxu1  ;;  %v3497_v38 = vld [vmem:[#allocation10_spill] sm:$0xff]  ;;  %v3498_v25 = vld [vmem:[#allocation11_spill] sm:$0xff] }
 0x1b3   :  { %v2202_v54 = vpop.f32.mrf.mxu0  ;;  %v1393_v51 = vmax.f32 %v3496_v50, %v1380_v1  ;;  %v3499_v21 = vmax.f32 %v3497_v38, %v3498_v25 }
 0x1b4   :  { %v1792_v55 = vmax.f32 %v1779_v56, 0.0  ;;  %v1767_v2 = vadd.f32 %v3078_v22, %v1754_v47  ;;  %v1728_v53 = vadd.f32 %v2201_v40, %v1727_v46  ;;  %v1729_v59 = vpop.f32.mrf.mxu1  ;;  %v1382_v47 = vadd.f32 %v3078_v22, %v1369_v12 }
 0x1b5   :  { %v2203_v41 = vpop.f32.mrf.mxu0  ;;  %v1394_v24 = vmax.f32 %v3499_v21, %v1381_v23 }
 0x1b6   :  { %1805 = vst [vmem:[%s3439_s7 + $0x38] sm:$0xff] %v1792_v55  ;;  %v1780_v19 = vmax.f32 %v1391_v18, %v1767_v2  ;;  %v1755_v15 = vmul.f32 %v3071_v14, %v1728_v53  ;;  %v2204_v60 = vadd.f32 %v2203_v41, %v2202_v54  ;;  %v1732_v61 = vpop.f32.mrf.mxu1  ;;  %v3502_v54 = vmax.f32 %v3500_v33, %v3501_v9 }
 0x1b7   :  { %v2205_v48 = vpop.f32.mrf.mxu0 }
 0x1b8   :  { %v1793_v7 = vmax.f32 %v1780_v19, 0.0  ;;  %v1768_v13 = vadd.f32 %v3078_v22, %v1755_v15  ;;  %v1733_v35 = vadd.f32 %v2204_v60, %v1732_v61  ;;  %v1734_v4 = vpop.f32.mrf.mxu1  ;;  %v1395_v34 = vmax.f32 %v3502_v54, %v1382_v47 }
 0x1b9   :  { %v2206_v43 = vpop.f32.mrf.mxu0 }
 0x1ba   :  { %1806 = vst [vmem:[%s3439_s7 + $0x40] sm:$0xff] %v1793_v7  ;;  %v1781_v44 = vmax.f32 %v1392_v29, %v1768_v13  ;;  %v1756_v58 = vmul.f32 %v3071_v14, %v1733_v35  ;;  %v2207_v36 = vadd.f32 %v2206_v43, %v2205_v48  ;;  %v1735_v39 = vpop.f32.mrf.mxu1 }
 0x1bb   :  { %v2208_v42 = vpop.f32.mrf.mxu0 }
 0x1bc   :  { %v1794_v45 = vmax.f32 %v1781_v44, 0.0  ;;  %v1769_v52 = vadd.f32 %v3078_v22, %v1756_v58  ;;  %v1736_v8 = vadd.f32 %v2207_v36, %v1735_v39  ;;  %v1737_v10 = vpop.f32.mrf.mxu1 }
 0x1bd   :  { %v2209_v6 = vpop.f32.mrf.mxu0 }
 0x1be   :  { %1807 = vst [vmem:[%s3439_s7 + $0x48] sm:$0xff] %v1794_v45  ;;  %v1782_v5 = vmax.f32 %v1393_v51, %v1769_v52  ;;  %v1757_v16 = vmul.f32 %v3071_v14, %v1736_v8  ;;  %v2210_v57 = vadd.f32 %v2209_v6, %v2208_v42  ;;  %v1740_v27 = vpop.f32.mrf.mxu1 }
 0x1bf   :  { %v2211_v56 = vpop.f32.mrf.mxu0 }
 0x1c0   :  { %v1795_v40 = vmax.f32 %v1782_v5, 0.0  ;;  %v1770_v46 = vadd.f32 %v3078_v22, %v1757_v16  ;;  %v1741_v62 = vadd.f32 %v2210_v57, %v1740_v27  ;;  %v1742_v30 = vpop.f32.mrf.mxu1 }
 0x1c1   :  { %v2212_v31 = vpop.f32.mrf.mxu0 }
 0x1c2   :  { %1808 = vst [vmem:[%s3439_s7 + $0x50] sm:$0xff] %v1795_v40  ;;  %v1783_v18 = vmax.f32 %v1394_v24, %v1770_v46  ;;  %v1758_v20 = vmul.f32 %v3071_v14, %v1741_v62  ;;  %v1743_v32 = vpop.f32.mrf.mxu1 }
 0x1c4   :  { %v1796_v17 = vmax.f32 %v1783_v18, 0.0  ;;  %v1771_v0 = vadd.f32 %v3078_v22, %v1758_v20  ;;  %v1744_v55 = vpop.f32.mrf.mxu1 }
 0x1c6   :  { %1809 = vst [vmem:[%s3439_s7 + $0x58] sm:$0xff] %v1796_v17  ;;  %v1784_v2 = vmax.f32 %v1395_v34, %v1771_v0 }
 0x1c8   :  { %v1797_v53 = vmax.f32 %v1784_v2, 0.0 }
 0x1ca   :  { %1810 = vst [vmem:[%s3439_s7 + $0x60] sm:$0x3] %v1797_v53 }

// kernel: convnet_forward.9
= control target key start
LH: loop header
LB: loop body
LE: loop exit
PB: predicated region body
PF: predicated region fallthrough
CT: control target
= control target key end

     0   :  { %v825_v27 = vlaneseq  ;;  %v5936_v35 = vmov 1966171168   ;;  %s7247_s0 = inlined_call_operand.vmem [shape: bf16[2,6272], index: 0, kind: input, shape index: {}]   ;;  %s7248_s1 = inlined_call_operand.vmem [shape: bf16[6272,128], index: 1, kind: input, shape index: {}]   ;;  %s7249_s2 = inlined_call_operand.vmem [shape: f32[1,128], index: 2, kind: input, shape index: {}]   ;;  %s7250_s3 = inlined_call_operand.hbm [shape: f32[2,128], index: 3, kind: output, shape index: {}]  }
   0x1   :  { %v5512_v0 = vld [vmem:[%s7248_s1 + $0x78] sm:$0xff]   ;;  %v5516_v4 = vld [vmem:[%s7248_s1 + $0x70] sm:$0xff]   ;;  %v5520_v8 = vld [vmem:[%s7248_s1 + $0x68] sm:$0xff]   ;;  %v823_v36 = vunpack.c.l.s4 %v5936_v35 }
   0x2   :  { %v5513_v1 = vld [vmem:[%s7248_s1 + $0x38] sm:$0xff]   ;;  %4951 = vmatprep.subr.bf16.mxu0 %v5512_v0  ;;  %v5517_v5 = vld [vmem:[%s7248_s1 + $0x30] sm:$0xff]   ;;  %v5521_v9 = vld [vmem:[%s7248_s1 + $0x28] sm:$0xff]   ;;  %v826_v32 = vshrl.u32 %v825_v27, 7 }
   0x3   :  { %v5514_v2 = vld [vmem:[%s7248_s1 + $0xf8] sm:$0xff]   ;;  %4952 = vmatpush3.bf16.msra.mxu0 %v5513_v1  ;;  %v5518_v6 = vld [vmem:[%s7248_s1 + $0xf0] sm:$0xff]   ;;  %v5522_v10 = vld [vmem:[%s7248_s1 + $0xe8] sm:$0xff]   ;;  %v824_v39 = vunpack.c.0.s8 %v823_v36 }
   0x4   :  { %v5515_v3 = vld [vmem:[%s7248_s1 + $0xb8] sm:$0xff]   ;;  %4973 = vmatprep.subr.bf16.mxu1 %v5514_v2  ;;  %4953 = vmatprep.subr.bf16.mxu0 %v5516_v4  ;;  %v5519_v7 = vld [vmem:[%s7248_s1 + $0xb0] sm:$0xff]   ;;  %v5523_v11 = vld [vmem:[%s7248_s1 + $0xa8] sm:$0xff]  }
   0x5   :  { %4974 = vmatpush3.bf16.msra.mxu1 %v5515_v3  ;;  %v5524_v12 = vld [vmem:[%s7248_s1 + $0x60] sm:$0xff]   ;;  %v5528_v16 = vld [vmem:[%s7248_s1 + $0x58] sm:$0xff]   ;;  %v5532_v20 = vld [vmem:[%s7248_s1 + $0x50] sm:$0xff]   ;;  %v6065_v41 = vsub.s32 %v824_v39, %v826_v32 }
   0x6   :  { %4975 = vmatprep.subr.bf16.mxu1 %v5518_v6  ;;  %v5525_v13 = vld [vmem:[%s7248_s1 + $0x20] sm:$0xff]   ;;  %v5529_v17 = vld [vmem:[%s7248_s1 + $0x18] sm:$0xff]   ;;  %v5533_v21 = vld [vmem:[%s7248_s1 + $0x10] sm:$0xff]  }
   0x7   :  { %4954 = vmatpush3.bf16.msra.mxu0 %v5517_v5  ;;  %v5526_v14 = vld [vmem:[%s7248_s1 + $0xe0] sm:$0xff]   ;;  %v5530_v18 = vld [vmem:[%s7248_s1 + $0xd8] sm:$0xff]   ;;  %v5534_v22 = vld [vmem:[%s7248_s1 + $0xd0] sm:$0xff]  }
   0x8   :  { %4955 = vmatprep.subr.bf16.mxu0 %v5520_v8  ;;  %v5527_v15 = vld [vmem:[%s7248_s1 + $0xa0] sm:$0xff]   ;;  %v5531_v19 = vld [vmem:[%s7248_s1 + $0x98] sm:$0xff]   ;;  %v5535_v23 = vld [vmem:[%s7248_s1 + $0x90] sm:$0xff]  }
   0x9   :  { %4976 = vmatpush3.bf16.msra.mxu1 %v5519_v7  ;;  %v5536_v24 = vld [vmem:[%s7248_s1 + $0x48] sm:$0xff]   ;;  %v5540_v29 = vld [vmem:[%s7248_s1 + $0x40] sm:$0xff]   ;;  %v5545_v37 = vld [vmem:[%s7248_s1 + $0x178] sm:$0xff]  }
   0xa   :  { %4977 = vmatprep.subr.bf16.mxu1 %v5522_v10  ;;  %v5537_v25 = vld [vmem:[%s7248_s1 + $0x8] sm:$0xff]   ;;  %v5541_v30 = vld [vmem:[%s7248_s1] sm:$0xff]   ;;  %v5547_v40 = vld [vmem:[%s7248_s1 + $0x1f8] sm:$0xff]  }
   0xb   :  { %4956 = vmatpush3.bf16.msra.mxu0 %v5521_v9  ;;  %v5538_v26 = vld [vmem:[%s7248_s1 + $0xc8] sm:$0xff]   ;;  %v5542_v31 = vld [vmem:[%s7248_s1 + $0xc0] sm:$0xff]   ;;  %v5546_v47 = vld [vmem:[%s7248_s1 + $0x138] sm:$0xff]  }
   0xc   :  { %4957 = vmatprep.subr.bf16.mxu0 %v5524_v12  ;;  %v5539_v28 = vld [vmem:[%s7248_s1 + $0x88] sm:$0xff]   ;;  %v16_v33 = vld [vmem:[%s7247_s0] sm:$0xff]  ;;  %v5548_v49 = vld [vmem:[%s7248_s1 + $0x1b8] sm:$0xff]  }
   0xd   :  { %4978 = vmatpush3.bf16.msra.mxu1 %v5523_v11  ;;  %v5544_v34 = vld [vmem:[%s7248_s1 + $0x80] sm:$0xff]   ;;  %v821_v38 = vcombine.high %v16_v33, %v16_v33  ;;  %v828_v42 = vrot.slane %v16_v33, %v6065_v41  ;;  %v5549_v52 = vld [vmem:[%s7248_s1 + $0x170] sm:$0xff]   ;;  %v5553_v58 = vld [vmem:[%s7248_s1 + $0x168] sm:$0xff]  }
   0xe   :  { %4979 = vmatprep.subr.bf16.mxu1 %v5526_v14  ;;  %v5550_v54 = vld [vmem:[%s7248_s1 + $0x130] sm:$0xff]   ;;  %v5554_v59 = vld [vmem:[%s7248_s1 + $0x128] sm:$0xff]   ;;  %v5557_v62 = vld [vmem:[%s7248_s1 + $0x160] sm:$0xff]  }
   0xf   :  { %4958 = vmatpush3.bf16.msra.mxu0 %v5525_v13  ;;  %v6069_v43 = vrot.slane %v821_v38, %v6065_v41  ;;  %v836_v44 = vcombine.high %v828_v42, %v828_v42  ;;  %v844_v45 = vrot.slane %v828_v42, %v6065_v41  ;;  %v5551_v55 = vld [vmem:[%s7248_s1 + $0x1f0] sm:$0xff]   ;;  %v5555_v60 = vld [vmem:[%s7248_s1 + $0x1e8] sm:$0xff]   ;;  %v5558_v63 = vld [vmem:[%s7248_s1 + $0x120] sm:$0xff]  }
  0x10   :  { %4959 = vmatprep.subr.bf16.mxu0 %v5528_v16  ;;  %v5552_v57 = vld [vmem:[%s7248_s1 + $0x1b0] sm:$0xff]   ;;  %v5556_v61 = vld [vmem:[%s7248_s1 + $0x1a8] sm:$0xff]   ;;  %v5559_v0 = vld [vmem:[%s7248_s1 + $0x1e0] sm:$0xff]  }
  0x11   :  { %4980 = vmatpush3.bf16.msra.mxu1 %v5527_v15  ;;  %v837_v46 = vcombine.high %v6069_v43, %v6069_v43  ;;  %v858_v48 = vrot.slane %v836_v44, %v6065_v41  ;;  %v866_v51 = vcombine.high %v844_v45, %v844_v45  ;;  %v5560_v1 = vld [vmem:[%s7248_s1 + $0x1a0] sm:$0xff]   ;;  %v5561_v2 = vld [vmem:[%s7248_s1 + $0x158] sm:$0xff]   ;;  %v5565_v6 = vld [vmem:[%s7248_s1 + $0x150] sm:$0xff]  }
  0x12   :  { %4981 = vmatprep.subr.bf16.mxu1 %v5530_v18  ;;  %v5562_v3 = vld [vmem:[%s7248_s1 + $0x118] sm:$0xff]   ;;  %v5566_v7 = vld [vmem:[%s7248_s1 + $0x110] sm:$0xff]   ;;  %v5569_v10 = vld [vmem:[%s7248_s1 + $0x148] sm:$0xff]   ;;  %v851_v18 = vrot.slane %v6069_v43, %v6065_v41 }
  0x13   :  { %4960 = vmatpush3.bf16.msra.mxu0 %v5529_v17  ;;  %v865_v50 = vrot.slane %v837_v46, %v6065_v41  ;;  %3562 = vmatprep.mubr.bf16.mxu0 %v858_v48  ;;  %v868_v53 = vcombine.high %v858_v48, %v858_v48  ;;  %v5563_v4 = vld [vmem:[%s7248_s1 + $0x1d8] sm:$0xff]   ;;  %v5567_v8 = vld [vmem:[%s7248_s1 + $0x1d0] sm:$0xff]   ;;  %v5570_v11 = vld [vmem:[%s7248_s1 + $0x108] sm:$0xff]  }
  0x14   :  { %4961 = vmatprep.subr.bf16.mxu0 %v5532_v20  ;;  %v5564_v5 = vld [vmem:[%s7248_s1 + $0x198] sm:$0xff]   ;;  %v5568_v9 = vld [vmem:[%s7248_s1 + $0x190] sm:$0xff]   ;;  %v5571_v12 = vld [vmem:[%s7248_s1 + $0x1c8] sm:$0xff]  }
  0x15   :  { %4982 = vmatpush3.bf16.msra.mxu1 %v5531_v19  ;;  %v869_v56 = vcombine.high %v865_v50, %v865_v50  ;;  %3602 = vmatprep.mubr.bf16.mxu1 %v868_v53  ;;  %v5572_v13 = vld [vmem:[%s7248_s1 + $0x188] sm:$0xff]   ;;  %v5573_v14 = vld [vmem:[%s7248_s1 + $0x140] sm:$0xff]   ;;  %v5577_v19 = vld [vmem:[%s7248_s1 + $0x278] sm:$0xff]  }
  0x16   :  { %4983 = vmatprep.subr.bf16.mxu1 %v5534_v22  ;;  %v5574_v15 = vld [vmem:[%s7248_s1 + $0x100] sm:$0xff]   ;;  %v5578_v20 = vld [vmem:[%s7248_s1 + $0x238] sm:$0xff]   ;;  %v5584_v27 = vld [vmem:[%s7248_s1 + $0x2b0] sm:$0xff]  }
  0x17   :  { %4962 = vmatpush3.bf16.msra.mxu0 %v5533_v21  ;;  %v5575_v16 = vld [vmem:[%s7248_s1 + $0x1c0] sm:$0xff]   ;;  %v5579_v21 = vld [vmem:[%s7248_s1 + $0x2f8] sm:$0xff]   ;;  %v5598_v42 = vld [vmem:[%s7248_s1 + $0x210] sm:$0xff]  }
  0x18   :  { %4963 = vmatprep.subr.bf16.mxu0 %v5536_v24  ;;  %v5576_v17 = vld [vmem:[%s7248_s1 + $0x180] sm:$0xff]   ;;  %v5580_v22 = vld [vmem:[%s7248_s1 + $0x2b8] sm:$0xff]   ;;  %v5581_v24 = vld [vmem:[%s7248_s1 + $0x270] sm:$0xff]  }
  0x19   :  { %4984 = vmatpush3.bf16.msra.mxu1 %v5535_v23  ;;  %v867_v23 = vcombine.high %v851_v18, %v851_v18  ;;  %v5589_v32 = vld [vmem:[%s7248_s1 + $0x260] sm:$0xff]   ;;  %v5593_v36 = vld [vmem:[%s7248_s1 + $0x258] sm:$0xff]   ;;  %v5599_v43 = vld [vmem:[%s7248_s1 + $0x2d0] sm:$0xff]  }
  0x1a   :  { %4985 = vmatprep.subr.bf16.mxu1 %v5538_v26  ;;  %v5583_v26 = vld [vmem:[%s7248_s1 + $0x2f0] sm:$0xff]   ;;  %v5590_v33 = vld [vmem:[%s7248_s1 + $0x220] sm:$0xff]   ;;  %v5595_v38 = vld [vmem:[%s7248_s1 + $0x2d8] sm:$0xff]  }
  0x1b   :  { %4964 = vmatpush3.bf16.msra.mxu0 %v5537_v25  ;;  %v5582_v25 = vld [vmem:[%s7248_s1 + $0x230] sm:$0xff]   ;;  %v5592_v35 = vld [vmem:[%s7248_s1 + $0x2a0] sm:$0xff]   ;;  %v5596_v39 = vld [vmem:[%s7248_s1 + $0x298] sm:$0xff]  }
  0x1c   :  { %4965 = vmatprep.subr.bf16.mxu0 %v5540_v29  ;;  %v5586_v29 = vld [vmem:[%s7248_s1 + $0x228] sm:$0xff]   ;;  %v5600_v44 = vld [vmem:[%s7248_s1 + $0x290] sm:$0xff]  }
  0x1d   :  { %4986 = vmatpush3.bf16.msra.mxu1 %v5539_v28  ;;  %v5585_v28 = vld [vmem:[%s7248_s1 + $0x268] sm:$0xff]  }
  0x1e   :  { %4987 = vmatprep.subr.bf16.mxu1 %v5542_v31  ;;  %v5588_v31 = vld [vmem:[%s7248_s1 + $0x2a8] sm:$0xff]  }
  0x1f   :  { %4966 = vmatpush3.bf16.msra.mxu0 %v5541_v30  ;;  %v5587_v30 = vld [vmem:[%s7248_s1 + $0x2e8] sm:$0xff]  }
  0x20   :  { %4995 = vmatprep.subr.bf16.mxu0 %v5545_v37  ;;  %v5594_v37 = vld [vmem:[%s7248_s1 + $0x218] sm:$0xff]   ;;  %v17_v46 = vld [vmem:[%s7247_s0 + $0x8] sm:$0xff] }
  0x21   :  { %4988 = vmatpush3.bf16.msra.mxu1 %v5544_v34  ;;  %v5591_v34 = vld [vmem:[%s7248_s1 + $0x2e0] sm:$0xff]   ;;  %v877_v48 = vrot.slane %v17_v46, %v6065_v41 }
  0x22   :  { %5017 = vmatprep.subr.bf16.mxu1 %v5547_v40  ;;  %3563 = vmatmul.mubr.bf16.vlgmr.msra.gmra.mxu0 %v844_v45  ;;  %v5597_v40 = vld [vmem:[%s7248_s1 + $0x250] sm:$0xff]   ;;  %v5601_v45 = vld [vmem:[%s7248_s1 + $0x248] sm:$0xff]  }
  0x23   :  { %4996 = vmatpush3.bf16.msra.mxu0 %v5546_v47  ;;  %3642 = vmatprep.mubr.bf16.mxu0 %v865_v50  ;;  %v5602_v47 = vld [vmem:[%s7248_s1 + $0x208] sm:$0xff]  }
  0x24   :  { %3603 = vmatmul.mubr.bf16.vlgmr.msra.gmra.mxu1 %v866_v51  ;;  %4997 = vmatprep.subr.bf16.mxu0 %v5549_v52  ;;  %v5603_v50 = vld [vmem:[%s7248_s1 + $0x2c8] sm:$0xff]   ;;  %v885_v52 = vcombine.high %v877_v48, %v877_v48 }
  0x25   :  { %5018 = vmatpush3.bf16.msra.mxu1 %v5548_v49  ;;  %3682 = vmatprep.mubr.bf16.mxu1 %v869_v56  ;;  %v870_v49 = vcombine.high %v17_v46, %v17_v46  ;;  %v5604_v51 = vld [vmem:[%s7248_s1 + $0x288] sm:$0xff]  }
  0x26   :  { %5019 = vmatprep.subr.bf16.mxu1 %v5551_v55  ;;  %v5606_v55 = vld [vmem:[%s7248_s1 + $0x200] sm:$0xff]   ;;  %v907_v56 = vrot.slane %v885_v52, %v6065_v41  ;;  %v5652_v46 = vld [vmem:[%s7248_s1 + $0x4e8] sm:$0xff]   ;;  %v5658_v52 = vld [vmem:[%s7248_s1 + $0x458] sm:$0xff]  }
  0x27   :  { %4998 = vmatpush3.bf16.msra.mxu0 %v5550_v54  ;;  %v6257_v53 = vrot.slane %v870_v49, %v6065_v41  ;;  %v5605_v54 = vld [vmem:[%s7248_s1 + $0x240] sm:$0xff]  }
  0x28   :  { %4999 = vmatprep.subr.bf16.mxu0 %v5553_v58  ;;  %v5607_v58 = vld [vmem:[%s7248_s1 + $0x2c0] sm:$0xff]  }
  0x29   :  { %5020 = vmatpush3.bf16.msra.mxu1 %v5552_v57  ;;  %v886_v57 = vcombine.high %v6257_v53, %v6257_v53  ;;  %v5655_v49 = vld [vmem:[%s7248_s1 + $0x420] sm:$0xff]  }
  0x2a   :  { %5021 = vmatprep.subr.bf16.mxu1 %v5555_v60  ;;  %v917_v60 = vcombine.high %v907_v56, %v907_v56 }
  0x2b   :  { %5000 = vmatpush3.bf16.msra.mxu0 %v5554_v59  ;;  %v5608_v59 = vld [vmem:[%s7248_s1 + $0x280] sm:$0xff]  }
  0x2c   :  { %5001 = vmatprep.subr.bf16.mxu0 %v5557_v62  ;;  %v5609_v62 = vld [vmem:[%s7248_s1 + $0x378] sm:$0xff]  }
  0x2d   :  { %5022 = vmatpush3.bf16.msra.mxu1 %v5556_v61  ;;  %v893_v61 = vrot.slane %v877_v48, %v6065_v41  ;;  %v5654_v48 = vld [vmem:[%s7248_s1 + $0x460] sm:$0xff]  }
  0x2e   :  { %5023 = vmatprep.subr.bf16.mxu1 %v5559_v0  ;;  %v914_v0 = vrot.slane %v886_v57, %v6065_v41  ;;  %v5663_v57 = vld [vmem:[%s7248_s1 + $0x410] sm:$0xff]  }
  0x2f   :  { %5002 = vmatpush3.bf16.msra.mxu0 %v5558_v63  ;;  %v5610_v63 = vld [vmem:[%s7248_s1 + $0x338] sm:$0xff]  }
  0x30   :  { %5003 = vmatprep.subr.bf16.mxu0 %v5561_v2  ;;  %v5612_v2 = vld [vmem:[%s7248_s1 + $0x3b8] sm:$0xff]  }
  0x31   :  { %5024 = vmatpush3.bf16.msra.mxu1 %v5560_v1  ;;  %v5611_v1 = vld [vmem:[%s7248_s1 + $0x3f8] sm:$0xff]  }
  0x32   :  { %5025 = vmatprep.subr.bf16.mxu1 %v5563_v4  ;;  %v5613_v4 = vld [vmem:[%s7248_s1 + $0x370] sm:$0xff]  }
  0x33   :  { %5004 = vmatpush3.bf16.msra.mxu0 %v5562_v3  ;;  %v915_v3 = vcombine.high %v893_v61, %v893_v61 }
  0x34   :  { %5005 = vmatprep.subr.bf16.mxu0 %v5565_v6  ;;  %v918_v6 = vcombine.high %v914_v0, %v914_v0 }
  0x35   :  { %5026 = vmatpush3.bf16.msra.mxu1 %v5564_v5  ;;  %v5614_v5 = vld [vmem:[%s7248_s1 + $0x330] sm:$0xff]  }
  0x36   :  { %5027 = vmatprep.subr.bf16.mxu1 %v5567_v8  ;;  %v5616_v8 = vld [vmem:[%s7248_s1 + $0x3b0] sm:$0xff]  }
  0x37   :  { %5006 = vmatpush3.bf16.msra.mxu0 %v5566_v7  ;;  %v5615_v7 = vld [vmem:[%s7248_s1 + $0x3f0] sm:$0xff]  }
  0x38   :  { %5007 = vmatprep.subr.bf16.mxu0 %v5569_v10  ;;  %v5618_v10 = vld [vmem:[%s7248_s1 + $0x328] sm:$0xff]  }
  0x39   :  { %5028 = vmatpush3.bf16.msra.mxu1 %v5568_v9  ;;  %v5617_v9 = vld [vmem:[%s7248_s1 + $0x368] sm:$0xff]  }
  0x3a   :  { %5029 = vmatprep.subr.bf16.mxu1 %v5571_v12  ;;  %v5620_v12 = vld [vmem:[%s7248_s1 + $0x3a8] sm:$0xff]  }
  0x3b   :  { %5008 = vmatpush3.bf16.msra.mxu0 %v5570_v11  ;;  %v5619_v11 = vld [vmem:[%s7248_s1 + $0x3e8] sm:$0xff]  }
  0x3c   :  { %5009 = vmatprep.subr.bf16.mxu0 %v5573_v14  ;;  %v5622_v14 = vld [vmem:[%s7248_s1 + $0x320] sm:$0xff]  }
  0x3d   :  { %5030 = vmatpush3.bf16.msra.mxu1 %v5572_v13  ;;  %v5621_v13 = vld [vmem:[%s7248_s1 + $0x360] sm:$0xff]  }
  0x3e   :  { %5031 = vmatprep.subr.bf16.mxu1 %v5575_v16  ;;  %v5624_v16 = vld [vmem:[%s7248_s1 + $0x3a0] sm:$0xff]  }
  0x3f   :  { %5010 = vmatpush3.bf16.msra.mxu0 %v5574_v15  ;;  %v5623_v15 = vld [vmem:[%s7248_s1 + $0x3e0] sm:$0xff]  }
  0x40   :  { %5039 = vmatprep.subr.bf16.mxu0 %v5577_v19  ;;  %v5627_v19 = vld [vmem:[%s7248_s1 + $0x3d8] sm:$0xff]  }
  0x41   :  { %5032 = vmatpush3.bf16.msra.mxu1 %v5576_v17  ;;  %v5625_v17 = vld [vmem:[%s7248_s1 + $0x358] sm:$0xff]  }
  0x42   :  { %3643 = vmatmul.mubr.bf16.vlgmr.msra.gmra.mxu0 %v851_v18  ;;  %5061 = vmatprep.subr.bf16.mxu1 %v5579_v21  ;;  %v5626_v18 = vld [vmem:[%s7248_s1 + $0x318] sm:$0xff]   ;;  %v5629_v21 = vld [vmem:[%s7248_s1 + $0x350] sm:$0xff]  }
  0x43   :  { %5040 = vmatpush3.bf16.msra.mxu0 %v5578_v20  ;;  %3722 = vmatprep.mubr.bf16.mxu0 %v907_v56  ;;  %v5628_v20 = vld [vmem:[%s7248_s1 + $0x398] sm:$0xff]   ;;  %v5662_v56 = vld [vmem:[%s7248_s1 + $0x450] sm:$0xff]  }
  0x44   :  { %3683 = vmatmul.mubr.bf16.vlgmr.msra.gmra.mxu1 %v867_v23  ;;  %5041 = vmatprep.subr.bf16.mxu0 %v5581_v24  ;;  %v5631_v23 = vld [vmem:[%s7248_s1 + $0x3d0] sm:$0xff]  }
  0x45   :  { %5062 = vmatpush3.bf16.msra.mxu1 %v5580_v22  ;;  %3762 = vmatprep.mubr.bf16.mxu1 %v917_v60  ;;  %v5630_v22 = vld [vmem:[%s7248_s1 + $0x310] sm:$0xff]   ;;  %v5666_v60 = vld [vmem:[%s7248_s1 + $0x448] sm:$0xff]  }
  0x46   :  { %5063 = vmatprep.subr.bf16.mxu1 %v5583_v26  ;;  %v5632_v24 = vld [vmem:[%s7248_s1 + $0x390] sm:$0xff]   ;;  %v5634_v26 = vld [vmem:[%s7248_s1 + $0x308] sm:$0xff]  }
  0x47   :  { %5042 = vmatpush3.bf16.msra.mxu0 %v5582_v25  ;;  %v5633_v25 = vld [vmem:[%s7248_s1 + $0x348] sm:$0xff]  }
  0x48   :  { %5043 = vmatprep.subr.bf16.mxu0 %v5585_v28  ;;  %v5636_v28 = vld [vmem:[%s7248_s1 + $0x388] sm:$0xff]  }
  0x49   :  { %5064 = vmatpush3.bf16.msra.mxu1 %v5584_v27  ;;  %v5635_v27 = vld [vmem:[%s7248_s1 + $0x3c8] sm:$0xff]  }
  0x4a   :  { %5065 = vmatprep.subr.bf16.mxu1 %v5587_v30  ;;  %v5638_v30 = vld [vmem:[%s7248_s1 + $0x300] sm:$0xff]  }
  0x4b   :  { %5044 = vmatpush3.bf16.msra.mxu0 %v5586_v29  ;;  %v5637_v29 = vld [vmem:[%s7248_s1 + $0x340] sm:$0xff]  }
  0x4c   :  { %5045 = vmatprep.subr.bf16.mxu0 %v5589_v32  ;;  %v5641_v32 = vld [vmem:[%s7248_s1 + $0x380] sm:$0xff]  }
  0x4d   :  { %5066 = vmatpush3.bf16.msra.mxu1 %v5588_v31  ;;  %v5639_v31 = vld [vmem:[%s7248_s1 + $0x3c0] sm:$0xff]  }
  0x4e   :  { %5067 = vmatprep.subr.bf16.mxu1 %v5591_v34  ;;  %v5642_v34 = vld [vmem:[%s7248_s1 + $0x478] sm:$0xff]  }
  0x4f   :  { %5046 = vmatpush3.bf16.msra.mxu0 %v5590_v33  ;;  %v900_v33 = vrot.slane %v6257_v53, %v6065_v41  ;;  %v5659_v53 = vld [vmem:[%s7248_s1 + $0x418] sm:$0xff]  }
  0x50   :  { %5047 = vmatprep.subr.bf16.mxu0 %v5593_v36  ;;  %v5644_v36 = vld [vmem:[%s7248_s1 + $0x4f8] sm:$0xff]  }
  0x51   :  { %5068 = vmatpush3.bf16.msra.mxu1 %v5592_v35  ;;  %v5643_v35 = vld [vmem:[%s7248_s1 + $0x438] sm:$0xff]  }
  0x52   :  { %5069 = vmatprep.subr.bf16.mxu1 %v5595_v38  ;;  %v916_v38 = vcombine.high %v900_v33, %v900_v33 }
  0x53   :  { %5048 = vmatpush3.bf16.msra.mxu0 %v5594_v37  ;;  %v5645_v37 = vld [vmem:[%s7248_s1 + $0x4b8] sm:$0xff]  }
  0x54   :  { %5049 = vmatprep.subr.bf16.mxu0 %v5597_v40  ;;  %v5647_v40 = vld [vmem:[%s7248_s1 + $0x430] sm:$0xff]  }
  0x55   :  { %5070 = vmatpush3.bf16.msra.mxu1 %v5596_v39  ;;  %v5646_v39 = vld [vmem:[%s7248_s1 + $0x470] sm:$0xff]  }
  0x56   :  { %5071 = vmatprep.subr.bf16.mxu1 %v5599_v43  ;;  %v5649_v43 = vld [vmem:[%s7248_s1 + $0x4b0] sm:$0xff]  }
  0x57   :  { %5050 = vmatpush3.bf16.msra.mxu0 %v5598_v42  ;;  %v5648_v42 = vld [vmem:[%s7248_s1 + $0x4f0] sm:$0xff]  }
  0x58   :  { %5051 = vmatprep.subr.bf16.mxu0 %v5601_v45  ;;  %v5651_v45 = vld [vmem:[%s7248_s1 + $0x428] sm:$0xff]  }
  0x59   :  { %5072 = vmatpush3.bf16.msra.mxu1 %v5600_v44  ;;  %v5650_v44 = vld [vmem:[%s7248_s1 + $0x468] sm:$0xff]  }
  0x5a   :  { %5073 = vmatprep.subr.bf16.mxu1 %v5603_v50  ;;  %v5656_v50 = vld [vmem:[%s7248_s1 + $0x4e0] sm:$0xff]  }
  0x5b   :  { %5052 = vmatpush3.bf16.msra.mxu0 %v5602_v47  ;;  %v5653_v47 = vld [vmem:[%s7248_s1 + $0x4a8] sm:$0xff]  }
  0x5c   :  { %5053 = vmatprep.subr.bf16.mxu0 %v5605_v54  ;;  %v5660_v54 = vld [vmem:[%s7248_s1 + $0x4d8] sm:$0xff]  }
  0x5d   :  { %5074 = vmatpush3.bf16.msra.mxu1 %v5604_v51  ;;  %v5657_v51 = vld [vmem:[%s7248_s1 + $0x4a0] sm:$0xff]  }
  0x5e   :  { %5075 = vmatprep.subr.bf16.mxu1 %v5607_v58  ;;  %v5664_v58 = vld [vmem:[%s7248_s1 + $0x4d0] sm:$0xff]  }
  0x5f   :  { %5054 = vmatpush3.bf16.msra.mxu0 %v5606_v55  ;;  %v5661_v55 = vld [vmem:[%s7248_s1 + $0x498] sm:$0xff]  }
  0x60   :  { %5083 = vmatprep.subr.bf16.mxu0 %v5609_v62  ;;  %v5667_v62 = vld [vmem:[%s7248_s1 + $0x408] sm:$0xff]  }
  0x61   :  { %5076 = vmatpush3.bf16.msra.mxu1 %v5608_v59  ;;  %v5665_v59 = vld [vmem:[%s7248_s1 + $0x490] sm:$0xff]  }
  0x62   :  { %3723 = vmatmul.mubr.bf16.vlgmr.msra.gmra.mxu0 %v893_v61  ;;  %5105 = vmatprep.subr.bf16.mxu1 %v5611_v1  ;;  %v18_v61 = vld [vmem:[%s7247_s0 + $0x10] sm:$0xff]  ;;  %v5668_v1 = vld [vmem:[%s7248_s1 + $0x4c8] sm:$0xff]  }
  0x63   :  { %5084 = vmatpush3.bf16.msra.mxu0 %v5610_v63  ;;  %3802 = vmatprep.mubr.bf16.mxu0 %v914_v0  ;;  %v926_v63 = vrot.slane %v18_v61, %v6065_v41  ;;  %v919_v0 = vcombine.high %v18_v61, %v18_v61  ;;  %v5717_v61 = vld [vmem:[%s7248_s1 + $0x6e8] sm:$0xff]  }
  0x64   :  { %3763 = vmatmul.mubr.bf16.vlgmr.msra.gmra.mxu1 %v915_v3  ;;  %5085 = vmatprep.subr.bf16.mxu0 %v5613_v4 }
  0x65   :  { %5106 = vmatpush3.bf16.msra.mxu1 %v5612_v2  ;;  %3842 = vmatprep.mubr.bf16.mxu1 %v918_v6  ;;  %v5669_v2 = vld [vmem:[%s7248_s1 + $0x488] sm:$0xff]   ;;  %v934_v3 = vcombine.high %v926_v63, %v926_v63  ;;  %v6463_v4 = vrot.slane %v919_v0, %v6065_v41  ;;  %v5671_v6 = vld [vmem:[%s7248_s1 + $0x400] sm:$0xff]  }
  0x66   :  { %5107 = vmatprep.subr.bf16.mxu1 %v5615_v7  ;;  %v5720_v0 = vld [vmem:[%s7248_s1 + $0x620] sm:$0xff]  }
  0x67   :  { %5086 = vmatpush3.bf16.msra.mxu0 %v5614_v5  ;;  %v5670_v5 = vld [vmem:[%s7248_s1 + $0x440] sm:$0xff]   ;;  %v956_v7 = vrot.slane %v934_v3, %v6065_v41  ;;  %v5723_v3 = vld [vmem:[%s7248_s1 + $0x658] sm:$0xff]  }
  0x68   :  { %5087 = vmatprep.subr.bf16.mxu0 %v5617_v9  ;;  %v5672_v9 = vld [vmem:[%s7248_s1 + $0x4c0] sm:$0xff]  }
  0x69   :  { %5108 = vmatpush3.bf16.msra.mxu1 %v5616_v8  ;;  %v935_v8 = vcombine.high %v6463_v4, %v6463_v4 }
  0x6a   :  { %5109 = vmatprep.subr.bf16.mxu1 %v5619_v11  ;;  %v966_v11 = vcombine.high %v956_v7, %v956_v7 }
  0x6b   :  { %5088 = vmatpush3.bf16.msra.mxu0 %v5618_v10  ;;  %v5673_v10 = vld [vmem:[%s7248_s1 + $0x480] sm:$0xff]  }
  0x6c   :  { %5089 = vmatprep.subr.bf16.mxu0 %v5621_v13  ;;  %v5674_v13 = vld [vmem:[%s7248_s1 + $0x578] sm:$0xff]  }
  0x6d   :  { %5110 = vmatpush3.bf16.msra.mxu1 %v5620_v12  ;;  %v942_v12 = vrot.slane %v926_v63, %v6065_v41  ;;  %v5719_v63 = vld [vmem:[%s7248_s1 + $0x660] sm:$0xff]  }
  0x6e   :  { %5111 = vmatprep.subr.bf16.mxu1 %v5623_v15  ;;  %v963_v15 = vrot.slane %v935_v8, %v6065_v41  ;;  %v5728_v8 = vld [vmem:[%s7248_s1 + $0x610] sm:$0xff]  }
  0x6f   :  { %5090 = vmatpush3.bf16.msra.mxu0 %v5622_v14  ;;  %v5675_v14 = vld [vmem:[%s7248_s1 + $0x538] sm:$0xff]  }
  0x70   :  { %5091 = vmatprep.subr.bf16.mxu0 %v5625_v17  ;;  %v5677_v17 = vld [vmem:[%s7248_s1 + $0x5b8] sm:$0xff]  }
  0x71   :  { %5112 = vmatpush3.bf16.msra.mxu1 %v5624_v16  ;;  %v5676_v16 = vld [vmem:[%s7248_s1 + $0x5f8] sm:$0xff]  }
  0x72   :  { %5113 = vmatprep.subr.bf16.mxu1 %v5627_v19  ;;  %v5678_v19 = vld [vmem:[%s7248_s1 + $0x570] sm:$0xff]  }
  0x73   :  { %5092 = vmatpush3.bf16.msra.mxu0 %v5626_v18  ;;  %v964_v18 = vcombine.high %v942_v12, %v942_v12 }
  0x74   :  { %5093 = vmatprep.subr.bf16.mxu0 %v5629_v21  ;;  %v967_v21 = vcombine.high %v963_v15, %v963_v15 }
  0x75   :  { %5114 = vmatpush3.bf16.msra.mxu1 %v5628_v20  ;;  %v5679_v20 = vld [vmem:[%s7248_s1 + $0x530] sm:$0xff]  }
  0x76   :  { %5115 = vmatprep.subr.bf16.mxu1 %v5631_v23  ;;  %v5681_v23 = vld [vmem:[%s7248_s1 + $0x5b0] sm:$0xff]  }
  0x77   :  { %5094 = vmatpush3.bf16.msra.mxu0 %v5630_v22  ;;  %v5680_v22 = vld [vmem:[%s7248_s1 + $0x5f0] sm:$0xff]  }
  0x78   :  { %5095 = vmatprep.subr.bf16.mxu0 %v5633_v25  ;;  %v5683_v25 = vld [vmem:[%s7248_s1 + $0x528] sm:$0xff]  }
  0x79   :  { %5116 = vmatpush3.bf16.msra.mxu1 %v5632_v24  ;;  %v5682_v24 = vld [vmem:[%s7248_s1 + $0x568] sm:$0xff]  }
  0x7a   :  { %5117 = vmatprep.subr.bf16.mxu1 %v5635_v27  ;;  %v5685_v27 = vld [vmem:[%s7248_s1 + $0x5a8] sm:$0xff]  }
  0x7b   :  { %5096 = vmatpush3.bf16.msra.mxu0 %v5634_v26  ;;  %v5684_v26 = vld [vmem:[%s7248_s1 + $0x5e8] sm:$0xff]  }
  0x7c   :  { %5097 = vmatprep.subr.bf16.mxu0 %v5637_v29  ;;  %v5687_v29 = vld [vmem:[%s7248_s1 + $0x520] sm:$0xff]  }
  0x7d   :  { %5118 = vmatpush3.bf16.msra.mxu1 %v5636_v28  ;;  %v5686_v28 = vld [vmem:[%s7248_s1 + $0x560] sm:$0xff]  }
  0x7e   :  { %5119 = vmatprep.subr.bf16.mxu1 %v5639_v31  ;;  %v5689_v31 = vld [vmem:[%s7248_s1 + $0x5a0] sm:$0xff]  }
  0x7f   :  { %5098 = vmatpush3.bf16.msra.mxu0 %v5638_v30  ;;  %v5688_v30 = vld [vmem:[%s7248_s1 + $0x5e0] sm:$0xff]  }
  0x80   :  { %5127 = vmatprep.subr.bf16.mxu0 %v5642_v34  ;;  %v5692_v34 = vld [vmem:[%s7248_s1 + $0x5d8] sm:$0xff]  }
  0x81   :  { %5120 = vmatpush3.bf16.msra.mxu1 %v5641_v32  ;;  %v5690_v32 = vld [vmem:[%s7248_s1 + $0x558] sm:$0xff]  }
  0x82   :  { %3803 = vmatmul.mubr.bf16.vlgmr.msra.gmra.mxu0 %v900_v33  ;;  %5149 = vmatprep.subr.bf16.mxu1 %v5644_v36  ;;  %v5691_v33 = vld [vmem:[%s7248_s1 + $0x518] sm:$0xff]   ;;  %v5694_v36 = vld [vmem:[%s7248_s1 + $0x550] sm:$0xff]  }
  0x83   :  { %5128 = vmatpush3.bf16.msra.mxu0 %v5643_v35  ;;  %3882 = vmatprep.mubr.bf16.mxu0 %v956_v7  ;;  %v5693_v35 = vld [vmem:[%s7248_s1 + $0x598] sm:$0xff]   ;;  %v5727_v7 = vld [vmem:[%s7248_s1 + $0x650] sm:$0xff]  }
  0x84   :  { %3843 = vmatmul.mubr.bf16.vlgmr.msra.gmra.mxu1 %v916_v38  ;;  %5129 = vmatprep.subr.bf16.mxu0 %v5646_v39  ;;  %v5696_v38 = vld [vmem:[%s7248_s1 + $0x5d0] sm:$0xff]  }
  0x85   :  { %5150 = vmatpush3.bf16.msra.mxu1 %v5645_v37  ;;  %3922 = vmatprep.mubr.bf16.mxu1 %v966_v11  ;;  %v5695_v37 = vld [vmem:[%s7248_s1 + $0x510] sm:$0xff]   ;;  %v5731_v11 = vld [vmem:[%s7248_s1 + $0x648] sm:$0xff]  }
  0x86   :  { %5151 = vmatprep.subr.bf16.mxu1 %v5648_v42  ;;  %v5697_v39 = vld [vmem:[%s7248_s1 + $0x590] sm:$0xff]   ;;  %v5699_v42 = vld [vmem:[%s7248_s1 + $0x508] sm:$0xff]  }
  0x87   :  { %5130 = vmatpush3.bf16.msra.mxu0 %v5647_v40  ;;  %v5698_v40 = vld [vmem:[%s7248_s1 + $0x548] sm:$0xff]  }
  0x88   :  { %5131 = vmatprep.subr.bf16.mxu0 %v5650_v44  ;;  %v5701_v44 = vld [vmem:[%s7248_s1 + $0x588] sm:$0xff]  }
  0x89   :  { %5152 = vmatpush3.bf16.msra.mxu1 %v5649_v43  ;;  %v5700_v43 = vld [vmem:[%s7248_s1 + $0x5c8] sm:$0xff]  }
  0x8a   :  { %5153 = vmatprep.subr.bf16.mxu1 %v5652_v46  ;;  %v5703_v46 = vld [vmem:[%s7248_s1 + $0x500] sm:$0xff]  }
  0x8b   :  { %5132 = vmatpush3.bf16.msra.mxu0 %v5651_v45  ;;  %v5702_v45 = vld [vmem:[%s7248_s1 + $0x540] sm:$0xff]  }
  0x8c   :  { %5133 = vmatprep.subr.bf16.mxu0 %v5654_v48  ;;  %v5706_v48 = vld [vmem:[%s7248_s1 + $0x580] sm:$0xff]  }
  0x8d   :  { %5154 = vmatpush3.bf16.msra.mxu1 %v5653_v47  ;;  %v5704_v47 = vld [vmem:[%s7248_s1 + $0x5c0] sm:$0xff]  }
  0x8e   :  { %5155 = vmatprep.subr.bf16.mxu1 %v5656_v50  ;;  %v5707_v50 = vld [vmem:[%s7248_s1 + $0x678] sm:$0xff]  }
  0x8f   :  { %5134 = vmatpush3.bf16.msra.mxu0 %v5655_v49  ;;  %v949_v49 = vrot.slane %v6463_v4, %v6065_v41  ;;  %v5724_v4 = vld [vmem:[%s7248_s1 + $0x618] sm:$0xff]  }
  0x90   :  { %5135 = vmatprep.subr.bf16.mxu0 %v5658_v52  ;;  %v5709_v52 = vld [vmem:[%s7248_s1 + $0x6f8] sm:$0xff]  }
  0x91   :  { %5156 = vmatpush3.bf16.msra.mxu1 %v5657_v51  ;;  %v5708_v51 = vld [vmem:[%s7248_s1 + $0x638] sm:$0xff]  }
  0x92   :  { %5157 = vmatprep.subr.bf16.mxu1 %v5660_v54  ;;  %v965_v54 = vcombine.high %v949_v49, %v949_v49 }
  0x93   :  { %5136 = vmatpush3.bf16.msra.mxu0 %v5659_v53  ;;  %v5710_v53 = vld [vmem:[%s7248_s1 + $0x6b8] sm:$0xff]  }
  0x94   :  { %5137 = vmatprep.subr.bf16.mxu0 %v5662_v56  ;;  %v5712_v56 = vld [vmem:[%s7248_s1 + $0x630] sm:$0xff]  }
  0x95   :  { %5158 = vmatpush3.bf16.msra.mxu1 %v5661_v55  ;;  %v5711_v55 = vld [vmem:[%s7248_s1 + $0x670] sm:$0xff]  }
  0x96   :  { %5159 = vmatprep.subr.bf16.mxu1 %v5664_v58  ;;  %v5714_v58 = vld [vmem:[%s7248_s1 + $0x6b0] sm:$0xff]  }
  0x97   :  { %5138 = vmatpush3.bf16.msra.mxu0 %v5663_v57  ;;  %v5713_v57 = vld [vmem:[%s7248_s1 + $0x6f0] sm:$0xff]  }
  0x98   :  { %5139 = vmatprep.subr.bf16.mxu0 %v5666_v60  ;;  %v5716_v60 = vld [vmem:[%s7248_s1 + $0x628] sm:$0xff]  }
  0x99   :  { %5160 = vmatpush3.bf16.msra.mxu1 %v5665_v59  ;;  %v5715_v59 = vld [vmem:[%s7248_s1 + $0x668] sm:$0xff]  }
  0x9a   :  { %5161 = vmatprep.subr.bf16.mxu1 %v5668_v1  ;;  %v5721_v1 = vld [vmem:[%s7248_s1 + $0x6e0] sm:$0xff]  }
  0x9b   :  { %5140 = vmatpush3.bf16.msra.mxu0 %v5667_v62  ;;  %v5718_v62 = vld [vmem:[%s7248_s1 + $0x6a8] sm:$0xff]  }
  0x9c   :  { %5141 = vmatprep.subr.bf16.mxu0 %v5670_v5  ;;  %v5725_v5 = vld [vmem:[%s7248_s1 + $0x6d8] sm:$0xff]  }
  0x9d   :  { %5162 = vmatpush3.bf16.msra.mxu1 %v5669_v2  ;;  %v5722_v2 = vld [vmem:[%s7248_s1 + $0x6a0] sm:$0xff]  }
  0x9e   :  { %5163 = vmatprep.subr.bf16.mxu1 %v5672_v9  ;;  %v5729_v9 = vld [vmem:[%s7248_s1 + $0x6d0] sm:$0xff]  }
  0x9f   :  { %5142 = vmatpush3.bf16.msra.mxu0 %v5671_v6  ;;  %v5726_v6 = vld [vmem:[%s7248_s1 + $0x698] sm:$0xff]  }
  0xa0   :  { %5171 = vmatprep.subr.bf16.mxu0 %v5674_v13  ;;  %v5733_v13 = vld [vmem:[%s7248_s1 + $0x6c8] sm:$0xff]  }
  0xa1   :  { %5164 = vmatpush3.bf16.msra.mxu1 %v5673_v10  ;;  %v5730_v10 = vld [vmem:[%s7248_s1 + $0x690] sm:$0xff]  }
  0xa2   :  { %3883 = vmatmul.mubr.bf16.vlgmr.msra.gmra.mxu0 %v942_v12  ;;  %5193 = vmatprep.subr.bf16.mxu1 %v5676_v16  ;;  %v19_v12 = vld [vmem:[%s7247_s0 + $0x18] sm:$0xff]  ;;  %v5732_v16 = vld [vmem:[%s7248_s1 + $0x608] sm:$0xff]  }
  0xa3   :  { %5172 = vmatpush3.bf16.msra.mxu0 %v5675_v14  ;;  %3962 = vmatprep.mubr.bf16.mxu0 %v963_v15  ;;  %v975_v14 = vrot.slane %v19_v12, %v6065_v41  ;;  %v968_v15 = vcombine.high %v19_v12, %v19_v12  ;;  %v5771_v12 = vld [vmem:[%s7248_s1 + $0x780] sm:$0xff]  }
  0xa4   :  { %3923 = vmatmul.mubr.bf16.vlgmr.msra.gmra.mxu1 %v964_v18  ;;  %5173 = vmatprep.subr.bf16.mxu0 %v5678_v19  ;;  %v5735_v18 = vld [vmem:[%s7248_s1 + $0x640] sm:$0xff]  }
  0xa5   :  { %5194 = vmatpush3.bf16.msra.mxu1 %v5677_v17  ;;  %4002 = vmatprep.mubr.bf16.mxu1 %v967_v21  ;;  %v5734_v17 = vld [vmem:[%s7248_s1 + $0x688] sm:$0xff]   ;;  %v983_v19 = vcombine.high %v975_v14, %v975_v14  ;;  %v5736_v21 = vld [vmem:[%s7248_s1 + $0x600] sm:$0xff]  }
  0xa6   :  { %5195 = vmatprep.subr.bf16.mxu1 %v5680_v22  ;;  %v5737_v22 = vld [vmem:[%s7248_s1 + $0x6c0] sm:$0xff]  }
  0xa7   :  { %5174 = vmatpush3.bf16.msra.mxu0 %v5679_v20  ;;  %v6672_v20 = vrot.slane %v968_v15, %v6065_v41  ;;  %v5773_v15 = vld [vmem:[%s7248_s1 + $0x838] sm:$0xff]  }
  0xa8   :  { %5175 = vmatprep.subr.bf16.mxu0 %v5682_v24 }
  0xa9   :  { %5196 = vmatpush3.bf16.msra.mxu1 %v5681_v23  ;;  %v1005_v23 = vrot.slane %v983_v19, %v6065_v41  ;;  %v984_v24 = vcombine.high %v6672_v20, %v6672_v20  ;;  %v5776_v19 = vld [vmem:[%s7248_s1 + $0x870] sm:$0xff]  }
  0xaa   :  { %5197 = vmatprep.subr.bf16.mxu1 %v5684_v26  ;;  %v991_v26 = vrot.slane %v975_v14, %v6065_v41  ;;  %v5772_v14 = vld [vmem:[%s7248_s1 + $0x878] sm:$0xff]  }
  0xab   :  { %5176 = vmatpush3.bf16.msra.mxu0 %v5683_v25  ;;  %v5738_v25 = vld [vmem:[%s7248_s1 + $0x680] sm:$0xff]  }
  0xac   :  { %5177 = vmatprep.subr.bf16.mxu0 %v5686_v28  ;;  %v1015_v28 = vcombine.high %v1005_v23, %v1005_v23 }
  0xad   :  { %5198 = vmatpush3.bf16.msra.mxu1 %v5685_v27  ;;  %v5739_v27 = vld [vmem:[%s7248_s1 + $0x778] sm:$0xff]  }
  0xae   :  { %5199 = vmatprep.subr.bf16.mxu1 %v5688_v30  ;;  %v1012_v30 = vrot.slane %v984_v24, %v6065_v41 }
  0xaf   :  { %5178 = vmatpush3.bf16.msra.mxu0 %v5687_v29  ;;  %v5740_v29 = vld [vmem:[%s7248_s1 + $0x738] sm:$0xff]  }
  0xb0   :  { %5179 = vmatprep.subr.bf16.mxu0 %v5690_v32  ;;  %v5742_v32 = vld [vmem:[%s7248_s1 + $0x7b8] sm:$0xff]  }
  0xb1   :  { %5200 = vmatpush3.bf16.msra.mxu1 %v5689_v31  ;;  %v5741_v31 = vld [vmem:[%s7248_s1 + $0x7f8] sm:$0xff]  }
  0xb2   :  { %5201 = vmatprep.subr.bf16.mxu1 %v5692_v34  ;;  %v5743_v34 = vld [vmem:[%s7248_s1 + $0x770] sm:$0xff]  }
  0xb3   :  { %5180 = vmatpush3.bf16.msra.mxu0 %v5691_v33  ;;  %v1013_v33 = vcombine.high %v991_v26, %v991_v26 }
  0xb4   :  { %5181 = vmatprep.subr.bf16.mxu0 %v5694_v36  ;;  %v1016_v36 = vcombine.high %v1012_v30, %v1012_v30 }
  0xb5   :  { %5202 = vmatpush3.bf16.msra.mxu1 %v5693_v35  ;;  %v5744_v35 = vld [vmem:[%s7248_s1 + $0x730] sm:$0xff]  }
  0xb6   :  { %5203 = vmatprep.subr.bf16.mxu1 %v5696_v38  ;;  %v4557_v38 = vld [vmem:[%s7249_s2] ss:$0 sm:$0xff] }
  0xb7   :  { %5182 = vmatpush3.bf16.msra.mxu0 %v5695_v37 }
  0xb8   :  { %5183 = vmatprep.subr.bf16.mxu0 %v5698_v40  ;;  %v5746_v40 = vld [vmem:[%s7248_s1 + $0x7b0] sm:$0xff]  }
  0xb9   :  { %5204 = vmatpush3.bf16.msra.mxu1 %v5697_v39  ;;  %v5745_v39 = vld [vmem:[%s7248_s1 + $0x7f0] sm:$0xff]  }
  0xba   :  { %5205 = vmatprep.subr.bf16.mxu1 %v5700_v43 }
  0xbb   :  { %5184 = vmatpush3.bf16.msra.mxu0 %v5699_v42 }
  0xbc   :  { %5185 = vmatprep.subr.bf16.mxu0 %v5702_v45 }
  0xbd   :  { %5206 = vmatpush3.bf16.msra.mxu1 %v5701_v44  ;;  %v5747_v44 = vld [vmem:[%s7248_s1 + $0x768] sm:$0xff]  }
  0xbe   :  { %5207 = vmatprep.subr.bf16.mxu1 %v5704_v47 }
  0xbf   :  { %5186 = vmatpush3.bf16.msra.mxu0 %v5703_v46  ;;  %v5748_v46 = vld [vmem:[%s7248_s1 + $0x728] sm:$0xff]  }
  0xc0   :  { %5215 = vmatprep.subr.bf16.mxu0 %v5707_v50 }
  0xc1   :  { %5208 = vmatpush3.bf16.msra.mxu1 %v5706_v48 }
  0xc2   :  { %3963 = vmatmul.mubr.bf16.vlgmr.msra.gmra.mxu0 %v949_v49  ;;  %5237 = vmatprep.subr.bf16.mxu1 %v5709_v52  ;;  %v5749_v49 = vld [vmem:[%s7248_s1 + $0x7e8] sm:$0xff]  }
  0xc3   :  { %5216 = vmatpush3.bf16.msra.mxu0 %v5708_v51  ;;  %4042 = vmatprep.mubr.bf16.mxu0 %v1005_v23  ;;  %v5750_v52 = vld [vmem:[%s7248_s1 + $0x7a8] sm:$0xff]   ;;  %v5779_v23 = vld [vmem:[%s7248_s1 + $0x8b0] sm:$0xff]  }
  0xc4   :  { %4003 = vmatmul.mubr.bf16.vlgmr.msra.gmra.mxu1 %v965_v54  ;;  %5217 = vmatprep.subr.bf16.mxu0 %v5711_v55  ;;  %v5751_v54 = vld [vmem:[%s7248_s1 + $0x760] sm:$0xff]  }
  0xc5   :  { %5238 = vmatpush3.bf16.msra.mxu1 %v5710_v53  ;;  %4082 = vmatprep.mubr.bf16.mxu1 %v1015_v28  ;;  %v5781_v28 = vld [vmem:[%s7248_s1 + $0x828] sm:$0xff]  }
  0xc6   :  { %5239 = vmatprep.subr.bf16.mxu1 %v5713_v57  ;;  %v5752_v57 = vld [vmem:[%s7248_s1 + $0x720] sm:$0xff]  }
  0xc7   :  { %5218 = vmatpush3.bf16.msra.mxu0 %v5712_v56 }
  0xc8   :  { %5219 = vmatprep.subr.bf16.mxu0 %v5715_v59 }
  0xc9   :  { %5240 = vmatpush3.bf16.msra.mxu1 %v5714_v58  ;;  %v5753_v58 = vld [vmem:[%s7248_s1 + $0x7e0] sm:$0xff]  }
  0xca   :  { %5241 = vmatprep.subr.bf16.mxu1 %v5717_v61  ;;  %v5755_v61 = vld [vmem:[%s7248_s1 + $0x758] sm:$0xff]  }
  0xcb   :  { %5220 = vmatpush3.bf16.msra.mxu0 %v5716_v60  ;;  %v5754_v60 = vld [vmem:[%s7248_s1 + $0x7a0] sm:$0xff]  }
  0xcc   :  { %5221 = vmatprep.subr.bf16.mxu0 %v5719_v63  ;;  %v5757_v63 = vld [vmem:[%s7248_s1 + $0x7d8] sm:$0xff]  }
  0xcd   :  { %5242 = vmatpush3.bf16.msra.mxu1 %v5718_v62  ;;  %v5756_v62 = vld [vmem:[%s7248_s1 + $0x718] sm:$0xff]  }
  0xce   :  { %5243 = vmatprep.subr.bf16.mxu1 %v5721_v1  ;;  %v5759_v1 = vld [vmem:[%s7248_s1 + $0x750] sm:$0xff]  }
  0xcf   :  { %5222 = vmatpush3.bf16.msra.mxu0 %v5720_v0  ;;  %v5758_v0 = vld [vmem:[%s7248_s1 + $0x798] sm:$0xff]  }
  0xd0   :  { %5223 = vmatprep.subr.bf16.mxu0 %v5723_v3  ;;  %v5761_v3 = vld [vmem:[%s7248_s1 + $0x7d0] sm:$0xff]  }
  0xd1   :  { %5244 = vmatpush3.bf16.msra.mxu1 %v5722_v2  ;;  %v5760_v2 = vld [vmem:[%s7248_s1 + $0x710] sm:$0xff]  }
  0xd2   :  { %5245 = vmatprep.subr.bf16.mxu1 %v5725_v5  ;;  %v5763_v5 = vld [vmem:[%s7248_s1 + $0x748] sm:$0xff]  }
  0xd3   :  { %5224 = vmatpush3.bf16.msra.mxu0 %v5724_v4  ;;  %v5762_v4 = vld [vmem:[%s7248_s1 + $0x790] sm:$0xff]  }
  0xd4   :  { %5225 = vmatprep.subr.bf16.mxu0 %v5727_v7  ;;  %v5765_v7 = vld [vmem:[%s7248_s1 + $0x7c8] sm:$0xff]  }
  0xd5   :  { %5246 = vmatpush3.bf16.msra.mxu1 %v5726_v6  ;;  %v5764_v6 = vld [vmem:[%s7248_s1 + $0x708] sm:$0xff]  }
  0xd6   :  { %5247 = vmatprep.subr.bf16.mxu1 %v5729_v9  ;;  %v5767_v9 = vld [vmem:[%s7248_s1 + $0x740] sm:$0xff]  }
  0xd7   :  { %5226 = vmatpush3.bf16.msra.mxu0 %v5728_v8  ;;  %v5766_v8 = vld [vmem:[%s7248_s1 + $0x788] sm:$0xff]  }
  0xd8   :  { %5227 = vmatprep.subr.bf16.mxu0 %v5731_v11  ;;  %v5769_v11 = vld [vmem:[%s7248_s1 + $0x7c0] sm:$0xff]  }
  0xd9   :  { %5248 = vmatpush3.bf16.msra.mxu1 %v5730_v10  ;;  %v5768_v10 = vld [vmem:[%s7248_s1 + $0x700] sm:$0xff]  }
  0xda   :  { %5249 = vmatprep.subr.bf16.mxu1 %v5733_v13  ;;  %v998_v13 = vrot.slane %v6672_v20, %v6065_v41  ;;  %v5777_v20 = vld [vmem:[%s7248_s1 + $0x830] sm:$0xff]  }
  0xdb   :  { %5228 = vmatpush3.bf16.msra.mxu0 %v5732_v16  ;;  %v5774_v16 = vld [vmem:[%s7248_s1 + $0x8f8] sm:$0xff]  }
  0xdc   :  { %5229 = vmatprep.subr.bf16.mxu0 %v5735_v18  ;;  %v1014_v18 = vcombine.high %v998_v13, %v998_v13 }
  0xdd   :  { %5250 = vmatpush3.bf16.msra.mxu1 %v5734_v17  ;;  %v5775_v17 = vld [vmem:[%s7248_s1 + $0x8b8] sm:$0xff]  }
  0xde   :  { %5251 = vmatprep.subr.bf16.mxu1 %v5737_v22  ;;  %v5778_v22 = vld [vmem:[%s7248_s1 + $0x8f0] sm:$0xff]  }
  0xdf   :  { %5230 = vmatpush3.bf16.msra.mxu0 %v5736_v21 }
  0xe0   :  { %5259 = vmatprep.subr.bf16.mxu0 %v5739_v27 }
  0xe1   :  { %5252 = vmatpush3.bf16.msra.mxu1 %v5738_v25 }
  0xe2   :  { %v4967_v37 = vpop.f32.mrf.mxu0  ;;  %4043 = vmatmul.mubr.bf16.vlgmr.msra.gmra.mxu0 %v991_v26  ;;  %5281 = vmatprep.subr.bf16.mxu1 %v5741_v31  ;;  %v5780_v26 = vld [vmem:[%s7248_s1 + $0x868] sm:$0xff]  }
  0xe3   :  { %5260 = vmatpush3.bf16.msra.mxu0 %v5740_v29  ;;  %4122 = vmatprep.mubr.bf16.mxu0 %v1012_v30  ;;  %v5782_v31 = vld [vmem:[%s7248_s1 + $0x8e8] sm:$0xff]  }
  0xe4   :  { %v4968_v42 = vpop.f32.mrf.mxu0  ;;  %v4989_v43 = vpop.f32.mrf.mxu1  ;;  %4083 = vmatmul.mubr.bf16.vlgmr.msra.gmra.mxu1 %v1013_v33  ;;  %5261 = vmatprep.subr.bf16.mxu0 %v5743_v34  ;;  %v5783_v34 = vld [vmem:[%s7248_s1 + $0x8a8] sm:$0xff]  }
  0xe5   :  { %v4969_v45 = vadd.f32 %v4968_v42, %v4967_v37  ;;  %5282 = vmatpush3.bf16.msra.mxu1 %v5742_v32  ;;  %4162 = vmatprep.mubr.bf16.mxu1 %v1016_v36  ;;  %v5784_v36 = vld [vmem:[%s7248_s1 + $0x860] sm:$0xff]  }
  0xe6   :  { %v4970_v47 = vpop.f32.mrf.mxu0  ;;  %v4990_v48 = vpop.f32.mrf.mxu1  ;;  %5283 = vmatprep.subr.bf16.mxu1 %v5745_v39  ;;  %v5785_v39 = vld [vmem:[%s7248_s1 + $0x820] sm:$0xff]  }
  0xe7   :  { %v3565_v50 = vadd.f32 %v4969_v45, %v4557_v38  ;;  %v4991_v51 = vadd.f32 %v4990_v48, %v4989_v43  ;;  %5262 = vmatpush3.bf16.msra.mxu0 %v5744_v35  ;;  %v5787_v43 = vld [vmem:[%s7248_s1 + $0x8a0] sm:$0xff]   ;;  %v5789_v45 = vld [vmem:[%s7248_s1 + $0x818] sm:$0xff]   ;;  %v5792_v48 = vld [vmem:[%s7248_s1 + $0x850] sm:$0xff]  }
  0xe8   :  { %v4971_v53 = vpop.f32.mrf.mxu0  ;;  %5263 = vmatprep.subr.bf16.mxu0 %v5747_v44  ;;  %v4992_v55 = vpop.f32.mrf.mxu1  ;;  %v5788_v44 = vld [vmem:[%s7248_s1 + $0x858] sm:$0xff]  }
  0xe9   :  { %v6730_v56 = vadd.f32 %v4991_v51, %v3565_v50  ;;  %5284 = vmatpush3.bf16.msra.mxu1 %v5746_v40  ;;  %v5786_v40 = vld [vmem:[%s7248_s1 + $0x8e0] sm:$0xff]   ;;  %v5791_v47 = vld [vmem:[%s7248_s1 + $0x898] sm:$0xff]   ;;  %v5794_v50 = vld [vmem:[%s7248_s1 + $0x8d0] sm:$0xff]  }
  0xea   :  { %5285 = vmatprep.subr.bf16.mxu1 %v5749_v49  ;;  %v4993_v59 = vpop.f32.mrf.mxu1  ;;  %v5793_v49 = vld [vmem:[%s7248_s1 + $0x810] sm:$0xff]   ;;  %v5797_v53 = vld [vmem:[%s7248_s1 + $0x808] sm:$0xff]  }
  0xeb   :  { %5264 = vmatpush3.bf16.msra.mxu0 %v5748_v46  ;;  %v5790_v46 = vld [vmem:[%s7248_s1 + $0x8d8] sm:$0xff]   ;;  %v5795_v51 = vld [vmem:[%s7248_s1 + $0x890] sm:$0xff]   ;;  %v5798_v55 = vld [vmem:[%s7248_s1 + $0x8c8] sm:$0xff]  }
  0xec   :  { %5265 = vmatprep.subr.bf16.mxu0 %v5751_v54  ;;  %v20_v54 = vld [vmem:[%s7247_s0 + $0x20] sm:$0xff] }
  0xed   :  { %5286 = vmatpush3.bf16.msra.mxu1 %v5750_v52  ;;  %v5796_v52 = vld [vmem:[%s7248_s1 + $0x848] sm:$0xff]   ;;  %v5800_v59 = vld [vmem:[%s7248_s1 + $0x840] sm:$0xff]  }
  0xee   :  { %5287 = vmatprep.subr.bf16.mxu1 %v5753_v58  ;;  %v5799_v58 = vld [vmem:[%s7248_s1 + $0x888] sm:$0xff]  }
  0xef   :  { %5266 = vmatpush3.bf16.msra.mxu0 %v5752_v57  ;;  %v1017_v57 = vcombine.high %v20_v54, %v20_v54 }
  0xf0   :  { %5267 = vmatprep.subr.bf16.mxu0 %v5755_v61 }
  0xf1   :  { %5288 = vmatpush3.bf16.msra.mxu1 %v5754_v60  ;;  %v6886_v61 = vrot.slane %v1017_v57, %v6065_v41  ;;  %v5840_v57 = vld [vmem:[%s7248_s1 + $0xab8] sm:$0xff]  }
  0xf2   :  { %5289 = vmatprep.subr.bf16.mxu1 %v5757_v63  ;;  %v5802_v63 = vld [vmem:[%s7248_s1 + $0x8c0] sm:$0xff]  }
  0xf3   :  { %5268 = vmatpush3.bf16.msra.mxu0 %v5756_v62  ;;  %v5801_v62 = vld [vmem:[%s7248_s1 + $0x800] sm:$0xff]  }
  0xf4   :  { %5269 = vmatprep.subr.bf16.mxu0 %v5759_v1  ;;  %v1033_v1 = vcombine.high %v6886_v61, %v6886_v61 }
  0xf5   :  { %5290 = vmatpush3.bf16.msra.mxu1 %v5758_v0 }
  0xf6   :  { %5291 = vmatprep.subr.bf16.mxu1 %v5761_v3 }
  0xf7   :  { %5270 = vmatpush3.bf16.msra.mxu0 %v5760_v2  ;;  %v5803_v2 = vld [vmem:[%s7248_s1 + $0x880] sm:$0xff]  }
  0xf8   :  { %5271 = vmatprep.subr.bf16.mxu0 %v5763_v5 }
  0xf9   :  { %5292 = vmatpush3.bf16.msra.mxu1 %v5762_v4  ;;  %v5804_v4 = vld [vmem:[%s7248_s1 + $0x978] sm:$0xff]  }
  0xfa   :  { %5293 = vmatprep.subr.bf16.mxu1 %v5765_v7  ;;  %v1061_v7 = vrot.slane %v1033_v1, %v6065_v41 }
  0xfb   :  { %5272 = vmatpush3.bf16.msra.mxu0 %v5764_v6  ;;  %v5805_v6 = vld [vmem:[%s7248_s1 + $0x938] sm:$0xff]  }
  0xfc   :  { %5273 = vmatprep.subr.bf16.mxu0 %v5767_v9  ;;  %v5807_v9 = vld [vmem:[%s7248_s1 + $0x9b8] sm:$0xff]  }
  0xfd   :  { %5294 = vmatpush3.bf16.msra.mxu1 %v5766_v8  ;;  %v5806_v8 = vld [vmem:[%s7248_s1 + $0x9f8] sm:$0xff]  }
  0xfe   :  { %5295 = vmatprep.subr.bf16.mxu1 %v5769_v11  ;;  %v5808_v11 = vld [vmem:[%s7248_s1 + $0x970] sm:$0xff]  }
  0xff   :  { %5274 = vmatpush3.bf16.msra.mxu0 %v5768_v10 }
 0x100   :  { %5303 = vmatprep.subr.bf16.mxu0 %v5772_v14 }
 0x101   :  { %5296 = vmatpush3.bf16.msra.mxu1 %v5771_v12  ;;  %v5809_v12 = vld [vmem:[%s7248_s1 + $0x930] sm:$0xff]  }
 0x102   :  { %v5011_v21 = vpop.f32.mrf.mxu0  ;;  %4123 = vmatmul.mubr.bf16.vlgmr.msra.gmra.mxu0 %v998_v13  ;;  %5325 = vmatprep.subr.bf16.mxu1 %v5774_v16  ;;  %v1065_v13 = vcombine.high %v1061_v7, %v1061_v7  ;;  %v5811_v16 = vld [vmem:[%s7248_s1 + $0x9b0] sm:$0xff]  }
 0x103   :  { %5304 = vmatpush3.bf16.msra.mxu0 %v5773_v15  ;;  %v5810_v15 = vld [vmem:[%s7248_s1 + $0x9f0] sm:$0xff]  }
 0x104   :  { %v5012_v24 = vpop.f32.mrf.mxu0  ;;  %v5033_v25 = vpop.f32.mrf.mxu1  ;;  %4163 = vmatmul.mubr.bf16.vlgmr.msra.gmra.mxu1 %v1014_v18  ;;  %5305 = vmatprep.subr.bf16.mxu0 %v5776_v19  ;;  %v5812_v19 = vld [vmem:[%s7248_s1 + $0x968] sm:$0xff]  }
 0x105   :  { %v5013_v27 = vadd.f32 %v5012_v24, %v5011_v21  ;;  %5326 = vmatpush3.bf16.msra.mxu1 %v5775_v17  ;;  %v5813_v21 = vld [vmem:[%s7248_s1 + $0x928] sm:$0xff]  }
 0x106   :  { %v5014_v29 = vpop.f32.mrf.mxu0  ;;  %v5034_v30 = vpop.f32.mrf.mxu1  ;;  %5327 = vmatprep.subr.bf16.mxu1 %v5778_v22  ;;  %v5814_v24 = vld [vmem:[%s7248_s1 + $0x9e8] sm:$0xff]  }
 0x107   :  { %v3645_v32 = vadd.f32 %v5013_v27, %v6730_v56  ;;  %v5035_v33 = vadd.f32 %v5034_v30, %v5033_v25  ;;  %5306 = vmatpush3.bf16.msra.mxu0 %v5777_v20  ;;  %v1024_v56 = vrot.slane %v20_v54, %v6065_v41  ;;  %v5815_v27 = vld [vmem:[%s7248_s1 + $0x9a8] sm:$0xff]   ;;  %v5816_v29 = vld [vmem:[%s7248_s1 + $0x960] sm:$0xff]   ;;  %v5837_v54 = vld [vmem:[%s7248_s1 + $0xa78] sm:$0xff]  }
 0x108   :  { %v5015_v35 = vpop.f32.mrf.mxu0  ;;  %5307 = vmatprep.subr.bf16.mxu0 %v5780_v26  ;;  %v5036_v37 = vpop.f32.mrf.mxu1 }
 0x109   :  { %v6831_v38 = vadd.f32 %v5035_v33, %v3645_v32  ;;  %5328 = vmatpush3.bf16.msra.mxu1 %v5779_v23  ;;  %v1032_v60 = vcombine.high %v1024_v56, %v1024_v56  ;;  %v1040_v3 = vrot.slane %v1024_v56, %v6065_v41  ;;  %v5817_v32 = vld [vmem:[%s7248_s1 + $0x920] sm:$0xff]   ;;  %v5821_v37 = vld [vmem:[%s7248_s1 + $0x918] sm:$0xff]  }
 0x10a   :  { %5329 = vmatprep.subr.bf16.mxu1 %v5782_v31  ;;  %v5037_v42 = vpop.f32.mrf.mxu1  ;;  %v5818_v33 = vld [vmem:[%s7248_s1 + $0x9e0] sm:$0xff]   ;;  %v5839_v56 = vld [vmem:[%s7248_s1 + $0xaf8] sm:$0xff]  }
 0x10b   :  { %5308 = vmatpush3.bf16.msra.mxu0 %v5781_v28  ;;  %v1054_v0 = vrot.slane %v1032_v60, %v6065_v41  ;;  %v1062_v10 = vcombine.high %v1040_v3, %v1040_v3  ;;  %v5819_v35 = vld [vmem:[%s7248_s1 + $0x9a0] sm:$0xff]   ;;  %v5825_v42 = vld [vmem:[%s7248_s1 + $0x910] sm:$0xff]  }
 0x10c   :  { %5309 = vmatprep.subr.bf16.mxu0 %v5784_v36  ;;  %v5820_v36 = vld [vmem:[%s7248_s1 + $0x958] sm:$0xff]   ;;  %v5842_v60 = vld [vmem:[%s7248_s1 + $0xa30] sm:$0xff]  }
 0x10d   :  { %5330 = vmatpush3.bf16.msra.mxu1 %v5783_v34  ;;  %4202 = vmatprep.mubr.bf16.mxu0 %v1054_v0  ;;  %v1064_v5 = vcombine.high %v1054_v0, %v1054_v0 }
 0x10e   :  { %5331 = vmatprep.subr.bf16.mxu1 %v5786_v40  ;;  %v5824_v40 = vld [vmem:[%s7248_s1 + $0x950] sm:$0xff]  }
 0x10f   :  { %5310 = vmatpush3.bf16.msra.mxu0 %v5785_v39  ;;  %4242 = vmatprep.mubr.bf16.mxu1 %v1064_v5  ;;  %v5823_v39 = vld [vmem:[%s7248_s1 + $0x998] sm:$0xff]  }
 0x110   :  { %5311 = vmatprep.subr.bf16.mxu0 %v5788_v44  ;;  %v5827_v44 = vld [vmem:[%s7248_s1 + $0x990] sm:$0xff]  }
 0x111   :  { %5332 = vmatpush3.bf16.msra.mxu1 %v5787_v43  ;;  %v5826_v43 = vld [vmem:[%s7248_s1 + $0x9d0] sm:$0xff]  }
 0x112   :  { %5333 = vmatprep.subr.bf16.mxu1 %v5790_v46  ;;  %v5829_v46 = vld [vmem:[%s7248_s1 + $0x908] sm:$0xff]  }
 0x113   :  { %5312 = vmatpush3.bf16.msra.mxu0 %v5789_v45  ;;  %v5828_v45 = vld [vmem:[%s7248_s1 + $0x948] sm:$0xff]  }
 0x114   :  { %5313 = vmatprep.subr.bf16.mxu0 %v5792_v48  ;;  %v5831_v48 = vld [vmem:[%s7248_s1 + $0x988] sm:$0xff]  }
 0x115   :  { %5334 = vmatpush3.bf16.msra.mxu1 %v5791_v47  ;;  %v5830_v47 = vld [vmem:[%s7248_s1 + $0x9c8] sm:$0xff]  }
 0x116   :  { %5335 = vmatprep.subr.bf16.mxu1 %v5794_v50  ;;  %v5833_v50 = vld [vmem:[%s7248_s1 + $0x900] sm:$0xff]  }
 0x117   :  { %5314 = vmatpush3.bf16.msra.mxu0 %v5793_v49  ;;  %v5832_v49 = vld [vmem:[%s7248_s1 + $0x940] sm:$0xff]  }
 0x118   :  { %5315 = vmatprep.subr.bf16.mxu0 %v5796_v52  ;;  %v5836_v52 = vld [vmem:[%s7248_s1 + $0x980] sm:$0xff]  }
 0x119   :  { %5336 = vmatpush3.bf16.msra.mxu1 %v5795_v51  ;;  %v5834_v51 = vld [vmem:[%s7248_s1 + $0x9c0] sm:$0xff]  }
 0x11a   :  { %5337 = vmatprep.subr.bf16.mxu1 %v5798_v55  ;;  %v5838_v55 = vld [vmem:[%s7248_s1 + $0xa38] sm:$0xff]  }
 0x11b   :  { %5316 = vmatpush3.bf16.msra.mxu0 %v5797_v53  ;;  %v1047_v53 = vrot.slane %v6886_v61, %v6065_v41 }
 0x11c   :  { %5317 = vmatprep.subr.bf16.mxu0 %v5800_v59  ;;  %v5841_v59 = vld [vmem:[%s7248_s1 + $0xa70] sm:$0xff]  }
 0x11d   :  { %5338 = vmatpush3.bf16.msra.mxu1 %v5799_v58  ;;  %v1063_v58 = vcombine.high %v1047_v53, %v1047_v53 }
 0x11e   :  { %5339 = vmatprep.subr.bf16.mxu1 %v5802_v63  ;;  %v5844_v63 = vld [vmem:[%s7248_s1 + $0xab0] sm:$0xff]  }
 0x11f   :  { %5318 = vmatpush3.bf16.msra.mxu0 %v5801_v62  ;;  %v5843_v62 = vld [vmem:[%s7248_s1 + $0xaf0] sm:$0xff]  }
 0x120   :  { %5347 = vmatprep.subr.bf16.mxu0 %v5804_v4  ;;  %v5846_v4 = vld [vmem:[%s7248_s1 + $0xa28] sm:$0xff]  }
 0x121   :  { %5340 = vmatpush3.bf16.msra.mxu1 %v5803_v2  ;;  %v5845_v2 = vld [vmem:[%s7248_s1 + $0xa68] sm:$0xff]  }
 0x122   :  { %v5055_v14 = vpop.f32.mrf.mxu0  ;;  %4203 = vmatmul.mubr.bf16.vlgmr.msra.gmra.mxu0 %v1040_v3  ;;  %5369 = vmatprep.subr.bf16.mxu1 %v5806_v8 }
 0x123   :  { %5348 = vmatpush3.bf16.msra.mxu0 %v5805_v6  ;;  %4282 = vmatprep.mubr.bf16.mxu0 %v1061_v7  ;;  %v5847_v7 = vld [vmem:[%s7248_s1 + $0xae8] sm:$0xff]  }
 0x124   :  { %v5056_v17 = vpop.f32.mrf.mxu0  ;;  %v5077_v18 = vpop.f32.mrf.mxu1  ;;  %4243 = vmatmul.mubr.bf16.vlgmr.msra.gmra.mxu1 %v1062_v10  ;;  %5349 = vmatprep.subr.bf16.mxu0 %v5808_v11  ;;  %v5848_v10 = vld [vmem:[%s7248_s1 + $0xaa8] sm:$0xff]  }
 0x125   :  { %v5057_v20 = vadd.f32 %v5056_v17, %v5055_v14  ;;  %5370 = vmatpush3.bf16.msra.mxu1 %v5807_v9  ;;  %4322 = vmatprep.mubr.bf16.mxu1 %v1065_v13 }
 0x126   :  { %v5058_v22 = vpop.f32.mrf.mxu0  ;;  %v5078_v23 = vpop.f32.mrf.mxu1  ;;  %5371 = vmatprep.subr.bf16.mxu1 %v5810_v15  ;;  %v5850_v15 = vld [vmem:[%s7248_s1 + $0xa20] sm:$0xff]  }
 0x127   :  { %v3725_v25 = vadd.f32 %v5057_v20, %v6831_v38  ;;  %v5079_v26 = vadd.f32 %v5078_v23, %v5077_v18  ;;  %5350 = vmatpush3.bf16.msra.mxu0 %v5809_v12  ;;  %v5822_v38 = vld [vmem:[%s7248_s1 + $0x9d8] sm:$0xff]   ;;  %v5849_v12 = vld [vmem:[%s7248_s1 + $0xa60] sm:$0xff]   ;;  %v5857_v23 = vld [vmem:[%s7248_s1 + $0xa50] sm:$0xff]  }
 0x128   :  { %v5059_v28 = vpop.f32.mrf.mxu0  ;;  %5351 = vmatprep.subr.bf16.mxu0 %v5812_v19  ;;  %v5080_v30 = vpop.f32.mrf.mxu1  ;;  %v5852_v18 = vld [vmem:[%s7248_s1 + $0xaa0] sm:$0xff]   ;;  %v5853_v19 = vld [vmem:[%s7248_s1 + $0xa58] sm:$0xff]  }
 0x129   :  { %v6942_v31 = vadd.f32 %v5079_v26, %v3725_v25  ;;  %5372 = vmatpush3.bf16.msra.mxu1 %v5811_v16  ;;  %v5851_v16 = vld [vmem:[%s7248_s1 + $0xae0] sm:$0xff]   ;;  %v5854_v20 = vld [vmem:[%s7248_s1 + $0xa18] sm:$0xff]   ;;  %v5859_v25 = vld [vmem:[%s7248_s1 + $0xad0] sm:$0xff]  }
 0x12a   :  { %5373 = vmatprep.subr.bf16.mxu1 %v5814_v24  ;;  %v5081_v34 = vpop.f32.mrf.mxu1  ;;  %v5856_v22 = vld [vmem:[%s7248_s1 + $0xa98] sm:$0xff]   ;;  %v5858_v24 = vld [vmem:[%s7248_s1 + $0xa10] sm:$0xff]   ;;  %v5863_v28 = vld [vmem:[%s7248_s1 + $0xac8] sm:$0xff]  }
 0x12b   :  { %5352 = vmatpush3.bf16.msra.mxu0 %v5813_v21  ;;  %v5855_v21 = vld [vmem:[%s7248_s1 + $0xad8] sm:$0xff]   ;;  %v5860_v26 = vld [vmem:[%s7248_s1 + $0xa90] sm:$0xff]   ;;  %v5862_v30 = vld [vmem:[%s7248_s1 + $0xa08] sm:$0xff]  }
 0x12c   :  { %5353 = vmatprep.subr.bf16.mxu0 %v5816_v29  ;;  %v21_v29 = vld [vmem:[%s7247_s0 + $0x28] sm:$0xff] }
 0x12d   :  { %5374 = vmatpush3.bf16.msra.mxu1 %v5815_v27  ;;  %v5861_v27 = vld [vmem:[%s7248_s1 + $0xa48] sm:$0xff]  }
 0x12e   :  { %5375 = vmatprep.subr.bf16.mxu1 %v5818_v33  ;;  %v5865_v33 = vld [vmem:[%s7248_s1 + $0xa40] sm:$0xff]   ;;  %v5864_v34 = vld [vmem:[%s7248_s1 + $0xa88] sm:$0xff]  }
 0x12f   :  { %5354 = vmatpush3.bf16.msra.mxu0 %v5817_v32  ;;  %v1066_v32 = vcombine.high %v21_v29, %v21_v29 }
 0x130   :  { %5355 = vmatprep.subr.bf16.mxu0 %v5820_v36 }
 0x131   :  { %5376 = vmatpush3.bf16.msra.mxu1 %v5819_v35  ;;  %v7098_v36 = vrot.slane %v1066_v32, %v6065_v41 }
 0x132   :  { %5377 = vmatprep.subr.bf16.mxu1 %v5822_v38  ;;  %v5866_v38 = vld [vmem:[%s7248_s1 + $0xa00] sm:$0xff]  }
 0x133   :  { %5356 = vmatpush3.bf16.msra.mxu0 %v5821_v37  ;;  %v5867_v37 = vld [vmem:[%s7248_s1 + $0xac0] sm:$0xff]  }
 0x134   :  { %5357 = vmatprep.subr.bf16.mxu0 %v5824_v40  ;;  %v1082_v40 = vcombine.high %v7098_v36, %v7098_v36 }
 0x135   :  { %5378 = vmatpush3.bf16.msra.mxu1 %v5823_v39 }
 0x136   :  { %5379 = vmatprep.subr.bf16.mxu1 %v5826_v43  ;;  %v5869_v43 = vld [vmem:[%s7248_s1 + $0xb78] sm:$0xff]  }
 0x137   :  { %5358 = vmatpush3.bf16.msra.mxu0 %v5825_v42 }
 0x138   :  { %5359 = vmatprep.subr.bf16.mxu0 %v5828_v45 }
 0x139   :  { %5380 = vmatpush3.bf16.msra.mxu1 %v5827_v44  ;;  %v5868_v44 = vld [vmem:[%s7248_s1 + $0xa80] sm:$0xff]  }
 0x13a   :  { %5381 = vmatprep.subr.bf16.mxu1 %v5830_v47  ;;  %v5871_v47 = vld [vmem:[%s7248_s1 + $0xbf8] sm:$0xff]  }
 0x13b   :  { %5360 = vmatpush3.bf16.msra.mxu0 %v5829_v46  ;;  %v1110_v46 = vrot.slane %v1082_v40, %v6065_v41 }
 0x13c   :  { %5361 = vmatprep.subr.bf16.mxu0 %v5832_v49 }
 0x13d   :  { %5382 = vmatpush3.bf16.msra.mxu1 %v5831_v48  ;;  %v5870_v48 = vld [vmem:[%s7248_s1 + $0xb38] sm:$0xff]  }
 0x13e   :  { %5383 = vmatprep.subr.bf16.mxu1 %v5834_v51  ;;  %v5872_v51 = vld [vmem:[%s7248_s1 + $0xbb8] sm:$0xff]  }
 0x13f   :  { %5362 = vmatpush3.bf16.msra.mxu0 %v5833_v50  ;;  %v5873_v50 = vld [vmem:[%s7248_s1 + $0xb70] sm:$0xff]  }
 0x140   :  { %5391 = vmatprep.subr.bf16.mxu0 %v5837_v54  ;;  %v5875_v54 = vld [vmem:[%s7248_s1 + $0xbf0] sm:$0xff]  }
 0x141   :  { %5384 = vmatpush3.bf16.msra.mxu1 %v5836_v52  ;;  %v1114_v52 = vcombine.high %v1110_v46, %v1110_v46 }
 0x142   :  { %v5099_v61 = vpop.f32.mrf.mxu0  ;;  %4283 = vmatmul.mubr.bf16.vlgmr.msra.gmra.mxu0 %v1047_v53  ;;  %5413 = vmatprep.subr.bf16.mxu1 %v5839_v56 }
 0x143   :  { %5392 = vmatpush3.bf16.msra.mxu0 %v5838_v55  ;;  %v5874_v55 = vld [vmem:[%s7248_s1 + $0xb30] sm:$0xff]  }
 0x144   :  { %v5100_v0 = vpop.f32.mrf.mxu0  ;;  %v5121_v1 = vpop.f32.mrf.mxu1  ;;  %4323 = vmatmul.mubr.bf16.vlgmr.msra.gmra.mxu1 %v1063_v58  ;;  %5393 = vmatprep.subr.bf16.mxu0 %v5841_v59  ;;  %v5877_v58 = vld [vmem:[%s7248_s1 + $0xb68] sm:$0xff]  }
 0x145   :  { %v5101_v3 = vadd.f32 %v5100_v0, %v5099_v61  ;;  %5414 = vmatpush3.bf16.msra.mxu1 %v5840_v57 }
 0x146   :  { %v5102_v5 = vpop.f32.mrf.mxu0  ;;  %v5122_v6 = vpop.f32.mrf.mxu1  ;;  %5415 = vmatprep.subr.bf16.mxu1 %v5843_v62 }
 0x147   :  { %v3805_v8 = vadd.f32 %v5101_v3, %v6942_v31  ;;  %v5123_v9 = vadd.f32 %v5122_v6, %v5121_v1  ;;  %5394 = vmatpush3.bf16.msra.mxu0 %v5842_v60  ;;  %v1073_v31 = vrot.slane %v21_v29, %v6065_v41  ;;  %v5876_v60 = vld [vmem:[%s7248_s1 + $0xbb0] sm:$0xff]   ;;  %v5902_v29 = vld [vmem:[%s7248_s1 + $0xc38] sm:$0xff]  }
 0x148   :  { %v5103_v11 = vpop.f32.mrf.mxu0  ;;  %5395 = vmatprep.subr.bf16.mxu0 %v5845_v2  ;;  %v5124_v13 = vpop.f32.mrf.mxu1  ;;  %v5878_v2 = vld [vmem:[%s7248_s1 + $0xb28] sm:$0xff]  }
 0x149   :  { %v7043_v14 = vadd.f32 %v5123_v9, %v3805_v8  ;;  %5416 = vmatpush3.bf16.msra.mxu1 %v5844_v63  ;;  %v1081_v35 = vcombine.high %v1073_v31, %v1073_v31  ;;  %v1089_v42 = vrot.slane %v1073_v31, %v6065_v41  ;;  %v5879_v63 = vld [vmem:[%s7248_s1 + $0xbe8] sm:$0xff]   ;;  %v5883_v8 = vld [vmem:[%s7248_s1 + $0xbe0] sm:$0xff]   ;;  %v5885_v11 = vld [vmem:[%s7248_s1 + $0xb58] sm:$0xff]  }
 0x14a   :  { %5417 = vmatprep.subr.bf16.mxu1 %v5847_v7  ;;  %v5125_v17 = vpop.f32.mrf.mxu1  ;;  %v5880_v7 = vld [vmem:[%s7248_s1 + $0xba8] sm:$0xff]   ;;  %v5887_v13 = vld [vmem:[%s7248_s1 + $0xbd8] sm:$0xff]  }
 0x14b   :  { %5396 = vmatpush3.bf16.msra.mxu0 %v5846_v4  ;;  %v1103_v39 = vrot.slane %v1081_v35, %v6065_v41  ;;  %v1111_v49 = vcombine.high %v1089_v42, %v1089_v42  ;;  %v5881_v4 = vld [vmem:[%s7248_s1 + $0xb60] sm:$0xff]   ;;  %v5891_v17 = vld [vmem:[%s7248_s1 + $0xbd0] sm:$0xff]  }
 0x14c   :  { %5397 = vmatprep.subr.bf16.mxu0 %v5849_v12  ;;  %v5884_v12 = vld [vmem:[%s7248_s1 + $0xba0] sm:$0xff]  }
 0x14d   :  { %5418 = vmatpush3.bf16.msra.mxu1 %v5848_v10  ;;  %4362 = vmatprep.mubr.bf16.mxu0 %v1103_v39  ;;  %v1113_v45 = vcombine.high %v1103_v39, %v1103_v39  ;;  %v5882_v10 = vld [vmem:[%s7248_s1 + $0xb20] sm:$0xff]  }
 0x14e   :  { %5419 = vmatprep.subr.bf16.mxu1 %v5851_v16  ;;  %v5888_v16 = vld [vmem:[%s7248_s1 + $0xb98] sm:$0xff]  }
 0x14f   :  { %5398 = vmatpush3.bf16.msra.mxu0 %v5850_v15  ;;  %4402 = vmatprep.mubr.bf16.mxu1 %v1113_v45  ;;  %v5889_v15 = vld [vmem:[%s7248_s1 + $0xb50] sm:$0xff]  }
 0x150   :  { %5399 = vmatprep.subr.bf16.mxu0 %v5853_v19  ;;  %v5893_v19 = vld [vmem:[%s7248_s1 + $0xb48] sm:$0xff]  }
 0x151   :  { %5420 = vmatpush3.bf16.msra.mxu1 %v5852_v18  ;;  %v5890_v18 = vld [vmem:[%s7248_s1 + $0xb10] sm:$0xff]  }
 0x152   :  { %5421 = vmatprep.subr.bf16.mxu1 %v5855_v21  ;;  %v5895_v21 = vld [vmem:[%s7248_s1 + $0xbc8] sm:$0xff]  }
 0x153   :  { %5400 = vmatpush3.bf16.msra.mxu0 %v5854_v20  ;;  %v5892_v20 = vld [vmem:[%s7248_s1 + $0xb90] sm:$0xff]  }
 0x154   :  { %5401 = vmatprep.subr.bf16.mxu0 %v5857_v23  ;;  %v5897_v23 = vld [vmem:[%s7248_s1 + $0xb40] sm:$0xff]  }
 0x155   :  { %5422 = vmatpush3.bf16.msra.mxu1 %v5856_v22  ;;  %v5894_v22 = vld [vmem:[%s7248_s1 + $0xb08] sm:$0xff]  }
 0x156   :  { %5423 = vmatprep.subr.bf16.mxu1 %v5859_v25  ;;  %v5899_v25 = vld [vmem:[%s7248_s1 + $0xbc0] sm:$0xff]  }
 0x157   :  { %5402 = vmatpush3.bf16.msra.mxu0 %v5858_v24  ;;  %v5896_v24 = vld [vmem:[%s7248_s1 + $0xb88] sm:$0xff]  }
 0x158   :  { %5403 = vmatprep.subr.bf16.mxu0 %v5861_v27  ;;  %v1096_v27 = vrot.slane %v7098_v36, %v6065_v41 }
 0x159   :  { %5424 = vmatpush3.bf16.msra.mxu1 %v5860_v26  ;;  %v5898_v26 = vld [vmem:[%s7248_s1 + $0xb00] sm:$0xff]  }
 0x15a   :  { %5425 = vmatprep.subr.bf16.mxu1 %v5863_v28  ;;  %v5901_v28 = vld [vmem:[%s7248_s1 + $0xb80] sm:$0xff]   ;;  %v1112_v31 = vcombine.high %v1096_v27, %v1096_v27 }
 0x15b   :  { %5404 = vmatpush3.bf16.msra.mxu0 %v5862_v30  ;;  %v5937_v30 = vmov 0.0  }
 0x15c   :  { %5405 = vmatprep.subr.bf16.mxu0 %v5865_v33 }
 0x15d   :  { %5426 = vmatpush3.bf16.msra.mxu1 %v5864_v34 }
 0x15e   :  { %5427 = vmatprep.subr.bf16.mxu1 %v5867_v37 }
 0x15f   :  { %5406 = vmatpush3.bf16.msra.mxu0 %v5866_v38 }
 0x160   :  { %5435 = vmatprep.subr.bf16.mxu0 %v5869_v43 }
 0x161   :  { %5428 = vmatpush3.bf16.msra.mxu1 %v5868_v44 }
 0x162   :  { %v5143_v53 = vpop.f32.mrf.mxu0  ;;  %4363 = vmatmul.mubr.bf16.vlgmr.msra.gmra.mxu0 %v1089_v42  ;;  %5457 = vmatprep.subr.bf16.mxu1 %v5871_v47 }
 0x163   :  { %5436 = vmatpush3.bf16.msra.mxu0 %v5870_v48  ;;  %4442 = vmatprep.mubr.bf16.mxu0 %v1110_v46 }
 0x164   :  { %v5144_v56 = vpop.f32.mrf.mxu0  ;;  %v5165_v57 = vpop.f32.mrf.mxu1  ;;  %4403 = vmatmul.mubr.bf16.vlgmr.msra.gmra.mxu1 %v1111_v49  ;;  %5437 = vmatprep.subr.bf16.mxu0 %v5873_v50 }
 0x165   :  { %v5145_v59 = vadd.f32 %v5144_v56, %v5143_v53  ;;  %5458 = vmatpush3.bf16.msra.mxu1 %v5872_v51  ;;  %4482 = vmatprep.mubr.bf16.mxu1 %v1114_v52 }
 0x166   :  { %v5146_v61 = vpop.f32.mrf.mxu0  ;;  %v5166_v62 = vpop.f32.mrf.mxu1  ;;  %5459 = vmatprep.subr.bf16.mxu1 %v5875_v54 }
 0x167   :  { %v3885_v0 = vadd.f32 %v5145_v59, %v7043_v14  ;;  %v5167_v1 = vadd.f32 %v5166_v62, %v5165_v57  ;;  %5438 = vmatpush3.bf16.msra.mxu0 %v5874_v55  ;;  %v5886_v14 = vld [vmem:[%s7248_s1 + $0xb18] sm:$0xff]  }
 0x168   :  { %v5147_v3 = vpop.f32.mrf.mxu0  ;;  %5439 = vmatprep.subr.bf16.mxu0 %v5877_v58  ;;  %v5168_v5 = vpop.f32.mrf.mxu1 }
 0x169   :  { %v7151_v6 = vadd.f32 %v5167_v1, %v3885_v0  ;;  %5460 = vmatpush3.bf16.msra.mxu1 %v5876_v60 }
 0x16a   :  { %5461 = vmatprep.subr.bf16.mxu1 %v5879_v63  ;;  %v5169_v9 = vpop.f32.mrf.mxu1 }
 0x16b   :  { %5440 = vmatpush3.bf16.msra.mxu0 %v5878_v2 }
 0x16c   :  { %5441 = vmatprep.subr.bf16.mxu0 %v5881_v4 }
 0x16d   :  { %5462 = vmatpush3.bf16.msra.mxu1 %v5880_v7 }
 0x16e   :  { %5463 = vmatprep.subr.bf16.mxu1 %v5883_v8 }
 0x16f   :  { %5442 = vmatpush3.bf16.msra.mxu0 %v5882_v10 }
 0x170   :  { %5443 = vmatprep.subr.bf16.mxu0 %v5885_v11 }
 0x171   :  { %5464 = vmatpush3.bf16.msra.mxu1 %v5884_v12 }
 0x172   :  { %5465 = vmatprep.subr.bf16.mxu1 %v5887_v13 }
 0x173   :  { %5444 = vmatpush3.bf16.msra.mxu0 %v5886_v14 }
 0x174   :  { %5445 = vmatprep.subr.bf16.mxu0 %v5889_v15 }
 0x175   :  { %5466 = vmatpush3.bf16.msra.mxu1 %v5888_v16 }
 0x176   :  { %5467 = vmatprep.subr.bf16.mxu1 %v5891_v17 }
 0x177   :  { %5446 = vmatpush3.bf16.msra.mxu0 %v5890_v18 }
 0x178   :  { %5447 = vmatprep.subr.bf16.mxu0 %v5893_v19 }
 0x179   :  { %5468 = vmatpush3.bf16.msra.mxu1 %v5892_v20 }
 0x17a   :  { %5469 = vmatprep.subr.bf16.mxu1 %v5895_v21 }
 0x17b   :  { %5448 = vmatpush3.bf16.msra.mxu0 %v5894_v22 }
 0x17c   :  { %5449 = vmatprep.subr.bf16.mxu0 %v5897_v23 }
 0x17d   :  { %5470 = vmatpush3.bf16.msra.mxu1 %v5896_v24 }
 0x17e   :  { %5471 = vmatprep.subr.bf16.mxu1 %v5899_v25 }
 0x17f   :  { %5450 = vmatpush3.bf16.msra.mxu0 %v5898_v26 }
 0x180   :  { %5488 = vmatprep.subr.bf16.mxu0 %v5937_v30 }
 0x181   :  { %8 = vsyncpa [#allocation3], 0  ;;  %5472 = vmatpush3.bf16.msra.mxu1 %v5901_v28  ;;  %v5903_v33 = vld [vmem:[%s7248_s1 + $0xc30] sm:$0xff]   ;;  %vm5938_vm0 = vmmov 0   ;;  %v5904_v42 = vld [vmem:[%s7248_s1 + $0xc28] sm:$0xff]   ;;  %vm4530_vm1 = vcmask 1041408  }
 0x182   :  { %v5187_v32 = vpop.f32.mrf.mxu0  ;;  %4443 = vmatmul.mubr.bf16.vlgmr.msra.gmra.mxu0 %v1096_v27  ;;  %v5905_v47 = vld [vmem:[%s7248_s1 + $0xc20] sm:$0xff]   ;;  %v5906_v48 = vld [vmem:[%s7248_s1 + $0xc18] sm:$0xff]   ;;  %v5907_v49 = vld [vmem:[%s7248_s1 + $0xc10] sm:$0xff]  }
 0x183   :  { %5489 = vmatpush3.bf16.msra.mxu0 %v5902_v29  ;;  %5504 = vmatprep.mubr.msk.bf16.mxu0 %vm5938_vm0, %v5937_v30  ;;  %v5908_v50 = vld [vmem:[%s7248_s1 + $0xc08] sm:$0xff]   ;;  %v5909_v51 = vld [vmem:[%s7248_s1 + $0xc00] sm:$0xff]   ;;  %v4558_v52 = vld.sshfl [vmem:[%s7247_s0 + $0x30] sm:$0x1 pattern:$0x75316420] }
 0x184   :  { %v5188_v34 = vpop.f32.mrf.mxu0  ;;  %v5209_v35 = vpop.f32.mrf.mxu1  ;;  %4483 = vmatmul.mubr.bf16.vlgmr.msra.gmra.mxu1 %v1112_v31  ;;  %5490 = vmatprep.subr.bf16.mxu0 %v5937_v30  ;;  %v1128_v53 = vrot.slane %v4558_v52, %v6065_v41  ;;  %s5939_s0 = smov [#allocation2]  }
 0x185   :  { %v5189_v36 = vadd.f32 %v5188_v34, %v5187_v32  ;;  %s4549_s1 = sshll.u32 %s5939_s0, 4  ;;  %s4550_s1 = int_to_ptr.vmem [resolvable:$true] %s4549_s1 }
 0x186   :  { %v5190_v37 = vpop.f32.mrf.mxu0  ;;  %v5210_v38 = vpop.f32.mrf.mxu1  ;;  %s5914_s17 = scalar_lea.vmem %s4550_s1, 32  ;;  %p5919_p1 = scmp.lt.s32.totalorder %s4550_s1, %s4550_s1 }
 0x187   :  { %v3965_v39 = vadd.f32 %v5189_v36, %v7151_v6  ;;  %v5211_v40 = vadd.f32 %v5210_v38, %v5209_v35  ;;  %5491 = vmatpush3.bf16.msra.mxu0 %v5903_v33  ;;  %p5915_p0 = scmp.ne.s32.totalorder %s4550_s1, %s5914_s17  ;;  %p5920_p2 = scmp.lt.s32.totalorder %s5914_s17, %s5914_s17 }
 0x188   :  { %v5191_v43 = vpop.f32.mrf.mxu0  ;;  %5492 = vmatprep.subr.bf16.mxu0 %v5937_v30  ;;  %v5212_v44 = vpop.f32.mrf.mxu1 }
 0x189   :  { %v4005_v45 = vadd.f32 %v5211_v40, %v3965_v39  ;;  %p5921_p3 = por %p5920_p2, %p5919_p1 }
 0x18a   :  { %v5213_v46 = vpop.f32.mrf.mxu1 }
 0x18b   :  { %5493 = vmatpush3.bf16.msra.mxu0 %v5904_v42  ;;  %p5922_p4 = pnand %p5921_p3, %p5915_p0 }
 0x18c   :  { %5494 = vmatprep.subr.bf16.mxu0 %v5937_v30 }
 0x18f   :  { %5495 = vmatpush3.bf16.msra.mxu0 %v5905_v47 }
 0x190   :  { %5496 = vmatprep.subr.bf16.mxu0 %v5937_v30 }
 0x193   :  { %5497 = vmatpush3.bf16.msra.mxu0 %v5906_v48 }
 0x194   :  { %5498 = vmatprep.subr.bf16.mxu0 %v5937_v30 }
 0x197   :  { %5499 = vmatpush3.bf16.msra.mxu0 %v5907_v49 }
 0x198   :  { %5500 = vmatprep.subr.bf16.mxu0 %v5937_v30 }
 0x19b   :  { %5501 = vmatpush3.bf16.msra.mxu0 %v5908_v50 }
 0x19c   :  { %5502 = vmatprep.subr.bf16.mxu0 %v5937_v30 }
 0x19f   :  { %5503 = vmatpush3.bf16.msra.mxu0 %v5909_v51 }
 0x1a2   :  { %v5231_v54 = vpop.f32.mrf.mxu0  ;;  %5505 = vmatmul.mubr.bf16.vlgmr.msra.gmra.mxu0 %v1128_v53 }
 0x1a4   :  { %v5232_v55 = vpop.f32.mrf.mxu0  ;;  %v5253_v56 = vpop.f32.mrf.mxu1 }
 0x1a5   :  { %v5233_v57 = vadd.f32 %v5232_v55, %v5231_v54 }
 0x1a6   :  { %v5234_v58 = vpop.f32.mrf.mxu0  ;;  %v5254_v59 = vpop.f32.mrf.mxu1 }
 0x1a7   :  { %v4045_v60 = vadd.f32 %v5233_v57, %v4005_v45  ;;  %v5255_v61 = vadd.f32 %v5254_v59, %v5253_v56 }
 0x1a8   :  { %v5235_v62 = vpop.f32.mrf.mxu0  ;;  %v5256_v63 = vpop.f32.mrf.mxu1 }
 0x1a9   :  { %v4085_v0 = vadd.f32 %v5255_v61, %v4045_v60 }
 0x1aa   :  { %v5257_v1 = vpop.f32.mrf.mxu1 }
 0x1c2   :  { %v5275_v2 = vpop.f32.mrf.mxu0 }
 0x1c4   :  { %v5276_v3 = vpop.f32.mrf.mxu0  ;;  %v5297_v4 = vpop.f32.mrf.mxu1 }
 0x1c5   :  { %v5277_v5 = vadd.f32 %v5276_v3, %v5275_v2 }
 0x1c6   :  { %v5278_v6 = vpop.f32.mrf.mxu0  ;;  %v5298_v41 = vpop.f32.mrf.mxu1 }
 0x1c7   :  { %v4125_v7 = vadd.f32 %v5277_v5, %v4085_v0  ;;  %v5299_v8 = vadd.f32 %v5298_v41, %v5297_v4 }
 0x1c8   :  { %v5279_v9 = vpop.f32.mrf.mxu0  ;;  %v5300_v10 = vpop.f32.mrf.mxu1 }
 0x1c9   :  { %v4165_v11 = vadd.f32 %v5299_v8, %v4125_v7 }
 0x1ca   :  { %v5301_v12 = vpop.f32.mrf.mxu1 }
 0x1e2   :  { %v5319_v13 = vpop.f32.mrf.mxu0 }
 0x1e4   :  { %v5320_v14 = vpop.f32.mrf.mxu0  ;;  %v5341_v15 = vpop.f32.mrf.mxu1 }
 0x1e5   :  { %v5321_v16 = vadd.f32 %v5320_v14, %v5319_v13 }
 0x1e6   :  { %v5322_v17 = vpop.f32.mrf.mxu0  ;;  %v5342_v18 = vpop.f32.mrf.mxu1 }
 0x1e7   :  { %v4205_v19 = vadd.f32 %v5321_v16, %v4165_v11  ;;  %v5343_v20 = vadd.f32 %v5342_v18, %v5341_v15 }
 0x1e8   :  { %v5323_v21 = vpop.f32.mrf.mxu0  ;;  %v5344_v22 = vpop.f32.mrf.mxu1 }
 0x1e9   :  { %v4245_v23 = vadd.f32 %v5343_v20, %v4205_v19 }
 0x1ea   :  { %v5345_v24 = vpop.f32.mrf.mxu1 }
 0x202   :  { %v5363_v25 = vpop.f32.mrf.mxu0 }
 0x204   :  { %v5364_v26 = vpop.f32.mrf.mxu0  ;;  %v5385_v27 = vpop.f32.mrf.mxu1 }
 0x205   :  { %v5365_v28 = vadd.f32 %v5364_v26, %v5363_v25 }
 0x206   :  { %v5366_v29 = vpop.f32.mrf.mxu0  ;;  %v5386_v30 = vpop.f32.mrf.mxu1 }
 0x207   :  { %v4285_v31 = vadd.f32 %v5365_v28, %v4245_v23  ;;  %v5387_v32 = vadd.f32 %v5386_v30, %v5385_v27 }
 0x208   :  { %v5367_v33 = vpop.f32.mrf.mxu0  ;;  %v5388_v34 = vpop.f32.mrf.mxu1 }
 0x209   :  { %v4325_v35 = vadd.f32 %v5387_v32, %v4285_v31 }
 0x20a   :  { %v5389_v36 = vpop.f32.mrf.mxu1 }
 0x222   :  { %v5407_v37 = vpop.f32.mrf.mxu0 }
 0x224   :  { %v5408_v38 = vpop.f32.mrf.mxu0  ;;  %v5429_v39 = vpop.f32.mrf.mxu1 }
 0x225   :  { %v5409_v54 = vadd.f32 %v5408_v38, %v5407_v37 }
 0x226   :  { %v5410_v40 = vpop.f32.mrf.mxu0  ;;  %v5430_v42 = vpop.f32.mrf.mxu1 }
 0x227   :  { %v4365_v55 = vadd.f32 %v5409_v54, %v4325_v35  ;;  %v5431_v56 = vadd.f32 %v5430_v42, %v5429_v39 }
 0x228   :  { %v5411_v43 = vpop.f32.mrf.mxu0  ;;  %v5432_v44 = vpop.f32.mrf.mxu1 }
 0x229   :  { %v4405_v58 = vadd.f32 %v5431_v56, %v4365_v55 }
 0x22a   :  { %v5433_v45 = vpop.f32.mrf.mxu1 }
 0x242   :  { %v5451_v46 = vpop.f32.mrf.mxu0 }
 0x244   :  { %v5452_v47 = vpop.f32.mrf.mxu0  ;;  %v5473_v48 = vpop.f32.mrf.mxu1 }
 0x245   :  { %v5453_v57 = vadd.f32 %v5452_v47, %v5451_v46 }
 0x246   :  { %v5454_v49 = vpop.f32.mrf.mxu0  ;;  %v5474_v50 = vpop.f32.mrf.mxu1 }
 0x247   :  { %v4445_v59 = vadd.f32 %v5453_v57, %v4405_v58  ;;  %v5475_v60 = vadd.f32 %v5474_v50, %v5473_v48 }
 0x248   :  { %v5455_v51 = vpop.f32.mrf.mxu0  ;;  %v5476_v52 = vpop.f32.mrf.mxu1 }
 0x249   :  { %v4485_v61 = vadd.f32 %v5475_v60, %v4445_v59 }
 0x24a   :  { %v5477_v53 = vpop.f32.mrf.mxu1 }
 0x262   :  { %v4524_v62 = vpop.f32.mrf.mxu0 }
 0x263   :  { %v4525_v63 = vadd.f32 %v4524_v62, %v4485_v61 }
 0x264   :  { %v5506_v0 = vpop.f32.mrf.mxu0 }
 0x265   :  { %v4531_v1 = vsel %vm4530_vm1, %v4525_v63, -inf }
 0x266   :  { %v4527_v2 = vpop.f32.mrf.mxu0  ;;  %4532 = vmax.xlane.f32.xlu0 %v4531_v1 }
 0x268   :  { %v5507_v3 = vpop.f32.mrf.mxu0 }
 0x2ef   :  { %v4533_v4 = vpop.xlane.xlu0 %4532 }
 0x2f0   :  { %v4534_v5 = vsub.f32 %v4525_v63, %v4533_v4 }
 0x2f2   :  { %v4535_v6 = vmul.f32 1.442695, %v4534_v5 }
 0x2f4   :  { %5910 = vpow2.f32 %v4535_v6 }
 0x301   :  { %v5911_v41 = vpop.eup %5910 }
 0x302   :  { %v4537_v7 = vsel %vm4530_vm1, %v5911_v41, 0.0 }
 0x303   :  { %4538 = vadd.xlane.f32.xlu0 %v4537_v7 }
 0x38c   :  { %v4539_v8 = vpop.xlane.xlu0 %4538 }
 0x38d   :  { %5912 = vrcp.f32 %v4539_v8 }
 0x39a   :  { %v5913_v9 = vpop.eup %5912 }
 0x39b   :  { %v4541_v10 = vmul.f32 %v5913_v9, %v5911_v41 }
 0x39d   :  { %4542 = vst [vmem:[#allocation2] sm:$0x3] %v4541_v10 }
 0x39e   :  { %5925 = shalt.err (!%p5922_p4)
}
 0x39f   :  { %4552 = dma.vmem_to_hbm [thread:$0]  %s4550_s1, 32, %s7250_s3, [#allocation3]  }
 0x3a0   :  { %5934 = dma.done.wait [#allocation3], 32  }
 0x3a1   :  { %5935 = vsyncadd [#allocation3], 4294967264 }
 0x3a2   :  { %4556 = vsyncpa [#allocation3], 1 }

</bundles_post_ra>
